<compile_context>
chip_gen: v5e
topology: v5e:2x2
jax: 0.10.0
libtpu: 0.0.40
codegen_flags: <defaults>
</compile_context>

<pallas_src>
import functools
import numpy as np
import jax
import jax.numpy as jnp
from jax import lax
from jax.experimental import pallas as pl
from jax.experimental.pallas import tpu as pltpu

EPS = 1e-5
HIGHEST = jax.lax.Precision.HIGHEST


def _round_up(x, m):
    return (x + m - 1) // m * m


# ------------------------------------------------------------------------ fused kernel ----

def _fused_cnn3d_kernel(xin_ref, mask1_ref, mask4_ref, w2r_ref, fw1_ref, fb1_ref,
                        fw2_ref, fb2_ref, sc_ref, sh_ref, w1s_ref, b1s_ref, b2s_ref,
                        out_ref, y1_ref, pz_ref, a2_ref, *,
                        cin1, cout1, cout2, k, t, h1, w1,
                        off1, off2, pool, out_dim, pzoff, l2, lz):
    pad = k // 2
    ntap = k * k * k
    hw1 = h1 * w1

    # ---- block 1: Conv3d(k^3, same) + BN(eval) + 1x1x1 shortcut, all folded into w1s/b1s.
    # Taps are static lane-slices of the flat padded input; tap-outer / cout-inner so every
    # shifted slab is loaded exactly once and reused by the 4 scalar-broadcast FMAs.
    acc1 = [jnp.zeros((t, hw1), jnp.float32) for _ in range(cout1)]
    for ci in range(cin1):
        for kd in range(k):
            for kh in range(k):
                for kw in range(k):
                    s = (kh - pad) * w1 + (kw - pad)
                    slab = xin_ref[0, ci, kd:kd + t, off1 + s:off1 + s + hw1]
                    if kw != pad:                       # flat shift crosses image rows
                        slab = slab * mask1_ref[kw:kw + 1, :]
                    base = ((ci * k + kd) * k + kh) * k + kw
                    for co in range(cout1):
                        acc1[co] = acc1[co] + w1s_ref[co * cin1 * ntap + base] * slab

    # ---- MaxPool3d((1,2,2)) + ReLU, then interleave the pool^2 pooled channel planes into
    # the 2x2 sub-positions of ONE lane-dense (t, hw1) plane (block-2 input).  Pooling uses
    # static lane-slices of a zero-margined VMEM scratch (no reshapes -> no relayouts).
    plane = jnp.zeros((t, hw1), jnp.float32)
    for co in range(cout1):
        pz_ref[co, :, 0:pzoff] = jnp.zeros((t, pzoff), jnp.float32)
        pz_ref[co, :, pzoff + hw1:lz] = jnp.zeros((t, lz - pzoff - hw1), jnp.float32)
        pz_ref[co, :, pzoff:pzoff + hw1] = acc1[co] + b1s_ref[co]
        a_, b_ = co // pool, co % pool                  # sub-position of this channel
        p0 = pzoff - a_ * w1 - b_
        m = jnp.maximum(
            jnp.maximum(pz_ref[co, :, p0:p0 + hw1],
                        pz_ref[co, :, p0 + 1:p0 + 1 + hw1]),
            jnp.maximum(pz_ref[co, :, p0 + w1:p0 + w1 + hw1],
                        pz_ref[co, :, p0 + w1 + 1:p0 + w1 + 1 + hw1]))
        plane = plane + jnp.maximum(m, 0.0) * mask4_ref[co:co + 1, :]

    # zero only the halo of y1_ref (interior is fully rewritten every grid step)
    y1_ref[0:pad, :] = jnp.zeros((pad, l2), jnp.float32)
    y1_ref[pad + t:2 * pad + t, :] = jnp.zeros((pad, l2), jnp.float32)
    y1_ref[pad:pad + t, 0:off2] = jnp.zeros((t, off2), jnp.float32)
    y1_ref[pad:pad + t, off2 + hw1:l2] = jnp.zeros((t, l2 - off2 - hw1), jnp.float32)
    y1_ref[pad:pad + t, off2:off2 + hw1] = plane

    # ---- block 2: fused conv on the channel-interleaved plane.  One tap = one full-width
    # lane slice shared by all couts; per-lane weight rows (boundary masks folded in) give
    # 100% lane density and zero SMEM scalar loads.
    acc2 = [jnp.zeros((t, hw1), jnp.float32) for _ in range(cout2)]
    for kd in range(k):
        for kh in range(k):
            for kw in range(k):
                sft = (kh - pad) * pool * w1 + (kw - pad) * pool
                slab = y1_ref[kd:kd + t, off2 + sft:off2 + sft + hw1]
                for co in range(cout2):
                    row = ((co * k + kd) * k + kh) * k + kw
                    acc2[co] = acc2[co] + w2r_ref[row:row + 1, :] * slab

    # ---- per 2x2 cell, sum the 4 interleaved per-input-channel partials, add bias; then
    # MaxPool + ReLU + AdaptiveMaxPool3d((None,1,1)) == relu(max over H,W), fused with
    # Linear(cout2 -> out_dim) as an outer-product accumulation.
    nsum = hw1 - w1 - 1
    hid = jnp.broadcast_to(fb1_ref[...], (t, out_dim)).astype(jnp.float32)
    for co in range(cout2):
        a2_ref[co, :, :] = acc2[co]
        v = (a2_ref[co, :, 0:nsum] + a2_ref[co, :, 1:1 + nsum]
             + a2_ref[co, :, w1:w1 + nsum] + a2_ref[co, :, w1 + 1:w1 + 1 + nsum])
        v = v + b2s_ref[co]
        v = jnp.where(mask4_ref[0:1, 0:nsum] > 0.5, v, -3.0e38)      # keep cell top-left lanes
        feat = jnp.maximum(jnp.max(v, axis=1, keepdims=True), 0.0)   # (t, 1)
        hid = hid + jnp.broadcast_to(feat, (t, out_dim)) * fw1_ref[co:co + 1, :]

    # ---- Linear(out_dim -> out_dim) + BatchNorm1d(num_frames, eval, folded) + Tanh.
    y = jnp.dot(hid, fw2_ref[...], precision=HIGHEST,
                preferred_element_type=jnp.float32) + fb2_ref[...]
    out_ref[0] = jnp.tanh(y * sc_ref[...] + sh_ref[...])


# ----------------------------------------------------------------------------- wrapper ----

def _fold_block(p):
    """Fold Conv3d bias + BatchNorm3d(eval) + 1x1x1 shortcut into 27-tap weights / bias."""
    a = (p['bn_g'] / jnp.sqrt(p['bn_v'] + EPS)).astype(jnp.float32)
    w_eff = p['conv_w'].astype(jnp.float32) * a[:, None, None, None, None]
    c = p['conv_w'].shape[2] // 2
    w_eff = w_eff.at[:, :, c, c, c].add(p['sc_w'].astype(jnp.float32))
    b_eff = a * (p['conv_b'] - p['bn_m']) + p['bn_b'] + p['sc_b']
    return w_eff, b_eff.astype(jnp.float32)


def _kw_masks(k, pad, h, w):
    """mask[kw, h*w] == 1 iff reading column (w + kw - pad) stays inside the image row."""
    wpos = np.arange(h * w, dtype=np.int64) % w
    rows = [((wpos + kw - pad >= 0) & (wpos + kw - pad < w)).astype(np.float32)
            for kw in range(k)]
    return np.stack(rows, axis=0)


def custom_cnn3d_spatial_forward(x, params):
    # x: (B, T, 1, H, W) — same layout as the PyTorch module input.
    B, T, cin1, H, W = x.shape
    p1, p2, ph = params['block1'], params['block2'], params['head']
    cout1 = p1['conv_w'].shape[0]
    cout2, cin2, K = p2['conv_w'].shape[:3]
    pad = K // 2
    pool = 2
    out_dim = ph['w1'].shape[0]
    assert H % pool == 0 and W % pool == 0
    assert cin2 == pool * pool and cout1 == cin2, \
        "interleaved block-2 layout assumes out_channels[0] == pool^2 (module default 4)"

    # Host-side relayout of the *input only*: NCDHW, flatten H*W onto the lane axis,
    # zero-pad T rows and lane margins so every block-1 tap is a static lane slice.
    HW1 = H * W
    L1 = _round_up(HW1 + 2 * (pad * W + pad), 128)
    off1 = (L1 - HW1) // 2
    Tp = T + 2 * pad
    xn = jnp.transpose(x, (0, 2, 1, 3, 4)).astype(jnp.float32)       # (B, cin1, T, H, W)
    xf = jnp.pad(xn.reshape(B, cin1, T, HW1),
                 ((0, 0), (0, 0), (pad, pad), (off1, L1 - HW1 - off1)))

    maxsh2 = pad * pool * W + pad * pool       # max |lane shift| of a block-2 tap (=34 here)
    off2 = _round_up(maxsh2, 128)
    L2 = _round_up(off2 + HW1 + maxsh2, 128)
    pzoff = _round_up((pool - 1) * (W + 1), 32)
    Lz = _round_up(pzoff + HW1 + (pool - 1) * (W + 1), 128)

    w1_eff, b1s = _fold_block(p1)
    w1s = w1_eff.reshape(-1)
    w2_eff, b2s = _fold_block(p2)

    # Per-lane block-2 weight rows: row ((co*K+kd)*K+kh)*K+kw, lane L -> w2_eff[co, j(L), ..]
    # where j(L) is the channel interleaved at lane L, masked to 0 where the tap falls
    # outside the pooled image (kh/kw boundary masks folded into the weights).
    Lidx = np.arange(HW1)
    a_np = (Lidx // W) % pool
    b_np = (Lidx % W) % pool
    j_np = a_np * pool + b_np
    r2_np = (Lidx // W) // pool
    c2_np = (Lidx % W) // pool
    valid = np.zeros((K, K, HW1), np.float32)
    for kh in range(K):
        for kw in range(K):
            valid[kh, kw] = (((r2_np + kh - pad) >= 0) & ((r2_np + kh - pad) < H // pool)
                             & ((c2_np + kw - pad) >= 0)
                             & ((c2_np + kw - pad) < W // pool)).astype(np.float32)
    wg = jnp.transpose(w2_eff[:, jnp.asarray(j_np), :, :, :], (0, 2, 3, 4, 1))
    w2rows = (wg * jnp.asarray(valid)[None, None]).reshape(cout2 * K ** 3, HW1)
    w2rows = w2rows.astype(jnp.float32)

    mask1 = jnp.asarray(_kw_masks(K, pad, H, W))                     # (K, HW1)
    mask4 = np.zeros((cout1, HW1), np.float32)                       # sub-position selectors
    for j in range(cout1):
        mask4[j] = ((a_np == j // pool) & (b_np == j % pool)).astype(np.float32)
    mask4 = jnp.asarray(mask4)

    sct = ph['bn_g'] / jnp.sqrt(ph['bn_v'] + EPS)                    # per-frame BN1d(eval)
    sht = ph['bn_b'] - ph['bn_m'] * sct
    sc_full = jnp.broadcast_to(sct[:, None], (T, out_dim)).astype(jnp.float32)
    sh_full = jnp.broadcast_to(sht[:, None], (T, out_dim)).astype(jnp.float32)

    kernel = functools.partial(
        _fused_cnn3d_kernel, cin1=cin1, cout1=cout1, cout2=cout2, k=K, t=T,
        h1=H, w1=W, off1=off1, off2=off2, pool=pool, out_dim=out_dim,
        pzoff=pzoff, l2=L2, lz=Lz)

    smem = pl.BlockSpec(memory_space=pltpu.MemorySpace.SMEM)
    return pl.pallas_call(
        kernel,
        out_shape=jax.ShapeDtypeStruct((B, T, out_dim), jnp.float32),
        grid=(B,),
        in_specs=[
            pl.BlockSpec((1, cin1, Tp, L1), lambda b: (b, 0, 0, 0)),   # flat padded input
            pl.BlockSpec((K, HW1), lambda b: (0, 0)),                  # block-1 kw masks
            pl.BlockSpec((cout1, HW1), lambda b: (0, 0)),              # sub-position masks
            pl.BlockSpec((cout2 * K ** 3, HW1), lambda b: (0, 0)),     # block-2 weight rows
            pl.BlockSpec((cout2, out_dim), lambda b: (0, 0)),          # fc1 weight (C, O)
            pl.BlockSpec((1, out_dim), lambda b: (0, 0)),              # fc1 bias
            pl.BlockSpec((out_dim, out_dim), lambda b: (0, 0)),        # fc2 weight (O, O)
            pl.BlockSpec((1, out_dim), lambda b: (0, 0)),              # fc2 bias
            pl.BlockSpec((T, out_dim), lambda b: (0, 0)),              # BN1d scale
            pl.BlockSpec((T, out_dim), lambda b: (0, 0)),              # BN1d shift
            smem, smem, smem,                                          # folded w1 / b1 / b2
        ],
        out_specs=pl.BlockSpec((1, T, out_dim), lambda b: (b, 0, 0)),
        scratch_shapes=[pltpu.VMEM((Tp, L2), jnp.float32),             # block-2 input plane
                        pltpu.VMEM((cout1, T, Lz), jnp.float32),       # pre-pool staging
                        pltpu.VMEM((cout2, T, HW1), jnp.float32)],     # block-2 partials
        compiler_params=pltpu.CompilerParams(dimension_semantics=("parallel",)),
    )(xf, mask1, mask4, w2rows,
      ph['w1'].T.astype(jnp.float32), ph['b1'][None, :].astype(jnp.float32),
      ph['w2'].T.astype(jnp.float32), ph['b2'][None, :].astype(jnp.float32),
      sc_full, sh_full, w1s, b1s, b2s)


# ----------------------------------------------------------------------------- params -----

def init_params(key, *, in_ch=1, channels=(4, 4), k=3, out_dim=32, T=8):
    ks = iter(jax.random.split(key, 32))

    def u(shape, s=0.3):
        return jax.random.uniform(next(ks), shape, jnp.float32, -s, s)

    def block(cin, cout):
        return dict(conv_w=u((cout, cin, k, k, k)), conv_b=u((cout,)),
                    sc_w=u((cout, cin)), sc_b=u((cout,)),
                    bn_g=1.0 + u((cout,), 0.2), bn_b=u((cout,), 0.2),
                    bn_m=u((cout,), 0.2), bn_v=1.0 + u((cout,), 0.2))

    head_params = dict(w1=u((out_dim, channels[-1])), b1=u((out_dim,)),
                       w2=u((out_dim, out_dim)), b2=u((out_dim,)),
                       bn_g=1.0 + u((T,), 0.2), bn_b=u((T,), 0.2),
                       bn_m=u((T,), 0.2), bn_v=1.0 + u((T,), 0.2))
    return dict(block1=block(in_ch, channels[0]),
                block2=block(channels[0], channels[1]),
                head=head_params)


# --------------------------------------------------------------------- pure-JAX reference -

def reference_forward(x, params):
    x = jnp.transpose(x, (0, 2, 1, 3, 4)).astype(jnp.float32)

    def block(x, p, pool, final):
        cout, cin = p['sc_w'].shape
        conv = lax.conv_general_dilated(
            x, p['conv_w'], window_strides=(1, 1, 1),
            padding=((1, 1), (1, 1), (1, 1)),
            dimension_numbers=('NCDHW', 'OIDHW', 'NCDHW'), precision=HIGHEST)
        conv = conv + p['conv_b'][None, :, None, None, None]
        res = lax.conv_general_dilated(
            x, p['sc_w'].reshape(cout, cin, 1, 1, 1), window_strides=(1, 1, 1),
            padding='VALID', dimension_numbers=('NCDHW', 'OIDHW', 'NCDHW'),
            precision=HIGHEST)
        res = res + p['sc_b'][None, :, None, None, None]
        sc = (p['bn_g'] / jnp.sqrt(p['bn_v'] + EPS))[None, :, None, None, None]
        bn = sc * (conv - p['bn_m'][None, :, None, None, None]) + p['bn_b'][None, :, None, None, None]
        y = bn + res
        y = lax.reduce_window(y, -jnp.inf, lax.max,
                              (1, 1, 1, pool, pool), (1, 1, 1, pool, pool), 'VALID')
        y = jnp.maximum(y, 0.0)
        if final:
            y = jnp.max(y, axis=(3, 4), keepdims=True)
        return y

    h = block(x, params['block1'], 2, False)
    h = block(h, params['block2'], 2, True)
    h = jnp.transpose(h, (0, 2, 1, 3, 4))
    B, T = h.shape[0], h.shape[1]
    h = h.reshape(B, T, -1)
    p = params['head']
    y = jnp.einsum('btc,oc->bto', h, p['w1'], precision=HIGHEST) + p['b1']
    y = jnp.einsum('bto,po->btp', y, p['w2'], precision=HIGHEST) + p['b2']
    sc = p['bn_g'] / jnp.sqrt(p['bn_v'] + EPS)
    y = sc[None, :, None] * (y - p['bn_m'][None, :, None]) + p['bn_b'][None, :, None]
    return jnp.tanh(y)


# ----------------------------------------------------------------------------- main -------

if __name__ == "__main__":
    B, T, H, W = 2, 8, 16, 16       # batch=2, num_frames=8, 16x16 images, 1 input channel
    OUT_DIM = 32                    # output_dim == hidden_dim (required by the fc stack)

    key = jax.random.PRNGKey(0)
    kx, kp = jax.random.split(key)
    x = jax.random.normal(kx, (B, T, 1, H, W), jnp.float32)
    params = init_params(kp, out_dim=OUT_DIM, T=T)

    out = jax.jit(custom_cnn3d_spatial_forward)(x, params)
    out = jax.block_until_ready(out)
    assert out.shape == (B, T, OUT_DIM), out.shape

    ref = reference_forward(x, params)
    assert jnp.allclose(out, ref, atol=1e-4, rtol=1e-3), float(jnp.max(jnp.abs(out - ref)))

    print("KERNEL_OK")
</pallas_src>

<mosaic_0001>
module attributes {stable_mosaic.version = 11 : i64} {
  func.func @_fused_cnn3d_kernel(%arg0: i32, %arg1: memref<1x1x10x384xf32, #tpu.memory_space<vmem>>, %arg2: memref<3x256xf32, #tpu.memory_space<vmem>>, %arg3: memref<4x256xf32, #tpu.memory_space<vmem>>, %arg4: memref<108x256xf32, #tpu.memory_space<vmem>>, %arg5: memref<4x32xf32, #tpu.memory_space<vmem>>, %arg6: memref<1x32xf32, #tpu.memory_space<vmem>>, %arg7: memref<32x32xf32, #tpu.memory_space<vmem>>, %arg8: memref<1x32xf32, #tpu.memory_space<vmem>>, %arg9: memref<8x32xf32, #tpu.memory_space<vmem>>, %arg10: memref<8x32xf32, #tpu.memory_space<vmem>>, %arg11: memref<108xf32, #tpu.memory_space<smem>>, %arg12: memref<4xf32, #tpu.memory_space<smem>>, %arg13: memref<4xf32, #tpu.memory_space<smem>>, %arg14: memref<1x8x32xf32, #tpu.memory_space<vmem>>, %arg15: memref<10x512xf32, #tpu.memory_space<vmem>>, %arg16: memref<4x8x384xf32, #tpu.memory_space<vmem>>, %arg17: memref<4x8x256xf32, #tpu.memory_space<vmem>>) attributes {dimension_semantics = [#tpu.dimension_semantics<parallel>], iteration_bounds = array<i64: 2>, scalar_prefetch = 0 : i64, scratch_operands = 3 : i64, tpu.core_type = #tpu.core_type<tc>, window_params = [{transform_indices = @transform_0, window_bounds = array<i64: 1, 1, 10, 384>}, {pipeline_mode = #tpu.pipeline_mode<synchronous>, transform_indices = @transform_1, window_bounds = array<i64: 3, 256>}, {pipeline_mode = #tpu.pipeline_mode<synchronous>, transform_indices = @transform_2, window_bounds = array<i64: 4, 256>}, {pipeline_mode = #tpu.pipeline_mode<synchronous>, transform_indices = @transform_3, window_bounds = array<i64: 108, 256>}, {pipeline_mode = #tpu.pipeline_mode<synchronous>, transform_indices = @transform_4, window_bounds = array<i64: 4, 32>}, {pipeline_mode = #tpu.pipeline_mode<synchronous>, transform_indices = @transform_5, window_bounds = array<i64: 1, 32>}, {pipeline_mode = #tpu.pipeline_mode<synchronous>, transform_indices = @transform_6, window_bounds = array<i64: 32, 32>}, {pipeline_mode = #tpu.pipeline_mode<synchronous>, transform_indices = @transform_7, window_bounds = array<i64: 1, 32>}, {pipeline_mode = #tpu.pipeline_mode<synchronous>, transform_indices = @transform_8, window_bounds = array<i64: 8, 32>}, {pipeline_mode = #tpu.pipeline_mode<synchronous>, transform_indices = @transform_9, window_bounds = array<i64: 8, 32>}, {transform_indices = @transform_10, window_bounds = array<i64: 108>}, {transform_indices = @transform_11, window_bounds = array<i64: 4>}, {transform_indices = @transform_12, window_bounds = array<i64: 4>}, {transform_indices = @transform_13, window_bounds = array<i64: 1, 8, 32>}]} {
    %cst = arith.constant 0.000000e+00 : f32
    %0 = vector.broadcast %cst : f32 to vector<8x256xf32>
    %cst_0 = arith.constant 0.000000e+00 : f32
    %1 = vector.broadcast %cst_0 : f32 to vector<8x256xf32>
    %cst_1 = arith.constant 0.000000e+00 : f32
    %2 = vector.broadcast %cst_1 : f32 to vector<8x256xf32>
    %cst_2 = arith.constant 0.000000e+00 : f32
    %3 = vector.broadcast %cst_2 : f32 to vector<8x256xf32>
    %c0 = arith.constant 0 : index
    %c0_3 = arith.constant 0 : index
    %c0_4 = arith.constant 0 : index
    %c47 = arith.constant 47 : index
    %4 = vector.load %arg1[%c0, %c0_3, %c0_4, %c47] : memref<1x1x10x384xf32, #tpu.memory_space<vmem>>, vector<1x1x8x256xf32>
    %5 = vector.shape_cast %4 : vector<1x1x8x256xf32> to vector<8x256xf32>
    %c0_5 = arith.constant 0 : index
    %c0_6 = arith.constant 0 : index
    %6 = vector.load %arg2[%c0_5, %c0_6] : memref<3x256xf32, #tpu.memory_space<vmem>>, vector<1x256xf32>
    %7 = vector.broadcast %6 : vector<1x256xf32> to vector<8x256xf32>
    %8 = arith.mulf %5, %7 : vector<8x256xf32>
    %c0_7 = arith.constant 0 : index
    %9 = memref.load %arg11[%c0_7] : memref<108xf32, #tpu.memory_space<smem>>
    %10 = vector.broadcast %9 : f32 to vector<8x256xf32>
    %11 = arith.mulf %10, %8 : vector<8x256xf32>
    %12 = arith.addf %0, %11 : vector<8x256xf32>
    %c27 = arith.constant 27 : index
    %13 = memref.load %arg11[%c27] : memref<108xf32, #tpu.memory_space<smem>>
    %14 = vector.broadcast %13 : f32 to vector<8x256xf32>
    %15 = arith.mulf %14, %8 : vector<8x256xf32>
    %16 = arith.addf %1, %15 : vector<8x256xf32>
    %c54 = arith.constant 54 : index
    %17 = memref.load %arg11[%c54] : memref<108xf32, #tpu.memory_space<smem>>
    %18 = vector.broadcast %17 : f32 to vector<8x256xf32>
    %19 = arith.mulf %18, %8 : vector<8x256xf32>
    %20 = arith.addf %2, %19 : vector<8x256xf32>
    %c81 = arith.constant 81 : index
    %21 = memref.load %arg11[%c81] : memref<108xf32, #tpu.memory_space<smem>>
    %22 = vector.broadcast %21 : f32 to vector<8x256xf32>
    %23 = arith.mulf %22, %8 : vector<8x256xf32>
    %24 = arith.addf %3, %23 : vector<8x256xf32>
    %c0_8 = arith.constant 0 : index
    %c0_9 = arith.constant 0 : index
    %c0_10 = arith.constant 0 : index
    %c48 = arith.constant 48 : index
    %25 = vector.load %arg1[%c0_8, %c0_9, %c0_10, %c48] : memref<1x1x10x384xf32, #tpu.memory_space<vmem>>, vector<1x1x8x256xf32>
    %26 = vector.shape_cast %25 : vector<1x1x8x256xf32> to vector<8x256xf32>
    %c1 = arith.constant 1 : index
    %27 = memref.load %arg11[%c1] : memref<108xf32, #tpu.memory_space<smem>>
    %28 = vector.broadcast %27 : f32 to vector<8x256xf32>
    %29 = arith.mulf %28, %26 : vector<8x256xf32>
    %30 = arith.addf %12, %29 : vector<8x256xf32>
    %c28 = arith.constant 28 : index
    %31 = memref.load %arg11[%c28] : memref<108xf32, #tpu.memory_space<smem>>
    %32 = vector.broadcast %31 : f32 to vector<8x256xf32>
    %33 = arith.mulf %32, %26 : vector<8x256xf32>
    %34 = arith.addf %16, %33 : vector<8x256xf32>
    %c55 = arith.constant 55 : index
    %35 = memref.load %arg11[%c55] : memref<108xf32, #tpu.memory_space<smem>>
    %36 = vector.broadcast %35 : f32 to vector<8x256xf32>
    %37 = arith.mulf %36, %26 : vector<8x256xf32>
    %38 = arith.addf %20, %37 : vector<8x256xf32>
    %c82 = arith.constant 82 : index
    %39 = memref.load %arg11[%c82] : memref<108xf32, #tpu.memory_space<smem>>
    %40 = vector.broadcast %39 : f32 to vector<8x256xf32>
    %41 = arith.mulf %40, %26 : vector<8x256xf32>
    %42 = arith.addf %24, %41 : vector<8x256xf32>
    %c0_11 = arith.constant 0 : index
    %c0_12 = arith.constant 0 : index
    %c0_13 = arith.constant 0 : index
    %c49 = arith.constant 49 : index
    %43 = vector.load %arg1[%c0_11, %c0_12, %c0_13, %c49] : memref<1x1x10x384xf32, #tpu.memory_space<vmem>>, vector<1x1x8x256xf32>
    %44 = vector.shape_cast %43 : vector<1x1x8x256xf32> to vector<8x256xf32>
    %c2 = arith.constant 2 : index
    %c0_14 = arith.constant 0 : index
    %45 = vector.load %arg2[%c2, %c0_14] : memref<3x256xf32, #tpu.memory_space<vmem>>, vector<1x256xf32>
    %46 = vector.broadcast %45 : vector<1x256xf32> to vector<8x256xf32>
    %47 = arith.mulf %44, %46 : vector<8x256xf32>
    %c2_15 = arith.constant 2 : index
    %48 = memref.load %arg11[%c2_15] : memref<108xf32, #tpu.memory_space<smem>>
    %49 = vector.broadcast %48 : f32 to vector<8x256xf32>
    %50 = arith.mulf %49, %47 : vector<8x256xf32>
    %51 = arith.addf %30, %50 : vector<8x256xf32>
    %c29 = arith.constant 29 : index
    %52 = memref.load %arg11[%c29] : memref<108xf32, #tpu.memory_space<smem>>
    %53 = vector.broadcast %52 : f32 to vector<8x256xf32>
    %54 = arith.mulf %53, %47 : vector<8x256xf32>
    %55 = arith.addf %34, %54 : vector<8x256xf32>
    %c56 = arith.constant 56 : index
    %56 = memref.load %arg11[%c56] : memref<108xf32, #tpu.memory_space<smem>>
    %57 = vector.broadcast %56 : f32 to vector<8x256xf32>
    %58 = arith.mulf %57, %47 : vector<8x256xf32>
    %59 = arith.addf %38, %58 : vector<8x256xf32>
    %c83 = arith.constant 83 : index
    %60 = memref.load %arg11[%c83] : memref<108xf32, #tpu.memory_space<smem>>
    %61 = vector.broadcast %60 : f32 to vector<8x256xf32>
    %62 = arith.mulf %61, %47 : vector<8x256xf32>
    %63 = arith.addf %42, %62 : vector<8x256xf32>
    %c0_16 = arith.constant 0 : index
    %c0_17 = arith.constant 0 : index
    %c0_18 = arith.constant 0 : index
    %c63 = arith.constant 63 : index
    %64 = vector.load %arg1[%c0_16, %c0_17, %c0_18, %c63] : memref<1x1x10x384xf32, #tpu.memory_space<vmem>>, vector<1x1x8x256xf32>
    %65 = vector.shape_cast %64 : vector<1x1x8x256xf32> to vector<8x256xf32>
    %c0_19 = arith.constant 0 : index
    %c0_20 = arith.constant 0 : index
    %66 = vector.load %arg2[%c0_19, %c0_20] : memref<3x256xf32, #tpu.memory_space<vmem>>, vector<1x256xf32>
    %67 = vector.broadcast %66 : vector<1x256xf32> to vector<8x256xf32>
    %68 = arith.mulf %65, %67 : vector<8x256xf32>
    %c3 = arith.constant 3 : index
    %69 = memref.load %arg11[%c3] : memref<108xf32, #tpu.memory_space<smem>>
    %70 = vector.broadcast %69 : f32 to vector<8x256xf32>
    %71 = arith.mulf %70, %68 : vector<8x256xf32>
    %72 = arith.addf %51, %71 : vector<8x256xf32>
    %c30 = arith.constant 30 : index
    %73 = memref.load %arg11[%c30] : memref<108xf32, #tpu.memory_space<smem>>
    %74 = vector.broadcast %73 : f32 to vector<8x256xf32>
    %75 = arith.mulf %74, %68 : vector<8x256xf32>
    %76 = arith.addf %55, %75 : vector<8x256xf32>
    %c57 = arith.constant 57 : index
    %77 = memref.load %arg11[%c57] : memref<108xf32, #tpu.memory_space<smem>>
    %78 = vector.broadcast %77 : f32 to vector<8x256xf32>
    %79 = arith.mulf %78, %68 : vector<8x256xf32>
    %80 = arith.addf %59, %79 : vector<8x256xf32>
    %c84 = arith.constant 84 : index
    %81 = memref.load %arg11[%c84] : memref<108xf32, #tpu.memory_space<smem>>
    %82 = vector.broadcast %81 : f32 to vector<8x256xf32>
    %83 = arith.mulf %82, %68 : vector<8x256xf32>
    %84 = arith.addf %63, %83 : vector<8x256xf32>
    %c0_21 = arith.constant 0 : index
    %c0_22 = arith.constant 0 : index
    %c0_23 = arith.constant 0 : index
    %c64 = arith.constant 64 : index
    %85 = vector.load %arg1[%c0_21, %c0_22, %c0_23, %c64] : memref<1x1x10x384xf32, #tpu.memory_space<vmem>>, vector<1x1x8x256xf32>
    %86 = vector.shape_cast %85 : vector<1x1x8x256xf32> to vector<8x256xf32>
    %c4 = arith.constant 4 : index
    %87 = memref.load %arg11[%c4] : memref<108xf32, #tpu.memory_space<smem>>
    %88 = vector.broadcast %87 : f32 to vector<8x256xf32>
    %89 = arith.mulf %88, %86 : vector<8x256xf32>
    %90 = arith.addf %72, %89 : vector<8x256xf32>
    %c31 = arith.constant 31 : index
    %91 = memref.load %arg11[%c31] : memref<108xf32, #tpu.memory_space<smem>>
    %92 = vector.broadcast %91 : f32 to vector<8x256xf32>
    %93 = arith.mulf %92, %86 : vector<8x256xf32>
    %94 = arith.addf %76, %93 : vector<8x256xf32>
    %c58 = arith.constant 58 : index
    %95 = memref.load %arg11[%c58] : memref<108xf32, #tpu.memory_space<smem>>
    %96 = vector.broadcast %95 : f32 to vector<8x256xf32>
    %97 = arith.mulf %96, %86 : vector<8x256xf32>
    %98 = arith.addf %80, %97 : vector<8x256xf32>
    %c85 = arith.constant 85 : index
    %99 = memref.load %arg11[%c85] : memref<108xf32, #tpu.memory_space<smem>>
    %100 = vector.broadcast %99 : f32 to vector<8x256xf32>
    %101 = arith.mulf %100, %86 : vector<8x256xf32>
    %102 = arith.addf %84, %101 : vector<8x256xf32>
    %c0_24 = arith.constant 0 : index
    %c0_25 = arith.constant 0 : index
    %c0_26 = arith.constant 0 : index
    %c65 = arith.constant 65 : index
    %103 = vector.load %arg1[%c0_24, %c0_25, %c0_26, %c65] : memref<1x1x10x384xf32, #tpu.memory_space<vmem>>, vector<1x1x8x256xf32>
    %104 = vector.shape_cast %103 : vector<1x1x8x256xf32> to vector<8x256xf32>
    %c2_27 = arith.constant 2 : index
    %c0_28 = arith.constant 0 : index
    %105 = vector.load %arg2[%c2_27, %c0_28] : memref<3x256xf32, #tpu.memory_space<vmem>>, vector<1x256xf32>
    %106 = vector.broadcast %105 : vector<1x256xf32> to vector<8x256xf32>
    %107 = arith.mulf %104, %106 : vector<8x256xf32>
    %c5 = arith.constant 5 : index
    %108 = memref.load %arg11[%c5] : memref<108xf32, #tpu.memory_space<smem>>
    %109 = vector.broadcast %108 : f32 to vector<8x256xf32>
    %110 = arith.mulf %109, %107 : vector<8x256xf32>
    %111 = arith.addf %90, %110 : vector<8x256xf32>
    %c32 = arith.constant 32 : index
    %112 = memref.load %arg11[%c32] : memref<108xf32, #tpu.memory_space<smem>>
    %113 = vector.broadcast %112 : f32 to vector<8x256xf32>
    %114 = arith.mulf %113, %107 : vector<8x256xf32>
    %115 = arith.addf %94, %114 : vector<8x256xf32>
    %c59 = arith.constant 59 : index
    %116 = memref.load %arg11[%c59] : memref<108xf32, #tpu.memory_space<smem>>
    %117 = vector.broadcast %116 : f32 to vector<8x256xf32>
    %118 = arith.mulf %117, %107 : vector<8x256xf32>
    %119 = arith.addf %98, %118 : vector<8x256xf32>
    %c86 = arith.constant 86 : index
    %120 = memref.load %arg11[%c86] : memref<108xf32, #tpu.memory_space<smem>>
    %121 = vector.broadcast %120 : f32 to vector<8x256xf32>
    %122 = arith.mulf %121, %107 : vector<8x256xf32>
    %123 = arith.addf %102, %122 : vector<8x256xf32>
    %c0_29 = arith.constant 0 : index
    %c0_30 = arith.constant 0 : index
    %c0_31 = arith.constant 0 : index
    %c79 = arith.constant 79 : index
    %124 = vector.load %arg1[%c0_29, %c0_30, %c0_31, %c79] : memref<1x1x10x384xf32, #tpu.memory_space<vmem>>, vector<1x1x8x256xf32>
    %125 = vector.shape_cast %124 : vector<1x1x8x256xf32> to vector<8x256xf32>
    %c0_32 = arith.constant 0 : index
    %c0_33 = arith.constant 0 : index
    %126 = vector.load %arg2[%c0_32, %c0_33] : memref<3x256xf32, #tpu.memory_space<vmem>>, vector<1x256xf32>
    %127 = vector.broadcast %126 : vector<1x256xf32> to vector<8x256xf32>
    %128 = arith.mulf %125, %127 : vector<8x256xf32>
    %c6 = arith.constant 6 : index
    %129 = memref.load %arg11[%c6] : memref<108xf32, #tpu.memory_space<smem>>
    %130 = vector.broadcast %129 : f32 to vector<8x256xf32>
    %131 = arith.mulf %130, %128 : vector<8x256xf32>
    %132 = arith.addf %111, %131 : vector<8x256xf32>
    %c33 = arith.constant 33 : index
    %133 = memref.load %arg11[%c33] : memref<108xf32, #tpu.memory_space<smem>>
    %134 = vector.broadcast %133 : f32 to vector<8x256xf32>
    %135 = arith.mulf %134, %128 : vector<8x256xf32>
    %136 = arith.addf %115, %135 : vector<8x256xf32>
    %c60 = arith.constant 60 : index
    %137 = memref.load %arg11[%c60] : memref<108xf32, #tpu.memory_space<smem>>
    %138 = vector.broadcast %137 : f32 to vector<8x256xf32>
    %139 = arith.mulf %138, %128 : vector<8x256xf32>
    %140 = arith.addf %119, %139 : vector<8x256xf32>
    %c87 = arith.constant 87 : index
    %141 = memref.load %arg11[%c87] : memref<108xf32, #tpu.memory_space<smem>>
    %142 = vector.broadcast %141 : f32 to vector<8x256xf32>
    %143 = arith.mulf %142, %128 : vector<8x256xf32>
    %144 = arith.addf %123, %143 : vector<8x256xf32>
    %c0_34 = arith.constant 0 : index
    %c0_35 = arith.constant 0 : index
    %c0_36 = arith.constant 0 : index
    %c80 = arith.constant 80 : index
    %145 = vector.load %arg1[%c0_34, %c0_35, %c0_36, %c80] : memref<1x1x10x384xf32, #tpu.memory_space<vmem>>, vector<1x1x8x256xf32>
    %146 = vector.shape_cast %145 : vector<1x1x8x256xf32> to vector<8x256xf32>
    %c7 = arith.constant 7 : index
    %147 = memref.load %arg11[%c7] : memref<108xf32, #tpu.memory_space<smem>>
    %148 = vector.broadcast %147 : f32 to vector<8x256xf32>
    %149 = arith.mulf %148, %146 : vector<8x256xf32>
    %150 = arith.addf %132, %149 : vector<8x256xf32>
    %c34 = arith.constant 34 : index
    %151 = memref.load %arg11[%c34] : memref<108xf32, #tpu.memory_space<smem>>
    %152 = vector.broadcast %151 : f32 to vector<8x256xf32>
    %153 = arith.mulf %152, %146 : vector<8x256xf32>
    %154 = arith.addf %136, %153 : vector<8x256xf32>
    %c61 = arith.constant 61 : index
    %155 = memref.load %arg11[%c61] : memref<108xf32, #tpu.memory_space<smem>>
    %156 = vector.broadcast %155 : f32 to vector<8x256xf32>
    %157 = arith.mulf %156, %146 : vector<8x256xf32>
    %158 = arith.addf %140, %157 : vector<8x256xf32>
    %c88 = arith.constant 88 : index
    %159 = memref.load %arg11[%c88] : memref<108xf32, #tpu.memory_space<smem>>
    %160 = vector.broadcast %159 : f32 to vector<8x256xf32>
    %161 = arith.mulf %160, %146 : vector<8x256xf32>
    %162 = arith.addf %144, %161 : vector<8x256xf32>
    %c0_37 = arith.constant 0 : index
    %c0_38 = arith.constant 0 : index
    %c0_39 = arith.constant 0 : index
    %c81_40 = arith.constant 81 : index
    %163 = vector.load %arg1[%c0_37, %c0_38, %c0_39, %c81_40] : memref<1x1x10x384xf32, #tpu.memory_space<vmem>>, vector<1x1x8x256xf32>
    %164 = vector.shape_cast %163 : vector<1x1x8x256xf32> to vector<8x256xf32>
    %c2_41 = arith.constant 2 : index
    %c0_42 = arith.constant 0 : index
    %165 = vector.load %arg2[%c2_41, %c0_42] : memref<3x256xf32, #tpu.memory_space<vmem>>, vector<1x256xf32>
    %166 = vector.broadcast %165 : vector<1x256xf32> to vector<8x256xf32>
    %167 = arith.mulf %164, %166 : vector<8x256xf32>
    %c8 = arith.constant 8 : index
    %168 = memref.load %arg11[%c8] : memref<108xf32, #tpu.memory_space<smem>>
    %169 = vector.broadcast %168 : f32 to vector<8x256xf32>
    %170 = arith.mulf %169, %167 : vector<8x256xf32>
    %171 = arith.addf %150, %170 : vector<8x256xf32>
    %c35 = arith.constant 35 : index
    %172 = memref.load %arg11[%c35] : memref<108xf32, #tpu.memory_space<smem>>
    %173 = vector.broadcast %172 : f32 to vector<8x256xf32>
    %174 = arith.mulf %173, %167 : vector<8x256xf32>
    %175 = arith.addf %154, %174 : vector<8x256xf32>
    %c62 = arith.constant 62 : index
    %176 = memref.load %arg11[%c62] : memref<108xf32, #tpu.memory_space<smem>>
    %177 = vector.broadcast %176 : f32 to vector<8x256xf32>
    %178 = arith.mulf %177, %167 : vector<8x256xf32>
    %179 = arith.addf %158, %178 : vector<8x256xf32>
    %c89 = arith.constant 89 : index
    %180 = memref.load %arg11[%c89] : memref<108xf32, #tpu.memory_space<smem>>
    %181 = vector.broadcast %180 : f32 to vector<8x256xf32>
    %182 = arith.mulf %181, %167 : vector<8x256xf32>
    %183 = arith.addf %162, %182 : vector<8x256xf32>
    %c0_43 = arith.constant 0 : index
    %c0_44 = arith.constant 0 : index
    %c1_45 = arith.constant 1 : index
    %c47_46 = arith.constant 47 : index
    %184 = vector.load %arg1[%c0_43, %c0_44, %c1_45, %c47_46] : memref<1x1x10x384xf32, #tpu.memory_space<vmem>>, vector<1x1x8x256xf32>
    %185 = vector.shape_cast %184 : vector<1x1x8x256xf32> to vector<8x256xf32>
    %c0_47 = arith.constant 0 : index
    %c0_48 = arith.constant 0 : index
    %186 = vector.load %arg2[%c0_47, %c0_48] : memref<3x256xf32, #tpu.memory_space<vmem>>, vector<1x256xf32>
    %187 = vector.broadcast %186 : vector<1x256xf32> to vector<8x256xf32>
    %188 = arith.mulf %185, %187 : vector<8x256xf32>
    %c9 = arith.constant 9 : index
    %189 = memref.load %arg11[%c9] : memref<108xf32, #tpu.memory_space<smem>>
    %190 = vector.broadcast %189 : f32 to vector<8x256xf32>
    %191 = arith.mulf %190, %188 : vector<8x256xf32>
    %192 = arith.addf %171, %191 : vector<8x256xf32>
    %c36 = arith.constant 36 : index
    %193 = memref.load %arg11[%c36] : memref<108xf32, #tpu.memory_space<smem>>
    %194 = vector.broadcast %193 : f32 to vector<8x256xf32>
    %195 = arith.mulf %194, %188 : vector<8x256xf32>
    %196 = arith.addf %175, %195 : vector<8x256xf32>
    %c63_49 = arith.constant 63 : index
    %197 = memref.load %arg11[%c63_49] : memref<108xf32, #tpu.memory_space<smem>>
    %198 = vector.broadcast %197 : f32 to vector<8x256xf32>
    %199 = arith.mulf %198, %188 : vector<8x256xf32>
    %200 = arith.addf %179, %199 : vector<8x256xf32>
    %c90 = arith.constant 90 : index
    %201 = memref.load %arg11[%c90] : memref<108xf32, #tpu.memory_space<smem>>
    %202 = vector.broadcast %201 : f32 to vector<8x256xf32>
    %203 = arith.mulf %202, %188 : vector<8x256xf32>
    %204 = arith.addf %183, %203 : vector<8x256xf32>
    %c0_50 = arith.constant 0 : index
    %c0_51 = arith.constant 0 : index
    %c1_52 = arith.constant 1 : index
    %c48_53 = arith.constant 48 : index
    %205 = vector.load %arg1[%c0_50, %c0_51, %c1_52, %c48_53] : memref<1x1x10x384xf32, #tpu.memory_space<vmem>>, vector<1x1x8x256xf32>
    %206 = vector.shape_cast %205 : vector<1x1x8x256xf32> to vector<8x256xf32>
    %c10 = arith.constant 10 : index
    %207 = memref.load %arg11[%c10] : memref<108xf32, #tpu.memory_space<smem>>
    %208 = vector.broadcast %207 : f32 to vector<8x256xf32>
    %209 = arith.mulf %208, %206 : vector<8x256xf32>
    %210 = arith.addf %192, %209 : vector<8x256xf32>
    %c37 = arith.constant 37 : index
    %211 = memref.load %arg11[%c37] : memref<108xf32, #tpu.memory_space<smem>>
    %212 = vector.broadcast %211 : f32 to vector<8x256xf32>
    %213 = arith.mulf %212, %206 : vector<8x256xf32>
    %214 = arith.addf %196, %213 : vector<8x256xf32>
    %c64_54 = arith.constant 64 : index
    %215 = memref.load %arg11[%c64_54] : memref<108xf32, #tpu.memory_space<smem>>
    %216 = vector.broadcast %215 : f32 to vector<8x256xf32>
    %217 = arith.mulf %216, %206 : vector<8x256xf32>
    %218 = arith.addf %200, %217 : vector<8x256xf32>
    %c91 = arith.constant 91 : index
    %219 = memref.load %arg11[%c91] : memref<108xf32, #tpu.memory_space<smem>>
    %220 = vector.broadcast %219 : f32 to vector<8x256xf32>
    %221 = arith.mulf %220, %206 : vector<8x256xf32>
    %222 = arith.addf %204, %221 : vector<8x256xf32>
    %c0_55 = arith.constant 0 : index
    %c0_56 = arith.constant 0 : index
    %c1_57 = arith.constant 1 : index
    %c49_58 = arith.constant 49 : index
    %223 = vector.load %arg1[%c0_55, %c0_56, %c1_57, %c49_58] : memref<1x1x10x384xf32, #tpu.memory_space<vmem>>, vector<1x1x8x256xf32>
    %224 = vector.shape_cast %223 : vector<1x1x8x256xf32> to vector<8x256xf32>
    %c2_59 = arith.constant 2 : index
    %c0_60 = arith.constant 0 : index
    %225 = vector.load %arg2[%c2_59, %c0_60] : memref<3x256xf32, #tpu.memory_space<vmem>>, vector<1x256xf32>
    %226 = vector.broadcast %225 : vector<1x256xf32> to vector<8x256xf32>
    %227 = arith.mulf %224, %226 : vector<8x256xf32>
    %c11 = arith.constant 11 : index
    %228 = memref.load %arg11[%c11] : memref<108xf32, #tpu.memory_space<smem>>
    %229 = vector.broadcast %228 : f32 to vector<8x256xf32>
    %230 = arith.mulf %229, %227 : vector<8x256xf32>
    %231 = arith.addf %210, %230 : vector<8x256xf32>
    %c38 = arith.constant 38 : index
    %232 = memref.load %arg11[%c38] : memref<108xf32, #tpu.memory_space<smem>>
    %233 = vector.broadcast %232 : f32 to vector<8x256xf32>
    %234 = arith.mulf %233, %227 : vector<8x256xf32>
    %235 = arith.addf %214, %234 : vector<8x256xf32>
    %c65_61 = arith.constant 65 : index
    %236 = memref.load %arg11[%c65_61] : memref<108xf32, #tpu.memory_space<smem>>
    %237 = vector.broadcast %236 : f32 to vector<8x256xf32>
    %238 = arith.mulf %237, %227 : vector<8x256xf32>
    %239 = arith.addf %218, %238 : vector<8x256xf32>
    %c92 = arith.constant 92 : index
    %240 = memref.load %arg11[%c92] : memref<108xf32, #tpu.memory_space<smem>>
    %241 = vector.broadcast %240 : f32 to vector<8x256xf32>
    %242 = arith.mulf %241, %227 : vector<8x256xf32>
    %243 = arith.addf %222, %242 : vector<8x256xf32>
    %c0_62 = arith.constant 0 : index
    %c0_63 = arith.constant 0 : index
    %c1_64 = arith.constant 1 : index
    %c63_65 = arith.constant 63 : index
    %244 = vector.load %arg1[%c0_62, %c0_63, %c1_64, %c63_65] : memref<1x1x10x384xf32, #tpu.memory_space<vmem>>, vector<1x1x8x256xf32>
    %245 = vector.shape_cast %244 : vector<1x1x8x256xf32> to vector<8x256xf32>
    %c0_66 = arith.constant 0 : index
    %c0_67 = arith.constant 0 : index
    %246 = vector.load %arg2[%c0_66, %c0_67] : memref<3x256xf32, #tpu.memory_space<vmem>>, vector<1x256xf32>
    %247 = vector.broadcast %246 : vector<1x256xf32> to vector<8x256xf32>
    %248 = arith.mulf %245, %247 : vector<8x256xf32>
    %c12 = arith.constant 12 : index
    %249 = memref.load %arg11[%c12] : memref<108xf32, #tpu.memory_space<smem>>
    %250 = vector.broadcast %249 : f32 to vector<8x256xf32>
    %251 = arith.mulf %250, %248 : vector<8x256xf32>
    %252 = arith.addf %231, %251 : vector<8x256xf32>
    %c39 = arith.constant 39 : index
    %253 = memref.load %arg11[%c39] : memref<108xf32, #tpu.memory_space<smem>>
    %254 = vector.broadcast %253 : f32 to vector<8x256xf32>
    %255 = arith.mulf %254, %248 : vector<8x256xf32>
    %256 = arith.addf %235, %255 : vector<8x256xf32>
    %c66 = arith.constant 66 : index
    %257 = memref.load %arg11[%c66] : memref<108xf32, #tpu.memory_space<smem>>
    %258 = vector.broadcast %257 : f32 to vector<8x256xf32>
    %259 = arith.mulf %258, %248 : vector<8x256xf32>
    %260 = arith.addf %239, %259 : vector<8x256xf32>
    %c93 = arith.constant 93 : index
    %261 = memref.load %arg11[%c93] : memref<108xf32, #tpu.memory_space<smem>>
    %262 = vector.broadcast %261 : f32 to vector<8x256xf32>
    %263 = arith.mulf %262, %248 : vector<8x256xf32>
    %264 = arith.addf %243, %263 : vector<8x256xf32>
    %c0_68 = arith.constant 0 : index
    %c0_69 = arith.constant 0 : index
    %c1_70 = arith.constant 1 : index
    %c64_71 = arith.constant 64 : index
    %265 = vector.load %arg1[%c0_68, %c0_69, %c1_70, %c64_71] : memref<1x1x10x384xf32, #tpu.memory_space<vmem>>, vector<1x1x8x256xf32>
    %266 = vector.shape_cast %265 : vector<1x1x8x256xf32> to vector<8x256xf32>
    %c13 = arith.constant 13 : index
    %267 = memref.load %arg11[%c13] : memref<108xf32, #tpu.memory_space<smem>>
    %268 = vector.broadcast %267 : f32 to vector<8x256xf32>
    %269 = arith.mulf %268, %266 : vector<8x256xf32>
    %270 = arith.addf %252, %269 : vector<8x256xf32>
    %c40 = arith.constant 40 : index
    %271 = memref.load %arg11[%c40] : memref<108xf32, #tpu.memory_space<smem>>
    %272 = vector.broadcast %271 : f32 to vector<8x256xf32>
    %273 = arith.mulf %272, %266 : vector<8x256xf32>
    %274 = arith.addf %256, %273 : vector<8x256xf32>
    %c67 = arith.constant 67 : index
    %275 = memref.load %arg11[%c67] : memref<108xf32, #tpu.memory_space<smem>>
    %276 = vector.broadcast %275 : f32 to vector<8x256xf32>
    %277 = arith.mulf %276, %266 : vector<8x256xf32>
    %278 = arith.addf %260, %277 : vector<8x256xf32>
    %c94 = arith.constant 94 : index
    %279 = memref.load %arg11[%c94] : memref<108xf32, #tpu.memory_space<smem>>
    %280 = vector.broadcast %279 : f32 to vector<8x256xf32>
    %281 = arith.mulf %280, %266 : vector<8x256xf32>
    %282 = arith.addf %264, %281 : vector<8x256xf32>
    %c0_72 = arith.constant 0 : index
    %c0_73 = arith.constant 0 : index
    %c1_74 = arith.constant 1 : index
    %c65_75 = arith.constant 65 : index
    %283 = vector.load %arg1[%c0_72, %c0_73, %c1_74, %c65_75] : memref<1x1x10x384xf32, #tpu.memory_space<vmem>>, vector<1x1x8x256xf32>
    %284 = vector.shape_cast %283 : vector<1x1x8x256xf32> to vector<8x256xf32>
    %c2_76 = arith.constant 2 : index
    %c0_77 = arith.constant 0 : index
    %285 = vector.load %arg2[%c2_76, %c0_77] : memref<3x256xf32, #tpu.memory_space<vmem>>, vector<1x256xf32>
    %286 = vector.broadcast %285 : vector<1x256xf32> to vector<8x256xf32>
    %287 = arith.mulf %284, %286 : vector<8x256xf32>
    %c14 = arith.constant 14 : index
    %288 = memref.load %arg11[%c14] : memref<108xf32, #tpu.memory_space<smem>>
    %289 = vector.broadcast %288 : f32 to vector<8x256xf32>
    %290 = arith.mulf %289, %287 : vector<8x256xf32>
    %291 = arith.addf %270, %290 : vector<8x256xf32>
    %c41 = arith.constant 41 : index
    %292 = memref.load %arg11[%c41] : memref<108xf32, #tpu.memory_space<smem>>
    %293 = vector.broadcast %292 : f32 to vector<8x256xf32>
    %294 = arith.mulf %293, %287 : vector<8x256xf32>
    %295 = arith.addf %274, %294 : vector<8x256xf32>
    %c68 = arith.constant 68 : index
    %296 = memref.load %arg11[%c68] : memref<108xf32, #tpu.memory_space<smem>>
    %297 = vector.broadcast %296 : f32 to vector<8x256xf32>
    %298 = arith.mulf %297, %287 : vector<8x256xf32>
    %299 = arith.addf %278, %298 : vector<8x256xf32>
    %c95 = arith.constant 95 : index
    %300 = memref.load %arg11[%c95] : memref<108xf32, #tpu.memory_space<smem>>
    %301 = vector.broadcast %300 : f32 to vector<8x256xf32>
    %302 = arith.mulf %301, %287 : vector<8x256xf32>
    %303 = arith.addf %282, %302 : vector<8x256xf32>
    %c0_78 = arith.constant 0 : index
    %c0_79 = arith.constant 0 : index
    %c1_80 = arith.constant 1 : index
    %c79_81 = arith.constant 79 : index
    %304 = vector.load %arg1[%c0_78, %c0_79, %c1_80, %c79_81] : memref<1x1x10x384xf32, #tpu.memory_space<vmem>>, vector<1x1x8x256xf32>
    %305 = vector.shape_cast %304 : vector<1x1x8x256xf32> to vector<8x256xf32>
    %c0_82 = arith.constant 0 : index
    %c0_83 = arith.constant 0 : index
    %306 = vector.load %arg2[%c0_82, %c0_83] : memref<3x256xf32, #tpu.memory_space<vmem>>, vector<1x256xf32>
    %307 = vector.broadcast %306 : vector<1x256xf32> to vector<8x256xf32>
    %308 = arith.mulf %305, %307 : vector<8x256xf32>
    %c15 = arith.constant 15 : index
    %309 = memref.load %arg11[%c15] : memref<108xf32, #tpu.memory_space<smem>>
    %310 = vector.broadcast %309 : f32 to vector<8x256xf32>
    %311 = arith.mulf %310, %308 : vector<8x256xf32>
    %312 = arith.addf %291, %311 : vector<8x256xf32>
    %c42 = arith.constant 42 : index
    %313 = memref.load %arg11[%c42] : memref<108xf32, #tpu.memory_space<smem>>
    %314 = vector.broadcast %313 : f32 to vector<8x256xf32>
    %315 = arith.mulf %314, %308 : vector<8x256xf32>
    %316 = arith.addf %295, %315 : vector<8x256xf32>
    %c69 = arith.constant 69 : index
    %317 = memref.load %arg11[%c69] : memref<108xf32, #tpu.memory_space<smem>>
    %318 = vector.broadcast %317 : f32 to vector<8x256xf32>
    %319 = arith.mulf %318, %308 : vector<8x256xf32>
    %320 = arith.addf %299, %319 : vector<8x256xf32>
    %c96 = arith.constant 96 : index
    %321 = memref.load %arg11[%c96] : memref<108xf32, #tpu.memory_space<smem>>
    %322 = vector.broadcast %321 : f32 to vector<8x256xf32>
    %323 = arith.mulf %322, %308 : vector<8x256xf32>
    %324 = arith.addf %303, %323 : vector<8x256xf32>
    %c0_84 = arith.constant 0 : index
    %c0_85 = arith.constant 0 : index
    %c1_86 = arith.constant 1 : index
    %c80_87 = arith.constant 80 : index
    %325 = vector.load %arg1[%c0_84, %c0_85, %c1_86, %c80_87] : memref<1x1x10x384xf32, #tpu.memory_space<vmem>>, vector<1x1x8x256xf32>
    %326 = vector.shape_cast %325 : vector<1x1x8x256xf32> to vector<8x256xf32>
    %c16 = arith.constant 16 : index
    %327 = memref.load %arg11[%c16] : memref<108xf32, #tpu.memory_space<smem>>
    %328 = vector.broadcast %327 : f32 to vector<8x256xf32>
    %329 = arith.mulf %328, %326 : vector<8x256xf32>
    %330 = arith.addf %312, %329 : vector<8x256xf32>
    %c43 = arith.constant 43 : index
    %331 = memref.load %arg11[%c43] : memref<108xf32, #tpu.memory_space<smem>>
    %332 = vector.broadcast %331 : f32 to vector<8x256xf32>
    %333 = arith.mulf %332, %326 : vector<8x256xf32>
    %334 = arith.addf %316, %333 : vector<8x256xf32>
    %c70 = arith.constant 70 : index
    %335 = memref.load %arg11[%c70] : memref<108xf32, #tpu.memory_space<smem>>
    %336 = vector.broadcast %335 : f32 to vector<8x256xf32>
    %337 = arith.mulf %336, %326 : vector<8x256xf32>
    %338 = arith.addf %320, %337 : vector<8x256xf32>
    %c97 = arith.constant 97 : index
    %339 = memref.load %arg11[%c97] : memref<108xf32, #tpu.memory_space<smem>>
    %340 = vector.broadcast %339 : f32 to vector<8x256xf32>
    %341 = arith.mulf %340, %326 : vector<8x256xf32>
    %342 = arith.addf %324, %341 : vector<8x256xf32>
    %c0_88 = arith.constant 0 : index
    %c0_89 = arith.constant 0 : index
    %c1_90 = arith.constant 1 : index
    %c81_91 = arith.constant 81 : index
    %343 = vector.load %arg1[%c0_88, %c0_89, %c1_90, %c81_91] : memref<1x1x10x384xf32, #tpu.memory_space<vmem>>, vector<1x1x8x256xf32>
    %344 = vector.shape_cast %343 : vector<1x1x8x256xf32> to vector<8x256xf32>
    %c2_92 = arith.constant 2 : index
    %c0_93 = arith.constant 0 : index
    %345 = vector.load %arg2[%c2_92, %c0_93] : memref<3x256xf32, #tpu.memory_space<vmem>>, vector<1x256xf32>
    %346 = vector.broadcast %345 : vector<1x256xf32> to vector<8x256xf32>
    %347 = arith.mulf %344, %346 : vector<8x256xf32>
    %c17 = arith.constant 17 : index
    %348 = memref.load %arg11[%c17] : memref<108xf32, #tpu.memory_space<smem>>
    %349 = vector.broadcast %348 : f32 to vector<8x256xf32>
    %350 = arith.mulf %349, %347 : vector<8x256xf32>
    %351 = arith.addf %330, %350 : vector<8x256xf32>
    %c44 = arith.constant 44 : index
    %352 = memref.load %arg11[%c44] : memref<108xf32, #tpu.memory_space<smem>>
    %353 = vector.broadcast %352 : f32 to vector<8x256xf32>
    %354 = arith.mulf %353, %347 : vector<8x256xf32>
    %355 = arith.addf %334, %354 : vector<8x256xf32>
    %c71 = arith.constant 71 : index
    %356 = memref.load %arg11[%c71] : memref<108xf32, #tpu.memory_space<smem>>
    %357 = vector.broadcast %356 : f32 to vector<8x256xf32>
    %358 = arith.mulf %357, %347 : vector<8x256xf32>
    %359 = arith.addf %338, %358 : vector<8x256xf32>
    %c98 = arith.constant 98 : index
    %360 = memref.load %arg11[%c98] : memref<108xf32, #tpu.memory_space<smem>>
    %361 = vector.broadcast %360 : f32 to vector<8x256xf32>
    %362 = arith.mulf %361, %347 : vector<8x256xf32>
    %363 = arith.addf %342, %362 : vector<8x256xf32>
    %c0_94 = arith.constant 0 : index
    %c0_95 = arith.constant 0 : index
    %c2_96 = arith.constant 2 : index
    %c47_97 = arith.constant 47 : index
    %364 = vector.load %arg1[%c0_94, %c0_95, %c2_96, %c47_97] : memref<1x1x10x384xf32, #tpu.memory_space<vmem>>, vector<1x1x8x256xf32>
    %365 = vector.shape_cast %364 : vector<1x1x8x256xf32> to vector<8x256xf32>
    %c0_98 = arith.constant 0 : index
    %c0_99 = arith.constant 0 : index
    %366 = vector.load %arg2[%c0_98, %c0_99] : memref<3x256xf32, #tpu.memory_space<vmem>>, vector<1x256xf32>
    %367 = vector.broadcast %366 : vector<1x256xf32> to vector<8x256xf32>
    %368 = arith.mulf %365, %367 : vector<8x256xf32>
    %c18 = arith.constant 18 : index
    %369 = memref.load %arg11[%c18] : memref<108xf32, #tpu.memory_space<smem>>
    %370 = vector.broadcast %369 : f32 to vector<8x256xf32>
    %371 = arith.mulf %370, %368 : vector<8x256xf32>
    %372 = arith.addf %351, %371 : vector<8x256xf32>
    %c45 = arith.constant 45 : index
    %373 = memref.load %arg11[%c45] : memref<108xf32, #tpu.memory_space<smem>>
    %374 = vector.broadcast %373 : f32 to vector<8x256xf32>
    %375 = arith.mulf %374, %368 : vector<8x256xf32>
    %376 = arith.addf %355, %375 : vector<8x256xf32>
    %c72 = arith.constant 72 : index
    %377 = memref.load %arg11[%c72] : memref<108xf32, #tpu.memory_space<smem>>
    %378 = vector.broadcast %377 : f32 to vector<8x256xf32>
    %379 = arith.mulf %378, %368 : vector<8x256xf32>
    %380 = arith.addf %359, %379 : vector<8x256xf32>
    %c99 = arith.constant 99 : index
    %381 = memref.load %arg11[%c99] : memref<108xf32, #tpu.memory_space<smem>>
    %382 = vector.broadcast %381 : f32 to vector<8x256xf32>
    %383 = arith.mulf %382, %368 : vector<8x256xf32>
    %384 = arith.addf %363, %383 : vector<8x256xf32>
    %c0_100 = arith.constant 0 : index
    %c0_101 = arith.constant 0 : index
    %c2_102 = arith.constant 2 : index
    %c48_103 = arith.constant 48 : index
    %385 = vector.load %arg1[%c0_100, %c0_101, %c2_102, %c48_103] : memref<1x1x10x384xf32, #tpu.memory_space<vmem>>, vector<1x1x8x256xf32>
    %386 = vector.shape_cast %385 : vector<1x1x8x256xf32> to vector<8x256xf32>
    %c19 = arith.constant 19 : index
    %387 = memref.load %arg11[%c19] : memref<108xf32, #tpu.memory_space<smem>>
    %388 = vector.broadcast %387 : f32 to vector<8x256xf32>
    %389 = arith.mulf %388, %386 : vector<8x256xf32>
    %390 = arith.addf %372, %389 : vector<8x256xf32>
    %c46 = arith.constant 46 : index
    %391 = memref.load %arg11[%c46] : memref<108xf32, #tpu.memory_space<smem>>
    %392 = vector.broadcast %391 : f32 to vector<8x256xf32>
    %393 = arith.mulf %392, %386 : vector<8x256xf32>
    %394 = arith.addf %376, %393 : vector<8x256xf32>
    %c73 = arith.constant 73 : index
    %395 = memref.load %arg11[%c73] : memref<108xf32, #tpu.memory_space<smem>>
    %396 = vector.broadcast %395 : f32 to vector<8x256xf32>
    %397 = arith.mulf %396, %386 : vector<8x256xf32>
    %398 = arith.addf %380, %397 : vector<8x256xf32>
    %c100 = arith.constant 100 : index
    %399 = memref.load %arg11[%c100] : memref<108xf32, #tpu.memory_space<smem>>
    %400 = vector.broadcast %399 : f32 to vector<8x256xf32>
    %401 = arith.mulf %400, %386 : vector<8x256xf32>
    %402 = arith.addf %384, %401 : vector<8x256xf32>
    %c0_104 = arith.constant 0 : index
    %c0_105 = arith.constant 0 : index
    %c2_106 = arith.constant 2 : index
    %c49_107 = arith.constant 49 : index
    %403 = vector.load %arg1[%c0_104, %c0_105, %c2_106, %c49_107] : memref<1x1x10x384xf32, #tpu.memory_space<vmem>>, vector<1x1x8x256xf32>
    %404 = vector.shape_cast %403 : vector<1x1x8x256xf32> to vector<8x256xf32>
    %c2_108 = arith.constant 2 : index
    %c0_109 = arith.constant 0 : index
    %405 = vector.load %arg2[%c2_108, %c0_109] : memref<3x256xf32, #tpu.memory_space<vmem>>, vector<1x256xf32>
    %406 = vector.broadcast %405 : vector<1x256xf32> to vector<8x256xf32>
    %407 = arith.mulf %404, %406 : vector<8x256xf32>
    %c20 = arith.constant 20 : index
    %408 = memref.load %arg11[%c20] : memref<108xf32, #tpu.memory_space<smem>>
    %409 = vector.broadcast %408 : f32 to vector<8x256xf32>
    %410 = arith.mulf %409, %407 : vector<8x256xf32>
    %411 = arith.addf %390, %410 : vector<8x256xf32>
    %c47_110 = arith.constant 47 : index
    %412 = memref.load %arg11[%c47_110] : memref<108xf32, #tpu.memory_space<smem>>
    %413 = vector.broadcast %412 : f32 to vector<8x256xf32>
    %414 = arith.mulf %413, %407 : vector<8x256xf32>
    %415 = arith.addf %394, %414 : vector<8x256xf32>
    %c74 = arith.constant 74 : index
    %416 = memref.load %arg11[%c74] : memref<108xf32, #tpu.memory_space<smem>>
    %417 = vector.broadcast %416 : f32 to vector<8x256xf32>
    %418 = arith.mulf %417, %407 : vector<8x256xf32>
    %419 = arith.addf %398, %418 : vector<8x256xf32>
    %c101 = arith.constant 101 : index
    %420 = memref.load %arg11[%c101] : memref<108xf32, #tpu.memory_space<smem>>
    %421 = vector.broadcast %420 : f32 to vector<8x256xf32>
    %422 = arith.mulf %421, %407 : vector<8x256xf32>
    %423 = arith.addf %402, %422 : vector<8x256xf32>
    %c0_111 = arith.constant 0 : index
    %c0_112 = arith.constant 0 : index
    %c2_113 = arith.constant 2 : index
    %c63_114 = arith.constant 63 : index
    %424 = vector.load %arg1[%c0_111, %c0_112, %c2_113, %c63_114] : memref<1x1x10x384xf32, #tpu.memory_space<vmem>>, vector<1x1x8x256xf32>
    %425 = vector.shape_cast %424 : vector<1x1x8x256xf32> to vector<8x256xf32>
    %c0_115 = arith.constant 0 : index
    %c0_116 = arith.constant 0 : index
    %426 = vector.load %arg2[%c0_115, %c0_116] : memref<3x256xf32, #tpu.memory_space<vmem>>, vector<1x256xf32>
    %427 = vector.broadcast %426 : vector<1x256xf32> to vector<8x256xf32>
    %428 = arith.mulf %425, %427 : vector<8x256xf32>
    %c21 = arith.constant 21 : index
    %429 = memref.load %arg11[%c21] : memref<108xf32, #tpu.memory_space<smem>>
    %430 = vector.broadcast %429 : f32 to vector<8x256xf32>
    %431 = arith.mulf %430, %428 : vector<8x256xf32>
    %432 = arith.addf %411, %431 : vector<8x256xf32>
    %c48_117 = arith.constant 48 : index
    %433 = memref.load %arg11[%c48_117] : memref<108xf32, #tpu.memory_space<smem>>
    %434 = vector.broadcast %433 : f32 to vector<8x256xf32>
    %435 = arith.mulf %434, %428 : vector<8x256xf32>
    %436 = arith.addf %415, %435 : vector<8x256xf32>
    %c75 = arith.constant 75 : index
    %437 = memref.load %arg11[%c75] : memref<108xf32, #tpu.memory_space<smem>>
    %438 = vector.broadcast %437 : f32 to vector<8x256xf32>
    %439 = arith.mulf %438, %428 : vector<8x256xf32>
    %440 = arith.addf %419, %439 : vector<8x256xf32>
    %c102 = arith.constant 102 : index
    %441 = memref.load %arg11[%c102] : memref<108xf32, #tpu.memory_space<smem>>
    %442 = vector.broadcast %441 : f32 to vector<8x256xf32>
    %443 = arith.mulf %442, %428 : vector<8x256xf32>
    %444 = arith.addf %423, %443 : vector<8x256xf32>
    %c0_118 = arith.constant 0 : index
    %c0_119 = arith.constant 0 : index
    %c2_120 = arith.constant 2 : index
    %c64_121 = arith.constant 64 : index
    %445 = vector.load %arg1[%c0_118, %c0_119, %c2_120, %c64_121] : memref<1x1x10x384xf32, #tpu.memory_space<vmem>>, vector<1x1x8x256xf32>
    %446 = vector.shape_cast %445 : vector<1x1x8x256xf32> to vector<8x256xf32>
    %c22 = arith.constant 22 : index
    %447 = memref.load %arg11[%c22] : memref<108xf32, #tpu.memory_space<smem>>
    %448 = vector.broadcast %447 : f32 to vector<8x256xf32>
    %449 = arith.mulf %448, %446 : vector<8x256xf32>
    %450 = arith.addf %432, %449 : vector<8x256xf32>
    %c49_122 = arith.constant 49 : index
    %451 = memref.load %arg11[%c49_122] : memref<108xf32, #tpu.memory_space<smem>>
    %452 = vector.broadcast %451 : f32 to vector<8x256xf32>
    %453 = arith.mulf %452, %446 : vector<8x256xf32>
    %454 = arith.addf %436, %453 : vector<8x256xf32>
    %c76 = arith.constant 76 : index
    %455 = memref.load %arg11[%c76] : memref<108xf32, #tpu.memory_space<smem>>
    %456 = vector.broadcast %455 : f32 to vector<8x256xf32>
    %457 = arith.mulf %456, %446 : vector<8x256xf32>
    %458 = arith.addf %440, %457 : vector<8x256xf32>
    %c103 = arith.constant 103 : index
    %459 = memref.load %arg11[%c103] : memref<108xf32, #tpu.memory_space<smem>>
    %460 = vector.broadcast %459 : f32 to vector<8x256xf32>
    %461 = arith.mulf %460, %446 : vector<8x256xf32>
    %462 = arith.addf %444, %461 : vector<8x256xf32>
    %c0_123 = arith.constant 0 : index
    %c0_124 = arith.constant 0 : index
    %c2_125 = arith.constant 2 : index
    %c65_126 = arith.constant 65 : index
    %463 = vector.load %arg1[%c0_123, %c0_124, %c2_125, %c65_126] : memref<1x1x10x384xf32, #tpu.memory_space<vmem>>, vector<1x1x8x256xf32>
    %464 = vector.shape_cast %463 : vector<1x1x8x256xf32> to vector<8x256xf32>
    %c2_127 = arith.constant 2 : index
    %c0_128 = arith.constant 0 : index
    %465 = vector.load %arg2[%c2_127, %c0_128] : memref<3x256xf32, #tpu.memory_space<vmem>>, vector<1x256xf32>
    %466 = vector.broadcast %465 : vector<1x256xf32> to vector<8x256xf32>
    %467 = arith.mulf %464, %466 : vector<8x256xf32>
    %c23 = arith.constant 23 : index
    %468 = memref.load %arg11[%c23] : memref<108xf32, #tpu.memory_space<smem>>
    %469 = vector.broadcast %468 : f32 to vector<8x256xf32>
    %470 = arith.mulf %469, %467 : vector<8x256xf32>
    %471 = arith.addf %450, %470 : vector<8x256xf32>
    %c50 = arith.constant 50 : index
    %472 = memref.load %arg11[%c50] : memref<108xf32, #tpu.memory_space<smem>>
    %473 = vector.broadcast %472 : f32 to vector<8x256xf32>
    %474 = arith.mulf %473, %467 : vector<8x256xf32>
    %475 = arith.addf %454, %474 : vector<8x256xf32>
    %c77 = arith.constant 77 : index
    %476 = memref.load %arg11[%c77] : memref<108xf32, #tpu.memory_space<smem>>
    %477 = vector.broadcast %476 : f32 to vector<8x256xf32>
    %478 = arith.mulf %477, %467 : vector<8x256xf32>
    %479 = arith.addf %458, %478 : vector<8x256xf32>
    %c104 = arith.constant 104 : index
    %480 = memref.load %arg11[%c104] : memref<108xf32, #tpu.memory_space<smem>>
    %481 = vector.broadcast %480 : f32 to vector<8x256xf32>
    %482 = arith.mulf %481, %467 : vector<8x256xf32>
    %483 = arith.addf %462, %482 : vector<8x256xf32>
    %c0_129 = arith.constant 0 : index
    %c0_130 = arith.constant 0 : index
    %c2_131 = arith.constant 2 : index
    %c79_132 = arith.constant 79 : index
    %484 = vector.load %arg1[%c0_129, %c0_130, %c2_131, %c79_132] : memref<1x1x10x384xf32, #tpu.memory_space<vmem>>, vector<1x1x8x256xf32>
    %485 = vector.shape_cast %484 : vector<1x1x8x256xf32> to vector<8x256xf32>
    %c0_133 = arith.constant 0 : index
    %c0_134 = arith.constant 0 : index
    %486 = vector.load %arg2[%c0_133, %c0_134] : memref<3x256xf32, #tpu.memory_space<vmem>>, vector<1x256xf32>
    %487 = vector.broadcast %486 : vector<1x256xf32> to vector<8x256xf32>
    %488 = arith.mulf %485, %487 : vector<8x256xf32>
    %c24 = arith.constant 24 : index
    %489 = memref.load %arg11[%c24] : memref<108xf32, #tpu.memory_space<smem>>
    %490 = vector.broadcast %489 : f32 to vector<8x256xf32>
    %491 = arith.mulf %490, %488 : vector<8x256xf32>
    %492 = arith.addf %471, %491 : vector<8x256xf32>
    %c51 = arith.constant 51 : index
    %493 = memref.load %arg11[%c51] : memref<108xf32, #tpu.memory_space<smem>>
    %494 = vector.broadcast %493 : f32 to vector<8x256xf32>
    %495 = arith.mulf %494, %488 : vector<8x256xf32>
    %496 = arith.addf %475, %495 : vector<8x256xf32>
    %c78 = arith.constant 78 : index
    %497 = memref.load %arg11[%c78] : memref<108xf32, #tpu.memory_space<smem>>
    %498 = vector.broadcast %497 : f32 to vector<8x256xf32>
    %499 = arith.mulf %498, %488 : vector<8x256xf32>
    %500 = arith.addf %479, %499 : vector<8x256xf32>
    %c105 = arith.constant 105 : index
    %501 = memref.load %arg11[%c105] : memref<108xf32, #tpu.memory_space<smem>>
    %502 = vector.broadcast %501 : f32 to vector<8x256xf32>
    %503 = arith.mulf %502, %488 : vector<8x256xf32>
    %504 = arith.addf %483, %503 : vector<8x256xf32>
    %c0_135 = arith.constant 0 : index
    %c0_136 = arith.constant 0 : index
    %c2_137 = arith.constant 2 : index
    %c80_138 = arith.constant 80 : index
    %505 = vector.load %arg1[%c0_135, %c0_136, %c2_137, %c80_138] : memref<1x1x10x384xf32, #tpu.memory_space<vmem>>, vector<1x1x8x256xf32>
    %506 = vector.shape_cast %505 : vector<1x1x8x256xf32> to vector<8x256xf32>
    %c25 = arith.constant 25 : index
    %507 = memref.load %arg11[%c25] : memref<108xf32, #tpu.memory_space<smem>>
    %508 = vector.broadcast %507 : f32 to vector<8x256xf32>
    %509 = arith.mulf %508, %506 : vector<8x256xf32>
    %510 = arith.addf %492, %509 : vector<8x256xf32>
    %c52 = arith.constant 52 : index
    %511 = memref.load %arg11[%c52] : memref<108xf32, #tpu.memory_space<smem>>
    %512 = vector.broadcast %511 : f32 to vector<8x256xf32>
    %513 = arith.mulf %512, %506 : vector<8x256xf32>
    %514 = arith.addf %496, %513 : vector<8x256xf32>
    %c79_139 = arith.constant 79 : index
    %515 = memref.load %arg11[%c79_139] : memref<108xf32, #tpu.memory_space<smem>>
    %516 = vector.broadcast %515 : f32 to vector<8x256xf32>
    %517 = arith.mulf %516, %506 : vector<8x256xf32>
    %518 = arith.addf %500, %517 : vector<8x256xf32>
    %c106 = arith.constant 106 : index
    %519 = memref.load %arg11[%c106] : memref<108xf32, #tpu.memory_space<smem>>
    %520 = vector.broadcast %519 : f32 to vector<8x256xf32>
    %521 = arith.mulf %520, %506 : vector<8x256xf32>
    %522 = arith.addf %504, %521 : vector<8x256xf32>
    %c0_140 = arith.constant 0 : index
    %c0_141 = arith.constant 0 : index
    %c2_142 = arith.constant 2 : index
    %c81_143 = arith.constant 81 : index
    %523 = vector.load %arg1[%c0_140, %c0_141, %c2_142, %c81_143] : memref<1x1x10x384xf32, #tpu.memory_space<vmem>>, vector<1x1x8x256xf32>
    %524 = vector.shape_cast %523 : vector<1x1x8x256xf32> to vector<8x256xf32>
    %c2_144 = arith.constant 2 : index
    %c0_145 = arith.constant 0 : index
    %525 = vector.load %arg2[%c2_144, %c0_145] : memref<3x256xf32, #tpu.memory_space<vmem>>, vector<1x256xf32>
    %526 = vector.broadcast %525 : vector<1x256xf32> to vector<8x256xf32>
    %527 = arith.mulf %524, %526 : vector<8x256xf32>
    %c26 = arith.constant 26 : index
    %528 = memref.load %arg11[%c26] : memref<108xf32, #tpu.memory_space<smem>>
    %529 = vector.broadcast %528 : f32 to vector<8x256xf32>
    %530 = arith.mulf %529, %527 : vector<8x256xf32>
    %531 = arith.addf %510, %530 : vector<8x256xf32>
    %c53 = arith.constant 53 : index
    %532 = memref.load %arg11[%c53] : memref<108xf32, #tpu.memory_space<smem>>
    %533 = vector.broadcast %532 : f32 to vector<8x256xf32>
    %534 = arith.mulf %533, %527 : vector<8x256xf32>
    %535 = arith.addf %514, %534 : vector<8x256xf32>
    %c80_146 = arith.constant 80 : index
    %536 = memref.load %arg11[%c80_146] : memref<108xf32, #tpu.memory_space<smem>>
    %537 = vector.broadcast %536 : f32 to vector<8x256xf32>
    %538 = arith.mulf %537, %527 : vector<8x256xf32>
    %539 = arith.addf %518, %538 : vector<8x256xf32>
    %c107 = arith.constant 107 : index
    %540 = memref.load %arg11[%c107] : memref<108xf32, #tpu.memory_space<smem>>
    %541 = vector.broadcast %540 : f32 to vector<8x256xf32>
    %542 = arith.mulf %541, %527 : vector<8x256xf32>
    %543 = arith.addf %522, %542 : vector<8x256xf32>
    %cst_147 = arith.constant 0.000000e+00 : f32
    %544 = vector.broadcast %cst_147 : f32 to vector<8x256xf32>
    %cst_148 = arith.constant 0.000000e+00 : f32
    %545 = vector.broadcast %cst_148 : f32 to vector<8x32xf32>
    %c0_149 = arith.constant 0 : index
    %c0_150 = arith.constant 0 : index
    %c0_151 = arith.constant 0 : index
    %546 = vector.load %arg16[%c0_149, %c0_150, %c0_151] : memref<4x8x384xf32, #tpu.memory_space<vmem>>, vector<1x8x32xf32>
    %547 = vector.shape_cast %546 : vector<1x8x32xf32> to vector<8x32xf32>
    %548 = vector.shape_cast %545 : vector<8x32xf32> to vector<1x8x32xf32>
    tpu.vector_store %arg16[%c0_149, %c0_150, %c0_151], %548 {strides = array<i32>} : memref<4x8x384xf32, #tpu.memory_space<vmem>>, vector<1x8x32xf32>,
    %cst_152 = arith.constant 0.000000e+00 : f32
    %549 = vector.broadcast %cst_152 : f32 to vector<8x96xf32>
    %c0_153 = arith.constant 0 : index
    %c0_154 = arith.constant 0 : index
    %c288 = arith.constant 288 : index
    %550 = vector.load %arg16[%c0_153, %c0_154, %c288] : memref<4x8x384xf32, #tpu.memory_space<vmem>>, vector<1x8x96xf32>
    %551 = vector.shape_cast %550 : vector<1x8x96xf32> to vector<8x96xf32>
    %552 = vector.shape_cast %549 : vector<8x96xf32> to vector<1x8x96xf32>
    tpu.vector_store %arg16[%c0_153, %c0_154, %c288], %552 {strides = array<i32>} : memref<4x8x384xf32, #tpu.memory_space<vmem>>, vector<1x8x96xf32>,
    %c0_155 = arith.constant 0 : index
    %553 = memref.load %arg12[%c0_155] : memref<4xf32, #tpu.memory_space<smem>>
    %554 = vector.broadcast %553 : f32 to vector<8x256xf32>
    %555 = arith.addf %531, %554 : vector<8x256xf32>
    %c0_156 = arith.constant 0 : index
    %c0_157 = arith.constant 0 : index
    %c32_158 = arith.constant 32 : index
    %556 = vector.load %arg16[%c0_156, %c0_157, %c32_158] : memref<4x8x384xf32, #tpu.memory_space<vmem>>, vector<1x8x256xf32>
    %557 = vector.shape_cast %556 : vector<1x8x256xf32> to vector<8x256xf32>
    %558 = vector.shape_cast %555 : vector<8x256xf32> to vector<1x8x256xf32>
    tpu.vector_store %arg16[%c0_156, %c0_157, %c32_158], %558 {strides = array<i32>} : memref<4x8x384xf32, #tpu.memory_space<vmem>>, vector<1x8x256xf32>,
    %c0_159 = arith.constant 0 : index
    %c0_160 = arith.constant 0 : index
    %c32_161 = arith.constant 32 : index
    %559 = vector.load %arg16[%c0_159, %c0_160, %c32_161] : memref<4x8x384xf32, #tpu.memory_space<vmem>>, vector<1x8x256xf32>
    %560 = vector.shape_cast %559 : vector<1x8x256xf32> to vector<8x256xf32>
    %c0_162 = arith.constant 0 : index
    %c0_163 = arith.constant 0 : index
    %c33_164 = arith.constant 33 : index
    %561 = vector.load %arg16[%c0_162, %c0_163, %c33_164] : memref<4x8x384xf32, #tpu.memory_space<vmem>>, vector<1x8x256xf32>
    %562 = vector.shape_cast %561 : vector<1x8x256xf32> to vector<8x256xf32>
    %563 = arith.maximumf %560, %562 : vector<8x256xf32>
    %c0_165 = arith.constant 0 : index
    %c0_166 = arith.constant 0 : index
    %c48_167 = arith.constant 48 : index
    %564 = vector.load %arg16[%c0_165, %c0_166, %c48_167] : memref<4x8x384xf32, #tpu.memory_space<vmem>>, vector<1x8x256xf32>
    %565 = vector.shape_cast %564 : vector<1x8x256xf32> to vector<8x256xf32>
    %c0_168 = arith.constant 0 : index
    %c0_169 = arith.constant 0 : index
    %c49_170 = arith.constant 49 : index
    %566 = vector.load %arg16[%c0_168, %c0_169, %c49_170] : memref<4x8x384xf32, #tpu.memory_space<vmem>>, vector<1x8x256xf32>
    %567 = vector.shape_cast %566 : vector<1x8x256xf32> to vector<8x256xf32>
    %568 = arith.maximumf %565, %567 : vector<8x256xf32>
    %569 = arith.maximumf %563, %568 : vector<8x256xf32>
    %cst_171 = arith.constant 0.000000e+00 : f32
    %570 = vector.broadcast %cst_171 : f32 to vector<8x256xf32>
    %571 = arith.maximumf %569, %570 : vector<8x256xf32>
    %c0_172 = arith.constant 0 : index
    %c0_173 = arith.constant 0 : index
    %572 = vector.load %arg3[%c0_172, %c0_173] : memref<4x256xf32, #tpu.memory_space<vmem>>, vector<1x256xf32>
    %573 = vector.broadcast %572 : vector<1x256xf32> to vector<8x256xf32>
    %574 = arith.mulf %571, %573 : vector<8x256xf32>
    %575 = arith.addf %544, %574 : vector<8x256xf32>
    %cst_174 = arith.constant 0.000000e+00 : f32
    %576 = vector.broadcast %cst_174 : f32 to vector<8x32xf32>
    %c1_175 = arith.constant 1 : index
    %c0_176 = arith.constant 0 : index
    %c0_177 = arith.constant 0 : index
    %577 = vector.load %arg16[%c1_175, %c0_176, %c0_177] : memref<4x8x384xf32, #tpu.memory_space<vmem>>, vector<1x8x32xf32>
    %578 = vector.shape_cast %577 : vector<1x8x32xf32> to vector<8x32xf32>
    %579 = vector.shape_cast %576 : vector<8x32xf32> to vector<1x8x32xf32>
    tpu.vector_store %arg16[%c1_175, %c0_176, %c0_177], %579 {strides = array<i32>} : memref<4x8x384xf32, #tpu.memory_space<vmem>>, vector<1x8x32xf32>,
    %cst_178 = arith.constant 0.000000e+00 : f32
    %580 = vector.broadcast %cst_178 : f32 to vector<8x96xf32>
    %c1_179 = arith.constant 1 : index
    %c0_180 = arith.constant 0 : index
    %c288_181 = arith.constant 288 : index
    %581 = vector.load %arg16[%c1_179, %c0_180, %c288_181] : memref<4x8x384xf32, #tpu.memory_space<vmem>>, vector<1x8x96xf32>
    %582 = vector.shape_cast %581 : vector<1x8x96xf32> to vector<8x96xf32>
    %583 = vector.shape_cast %580 : vector<8x96xf32> to vector<1x8x96xf32>
    tpu.vector_store %arg16[%c1_179, %c0_180, %c288_181], %583 {strides = array<i32>} : memref<4x8x384xf32, #tpu.memory_space<vmem>>, vector<1x8x96xf32>,
    %c1_182 = arith.constant 1 : index
    %584 = memref.load %arg12[%c1_182] : memref<4xf32, #tpu.memory_space<smem>>
    %585 = vector.broadcast %584 : f32 to vector<8x256xf32>
    %586 = arith.addf %535, %585 : vector<8x256xf32>
    %c1_183 = arith.constant 1 : index
    %c0_184 = arith.constant 0 : index
    %c32_185 = arith.constant 32 : index
    %587 = vector.load %arg16[%c1_183, %c0_184, %c32_185] : memref<4x8x384xf32, #tpu.memory_space<vmem>>, vector<1x8x256xf32>
    %588 = vector.shape_cast %587 : vector<1x8x256xf32> to vector<8x256xf32>
    %589 = vector.shape_cast %586 : vector<8x256xf32> to vector<1x8x256xf32>
    tpu.vector_store %arg16[%c1_183, %c0_184, %c32_185], %589 {strides = array<i32>} : memref<4x8x384xf32, #tpu.memory_space<vmem>>, vector<1x8x256xf32>,
    %c1_186 = arith.constant 1 : index
    %c0_187 = arith.constant 0 : index
    %c31_188 = arith.constant 31 : index
    %590 = vector.load %arg16[%c1_186, %c0_187, %c31_188] : memref<4x8x384xf32, #tpu.memory_space<vmem>>, vector<1x8x256xf32>
    %591 = vector.shape_cast %590 : vector<1x8x256xf32> to vector<8x256xf32>
    %c1_189 = arith.constant 1 : index
    %c0_190 = arith.constant 0 : index
    %c32_191 = arith.constant 32 : index
    %592 = vector.load %arg16[%c1_189, %c0_190, %c32_191] : memref<4x8x384xf32, #tpu.memory_space<vmem>>, vector<1x8x256xf32>
    %593 = vector.shape_cast %592 : vector<1x8x256xf32> to vector<8x256xf32>
    %594 = arith.maximumf %591, %593 : vector<8x256xf32>
    %c1_192 = arith.constant 1 : index
    %c0_193 = arith.constant 0 : index
    %c47_194 = arith.constant 47 : index
    %595 = vector.load %arg16[%c1_192, %c0_193, %c47_194] : memref<4x8x384xf32, #tpu.memory_space<vmem>>, vector<1x8x256xf32>
    %596 = vector.shape_cast %595 : vector<1x8x256xf32> to vector<8x256xf32>
    %c1_195 = arith.constant 1 : index
    %c0_196 = arith.constant 0 : index
    %c48_197 = arith.constant 48 : index
    %597 = vector.load %arg16[%c1_195, %c0_196, %c48_197] : memref<4x8x384xf32, #tpu.memory_space<vmem>>, vector<1x8x256xf32>
    %598 = vector.shape_cast %597 : vector<1x8x256xf32> to vector<8x256xf32>
    %599 = arith.maximumf %596, %598 : vector<8x256xf32>
    %600 = arith.maximumf %594, %599 : vector<8x256xf32>
    %cst_198 = arith.constant 0.000000e+00 : f32
    %601 = vector.broadcast %cst_198 : f32 to vector<8x256xf32>
    %602 = arith.maximumf %600, %601 : vector<8x256xf32>
    %c1_199 = arith.constant 1 : index
    %c0_200 = arith.constant 0 : index
    %603 = vector.load %arg3[%c1_199, %c0_200] : memref<4x256xf32, #tpu.memory_space<vmem>>, vector<1x256xf32>
    %604 = vector.broadcast %603 : vector<1x256xf32> to vector<8x256xf32>
    %605 = arith.mulf %602, %604 : vector<8x256xf32>
    %606 = arith.addf %575, %605 : vector<8x256xf32>
    %cst_201 = arith.constant 0.000000e+00 : f32
    %607 = vector.broadcast %cst_201 : f32 to vector<8x32xf32>
    %c2_202 = arith.constant 2 : index
    %c0_203 = arith.constant 0 : index
    %c0_204 = arith.constant 0 : index
    %608 = vector.load %arg16[%c2_202, %c0_203, %c0_204] : memref<4x8x384xf32, #tpu.memory_space<vmem>>, vector<1x8x32xf32>
    %609 = vector.shape_cast %608 : vector<1x8x32xf32> to vector<8x32xf32>
    %610 = vector.shape_cast %607 : vector<8x32xf32> to vector<1x8x32xf32>
    tpu.vector_store %arg16[%c2_202, %c0_203, %c0_204], %610 {strides = array<i32>} : memref<4x8x384xf32, #tpu.memory_space<vmem>>, vector<1x8x32xf32>,
    %cst_205 = arith.constant 0.000000e+00 : f32
    %611 = vector.broadcast %cst_205 : f32 to vector<8x96xf32>
    %c2_206 = arith.constant 2 : index
    %c0_207 = arith.constant 0 : index
    %c288_208 = arith.constant 288 : index
    %612 = vector.load %arg16[%c2_206, %c0_207, %c288_208] : memref<4x8x384xf32, #tpu.memory_space<vmem>>, vector<1x8x96xf32>
    %613 = vector.shape_cast %612 : vector<1x8x96xf32> to vector<8x96xf32>
    %614 = vector.shape_cast %611 : vector<8x96xf32> to vector<1x8x96xf32>
    tpu.vector_store %arg16[%c2_206, %c0_207, %c288_208], %614 {strides = array<i32>} : memref<4x8x384xf32, #tpu.memory_space<vmem>>, vector<1x8x96xf32>,
    %c2_209 = arith.constant 2 : index
    %615 = memref.load %arg12[%c2_209] : memref<4xf32, #tpu.memory_space<smem>>
    %616 = vector.broadcast %615 : f32 to vector<8x256xf32>
    %617 = arith.addf %539, %616 : vector<8x256xf32>
    %c2_210 = arith.constant 2 : index
    %c0_211 = arith.constant 0 : index
    %c32_212 = arith.constant 32 : index
    %618 = vector.load %arg16[%c2_210, %c0_211, %c32_212] : memref<4x8x384xf32, #tpu.memory_space<vmem>>, vector<1x8x256xf32>
    %619 = vector.shape_cast %618 : vector<1x8x256xf32> to vector<8x256xf32>
    %620 = vector.shape_cast %617 : vector<8x256xf32> to vector<1x8x256xf32>
    tpu.vector_store %arg16[%c2_210, %c0_211, %c32_212], %620 {strides = array<i32>} : memref<4x8x384xf32, #tpu.memory_space<vmem>>, vector<1x8x256xf32>,
    %c2_213 = arith.constant 2 : index
    %c0_214 = arith.constant 0 : index
    %c16_215 = arith.constant 16 : index
    %621 = vector.load %arg16[%c2_213, %c0_214, %c16_215] : memref<4x8x384xf32, #tpu.memory_space<vmem>>, vector<1x8x256xf32>
    %622 = vector.shape_cast %621 : vector<1x8x256xf32> to vector<8x256xf32>
    %c2_216 = arith.constant 2 : index
    %c0_217 = arith.constant 0 : index
    %c17_218 = arith.constant 17 : index
    %623 = vector.load %arg16[%c2_216, %c0_217, %c17_218] : memref<4x8x384xf32, #tpu.memory_space<vmem>>, vector<1x8x256xf32>
    %624 = vector.shape_cast %623 : vector<1x8x256xf32> to vector<8x256xf32>
    %625 = arith.maximumf %622, %624 : vector<8x256xf32>
    %c2_219 = arith.constant 2 : index
    %c0_220 = arith.constant 0 : index
    %c32_221 = arith.constant 32 : index
    %626 = vector.load %arg16[%c2_219, %c0_220, %c32_221] : memref<4x8x384xf32, #tpu.memory_space<vmem>>, vector<1x8x256xf32>
    %627 = vector.shape_cast %626 : vector<1x8x256xf32> to vector<8x256xf32>
    %c2_222 = arith.constant 2 : index
    %c0_223 = arith.constant 0 : index
    %c33_224 = arith.constant 33 : index
    %628 = vector.load %arg16[%c2_222, %c0_223, %c33_224] : memref<4x8x384xf32, #tpu.memory_space<vmem>>, vector<1x8x256xf32>
    %629 = vector.shape_cast %628 : vector<1x8x256xf32> to vector<8x256xf32>
    %630 = arith.maximumf %627, %629 : vector<8x256xf32>
    %631 = arith.maximumf %625, %630 : vector<8x256xf32>
    %cst_225 = arith.constant 0.000000e+00 : f32
    %632 = vector.broadcast %cst_225 : f32 to vector<8x256xf32>
    %633 = arith.maximumf %631, %632 : vector<8x256xf32>
    %c2_226 = arith.constant 2 : index
    %c0_227 = arith.constant 0 : index
    %634 = vector.load %arg3[%c2_226, %c0_227] : memref<4x256xf32, #tpu.memory_space<vmem>>, vector<1x256xf32>
    %635 = vector.broadcast %634 : vector<1x256xf32> to vector<8x256xf32>
    %636 = arith.mulf %633, %635 : vector<8x256xf32>
    %637 = arith.addf %606, %636 : vector<8x256xf32>
    %cst_228 = arith.constant 0.000000e+00 : f32
    %638 = vector.broadcast %cst_228 : f32 to vector<8x32xf32>
    %c3_229 = arith.constant 3 : index
    %c0_230 = arith.constant 0 : index
    %c0_231 = arith.constant 0 : index
    %639 = vector.load %arg16[%c3_229, %c0_230, %c0_231] : memref<4x8x384xf32, #tpu.memory_space<vmem>>, vector<1x8x32xf32>
    %640 = vector.shape_cast %639 : vector<1x8x32xf32> to vector<8x32xf32>
    %641 = vector.shape_cast %638 : vector<8x32xf32> to vector<1x8x32xf32>
    tpu.vector_store %arg16[%c3_229, %c0_230, %c0_231], %641 {strides = array<i32>} : memref<4x8x384xf32, #tpu.memory_space<vmem>>, vector<1x8x32xf32>,
    %cst_232 = arith.constant 0.000000e+00 : f32
    %642 = vector.broadcast %cst_232 : f32 to vector<8x96xf32>
    %c3_233 = arith.constant 3 : index
    %c0_234 = arith.constant 0 : index
    %c288_235 = arith.constant 288 : index
    %643 = vector.load %arg16[%c3_233, %c0_234, %c288_235] : memref<4x8x384xf32, #tpu.memory_space<vmem>>, vector<1x8x96xf32>
    %644 = vector.shape_cast %643 : vector<1x8x96xf32> to vector<8x96xf32>
    %645 = vector.shape_cast %642 : vector<8x96xf32> to vector<1x8x96xf32>
    tpu.vector_store %arg16[%c3_233, %c0_234, %c288_235], %645 {strides = array<i32>} : memref<4x8x384xf32, #tpu.memory_space<vmem>>, vector<1x8x96xf32>,
    %c3_236 = arith.constant 3 : index
    %646 = memref.load %arg12[%c3_236] : memref<4xf32, #tpu.memory_space<smem>>
    %647 = vector.broadcast %646 : f32 to vector<8x256xf32>
    %648 = arith.addf %543, %647 : vector<8x256xf32>
    %c3_237 = arith.constant 3 : index
    %c0_238 = arith.constant 0 : index
    %c32_239 = arith.constant 32 : index
    %649 = vector.load %arg16[%c3_237, %c0_238, %c32_239] : memref<4x8x384xf32, #tpu.memory_space<vmem>>, vector<1x8x256xf32>
    %650 = vector.shape_cast %649 : vector<1x8x256xf32> to vector<8x256xf32>
    %651 = vector.shape_cast %648 : vector<8x256xf32> to vector<1x8x256xf32>
    tpu.vector_store %arg16[%c3_237, %c0_238, %c32_239], %651 {strides = array<i32>} : memref<4x8x384xf32, #tpu.memory_space<vmem>>, vector<1x8x256xf32>,
    %c3_240 = arith.constant 3 : index
    %c0_241 = arith.constant 0 : index
    %c15_242 = arith.constant 15 : index
    %652 = vector.load %arg16[%c3_240, %c0_241, %c15_242] : memref<4x8x384xf32, #tpu.memory_space<vmem>>, vector<1x8x256xf32>
    %653 = vector.shape_cast %652 : vector<1x8x256xf32> to vector<8x256xf32>
    %c3_243 = arith.constant 3 : index
    %c0_244 = arith.constant 0 : index
    %c16_245 = arith.constant 16 : index
    %654 = vector.load %arg16[%c3_243, %c0_244, %c16_245] : memref<4x8x384xf32, #tpu.memory_space<vmem>>, vector<1x8x256xf32>
    %655 = vector.shape_cast %654 : vector<1x8x256xf32> to vector<8x256xf32>
    %656 = arith.maximumf %653, %655 : vector<8x256xf32>
    %c3_246 = arith.constant 3 : index
    %c0_247 = arith.constant 0 : index
    %c31_248 = arith.constant 31 : index
    %657 = vector.load %arg16[%c3_246, %c0_247, %c31_248] : memref<4x8x384xf32, #tpu.memory_space<vmem>>, vector<1x8x256xf32>
    %658 = vector.shape_cast %657 : vector<1x8x256xf32> to vector<8x256xf32>
    %c3_249 = arith.constant 3 : index
    %c0_250 = arith.constant 0 : index
    %c32_251 = arith.constant 32 : index
    %659 = vector.load %arg16[%c3_249, %c0_250, %c32_251] : memref<4x8x384xf32, #tpu.memory_space<vmem>>, vector<1x8x256xf32>
    %660 = vector.shape_cast %659 : vector<1x8x256xf32> to vector<8x256xf32>
    %661 = arith.maximumf %658, %660 : vector<8x256xf32>
    %662 = arith.maximumf %656, %661 : vector<8x256xf32>
    %cst_252 = arith.constant 0.000000e+00 : f32
    %663 = vector.broadcast %cst_252 : f32 to vector<8x256xf32>
    %664 = arith.maximumf %662, %663 : vector<8x256xf32>
    %c3_253 = arith.constant 3 : index
    %c0_254 = arith.constant 0 : index
    %665 = vector.load %arg3[%c3_253, %c0_254] : memref<4x256xf32, #tpu.memory_space<vmem>>, vector<1x256xf32>
    %666 = vector.broadcast %665 : vector<1x256xf32> to vector<8x256xf32>
    %667 = arith.mulf %664, %666 : vector<8x256xf32>
    %668 = arith.addf %637, %667 : vector<8x256xf32>
    %cst_255 = arith.constant 0.000000e+00 : f32
    %669 = vector.broadcast %cst_255 : f32 to vector<1x512xf32>
    %c0_256 = arith.constant 0 : index
    %c0_257 = arith.constant 0 : index
    %670 = vector.load %arg15[%c0_256, %c0_257] : memref<10x512xf32, #tpu.memory_space<vmem>>, vector<1x512xf32>
    tpu.vector_store %arg15[%c0_256, %c0_257], %669 {strides = array<i32>} : memref<10x512xf32, #tpu.memory_space<vmem>>, vector<1x512xf32>,
    %cst_258 = arith.constant 0.000000e+00 : f32
    %671 = vector.broadcast %cst_258 : f32 to vector<1x512xf32>
    %c9_259 = arith.constant 9 : index
    %c0_260 = arith.constant 0 : index
    %672 = vector.load %arg15[%c9_259, %c0_260] : memref<10x512xf32, #tpu.memory_space<vmem>>, vector<1x512xf32>
    tpu.vector_store %arg15[%c9_259, %c0_260], %671 {strides = array<i32>} : memref<10x512xf32, #tpu.memory_space<vmem>>, vector<1x512xf32>,
    %cst_261 = arith.constant 0.000000e+00 : f32
    %673 = vector.broadcast %cst_261 : f32 to vector<8x128xf32>
    %c1_262 = arith.constant 1 : index
    %c0_263 = arith.constant 0 : index
    %674 = vector.load %arg15[%c1_262, %c0_263] : memref<10x512xf32, #tpu.memory_space<vmem>>, vector<8x128xf32>
    tpu.vector_store %arg15[%c1_262, %c0_263], %673 {strides = array<i32>} : memref<10x512xf32, #tpu.memory_space<vmem>>, vector<8x128xf32>,
    %cst_264 = arith.constant 0.000000e+00 : f32
    %675 = vector.broadcast %cst_264 : f32 to vector<8x128xf32>
    %c1_265 = arith.constant 1 : index
    %c384 = arith.constant 384 : index
    %676 = vector.load %arg15[%c1_265, %c384] : memref<10x512xf32, #tpu.memory_space<vmem>>, vector<8x128xf32>
    tpu.vector_store %arg15[%c1_265, %c384], %675 {strides = array<i32>} : memref<10x512xf32, #tpu.memory_space<vmem>>, vector<8x128xf32>,
    %c1_266 = arith.constant 1 : index
    %c128 = arith.constant 128 : index
    %677 = vector.load %arg15[%c1_266, %c128] : memref<10x512xf32, #tpu.memory_space<vmem>>, vector<8x256xf32>
    tpu.vector_store %arg15[%c1_266, %c128], %668 {strides = array<i32>} : memref<10x512xf32, #tpu.memory_space<vmem>>, vector<8x256xf32>,
    %cst_267 = arith.constant 0.000000e+00 : f32
    %678 = vector.broadcast %cst_267 : f32 to vector<8x256xf32>
    %cst_268 = arith.constant 0.000000e+00 : f32
    %679 = vector.broadcast %cst_268 : f32 to vector<8x256xf32>
    %cst_269 = arith.constant 0.000000e+00 : f32
    %680 = vector.broadcast %cst_269 : f32 to vector<8x256xf32>
    %cst_270 = arith.constant 0.000000e+00 : f32
    %681 = vector.broadcast %cst_270 : f32 to vector<8x256xf32>
    %c0_271 = arith.constant 0 : index
    %c94_272 = arith.constant 94 : index
    %682 = vector.load %arg15[%c0_271, %c94_272] : memref<10x512xf32, #tpu.memory_space<vmem>>, vector<8x256xf32>
    %c0_273 = arith.constant 0 : index
    %c0_274 = arith.constant 0 : index
    %683 = vector.load %arg4[%c0_273, %c0_274] : memref<108x256xf32, #tpu.memory_space<vmem>>, vector<1x256xf32>
    %684 = vector.broadcast %683 : vector<1x256xf32> to vector<8x256xf32>
    %685 = arith.mulf %684, %682 : vector<8x256xf32>
    %686 = arith.addf %678, %685 : vector<8x256xf32>
    %c27_275 = arith.constant 27 : index
    %c0_276 = arith.constant 0 : index
    %687 = vector.load %arg4[%c27_275, %c0_276] : memref<108x256xf32, #tpu.memory_space<vmem>>, vector<1x256xf32>
    %688 = vector.broadcast %687 : vector<1x256xf32> to vector<8x256xf32>
    %689 = arith.mulf %688, %682 : vector<8x256xf32>
    %690 = arith.addf %679, %689 : vector<8x256xf32>
    %c54_277 = arith.constant 54 : index
    %c0_278 = arith.constant 0 : index
    %691 = vector.load %arg4[%c54_277, %c0_278] : memref<108x256xf32, #tpu.memory_space<vmem>>, vector<1x256xf32>
    %692 = vector.broadcast %691 : vector<1x256xf32> to vector<8x256xf32>
    %693 = arith.mulf %692, %682 : vector<8x256xf32>
    %694 = arith.addf %680, %693 : vector<8x256xf32>
    %c81_279 = arith.constant 81 : index
    %c0_280 = arith.constant 0 : index
    %695 = vector.load %arg4[%c81_279, %c0_280] : memref<108x256xf32, #tpu.memory_space<vmem>>, vector<1x256xf32>
    %696 = vector.broadcast %695 : vector<1x256xf32> to vector<8x256xf32>
    %697 = arith.mulf %696, %682 : vector<8x256xf32>
    %698 = arith.addf %681, %697 : vector<8x256xf32>
    %c0_281 = arith.constant 0 : index
    %c96_282 = arith.constant 96 : index
    %699 = vector.load %arg15[%c0_281, %c96_282] : memref<10x512xf32, #tpu.memory_space<vmem>>, vector<8x256xf32>
    %c1_283 = arith.constant 1 : index
    %c0_284 = arith.constant 0 : index
    %700 = vector.load %arg4[%c1_283, %c0_284] : memref<108x256xf32, #tpu.memory_space<vmem>>, vector<1x256xf32>
    %701 = vector.broadcast %700 : vector<1x256xf32> to vector<8x256xf32>
    %702 = arith.mulf %701, %699 : vector<8x256xf32>
    %703 = arith.addf %686, %702 : vector<8x256xf32>
    %c28_285 = arith.constant 28 : index
    %c0_286 = arith.constant 0 : index
    %704 = vector.load %arg4[%c28_285, %c0_286] : memref<108x256xf32, #tpu.memory_space<vmem>>, vector<1x256xf32>
    %705 = vector.broadcast %704 : vector<1x256xf32> to vector<8x256xf32>
    %706 = arith.mulf %705, %699 : vector<8x256xf32>
    %707 = arith.addf %690, %706 : vector<8x256xf32>
    %c55_287 = arith.constant 55 : index
    %c0_288 = arith.constant 0 : index
    %708 = vector.load %arg4[%c55_287, %c0_288] : memref<108x256xf32, #tpu.memory_space<vmem>>, vector<1x256xf32>
    %709 = vector.broadcast %708 : vector<1x256xf32> to vector<8x256xf32>
    %710 = arith.mulf %709, %699 : vector<8x256xf32>
    %711 = arith.addf %694, %710 : vector<8x256xf32>
    %c82_289 = arith.constant 82 : index
    %c0_290 = arith.constant 0 : index
    %712 = vector.load %arg4[%c82_289, %c0_290] : memref<108x256xf32, #tpu.memory_space<vmem>>, vector<1x256xf32>
    %713 = vector.broadcast %712 : vector<1x256xf32> to vector<8x256xf32>
    %714 = arith.mulf %713, %699 : vector<8x256xf32>
    %715 = arith.addf %698, %714 : vector<8x256xf32>
    %c0_291 = arith.constant 0 : index
    %c98_292 = arith.constant 98 : index
    %716 = vector.load %arg15[%c0_291, %c98_292] : memref<10x512xf32, #tpu.memory_space<vmem>>, vector<8x256xf32>
    %c2_293 = arith.constant 2 : index
    %c0_294 = arith.constant 0 : index
    %717 = vector.load %arg4[%c2_293, %c0_294] : memref<108x256xf32, #tpu.memory_space<vmem>>, vector<1x256xf32>
    %718 = vector.broadcast %717 : vector<1x256xf32> to vector<8x256xf32>
    %719 = arith.mulf %718, %716 : vector<8x256xf32>
    %720 = arith.addf %703, %719 : vector<8x256xf32>
    %c29_295 = arith.constant 29 : index
    %c0_296 = arith.constant 0 : index
    %721 = vector.load %arg4[%c29_295, %c0_296] : memref<108x256xf32, #tpu.memory_space<vmem>>, vector<1x256xf32>
    %722 = vector.broadcast %721 : vector<1x256xf32> to vector<8x256xf32>
    %723 = arith.mulf %722, %716 : vector<8x256xf32>
    %724 = arith.addf %707, %723 : vector<8x256xf32>
    %c56_297 = arith.constant 56 : index
    %c0_298 = arith.constant 0 : index
    %725 = vector.load %arg4[%c56_297, %c0_298] : memref<108x256xf32, #tpu.memory_space<vmem>>, vector<1x256xf32>
    %726 = vector.broadcast %725 : vector<1x256xf32> to vector<8x256xf32>
    %727 = arith.mulf %726, %716 : vector<8x256xf32>
    %728 = arith.addf %711, %727 : vector<8x256xf32>
    %c83_299 = arith.constant 83 : index
    %c0_300 = arith.constant 0 : index
    %729 = vector.load %arg4[%c83_299, %c0_300] : memref<108x256xf32, #tpu.memory_space<vmem>>, vector<1x256xf32>
    %730 = vector.broadcast %729 : vector<1x256xf32> to vector<8x256xf32>
    %731 = arith.mulf %730, %716 : vector<8x256xf32>
    %732 = arith.addf %715, %731 : vector<8x256xf32>
    %c0_301 = arith.constant 0 : index
    %c126 = arith.constant 126 : index
    %733 = vector.load %arg15[%c0_301, %c126] : memref<10x512xf32, #tpu.memory_space<vmem>>, vector<8x256xf32>
    %c3_302 = arith.constant 3 : index
    %c0_303 = arith.constant 0 : index
    %734 = vector.load %arg4[%c3_302, %c0_303] : memref<108x256xf32, #tpu.memory_space<vmem>>, vector<1x256xf32>
    %735 = vector.broadcast %734 : vector<1x256xf32> to vector<8x256xf32>
    %736 = arith.mulf %735, %733 : vector<8x256xf32>
    %737 = arith.addf %720, %736 : vector<8x256xf32>
    %c30_304 = arith.constant 30 : index
    %c0_305 = arith.constant 0 : index
    %738 = vector.load %arg4[%c30_304, %c0_305] : memref<108x256xf32, #tpu.memory_space<vmem>>, vector<1x256xf32>
    %739 = vector.broadcast %738 : vector<1x256xf32> to vector<8x256xf32>
    %740 = arith.mulf %739, %733 : vector<8x256xf32>
    %741 = arith.addf %724, %740 : vector<8x256xf32>
    %c57_306 = arith.constant 57 : index
    %c0_307 = arith.constant 0 : index
    %742 = vector.load %arg4[%c57_306, %c0_307] : memref<108x256xf32, #tpu.memory_space<vmem>>, vector<1x256xf32>
    %743 = vector.broadcast %742 : vector<1x256xf32> to vector<8x256xf32>
    %744 = arith.mulf %743, %733 : vector<8x256xf32>
    %745 = arith.addf %728, %744 : vector<8x256xf32>
    %c84_308 = arith.constant 84 : index
    %c0_309 = arith.constant 0 : index
    %746 = vector.load %arg4[%c84_308, %c0_309] : memref<108x256xf32, #tpu.memory_space<vmem>>, vector<1x256xf32>
    %747 = vector.broadcast %746 : vector<1x256xf32> to vector<8x256xf32>
    %748 = arith.mulf %747, %733 : vector<8x256xf32>
    %749 = arith.addf %732, %748 : vector<8x256xf32>
    %c0_310 = arith.constant 0 : index
    %c128_311 = arith.constant 128 : index
    %750 = vector.load %arg15[%c0_310, %c128_311] : memref<10x512xf32, #tpu.memory_space<vmem>>, vector<8x256xf32>
    %c4_312 = arith.constant 4 : index
    %c0_313 = arith.constant 0 : index
    %751 = vector.load %arg4[%c4_312, %c0_313] : memref<108x256xf32, #tpu.memory_space<vmem>>, vector<1x256xf32>
    %752 = vector.broadcast %751 : vector<1x256xf32> to vector<8x256xf32>
    %753 = arith.mulf %752, %750 : vector<8x256xf32>
    %754 = arith.addf %737, %753 : vector<8x256xf32>
    %c31_314 = arith.constant 31 : index
    %c0_315 = arith.constant 0 : index
    %755 = vector.load %arg4[%c31_314, %c0_315] : memref<108x256xf32, #tpu.memory_space<vmem>>, vector<1x256xf32>
    %756 = vector.broadcast %755 : vector<1x256xf32> to vector<8x256xf32>
    %757 = arith.mulf %756, %750 : vector<8x256xf32>
    %758 = arith.addf %741, %757 : vector<8x256xf32>
    %c58_316 = arith.constant 58 : index
    %c0_317 = arith.constant 0 : index
    %759 = vector.load %arg4[%c58_316, %c0_317] : memref<108x256xf32, #tpu.memory_space<vmem>>, vector<1x256xf32>
    %760 = vector.broadcast %759 : vector<1x256xf32> to vector<8x256xf32>
    %761 = arith.mulf %760, %750 : vector<8x256xf32>
    %762 = arith.addf %745, %761 : vector<8x256xf32>
    %c85_318 = arith.constant 85 : index
    %c0_319 = arith.constant 0 : index
    %763 = vector.load %arg4[%c85_318, %c0_319] : memref<108x256xf32, #tpu.memory_space<vmem>>, vector<1x256xf32>
    %764 = vector.broadcast %763 : vector<1x256xf32> to vector<8x256xf32>
    %765 = arith.mulf %764, %750 : vector<8x256xf32>
    %766 = arith.addf %749, %765 : vector<8x256xf32>
    %c0_320 = arith.constant 0 : index
    %c130 = arith.constant 130 : index
    %767 = vector.load %arg15[%c0_320, %c130] : memref<10x512xf32, #tpu.memory_space<vmem>>, vector<8x256xf32>
    %c5_321 = arith.constant 5 : index
    %c0_322 = arith.constant 0 : index
    %768 = vector.load %arg4[%c5_321, %c0_322] : memref<108x256xf32, #tpu.memory_space<vmem>>, vector<1x256xf32>
    %769 = vector.broadcast %768 : vector<1x256xf32> to vector<8x256xf32>
    %770 = arith.mulf %769, %767 : vector<8x256xf32>
    %771 = arith.addf %754, %770 : vector<8x256xf32>
    %c32_323 = arith.constant 32 : index
    %c0_324 = arith.constant 0 : index
    %772 = vector.load %arg4[%c32_323, %c0_324] : memref<108x256xf32, #tpu.memory_space<vmem>>, vector<1x256xf32>
    %773 = vector.broadcast %772 : vector<1x256xf32> to vector<8x256xf32>
    %774 = arith.mulf %773, %767 : vector<8x256xf32>
    %775 = arith.addf %758, %774 : vector<8x256xf32>
    %c59_325 = arith.constant 59 : index
    %c0_326 = arith.constant 0 : index
    %776 = vector.load %arg4[%c59_325, %c0_326] : memref<108x256xf32, #tpu.memory_space<vmem>>, vector<1x256xf32>
    %777 = vector.broadcast %776 : vector<1x256xf32> to vector<8x256xf32>
    %778 = arith.mulf %777, %767 : vector<8x256xf32>
    %779 = arith.addf %762, %778 : vector<8x256xf32>
    %c86_327 = arith.constant 86 : index
    %c0_328 = arith.constant 0 : index
    %780 = vector.load %arg4[%c86_327, %c0_328] : memref<108x256xf32, #tpu.memory_space<vmem>>, vector<1x256xf32>
    %781 = vector.broadcast %780 : vector<1x256xf32> to vector<8x256xf32>
    %782 = arith.mulf %781, %767 : vector<8x256xf32>
    %783 = arith.addf %766, %782 : vector<8x256xf32>
    %c0_329 = arith.constant 0 : index
    %c158 = arith.constant 158 : index
    %784 = vector.load %arg15[%c0_329, %c158] : memref<10x512xf32, #tpu.memory_space<vmem>>, vector<8x256xf32>
    %c6_330 = arith.constant 6 : index
    %c0_331 = arith.constant 0 : index
    %785 = vector.load %arg4[%c6_330, %c0_331] : memref<108x256xf32, #tpu.memory_space<vmem>>, vector<1x256xf32>
    %786 = vector.broadcast %785 : vector<1x256xf32> to vector<8x256xf32>
    %787 = arith.mulf %786, %784 : vector<8x256xf32>
    %788 = arith.addf %771, %787 : vector<8x256xf32>
    %c33_332 = arith.constant 33 : index
    %c0_333 = arith.constant 0 : index
    %789 = vector.load %arg4[%c33_332, %c0_333] : memref<108x256xf32, #tpu.memory_space<vmem>>, vector<1x256xf32>
    %790 = vector.broadcast %789 : vector<1x256xf32> to vector<8x256xf32>
    %791 = arith.mulf %790, %784 : vector<8x256xf32>
    %792 = arith.addf %775, %791 : vector<8x256xf32>
    %c60_334 = arith.constant 60 : index
    %c0_335 = arith.constant 0 : index
    %793 = vector.load %arg4[%c60_334, %c0_335] : memref<108x256xf32, #tpu.memory_space<vmem>>, vector<1x256xf32>
    %794 = vector.broadcast %793 : vector<1x256xf32> to vector<8x256xf32>
    %795 = arith.mulf %794, %784 : vector<8x256xf32>
    %796 = arith.addf %779, %795 : vector<8x256xf32>
    %c87_336 = arith.constant 87 : index
    %c0_337 = arith.constant 0 : index
    %797 = vector.load %arg4[%c87_336, %c0_337] : memref<108x256xf32, #tpu.memory_space<vmem>>, vector<1x256xf32>
    %798 = vector.broadcast %797 : vector<1x256xf32> to vector<8x256xf32>
    %799 = arith.mulf %798, %784 : vector<8x256xf32>
    %800 = arith.addf %783, %799 : vector<8x256xf32>
    %c0_338 = arith.constant 0 : index
    %c160 = arith.constant 160 : index
    %801 = vector.load %arg15[%c0_338, %c160] : memref<10x512xf32, #tpu.memory_space<vmem>>, vector<8x256xf32>
    %c7_339 = arith.constant 7 : index
    %c0_340 = arith.constant 0 : index
    %802 = vector.load %arg4[%c7_339, %c0_340] : memref<108x256xf32, #tpu.memory_space<vmem>>, vector<1x256xf32>
    %803 = vector.broadcast %802 : vector<1x256xf32> to vector<8x256xf32>
    %804 = arith.mulf %803, %801 : vector<8x256xf32>
    %805 = arith.addf %788, %804 : vector<8x256xf32>
    %c34_341 = arith.constant 34 : index
    %c0_342 = arith.constant 0 : index
    %806 = vector.load %arg4[%c34_341, %c0_342] : memref<108x256xf32, #tpu.memory_space<vmem>>, vector<1x256xf32>
    %807 = vector.broadcast %806 : vector<1x256xf32> to vector<8x256xf32>
    %808 = arith.mulf %807, %801 : vector<8x256xf32>
    %809 = arith.addf %792, %808 : vector<8x256xf32>
    %c61_343 = arith.constant 61 : index
    %c0_344 = arith.constant 0 : index
    %810 = vector.load %arg4[%c61_343, %c0_344] : memref<108x256xf32, #tpu.memory_space<vmem>>, vector<1x256xf32>
    %811 = vector.broadcast %810 : vector<1x256xf32> to vector<8x256xf32>
    %812 = arith.mulf %811, %801 : vector<8x256xf32>
    %813 = arith.addf %796, %812 : vector<8x256xf32>
    %c88_345 = arith.constant 88 : index
    %c0_346 = arith.constant 0 : index
    %814 = vector.load %arg4[%c88_345, %c0_346] : memref<108x256xf32, #tpu.memory_space<vmem>>, vector<1x256xf32>
    %815 = vector.broadcast %814 : vector<1x256xf32> to vector<8x256xf32>
    %816 = arith.mulf %815, %801 : vector<8x256xf32>
    %817 = arith.addf %800, %816 : vector<8x256xf32>
    %c0_347 = arith.constant 0 : index
    %c162 = arith.constant 162 : index
    %818 = vector.load %arg15[%c0_347, %c162] : memref<10x512xf32, #tpu.memory_space<vmem>>, vector<8x256xf32>
    %c8_348 = arith.constant 8 : index
    %c0_349 = arith.constant 0 : index
    %819 = vector.load %arg4[%c8_348, %c0_349] : memref<108x256xf32, #tpu.memory_space<vmem>>, vector<1x256xf32>
    %820 = vector.broadcast %819 : vector<1x256xf32> to vector<8x256xf32>
    %821 = arith.mulf %820, %818 : vector<8x256xf32>
    %822 = arith.addf %805, %821 : vector<8x256xf32>
    %c35_350 = arith.constant 35 : index
    %c0_351 = arith.constant 0 : index
    %823 = vector.load %arg4[%c35_350, %c0_351] : memref<108x256xf32, #tpu.memory_space<vmem>>, vector<1x256xf32>
    %824 = vector.broadcast %823 : vector<1x256xf32> to vector<8x256xf32>
    %825 = arith.mulf %824, %818 : vector<8x256xf32>
    %826 = arith.addf %809, %825 : vector<8x256xf32>
    %c62_352 = arith.constant 62 : index
    %c0_353 = arith.constant 0 : index
    %827 = vector.load %arg4[%c62_352, %c0_353] : memref<108x256xf32, #tpu.memory_space<vmem>>, vector<1x256xf32>
    %828 = vector.broadcast %827 : vector<1x256xf32> to vector<8x256xf32>
    %829 = arith.mulf %828, %818 : vector<8x256xf32>
    %830 = arith.addf %813, %829 : vector<8x256xf32>
    %c89_354 = arith.constant 89 : index
    %c0_355 = arith.constant 0 : index
    %831 = vector.load %arg4[%c89_354, %c0_355] : memref<108x256xf32, #tpu.memory_space<vmem>>, vector<1x256xf32>
    %832 = vector.broadcast %831 : vector<1x256xf32> to vector<8x256xf32>
    %833 = arith.mulf %832, %818 : vector<8x256xf32>
    %834 = arith.addf %817, %833 : vector<8x256xf32>
    %c1_356 = arith.constant 1 : index
    %c94_357 = arith.constant 94 : index
    %835 = vector.load %arg15[%c1_356, %c94_357] : memref<10x512xf32, #tpu.memory_space<vmem>>, vector<8x256xf32>
    %c9_358 = arith.constant 9 : index
    %c0_359 = arith.constant 0 : index
    %836 = vector.load %arg4[%c9_358, %c0_359] : memref<108x256xf32, #tpu.memory_space<vmem>>, vector<1x256xf32>
    %837 = vector.broadcast %836 : vector<1x256xf32> to vector<8x256xf32>
    %838 = arith.mulf %837, %835 : vector<8x256xf32>
    %839 = arith.addf %822, %838 : vector<8x256xf32>
    %c36_360 = arith.constant 36 : index
    %c0_361 = arith.constant 0 : index
    %840 = vector.load %arg4[%c36_360, %c0_361] : memref<108x256xf32, #tpu.memory_space<vmem>>, vector<1x256xf32>
    %841 = vector.broadcast %840 : vector<1x256xf32> to vector<8x256xf32>
    %842 = arith.mulf %841, %835 : vector<8x256xf32>
    %843 = arith.addf %826, %842 : vector<8x256xf32>
    %c63_362 = arith.constant 63 : index
    %c0_363 = arith.constant 0 : index
    %844 = vector.load %arg4[%c63_362, %c0_363] : memref<108x256xf32, #tpu.memory_space<vmem>>, vector<1x256xf32>
    %845 = vector.broadcast %844 : vector<1x256xf32> to vector<8x256xf32>
    %846 = arith.mulf %845, %835 : vector<8x256xf32>
    %847 = arith.addf %830, %846 : vector<8x256xf32>
    %c90_364 = arith.constant 90 : index
    %c0_365 = arith.constant 0 : index
    %848 = vector.load %arg4[%c90_364, %c0_365] : memref<108x256xf32, #tpu.memory_space<vmem>>, vector<1x256xf32>
    %849 = vector.broadcast %848 : vector<1x256xf32> to vector<8x256xf32>
    %850 = arith.mulf %849, %835 : vector<8x256xf32>
    %851 = arith.addf %834, %850 : vector<8x256xf32>
    %c1_366 = arith.constant 1 : index
    %c96_367 = arith.constant 96 : index
    %852 = vector.load %arg15[%c1_366, %c96_367] : memref<10x512xf32, #tpu.memory_space<vmem>>, vector<8x256xf32>
    %c10_368 = arith.constant 10 : index
    %c0_369 = arith.constant 0 : index
    %853 = vector.load %arg4[%c10_368, %c0_369] : memref<108x256xf32, #tpu.memory_space<vmem>>, vector<1x256xf32>
    %854 = vector.broadcast %853 : vector<1x256xf32> to vector<8x256xf32>
    %855 = arith.mulf %854, %852 : vector<8x256xf32>
    %856 = arith.addf %839, %855 : vector<8x256xf32>
    %c37_370 = arith.constant 37 : index
    %c0_371 = arith.constant 0 : index
    %857 = vector.load %arg4[%c37_370, %c0_371] : memref<108x256xf32, #tpu.memory_space<vmem>>, vector<1x256xf32>
    %858 = vector.broadcast %857 : vector<1x256xf32> to vector<8x256xf32>
    %859 = arith.mulf %858, %852 : vector<8x256xf32>
    %860 = arith.addf %843, %859 : vector<8x256xf32>
    %c64_372 = arith.constant 64 : index
    %c0_373 = arith.constant 0 : index
    %861 = vector.load %arg4[%c64_372, %c0_373] : memref<108x256xf32, #tpu.memory_space<vmem>>, vector<1x256xf32>
    %862 = vector.broadcast %861 : vector<1x256xf32> to vector<8x256xf32>
    %863 = arith.mulf %862, %852 : vector<8x256xf32>
    %864 = arith.addf %847, %863 : vector<8x256xf32>
    %c91_374 = arith.constant 91 : index
    %c0_375 = arith.constant 0 : index
    %865 = vector.load %arg4[%c91_374, %c0_375] : memref<108x256xf32, #tpu.memory_space<vmem>>, vector<1x256xf32>
    %866 = vector.broadcast %865 : vector<1x256xf32> to vector<8x256xf32>
    %867 = arith.mulf %866, %852 : vector<8x256xf32>
    %868 = arith.addf %851, %867 : vector<8x256xf32>
    %c1_376 = arith.constant 1 : index
    %c98_377 = arith.constant 98 : index
    %869 = vector.load %arg15[%c1_376, %c98_377] : memref<10x512xf32, #tpu.memory_space<vmem>>, vector<8x256xf32>
    %c11_378 = arith.constant 11 : index
    %c0_379 = arith.constant 0 : index
    %870 = vector.load %arg4[%c11_378, %c0_379] : memref<108x256xf32, #tpu.memory_space<vmem>>, vector<1x256xf32>
    %871 = vector.broadcast %870 : vector<1x256xf32> to vector<8x256xf32>
    %872 = arith.mulf %871, %869 : vector<8x256xf32>
    %873 = arith.addf %856, %872 : vector<8x256xf32>
    %c38_380 = arith.constant 38 : index
    %c0_381 = arith.constant 0 : index
    %874 = vector.load %arg4[%c38_380, %c0_381] : memref<108x256xf32, #tpu.memory_space<vmem>>, vector<1x256xf32>
    %875 = vector.broadcast %874 : vector<1x256xf32> to vector<8x256xf32>
    %876 = arith.mulf %875, %869 : vector<8x256xf32>
    %877 = arith.addf %860, %876 : vector<8x256xf32>
    %c65_382 = arith.constant 65 : index
    %c0_383 = arith.constant 0 : index
    %878 = vector.load %arg4[%c65_382, %c0_383] : memref<108x256xf32, #tpu.memory_space<vmem>>, vector<1x256xf32>
    %879 = vector.broadcast %878 : vector<1x256xf32> to vector<8x256xf32>
    %880 = arith.mulf %879, %869 : vector<8x256xf32>
    %881 = arith.addf %864, %880 : vector<8x256xf32>
    %c92_384 = arith.constant 92 : index
    %c0_385 = arith.constant 0 : index
    %882 = vector.load %arg4[%c92_384, %c0_385] : memref<108x256xf32, #tpu.memory_space<vmem>>, vector<1x256xf32>
    %883 = vector.broadcast %882 : vector<1x256xf32> to vector<8x256xf32>
    %884 = arith.mulf %883, %869 : vector<8x256xf32>
    %885 = arith.addf %868, %884 : vector<8x256xf32>
    %c1_386 = arith.constant 1 : index
    %c126_387 = arith.constant 126 : index
    %886 = vector.load %arg15[%c1_386, %c126_387] : memref<10x512xf32, #tpu.memory_space<vmem>>, vector<8x256xf32>
    %c12_388 = arith.constant 12 : index
    %c0_389 = arith.constant 0 : index
    %887 = vector.load %arg4[%c12_388, %c0_389] : memref<108x256xf32, #tpu.memory_space<vmem>>, vector<1x256xf32>
    %888 = vector.broadcast %887 : vector<1x256xf32> to vector<8x256xf32>
    %889 = arith.mulf %888, %886 : vector<8x256xf32>
    %890 = arith.addf %873, %889 : vector<8x256xf32>
    %c39_390 = arith.constant 39 : index
    %c0_391 = arith.constant 0 : index
    %891 = vector.load %arg4[%c39_390, %c0_391] : memref<108x256xf32, #tpu.memory_space<vmem>>, vector<1x256xf32>
    %892 = vector.broadcast %891 : vector<1x256xf32> to vector<8x256xf32>
    %893 = arith.mulf %892, %886 : vector<8x256xf32>
    %894 = arith.addf %877, %893 : vector<8x256xf32>
    %c66_392 = arith.constant 66 : index
    %c0_393 = arith.constant 0 : index
    %895 = vector.load %arg4[%c66_392, %c0_393] : memref<108x256xf32, #tpu.memory_space<vmem>>, vector<1x256xf32>
    %896 = vector.broadcast %895 : vector<1x256xf32> to vector<8x256xf32>
    %897 = arith.mulf %896, %886 : vector<8x256xf32>
    %898 = arith.addf %881, %897 : vector<8x256xf32>
    %c93_394 = arith.constant 93 : index
    %c0_395 = arith.constant 0 : index
    %899 = vector.load %arg4[%c93_394, %c0_395] : memref<108x256xf32, #tpu.memory_space<vmem>>, vector<1x256xf32>
    %900 = vector.broadcast %899 : vector<1x256xf32> to vector<8x256xf32>
    %901 = arith.mulf %900, %886 : vector<8x256xf32>
    %902 = arith.addf %885, %901 : vector<8x256xf32>
    %c1_396 = arith.constant 1 : index
    %c128_397 = arith.constant 128 : index
    %903 = vector.load %arg15[%c1_396, %c128_397] : memref<10x512xf32, #tpu.memory_space<vmem>>, vector<8x256xf32>
    %c13_398 = arith.constant 13 : index
    %c0_399 = arith.constant 0 : index
    %904 = vector.load %arg4[%c13_398, %c0_399] : memref<108x256xf32, #tpu.memory_space<vmem>>, vector<1x256xf32>
    %905 = vector.broadcast %904 : vector<1x256xf32> to vector<8x256xf32>
    %906 = arith.mulf %905, %903 : vector<8x256xf32>
    %907 = arith.addf %890, %906 : vector<8x256xf32>
    %c40_400 = arith.constant 40 : index
    %c0_401 = arith.constant 0 : index
    %908 = vector.load %arg4[%c40_400, %c0_401] : memref<108x256xf32, #tpu.memory_space<vmem>>, vector<1x256xf32>
    %909 = vector.broadcast %908 : vector<1x256xf32> to vector<8x256xf32>
    %910 = arith.mulf %909, %903 : vector<8x256xf32>
    %911 = arith.addf %894, %910 : vector<8x256xf32>
    %c67_402 = arith.constant 67 : index
    %c0_403 = arith.constant 0 : index
    %912 = vector.load %arg4[%c67_402, %c0_403] : memref<108x256xf32, #tpu.memory_space<vmem>>, vector<1x256xf32>
    %913 = vector.broadcast %912 : vector<1x256xf32> to vector<8x256xf32>
    %914 = arith.mulf %913, %903 : vector<8x256xf32>
    %915 = arith.addf %898, %914 : vector<8x256xf32>
    %c94_404 = arith.constant 94 : index
    %c0_405 = arith.constant 0 : index
    %916 = vector.load %arg4[%c94_404, %c0_405] : memref<108x256xf32, #tpu.memory_space<vmem>>, vector<1x256xf32>
    %917 = vector.broadcast %916 : vector<1x256xf32> to vector<8x256xf32>
    %918 = arith.mulf %917, %903 : vector<8x256xf32>
    %919 = arith.addf %902, %918 : vector<8x256xf32>
    %c1_406 = arith.constant 1 : index
    %c130_407 = arith.constant 130 : index
    %920 = vector.load %arg15[%c1_406, %c130_407] : memref<10x512xf32, #tpu.memory_space<vmem>>, vector<8x256xf32>
    %c14_408 = arith.constant 14 : index
    %c0_409 = arith.constant 0 : index
    %921 = vector.load %arg4[%c14_408, %c0_409] : memref<108x256xf32, #tpu.memory_space<vmem>>, vector<1x256xf32>
    %922 = vector.broadcast %921 : vector<1x256xf32> to vector<8x256xf32>
    %923 = arith.mulf %922, %920 : vector<8x256xf32>
    %924 = arith.addf %907, %923 : vector<8x256xf32>
    %c41_410 = arith.constant 41 : index
    %c0_411 = arith.constant 0 : index
    %925 = vector.load %arg4[%c41_410, %c0_411] : memref<108x256xf32, #tpu.memory_space<vmem>>, vector<1x256xf32>
    %926 = vector.broadcast %925 : vector<1x256xf32> to vector<8x256xf32>
    %927 = arith.mulf %926, %920 : vector<8x256xf32>
    %928 = arith.addf %911, %927 : vector<8x256xf32>
    %c68_412 = arith.constant 68 : index
    %c0_413 = arith.constant 0 : index
    %929 = vector.load %arg4[%c68_412, %c0_413] : memref<108x256xf32, #tpu.memory_space<vmem>>, vector<1x256xf32>
    %930 = vector.broadcast %929 : vector<1x256xf32> to vector<8x256xf32>
    %931 = arith.mulf %930, %920 : vector<8x256xf32>
    %932 = arith.addf %915, %931 : vector<8x256xf32>
    %c95_414 = arith.constant 95 : index
    %c0_415 = arith.constant 0 : index
    %933 = vector.load %arg4[%c95_414, %c0_415] : memref<108x256xf32, #tpu.memory_space<vmem>>, vector<1x256xf32>
    %934 = vector.broadcast %933 : vector<1x256xf32> to vector<8x256xf32>
    %935 = arith.mulf %934, %920 : vector<8x256xf32>
    %936 = arith.addf %919, %935 : vector<8x256xf32>
    %c1_416 = arith.constant 1 : index
    %c158_417 = arith.constant 158 : index
    %937 = vector.load %arg15[%c1_416, %c158_417] : memref<10x512xf32, #tpu.memory_space<vmem>>, vector<8x256xf32>
    %c15_418 = arith.constant 15 : index
    %c0_419 = arith.constant 0 : index
    %938 = vector.load %arg4[%c15_418, %c0_419] : memref<108x256xf32, #tpu.memory_space<vmem>>, vector<1x256xf32>
    %939 = vector.broadcast %938 : vector<1x256xf32> to vector<8x256xf32>
    %940 = arith.mulf %939, %937 : vector<8x256xf32>
    %941 = arith.addf %924, %940 : vector<8x256xf32>
    %c42_420 = arith.constant 42 : index
    %c0_421 = arith.constant 0 : index
    %942 = vector.load %arg4[%c42_420, %c0_421] : memref<108x256xf32, #tpu.memory_space<vmem>>, vector<1x256xf32>
    %943 = vector.broadcast %942 : vector<1x256xf32> to vector<8x256xf32>
    %944 = arith.mulf %943, %937 : vector<8x256xf32>
    %945 = arith.addf %928, %944 : vector<8x256xf32>
    %c69_422 = arith.constant 69 : index
    %c0_423 = arith.constant 0 : index
    %946 = vector.load %arg4[%c69_422, %c0_423] : memref<108x256xf32, #tpu.memory_space<vmem>>, vector<1x256xf32>
    %947 = vector.broadcast %946 : vector<1x256xf32> to vector<8x256xf32>
    %948 = arith.mulf %947, %937 : vector<8x256xf32>
    %949 = arith.addf %932, %948 : vector<8x256xf32>
    %c96_424 = arith.constant 96 : index
    %c0_425 = arith.constant 0 : index
    %950 = vector.load %arg4[%c96_424, %c0_425] : memref<108x256xf32, #tpu.memory_space<vmem>>, vector<1x256xf32>
    %951 = vector.broadcast %950 : vector<1x256xf32> to vector<8x256xf32>
    %952 = arith.mulf %951, %937 : vector<8x256xf32>
    %953 = arith.addf %936, %952 : vector<8x256xf32>
    %c1_426 = arith.constant 1 : index
    %c160_427 = arith.constant 160 : index
    %954 = vector.load %arg15[%c1_426, %c160_427] : memref<10x512xf32, #tpu.memory_space<vmem>>, vector<8x256xf32>
    %c16_428 = arith.constant 16 : index
    %c0_429 = arith.constant 0 : index
    %955 = vector.load %arg4[%c16_428, %c0_429] : memref<108x256xf32, #tpu.memory_space<vmem>>, vector<1x256xf32>
    %956 = vector.broadcast %955 : vector<1x256xf32> to vector<8x256xf32>
    %957 = arith.mulf %956, %954 : vector<8x256xf32>
    %958 = arith.addf %941, %957 : vector<8x256xf32>
    %c43_430 = arith.constant 43 : index
    %c0_431 = arith.constant 0 : index
    %959 = vector.load %arg4[%c43_430, %c0_431] : memref<108x256xf32, #tpu.memory_space<vmem>>, vector<1x256xf32>
    %960 = vector.broadcast %959 : vector<1x256xf32> to vector<8x256xf32>
    %961 = arith.mulf %960, %954 : vector<8x256xf32>
    %962 = arith.addf %945, %961 : vector<8x256xf32>
    %c70_432 = arith.constant 70 : index
    %c0_433 = arith.constant 0 : index
    %963 = vector.load %arg4[%c70_432, %c0_433] : memref<108x256xf32, #tpu.memory_space<vmem>>, vector<1x256xf32>
    %964 = vector.broadcast %963 : vector<1x256xf32> to vector<8x256xf32>
    %965 = arith.mulf %964, %954 : vector<8x256xf32>
    %966 = arith.addf %949, %965 : vector<8x256xf32>
    %c97_434 = arith.constant 97 : index
    %c0_435 = arith.constant 0 : index
    %967 = vector.load %arg4[%c97_434, %c0_435] : memref<108x256xf32, #tpu.memory_space<vmem>>, vector<1x256xf32>
    %968 = vector.broadcast %967 : vector<1x256xf32> to vector<8x256xf32>
    %969 = arith.mulf %968, %954 : vector<8x256xf32>
    %970 = arith.addf %953, %969 : vector<8x256xf32>
    %c1_436 = arith.constant 1 : index
    %c162_437 = arith.constant 162 : index
    %971 = vector.load %arg15[%c1_436, %c162_437] : memref<10x512xf32, #tpu.memory_space<vmem>>, vector<8x256xf32>
    %c17_438 = arith.constant 17 : index
    %c0_439 = arith.constant 0 : index
    %972 = vector.load %arg4[%c17_438, %c0_439] : memref<108x256xf32, #tpu.memory_space<vmem>>, vector<1x256xf32>
    %973 = vector.broadcast %972 : vector<1x256xf32> to vector<8x256xf32>
    %974 = arith.mulf %973, %971 : vector<8x256xf32>
    %975 = arith.addf %958, %974 : vector<8x256xf32>
    %c44_440 = arith.constant 44 : index
    %c0_441 = arith.constant 0 : index
    %976 = vector.load %arg4[%c44_440, %c0_441] : memref<108x256xf32, #tpu.memory_space<vmem>>, vector<1x256xf32>
    %977 = vector.broadcast %976 : vector<1x256xf32> to vector<8x256xf32>
    %978 = arith.mulf %977, %971 : vector<8x256xf32>
    %979 = arith.addf %962, %978 : vector<8x256xf32>
    %c71_442 = arith.constant 71 : index
    %c0_443 = arith.constant 0 : index
    %980 = vector.load %arg4[%c71_442, %c0_443] : memref<108x256xf32, #tpu.memory_space<vmem>>, vector<1x256xf32>
    %981 = vector.broadcast %980 : vector<1x256xf32> to vector<8x256xf32>
    %982 = arith.mulf %981, %971 : vector<8x256xf32>
    %983 = arith.addf %966, %982 : vector<8x256xf32>
    %c98_444 = arith.constant 98 : index
    %c0_445 = arith.constant 0 : index
    %984 = vector.load %arg4[%c98_444, %c0_445] : memref<108x256xf32, #tpu.memory_space<vmem>>, vector<1x256xf32>
    %985 = vector.broadcast %984 : vector<1x256xf32> to vector<8x256xf32>
    %986 = arith.mulf %985, %971 : vector<8x256xf32>
    %987 = arith.addf %970, %986 : vector<8x256xf32>
    %c2_446 = arith.constant 2 : index
    %c94_447 = arith.constant 94 : index
    %988 = vector.load %arg15[%c2_446, %c94_447] : memref<10x512xf32, #tpu.memory_space<vmem>>, vector<8x256xf32>
    %c18_448 = arith.constant 18 : index
    %c0_449 = arith.constant 0 : index
    %989 = vector.load %arg4[%c18_448, %c0_449] : memref<108x256xf32, #tpu.memory_space<vmem>>, vector<1x256xf32>
    %990 = vector.broadcast %989 : vector<1x256xf32> to vector<8x256xf32>
    %991 = arith.mulf %990, %988 : vector<8x256xf32>
    %992 = arith.addf %975, %991 : vector<8x256xf32>
    %c45_450 = arith.constant 45 : index
    %c0_451 = arith.constant 0 : index
    %993 = vector.load %arg4[%c45_450, %c0_451] : memref<108x256xf32, #tpu.memory_space<vmem>>, vector<1x256xf32>
    %994 = vector.broadcast %993 : vector<1x256xf32> to vector<8x256xf32>
    %995 = arith.mulf %994, %988 : vector<8x256xf32>
    %996 = arith.addf %979, %995 : vector<8x256xf32>
    %c72_452 = arith.constant 72 : index
    %c0_453 = arith.constant 0 : index
    %997 = vector.load %arg4[%c72_452, %c0_453] : memref<108x256xf32, #tpu.memory_space<vmem>>, vector<1x256xf32>
    %998 = vector.broadcast %997 : vector<1x256xf32> to vector<8x256xf32>
    %999 = arith.mulf %998, %988 : vector<8x256xf32>
    %1000 = arith.addf %983, %999 : vector<8x256xf32>
    %c99_454 = arith.constant 99 : index
    %c0_455 = arith.constant 0 : index
    %1001 = vector.load %arg4[%c99_454, %c0_455] : memref<108x256xf32, #tpu.memory_space<vmem>>, vector<1x256xf32>
    %1002 = vector.broadcast %1001 : vector<1x256xf32> to vector<8x256xf32>
    %1003 = arith.mulf %1002, %988 : vector<8x256xf32>
    %1004 = arith.addf %987, %1003 : vector<8x256xf32>
    %c2_456 = arith.constant 2 : index
    %c96_457 = arith.constant 96 : index
    %1005 = vector.load %arg15[%c2_456, %c96_457] : memref<10x512xf32, #tpu.memory_space<vmem>>, vector<8x256xf32>
    %c19_458 = arith.constant 19 : index
    %c0_459 = arith.constant 0 : index
    %1006 = vector.load %arg4[%c19_458, %c0_459] : memref<108x256xf32, #tpu.memory_space<vmem>>, vector<1x256xf32>
    %1007 = vector.broadcast %1006 : vector<1x256xf32> to vector<8x256xf32>
    %1008 = arith.mulf %1007, %1005 : vector<8x256xf32>
    %1009 = arith.addf %992, %1008 : vector<8x256xf32>
    %c46_460 = arith.constant 46 : index
    %c0_461 = arith.constant 0 : index
    %1010 = vector.load %arg4[%c46_460, %c0_461] : memref<108x256xf32, #tpu.memory_space<vmem>>, vector<1x256xf32>
    %1011 = vector.broadcast %1010 : vector<1x256xf32> to vector<8x256xf32>
    %1012 = arith.mulf %1011, %1005 : vector<8x256xf32>
    %1013 = arith.addf %996, %1012 : vector<8x256xf32>
    %c73_462 = arith.constant 73 : index
    %c0_463 = arith.constant 0 : index
    %1014 = vector.load %arg4[%c73_462, %c0_463] : memref<108x256xf32, #tpu.memory_space<vmem>>, vector<1x256xf32>
    %1015 = vector.broadcast %1014 : vector<1x256xf32> to vector<8x256xf32>
    %1016 = arith.mulf %1015, %1005 : vector<8x256xf32>
    %1017 = arith.addf %1000, %1016 : vector<8x256xf32>
    %c100_464 = arith.constant 100 : index
    %c0_465 = arith.constant 0 : index
    %1018 = vector.load %arg4[%c100_464, %c0_465] : memref<108x256xf32, #tpu.memory_space<vmem>>, vector<1x256xf32>
    %1019 = vector.broadcast %1018 : vector<1x256xf32> to vector<8x256xf32>
    %1020 = arith.mulf %1019, %1005 : vector<8x256xf32>
    %1021 = arith.addf %1004, %1020 : vector<8x256xf32>
    %c2_466 = arith.constant 2 : index
    %c98_467 = arith.constant 98 : index
    %1022 = vector.load %arg15[%c2_466, %c98_467] : memref<10x512xf32, #tpu.memory_space<vmem>>, vector<8x256xf32>
    %c20_468 = arith.constant 20 : index
    %c0_469 = arith.constant 0 : index
    %1023 = vector.load %arg4[%c20_468, %c0_469] : memref<108x256xf32, #tpu.memory_space<vmem>>, vector<1x256xf32>
    %1024 = vector.broadcast %1023 : vector<1x256xf32> to vector<8x256xf32>
    %1025 = arith.mulf %1024, %1022 : vector<8x256xf32>
    %1026 = arith.addf %1009, %1025 : vector<8x256xf32>
    %c47_470 = arith.constant 47 : index
    %c0_471 = arith.constant 0 : index
    %1027 = vector.load %arg4[%c47_470, %c0_471] : memref<108x256xf32, #tpu.memory_space<vmem>>, vector<1x256xf32>
    %1028 = vector.broadcast %1027 : vector<1x256xf32> to vector<8x256xf32>
    %1029 = arith.mulf %1028, %1022 : vector<8x256xf32>
    %1030 = arith.addf %1013, %1029 : vector<8x256xf32>
    %c74_472 = arith.constant 74 : index
    %c0_473 = arith.constant 0 : index
    %1031 = vector.load %arg4[%c74_472, %c0_473] : memref<108x256xf32, #tpu.memory_space<vmem>>, vector<1x256xf32>
    %1032 = vector.broadcast %1031 : vector<1x256xf32> to vector<8x256xf32>
    %1033 = arith.mulf %1032, %1022 : vector<8x256xf32>
    %1034 = arith.addf %1017, %1033 : vector<8x256xf32>
    %c101_474 = arith.constant 101 : index
    %c0_475 = arith.constant 0 : index
    %1035 = vector.load %arg4[%c101_474, %c0_475] : memref<108x256xf32, #tpu.memory_space<vmem>>, vector<1x256xf32>
    %1036 = vector.broadcast %1035 : vector<1x256xf32> to vector<8x256xf32>
    %1037 = arith.mulf %1036, %1022 : vector<8x256xf32>
    %1038 = arith.addf %1021, %1037 : vector<8x256xf32>
    %c2_476 = arith.constant 2 : index
    %c126_477 = arith.constant 126 : index
    %1039 = vector.load %arg15[%c2_476, %c126_477] : memref<10x512xf32, #tpu.memory_space<vmem>>, vector<8x256xf32>
    %c21_478 = arith.constant 21 : index
    %c0_479 = arith.constant 0 : index
    %1040 = vector.load %arg4[%c21_478, %c0_479] : memref<108x256xf32, #tpu.memory_space<vmem>>, vector<1x256xf32>
    %1041 = vector.broadcast %1040 : vector<1x256xf32> to vector<8x256xf32>
    %1042 = arith.mulf %1041, %1039 : vector<8x256xf32>
    %1043 = arith.addf %1026, %1042 : vector<8x256xf32>
    %c48_480 = arith.constant 48 : index
    %c0_481 = arith.constant 0 : index
    %1044 = vector.load %arg4[%c48_480, %c0_481] : memref<108x256xf32, #tpu.memory_space<vmem>>, vector<1x256xf32>
    %1045 = vector.broadcast %1044 : vector<1x256xf32> to vector<8x256xf32>
    %1046 = arith.mulf %1045, %1039 : vector<8x256xf32>
    %1047 = arith.addf %1030, %1046 : vector<8x256xf32>
    %c75_482 = arith.constant 75 : index
    %c0_483 = arith.constant 0 : index
    %1048 = vector.load %arg4[%c75_482, %c0_483] : memref<108x256xf32, #tpu.memory_space<vmem>>, vector<1x256xf32>
    %1049 = vector.broadcast %1048 : vector<1x256xf32> to vector<8x256xf32>
    %1050 = arith.mulf %1049, %1039 : vector<8x256xf32>
    %1051 = arith.addf %1034, %1050 : vector<8x256xf32>
    %c102_484 = arith.constant 102 : index
    %c0_485 = arith.constant 0 : index
    %1052 = vector.load %arg4[%c102_484, %c0_485] : memref<108x256xf32, #tpu.memory_space<vmem>>, vector<1x256xf32>
    %1053 = vector.broadcast %1052 : vector<1x256xf32> to vector<8x256xf32>
    %1054 = arith.mulf %1053, %1039 : vector<8x256xf32>
    %1055 = arith.addf %1038, %1054 : vector<8x256xf32>
    %c2_486 = arith.constant 2 : index
    %c128_487 = arith.constant 128 : index
    %1056 = vector.load %arg15[%c2_486, %c128_487] : memref<10x512xf32, #tpu.memory_space<vmem>>, vector<8x256xf32>
    %c22_488 = arith.constant 22 : index
    %c0_489 = arith.constant 0 : index
    %1057 = vector.load %arg4[%c22_488, %c0_489] : memref<108x256xf32, #tpu.memory_space<vmem>>, vector<1x256xf32>
    %1058 = vector.broadcast %1057 : vector<1x256xf32> to vector<8x256xf32>
    %1059 = arith.mulf %1058, %1056 : vector<8x256xf32>
    %1060 = arith.addf %1043, %1059 : vector<8x256xf32>
    %c49_490 = arith.constant 49 : index
    %c0_491 = arith.constant 0 : index
    %1061 = vector.load %arg4[%c49_490, %c0_491] : memref<108x256xf32, #tpu.memory_space<vmem>>, vector<1x256xf32>
    %1062 = vector.broadcast %1061 : vector<1x256xf32> to vector<8x256xf32>
    %1063 = arith.mulf %1062, %1056 : vector<8x256xf32>
    %1064 = arith.addf %1047, %1063 : vector<8x256xf32>
    %c76_492 = arith.constant 76 : index
    %c0_493 = arith.constant 0 : index
    %1065 = vector.load %arg4[%c76_492, %c0_493] : memref<108x256xf32, #tpu.memory_space<vmem>>, vector<1x256xf32>
    %1066 = vector.broadcast %1065 : vector<1x256xf32> to vector<8x256xf32>
    %1067 = arith.mulf %1066, %1056 : vector<8x256xf32>
    %1068 = arith.addf %1051, %1067 : vector<8x256xf32>
    %c103_494 = arith.constant 103 : index
    %c0_495 = arith.constant 0 : index
    %1069 = vector.load %arg4[%c103_494, %c0_495] : memref<108x256xf32, #tpu.memory_space<vmem>>, vector<1x256xf32>
    %1070 = vector.broadcast %1069 : vector<1x256xf32> to vector<8x256xf32>
    %1071 = arith.mulf %1070, %1056 : vector<8x256xf32>
    %1072 = arith.addf %1055, %1071 : vector<8x256xf32>
    %c2_496 = arith.constant 2 : index
    %c130_497 = arith.constant 130 : index
    %1073 = vector.load %arg15[%c2_496, %c130_497] : memref<10x512xf32, #tpu.memory_space<vmem>>, vector<8x256xf32>
    %c23_498 = arith.constant 23 : index
    %c0_499 = arith.constant 0 : index
    %1074 = vector.load %arg4[%c23_498, %c0_499] : memref<108x256xf32, #tpu.memory_space<vmem>>, vector<1x256xf32>
    %1075 = vector.broadcast %1074 : vector<1x256xf32> to vector<8x256xf32>
    %1076 = arith.mulf %1075, %1073 : vector<8x256xf32>
    %1077 = arith.addf %1060, %1076 : vector<8x256xf32>
    %c50_500 = arith.constant 50 : index
    %c0_501 = arith.constant 0 : index
    %1078 = vector.load %arg4[%c50_500, %c0_501] : memref<108x256xf32, #tpu.memory_space<vmem>>, vector<1x256xf32>
    %1079 = vector.broadcast %1078 : vector<1x256xf32> to vector<8x256xf32>
    %1080 = arith.mulf %1079, %1073 : vector<8x256xf32>
    %1081 = arith.addf %1064, %1080 : vector<8x256xf32>
    %c77_502 = arith.constant 77 : index
    %c0_503 = arith.constant 0 : index
    %1082 = vector.load %arg4[%c77_502, %c0_503] : memref<108x256xf32, #tpu.memory_space<vmem>>, vector<1x256xf32>
    %1083 = vector.broadcast %1082 : vector<1x256xf32> to vector<8x256xf32>
    %1084 = arith.mulf %1083, %1073 : vector<8x256xf32>
    %1085 = arith.addf %1068, %1084 : vector<8x256xf32>
    %c104_504 = arith.constant 104 : index
    %c0_505 = arith.constant 0 : index
    %1086 = vector.load %arg4[%c104_504, %c0_505] : memref<108x256xf32, #tpu.memory_space<vmem>>, vector<1x256xf32>
    %1087 = vector.broadcast %1086 : vector<1x256xf32> to vector<8x256xf32>
    %1088 = arith.mulf %1087, %1073 : vector<8x256xf32>
    %1089 = arith.addf %1072, %1088 : vector<8x256xf32>
    %c2_506 = arith.constant 2 : index
    %c158_507 = arith.constant 158 : index
    %1090 = vector.load %arg15[%c2_506, %c158_507] : memref<10x512xf32, #tpu.memory_space<vmem>>, vector<8x256xf32>
    %c24_508 = arith.constant 24 : index
    %c0_509 = arith.constant 0 : index
    %1091 = vector.load %arg4[%c24_508, %c0_509] : memref<108x256xf32, #tpu.memory_space<vmem>>, vector<1x256xf32>
    %1092 = vector.broadcast %1091 : vector<1x256xf32> to vector<8x256xf32>
    %1093 = arith.mulf %1092, %1090 : vector<8x256xf32>
    %1094 = arith.addf %1077, %1093 : vector<8x256xf32>
    %c51_510 = arith.constant 51 : index
    %c0_511 = arith.constant 0 : index
    %1095 = vector.load %arg4[%c51_510, %c0_511] : memref<108x256xf32, #tpu.memory_space<vmem>>, vector<1x256xf32>
    %1096 = vector.broadcast %1095 : vector<1x256xf32> to vector<8x256xf32>
    %1097 = arith.mulf %1096, %1090 : vector<8x256xf32>
    %1098 = arith.addf %1081, %1097 : vector<8x256xf32>
    %c78_512 = arith.constant 78 : index
    %c0_513 = arith.constant 0 : index
    %1099 = vector.load %arg4[%c78_512, %c0_513] : memref<108x256xf32, #tpu.memory_space<vmem>>, vector<1x256xf32>
    %1100 = vector.broadcast %1099 : vector<1x256xf32> to vector<8x256xf32>
    %1101 = arith.mulf %1100, %1090 : vector<8x256xf32>
    %1102 = arith.addf %1085, %1101 : vector<8x256xf32>
    %c105_514 = arith.constant 105 : index
    %c0_515 = arith.constant 0 : index
    %1103 = vector.load %arg4[%c105_514, %c0_515] : memref<108x256xf32, #tpu.memory_space<vmem>>, vector<1x256xf32>
    %1104 = vector.broadcast %1103 : vector<1x256xf32> to vector<8x256xf32>
    %1105 = arith.mulf %1104, %1090 : vector<8x256xf32>
    %1106 = arith.addf %1089, %1105 : vector<8x256xf32>
    %c2_516 = arith.constant 2 : index
    %c160_517 = arith.constant 160 : index
    %1107 = vector.load %arg15[%c2_516, %c160_517] : memref<10x512xf32, #tpu.memory_space<vmem>>, vector<8x256xf32>
    %c25_518 = arith.constant 25 : index
    %c0_519 = arith.constant 0 : index
    %1108 = vector.load %arg4[%c25_518, %c0_519] : memref<108x256xf32, #tpu.memory_space<vmem>>, vector<1x256xf32>
    %1109 = vector.broadcast %1108 : vector<1x256xf32> to vector<8x256xf32>
    %1110 = arith.mulf %1109, %1107 : vector<8x256xf32>
    %1111 = arith.addf %1094, %1110 : vector<8x256xf32>
    %c52_520 = arith.constant 52 : index
    %c0_521 = arith.constant 0 : index
    %1112 = vector.load %arg4[%c52_520, %c0_521] : memref<108x256xf32, #tpu.memory_space<vmem>>, vector<1x256xf32>
    %1113 = vector.broadcast %1112 : vector<1x256xf32> to vector<8x256xf32>
    %1114 = arith.mulf %1113, %1107 : vector<8x256xf32>
    %1115 = arith.addf %1098, %1114 : vector<8x256xf32>
    %c79_522 = arith.constant 79 : index
    %c0_523 = arith.constant 0 : index
    %1116 = vector.load %arg4[%c79_522, %c0_523] : memref<108x256xf32, #tpu.memory_space<vmem>>, vector<1x256xf32>
    %1117 = vector.broadcast %1116 : vector<1x256xf32> to vector<8x256xf32>
    %1118 = arith.mulf %1117, %1107 : vector<8x256xf32>
    %1119 = arith.addf %1102, %1118 : vector<8x256xf32>
    %c106_524 = arith.constant 106 : index
    %c0_525 = arith.constant 0 : index
    %1120 = vector.load %arg4[%c106_524, %c0_525] : memref<108x256xf32, #tpu.memory_space<vmem>>, vector<1x256xf32>
    %1121 = vector.broadcast %1120 : vector<1x256xf32> to vector<8x256xf32>
    %1122 = arith.mulf %1121, %1107 : vector<8x256xf32>
    %1123 = arith.addf %1106, %1122 : vector<8x256xf32>
    %c2_526 = arith.constant 2 : index
    %c162_527 = arith.constant 162 : index
    %1124 = vector.load %arg15[%c2_526, %c162_527] : memref<10x512xf32, #tpu.memory_space<vmem>>, vector<8x256xf32>
    %c26_528 = arith.constant 26 : index
    %c0_529 = arith.constant 0 : index
    %1125 = vector.load %arg4[%c26_528, %c0_529] : memref<108x256xf32, #tpu.memory_space<vmem>>, vector<1x256xf32>
    %1126 = vector.broadcast %1125 : vector<1x256xf32> to vector<8x256xf32>
    %1127 = arith.mulf %1126, %1124 : vector<8x256xf32>
    %1128 = arith.addf %1111, %1127 : vector<8x256xf32>
    %c53_530 = arith.constant 53 : index
    %c0_531 = arith.constant 0 : index
    %1129 = vector.load %arg4[%c53_530, %c0_531] : memref<108x256xf32, #tpu.memory_space<vmem>>, vector<1x256xf32>
    %1130 = vector.broadcast %1129 : vector<1x256xf32> to vector<8x256xf32>
    %1131 = arith.mulf %1130, %1124 : vector<8x256xf32>
    %1132 = arith.addf %1115, %1131 : vector<8x256xf32>
    %c80_532 = arith.constant 80 : index
    %c0_533 = arith.constant 0 : index
    %1133 = vector.load %arg4[%c80_532, %c0_533] : memref<108x256xf32, #tpu.memory_space<vmem>>, vector<1x256xf32>
    %1134 = vector.broadcast %1133 : vector<1x256xf32> to vector<8x256xf32>
    %1135 = arith.mulf %1134, %1124 : vector<8x256xf32>
    %1136 = arith.addf %1119, %1135 : vector<8x256xf32>
    %c107_534 = arith.constant 107 : index
    %c0_535 = arith.constant 0 : index
    %1137 = vector.load %arg4[%c107_534, %c0_535] : memref<108x256xf32, #tpu.memory_space<vmem>>, vector<1x256xf32>
    %1138 = vector.broadcast %1137 : vector<1x256xf32> to vector<8x256xf32>
    %1139 = arith.mulf %1138, %1124 : vector<8x256xf32>
    %1140 = arith.addf %1123, %1139 : vector<8x256xf32>
    %c0_536 = arith.constant 0 : index
    %c0_537 = arith.constant 0 : index
    %1141 = vector.load %arg6[%c0_536, %c0_537] : memref<1x32xf32, #tpu.memory_space<vmem>>, vector<1x32xf32>
    %1142 = vector.shape_cast %1141 : vector<1x32xf32> to vector<1x32xf32>
    %1143 = vector.broadcast %1142 : vector<1x32xf32> to vector<8x32xf32>
    %c0_538 = arith.constant 0 : index
    %c0_539 = arith.constant 0 : index
    %c0_540 = arith.constant 0 : index
    %1144 = vector.load %arg17[%c0_538, %c0_539, %c0_540] : memref<4x8x256xf32, #tpu.memory_space<vmem>>, vector<1x8x256xf32>
    %1145 = vector.shape_cast %1144 : vector<1x8x256xf32> to vector<8x256xf32>
    %1146 = vector.shape_cast %1128 : vector<8x256xf32> to vector<1x8x256xf32>
    tpu.vector_store %arg17[%c0_538, %c0_539, %c0_540], %1146 {strides = array<i32>} : memref<4x8x256xf32, #tpu.memory_space<vmem>>, vector<1x8x256xf32>,
    %c0_541 = arith.constant 0 : index
    %c0_542 = arith.constant 0 : index
    %c0_543 = arith.constant 0 : index
    %1147 = vector.load %arg17[%c0_541, %c0_542, %c0_543] : memref<4x8x256xf32, #tpu.memory_space<vmem>>, vector<1x8x239xf32>
    %1148 = vector.shape_cast %1147 : vector<1x8x239xf32> to vector<8x239xf32>
    %c0_544 = arith.constant 0 : index
    %c0_545 = arith.constant 0 : index
    %c1_546 = arith.constant 1 : index
    %1149 = vector.load %arg17[%c0_544, %c0_545, %c1_546] : memref<4x8x256xf32, #tpu.memory_space<vmem>>, vector<1x8x239xf32>
    %1150 = vector.shape_cast %1149 : vector<1x8x239xf32> to vector<8x239xf32>
    %1151 = arith.addf %1148, %1150 : vector<8x239xf32>
    %c0_547 = arith.constant 0 : index
    %c0_548 = arith.constant 0 : index
    %c16_549 = arith.constant 16 : index
    %1152 = vector.load %arg17[%c0_547, %c0_548, %c16_549] : memref<4x8x256xf32, #tpu.memory_space<vmem>>, vector<1x8x239xf32>
    %1153 = vector.shape_cast %1152 : vector<1x8x239xf32> to vector<8x239xf32>
    %1154 = arith.addf %1151, %1153 : vector<8x239xf32>
    %c0_550 = arith.constant 0 : index
    %c0_551 = arith.constant 0 : index
    %c17_552 = arith.constant 17 : index
    %1155 = vector.load %arg17[%c0_550, %c0_551, %c17_552] : memref<4x8x256xf32, #tpu.memory_space<vmem>>, vector<1x8x239xf32>
    %1156 = vector.shape_cast %1155 : vector<1x8x239xf32> to vector<8x239xf32>
    %1157 = arith.addf %1154, %1156 : vector<8x239xf32>
    %c0_553 = arith.constant 0 : index
    %1158 = memref.load %arg13[%c0_553] : memref<4xf32, #tpu.memory_space<smem>>
    %1159 = vector.broadcast %1158 : f32 to vector<8x239xf32>
    %1160 = arith.addf %1157, %1159 : vector<8x239xf32>
    %c0_554 = arith.constant 0 : index
    %c0_555 = arith.constant 0 : index
    %1161 = vector.load %arg3[%c0_554, %c0_555] : memref<4x256xf32, #tpu.memory_space<vmem>>, vector<1x239xf32>
    %cst_556 = arith.constant 5.000000e-01 : f32
    %1162 = vector.broadcast %cst_556 : f32 to vector<1x239xf32>
    %1163 = arith.cmpf ogt, %1161, %1162 : vector<1x239xf32>
    %cst_557 = arith.constant -3.000000e+38 : f32
    %1164 = vector.shape_cast %1163 : vector<1x239xi1> to vector<1x239xi1>
    %1165 = vector.broadcast %1164 : vector<1x239xi1> to vector<8x239xi1>
    %1166 = vector.broadcast %cst_557 : f32 to vector<8x239xf32>
    %1167 = arith.select %1165, %1160, %1166 : vector<8x239xi1>, vector<8x239xf32>
    %cst_558 = arith.constant dense<0xFF800000> : vector<8xf32>
    %1168 = vector.multi_reduction <maximumf>, %1167, %cst_558 [1] : vector<8x239xf32> to vector<8xf32>
    %1169 = vector.shape_cast %1168 : vector<8xf32> to vector<8x1xf32>
    %cst_559 = arith.constant 0.000000e+00 : f32
    %1170 = vector.broadcast %cst_559 : f32 to vector<8x1xf32>
    %1171 = arith.maximumf %1169, %1170 : vector<8x1xf32>
    %1172 = vector.shape_cast %1171 : vector<8x1xf32> to vector<8x1xf32>
    %1173 = vector.broadcast %1172 : vector<8x1xf32> to vector<8x32xf32>
    %c0_560 = arith.constant 0 : index
    %c0_561 = arith.constant 0 : index
    %1174 = vector.load %arg5[%c0_560, %c0_561] : memref<4x32xf32, #tpu.memory_space<vmem>>, vector<1x32xf32>
    %1175 = vector.broadcast %1174 : vector<1x32xf32> to vector<8x32xf32>
    %1176 = arith.mulf %1173, %1175 : vector<8x32xf32>
    %1177 = arith.addf %1143, %1176 : vector<8x32xf32>
    %c1_562 = arith.constant 1 : index
    %c0_563 = arith.constant 0 : index
    %c0_564 = arith.constant 0 : index
    %1178 = vector.load %arg17[%c1_562, %c0_563, %c0_564] : memref<4x8x256xf32, #tpu.memory_space<vmem>>, vector<1x8x256xf32>
    %1179 = vector.shape_cast %1178 : vector<1x8x256xf32> to vector<8x256xf32>
    %1180 = vector.shape_cast %1132 : vector<8x256xf32> to vector<1x8x256xf32>
    tpu.vector_store %arg17[%c1_562, %c0_563, %c0_564], %1180 {strides = array<i32>} : memref<4x8x256xf32, #tpu.memory_space<vmem>>, vector<1x8x256xf32>,
    %c1_565 = arith.constant 1 : index
    %c0_566 = arith.constant 0 : index
    %c0_567 = arith.constant 0 : index
    %1181 = vector.load %arg17[%c1_565, %c0_566, %c0_567] : memref<4x8x256xf32, #tpu.memory_space<vmem>>, vector<1x8x239xf32>
    %1182 = vector.shape_cast %1181 : vector<1x8x239xf32> to vector<8x239xf32>
    %c1_568 = arith.constant 1 : index
    %c0_569 = arith.constant 0 : index
    %c1_570 = arith.constant 1 : index
    %1183 = vector.load %arg17[%c1_568, %c0_569, %c1_570] : memref<4x8x256xf32, #tpu.memory_space<vmem>>, vector<1x8x239xf32>
    %1184 = vector.shape_cast %1183 : vector<1x8x239xf32> to vector<8x239xf32>
    %1185 = arith.addf %1182, %1184 : vector<8x239xf32>
    %c1_571 = arith.constant 1 : index
    %c0_572 = arith.constant 0 : index
    %c16_573 = arith.constant 16 : index
    %1186 = vector.load %arg17[%c1_571, %c0_572, %c16_573] : memref<4x8x256xf32, #tpu.memory_space<vmem>>, vector<1x8x239xf32>
    %1187 = vector.shape_cast %1186 : vector<1x8x239xf32> to vector<8x239xf32>
    %1188 = arith.addf %1185, %1187 : vector<8x239xf32>
    %c1_574 = arith.constant 1 : index
    %c0_575 = arith.constant 0 : index
    %c17_576 = arith.constant 17 : index
    %1189 = vector.load %arg17[%c1_574, %c0_575, %c17_576] : memref<4x8x256xf32, #tpu.memory_space<vmem>>, vector<1x8x239xf32>
    %1190 = vector.shape_cast %1189 : vector<1x8x239xf32> to vector<8x239xf32>
    %1191 = arith.addf %1188, %1190 : vector<8x239xf32>
    %c1_577 = arith.constant 1 : index
    %1192 = memref.load %arg13[%c1_577] : memref<4xf32, #tpu.memory_space<smem>>
    %1193 = vector.broadcast %1192 : f32 to vector<8x239xf32>
    %1194 = arith.addf %1191, %1193 : vector<8x239xf32>
    %c0_578 = arith.constant 0 : index
    %c0_579 = arith.constant 0 : index
    %1195 = vector.load %arg3[%c0_578, %c0_579] : memref<4x256xf32, #tpu.memory_space<vmem>>, vector<1x239xf32>
    %cst_580 = arith.constant 5.000000e-01 : f32
    %1196 = vector.broadcast %cst_580 : f32 to vector<1x239xf32>
    %1197 = arith.cmpf ogt, %1195, %1196 : vector<1x239xf32>
    %cst_581 = arith.constant -3.000000e+38 : f32
    %1198 = vector.shape_cast %1197 : vector<1x239xi1> to vector<1x239xi1>
    %1199 = vector.broadcast %1198 : vector<1x239xi1> to vector<8x239xi1>
    %1200 = vector.broadcast %cst_581 : f32 to vector<8x239xf32>
    %1201 = arith.select %1199, %1194, %1200 : vector<8x239xi1>, vector<8x239xf32>
    %cst_582 = arith.constant dense<0xFF800000> : vector<8xf32>
    %1202 = vector.multi_reduction <maximumf>, %1201, %cst_582 [1] : vector<8x239xf32> to vector<8xf32>
    %1203 = vector.shape_cast %1202 : vector<8xf32> to vector<8x1xf32>
    %cst_583 = arith.constant 0.000000e+00 : f32
    %1204 = vector.broadcast %cst_583 : f32 to vector<8x1xf32>
    %1205 = arith.maximumf %1203, %1204 : vector<8x1xf32>
    %1206 = vector.shape_cast %1205 : vector<8x1xf32> to vector<8x1xf32>
    %1207 = vector.broadcast %1206 : vector<8x1xf32> to vector<8x32xf32>
    %c1_584 = arith.constant 1 : index
    %c0_585 = arith.constant 0 : index
    %1208 = vector.load %arg5[%c1_584, %c0_585] : memref<4x32xf32, #tpu.memory_space<vmem>>, vector<1x32xf32>
    %1209 = vector.broadcast %1208 : vector<1x32xf32> to vector<8x32xf32>
    %1210 = arith.mulf %1207, %1209 : vector<8x32xf32>
    %1211 = arith.addf %1177, %1210 : vector<8x32xf32>
    %c2_586 = arith.constant 2 : index
    %c0_587 = arith.constant 0 : index
    %c0_588 = arith.constant 0 : index
    %1212 = vector.load %arg17[%c2_586, %c0_587, %c0_588] : memref<4x8x256xf32, #tpu.memory_space<vmem>>, vector<1x8x256xf32>
    %1213 = vector.shape_cast %1212 : vector<1x8x256xf32> to vector<8x256xf32>
    %1214 = vector.shape_cast %1136 : vector<8x256xf32> to vector<1x8x256xf32>
    tpu.vector_store %arg17[%c2_586, %c0_587, %c0_588], %1214 {strides = array<i32>} : memref<4x8x256xf32, #tpu.memory_space<vmem>>, vector<1x8x256xf32>,
    %c2_589 = arith.constant 2 : index
    %c0_590 = arith.constant 0 : index
    %c0_591 = arith.constant 0 : index
    %1215 = vector.load %arg17[%c2_589, %c0_590, %c0_591] : memref<4x8x256xf32, #tpu.memory_space<vmem>>, vector<1x8x239xf32>
    %1216 = vector.shape_cast %1215 : vector<1x8x239xf32> to vector<8x239xf32>
    %c2_592 = arith.constant 2 : index
    %c0_593 = arith.constant 0 : index
    %c1_594 = arith.constant 1 : index
    %1217 = vector.load %arg17[%c2_592, %c0_593, %c1_594] : memref<4x8x256xf32, #tpu.memory_space<vmem>>, vector<1x8x239xf32>
    %1218 = vector.shape_cast %1217 : vector<1x8x239xf32> to vector<8x239xf32>
    %1219 = arith.addf %1216, %1218 : vector<8x239xf32>
    %c2_595 = arith.constant 2 : index
    %c0_596 = arith.constant 0 : index
    %c16_597 = arith.constant 16 : index
    %1220 = vector.load %arg17[%c2_595, %c0_596, %c16_597] : memref<4x8x256xf32, #tpu.memory_space<vmem>>, vector<1x8x239xf32>
    %1221 = vector.shape_cast %1220 : vector<1x8x239xf32> to vector<8x239xf32>
    %1222 = arith.addf %1219, %1221 : vector<8x239xf32>
    %c2_598 = arith.constant 2 : index
    %c0_599 = arith.constant 0 : index
    %c17_600 = arith.constant 17 : index
    %1223 = vector.load %arg17[%c2_598, %c0_599, %c17_600] : memref<4x8x256xf32, #tpu.memory_space<vmem>>, vector<1x8x239xf32>
    %1224 = vector.shape_cast %1223 : vector<1x8x239xf32> to vector<8x239xf32>
    %1225 = arith.addf %1222, %1224 : vector<8x239xf32>
    %c2_601 = arith.constant 2 : index
    %1226 = memref.load %arg13[%c2_601] : memref<4xf32, #tpu.memory_space<smem>>
    %1227 = vector.broadcast %1226 : f32 to vector<8x239xf32>
    %1228 = arith.addf %1225, %1227 : vector<8x239xf32>
    %c0_602 = arith.constant 0 : index
    %c0_603 = arith.constant 0 : index
    %1229 = vector.load %arg3[%c0_602, %c0_603] : memref<4x256xf32, #tpu.memory_space<vmem>>, vector<1x239xf32>
    %cst_604 = arith.constant 5.000000e-01 : f32
    %1230 = vector.broadcast %cst_604 : f32 to vector<1x239xf32>
    %1231 = arith.cmpf ogt, %1229, %1230 : vector<1x239xf32>
    %cst_605 = arith.constant -3.000000e+38 : f32
    %1232 = vector.shape_cast %1231 : vector<1x239xi1> to vector<1x239xi1>
    %1233 = vector.broadcast %1232 : vector<1x239xi1> to vector<8x239xi1>
    %1234 = vector.broadcast %cst_605 : f32 to vector<8x239xf32>
    %1235 = arith.select %1233, %1228, %1234 : vector<8x239xi1>, vector<8x239xf32>
    %cst_606 = arith.constant dense<0xFF800000> : vector<8xf32>
    %1236 = vector.multi_reduction <maximumf>, %1235, %cst_606 [1] : vector<8x239xf32> to vector<8xf32>
    %1237 = vector.shape_cast %1236 : vector<8xf32> to vector<8x1xf32>
    %cst_607 = arith.constant 0.000000e+00 : f32
    %1238 = vector.broadcast %cst_607 : f32 to vector<8x1xf32>
    %1239 = arith.maximumf %1237, %1238 : vector<8x1xf32>
    %1240 = vector.shape_cast %1239 : vector<8x1xf32> to vector<8x1xf32>
    %1241 = vector.broadcast %1240 : vector<8x1xf32> to vector<8x32xf32>
    %c2_608 = arith.constant 2 : index
    %c0_609 = arith.constant 0 : index
    %1242 = vector.load %arg5[%c2_608, %c0_609] : memref<4x32xf32, #tpu.memory_space<vmem>>, vector<1x32xf32>
    %1243 = vector.broadcast %1242 : vector<1x32xf32> to vector<8x32xf32>
    %1244 = arith.mulf %1241, %1243 : vector<8x32xf32>
    %1245 = arith.addf %1211, %1244 : vector<8x32xf32>
    %c3_610 = arith.constant 3 : index
    %c0_611 = arith.constant 0 : index
    %c0_612 = arith.constant 0 : index
    %1246 = vector.load %arg17[%c3_610, %c0_611, %c0_612] : memref<4x8x256xf32, #tpu.memory_space<vmem>>, vector<1x8x256xf32>
    %1247 = vector.shape_cast %1246 : vector<1x8x256xf32> to vector<8x256xf32>
    %1248 = vector.shape_cast %1140 : vector<8x256xf32> to vector<1x8x256xf32>
    tpu.vector_store %arg17[%c3_610, %c0_611, %c0_612], %1248 {strides = array<i32>} : memref<4x8x256xf32, #tpu.memory_space<vmem>>, vector<1x8x256xf32>,
    %c3_613 = arith.constant 3 : index
    %c0_614 = arith.constant 0 : index
    %c0_615 = arith.constant 0 : index
    %1249 = vector.load %arg17[%c3_613, %c0_614, %c0_615] : memref<4x8x256xf32, #tpu.memory_space<vmem>>, vector<1x8x239xf32>
    %1250 = vector.shape_cast %1249 : vector<1x8x239xf32> to vector<8x239xf32>
    %c3_616 = arith.constant 3 : index
    %c0_617 = arith.constant 0 : index
    %c1_618 = arith.constant 1 : index
    %1251 = vector.load %arg17[%c3_616, %c0_617, %c1_618] : memref<4x8x256xf32, #tpu.memory_space<vmem>>, vector<1x8x239xf32>
    %1252 = vector.shape_cast %1251 : vector<1x8x239xf32> to vector<8x239xf32>
    %1253 = arith.addf %1250, %1252 : vector<8x239xf32>
    %c3_619 = arith.constant 3 : index
    %c0_620 = arith.constant 0 : index
    %c16_621 = arith.constant 16 : index
    %1254 = vector.load %arg17[%c3_619, %c0_620, %c16_621] : memref<4x8x256xf32, #tpu.memory_space<vmem>>, vector<1x8x239xf32>
    %1255 = vector.shape_cast %1254 : vector<1x8x239xf32> to vector<8x239xf32>
    %1256 = arith.addf %1253, %1255 : vector<8x239xf32>
    %c3_622 = arith.constant 3 : index
    %c0_623 = arith.constant 0 : index
    %c17_624 = arith.constant 17 : index
    %1257 = vector.load %arg17[%c3_622, %c0_623, %c17_624] : memref<4x8x256xf32, #tpu.memory_space<vmem>>, vector<1x8x239xf32>
    %1258 = vector.shape_cast %1257 : vector<1x8x239xf32> to vector<8x239xf32>
    %1259 = arith.addf %1256, %1258 : vector<8x239xf32>
    %c3_625 = arith.constant 3 : index
    %1260 = memref.load %arg13[%c3_625] : memref<4xf32, #tpu.memory_space<smem>>
    %1261 = vector.broadcast %1260 : f32 to vector<8x239xf32>
    %1262 = arith.addf %1259, %1261 : vector<8x239xf32>
    %c0_626 = arith.constant 0 : index
    %c0_627 = arith.constant 0 : index
    %1263 = vector.load %arg3[%c0_626, %c0_627] : memref<4x256xf32, #tpu.memory_space<vmem>>, vector<1x239xf32>
    %cst_628 = arith.constant 5.000000e-01 : f32
    %1264 = vector.broadcast %cst_628 : f32 to vector<1x239xf32>
    %1265 = arith.cmpf ogt, %1263, %1264 : vector<1x239xf32>
    %cst_629 = arith.constant -3.000000e+38 : f32
    %1266 = vector.shape_cast %1265 : vector<1x239xi1> to vector<1x239xi1>
    %1267 = vector.broadcast %1266 : vector<1x239xi1> to vector<8x239xi1>
    %1268 = vector.broadcast %cst_629 : f32 to vector<8x239xf32>
    %1269 = arith.select %1267, %1262, %1268 : vector<8x239xi1>, vector<8x239xf32>
    %cst_630 = arith.constant dense<0xFF800000> : vector<8xf32>
    %1270 = vector.multi_reduction <maximumf>, %1269, %cst_630 [1] : vector<8x239xf32> to vector<8xf32>
    %1271 = vector.shape_cast %1270 : vector<8xf32> to vector<8x1xf32>
    %cst_631 = arith.constant 0.000000e+00 : f32
    %1272 = vector.broadcast %cst_631 : f32 to vector<8x1xf32>
    %1273 = arith.maximumf %1271, %1272 : vector<8x1xf32>
    %1274 = vector.shape_cast %1273 : vector<8x1xf32> to vector<8x1xf32>
    %1275 = vector.broadcast %1274 : vector<8x1xf32> to vector<8x32xf32>
    %c3_632 = arith.constant 3 : index
    %c0_633 = arith.constant 0 : index
    %1276 = vector.load %arg5[%c3_632, %c0_633] : memref<4x32xf32, #tpu.memory_space<vmem>>, vector<1x32xf32>
    %1277 = vector.broadcast %1276 : vector<1x32xf32> to vector<8x32xf32>
    %1278 = arith.mulf %1275, %1277 : vector<8x32xf32>
    %1279 = arith.addf %1245, %1278 : vector<8x32xf32>
    %c0_634 = arith.constant 0 : index
    %c0_635 = arith.constant 0 : index
    %1280 = vector.load %arg7[%c0_634, %c0_635] : memref<32x32xf32, #tpu.memory_space<vmem>>, vector<32x32xf32>
    %cst_636 = arith.constant dense<0.000000e+00> : vector<8x32xf32>
    %1281 = tpu.matmul %1279, %1280, %cst_636 {dimension_numbers = #tpu.dot_dimension_numbers<[1], [0], [0], [1], [0, 0, 1, 1], [], []>, precision = #tpu.contract_precision<fp32>} : vector<8x32xf32>, vector<32x32xf32>, vector<8x32xf32> -> vector<8x32xf32>
    %c0_637 = arith.constant 0 : index
    %c0_638 = arith.constant 0 : index
    %1282 = vector.load %arg8[%c0_637, %c0_638] : memref<1x32xf32, #tpu.memory_space<vmem>>, vector<1x32xf32>
    %1283 = vector.broadcast %1282 : vector<1x32xf32> to vector<8x32xf32>
    %1284 = arith.addf %1281, %1283 : vector<8x32xf32>
    %c0_639 = arith.constant 0 : index
    %c0_640 = arith.constant 0 : index
    %1285 = vector.load %arg9[%c0_639, %c0_640] : memref<8x32xf32, #tpu.memory_space<vmem>>, vector<8x32xf32>
    %1286 = arith.mulf %1284, %1285 : vector<8x32xf32>
    %c0_641 = arith.constant 0 : index
    %c0_642 = arith.constant 0 : index
    %1287 = vector.load %arg10[%c0_641, %c0_642] : memref<8x32xf32, #tpu.memory_space<vmem>>, vector<8x32xf32>
    %1288 = arith.addf %1286, %1287 : vector<8x32xf32>
    %1289 = math.tanh %1288 : vector<8x32xf32>
    %c0_643 = arith.constant 0 : index
    %c0_644 = arith.constant 0 : index
    %c0_645 = arith.constant 0 : index
    %1290 = vector.load %arg14[%c0_643, %c0_644, %c0_645] : memref<1x8x32xf32, #tpu.memory_space<vmem>>, vector<1x8x32xf32>
    %1291 = vector.shape_cast %1290 : vector<1x8x32xf32> to vector<8x32xf32>
    %1292 = vector.shape_cast %1289 : vector<8x32xf32> to vector<1x8x32xf32>
    tpu.vector_store %arg14[%c0_643, %c0_644, %c0_645], %1292 {strides = array<i32>} : memref<1x8x32xf32, #tpu.memory_space<vmem>>, vector<1x8x32xf32>,
    return
  }
  func.func @transform_0(%arg0: i32) -> (i32, i32, i32, i32) {
    %c0_i32 = arith.constant 0 : i32
    %c0_i32_0 = arith.constant 0 : i32
    %c0_i32_1 = arith.constant 0 : i32
    %c0_i32_2 = arith.constant 0 : i32
    return %arg0, %c0_i32, %c0_i32_0, %c0_i32_1 : i32, i32, i32, i32
  }
  func.func @transform_1(%arg0: i32) -> (i32, i32) {
    %c0_i32 = arith.constant 0 : i32
    %c0_i32_0 = arith.constant 0 : i32
    %c0_i32_1 = arith.constant 0 : i32
    return %c0_i32, %c0_i32_0 : i32, i32
  }
  func.func @transform_2(%arg0: i32) -> (i32, i32) {
    %c0_i32 = arith.constant 0 : i32
    %c0_i32_0 = arith.constant 0 : i32
    %c0_i32_1 = arith.constant 0 : i32
    return %c0_i32, %c0_i32_0 : i32, i32
  }
  func.func @transform_3(%arg0: i32) -> (i32, i32) {
    %c0_i32 = arith.constant 0 : i32
    %c0_i32_0 = arith.constant 0 : i32
    %c0_i32_1 = arith.constant 0 : i32
    return %c0_i32, %c0_i32_0 : i32, i32
  }
  func.func @transform_4(%arg0: i32) -> (i32, i32) {
    %c0_i32 = arith.constant 0 : i32
    %c0_i32_0 = arith.constant 0 : i32
    %c0_i32_1 = arith.constant 0 : i32
    return %c0_i32, %c0_i32_0 : i32, i32
  }
  func.func @transform_5(%arg0: i32) -> (i32, i32) {
    %c0_i32 = arith.constant 0 : i32
    %c0_i32_0 = arith.constant 0 : i32
    %c0_i32_1 = arith.constant 0 : i32
    return %c0_i32, %c0_i32_0 : i32, i32
  }
  func.func @transform_6(%arg0: i32) -> (i32, i32) {
    %c0_i32 = arith.constant 0 : i32
    %c0_i32_0 = arith.constant 0 : i32
    %c0_i32_1 = arith.constant 0 : i32
    return %c0_i32, %c0_i32_0 : i32, i32
  }
  func.func @transform_7(%arg0: i32) -> (i32, i32) {
    %c0_i32 = arith.constant 0 : i32
    %c0_i32_0 = arith.constant 0 : i32
    %c0_i32_1 = arith.constant 0 : i32
    return %c0_i32, %c0_i32_0 : i32, i32
  }
  func.func @transform_8(%arg0: i32) -> (i32, i32) {
    %c0_i32 = arith.constant 0 : i32
    %c0_i32_0 = arith.constant 0 : i32
    %c0_i32_1 = arith.constant 0 : i32
    return %c0_i32, %c0_i32_0 : i32, i32
  }
  func.func @transform_9(%arg0: i32) -> (i32, i32) {
    %c0_i32 = arith.constant 0 : i32
    %c0_i32_0 = arith.constant 0 : i32
    %c0_i32_1 = arith.constant 0 : i32
    return %c0_i32, %c0_i32_0 : i32, i32
  }
  func.func @transform_10(%arg0: i32) -> i32 {
    %c0_i32 = arith.constant 0 : i32
    %c0_i32_0 = arith.constant 0 : i32
    return %c0_i32 : i32
  }
  func.func @transform_11(%arg0: i32) -> i32 {
    %c0_i32 = arith.constant 0 : i32
    %c0_i32_0 = arith.constant 0 : i32
    return %c0_i32 : i32
  }
  func.func @transform_12(%arg0: i32) -> i32 {
    %c0_i32 = arith.constant 0 : i32
    %c0_i32_0 = arith.constant 0 : i32
    return %c0_i32 : i32
  }
  func.func @transform_13(%arg0: i32) -> (i32, i32, i32) {
    %c0_i32 = arith.constant 0 : i32
    %c0_i32_0 = arith.constant 0 : i32
    %c0_i32_1 = arith.constant 0 : i32
    return %arg0, %c0_i32, %c0_i32_0 : i32, i32, i32
  }
}

</mosaic_0001>

<bundles_post_ra>
// kernel: custom_cnn3d_spatial_forward.1
= control target key start
LH: loop header
LB: loop body
LE: loop exit
PB: predicated region body
PF: predicated region fallthrough
CT: control target
= control target key end

     0   :  { %s11955_s0 = inlined_call_operand.vmem [shape: f32[2,1,10,384], index: 0, kind: input, shape index: {}]   ;;  %s11956_s1 = inlined_call_operand.vmem [shape: f32[3,256], index: 1, kind: input, shape index: {}]   ;;  %s11957_s2 = inlined_call_operand.vmem [shape: f32[4,256], index: 2, kind: input, shape index: {}]   ;;  %s11958_s3 = inlined_call_operand.vmem [shape: f32[108,256], index: 3, kind: input, shape index: {}]   ;;  %s11959_s4 = inlined_call_operand.vmem [shape: f32[4,32], index: 4, kind: input, shape index: {}]   ;;  %s11960_s5 = inlined_call_operand.vmem [shape: f32[1,32], index: 5, kind: input, shape index: {}]   ;;  %s11961_s6 = inlined_call_operand.vmem [shape: f32[32,32], index: 6, kind: input, shape index: {}]   ;;  %s11962_s7 = inlined_call_operand.vmem [shape: f32[1,32], index: 7, kind: input, shape index: {}]   ;;  %s11963_s8 = inlined_call_operand.vmem [shape: f32[8,32], index: 8, kind: input, shape index: {}]   ;;  %s11964_s9 = inlined_call_operand.vmem [shape: f32[8,32], index: 9, kind: input, shape index: {}]   ;;  %s11965_s10 = inlined_call_operand.vmem [shape: f32[108], index: 10, kind: input, shape index: {}]   ;;  %s11966_s11 = inlined_call_operand.vmem [shape: f32[4], index: 11, kind: input, shape index: {}]   ;;  %s11967_s12 = inlined_call_operand.vmem [shape: f32[4], index: 12, kind: input, shape index: {}]   ;;  %s11968_s13 = inlined_call_operand.hbm [shape: f32[2,8,32], index: 13, kind: output, shape index: {}]  }
   0x1   :  { %12173 = sst [smem:[#allocation257_spill]] %s11955_s0 }
   0x2   :  { %12174 = sst [smem:[#allocation258_spill]] %s11956_s1 }
   0x3   :  { %12175 = sst [smem:[#allocation259_spill]] %s11965_s10 }
   0x4   :  { %12176 = sst [smem:[#allocation260_spill]] %s11966_s11 }
   0x5   :  { %12177 = sst [smem:[#allocation261_spill]] %s11967_s12 }
   0x6   :  { %18 = vsyncpa [#allocation7], 0 }
   0x7   :  { %19 = vsyncpa [#allocation9], 0 }
   0x8   :  { %20 = vsyncpa [#allocation6], 0 }
   0x9   :  { %22 = vsyncpa [#allocation6 + $0x1], 0  ;;  %s7145_s25 = smov 0   ;;  %s7147_s26 = smov 0  }
   0xa   :  { %s7149_s27 = smov 0   ;;  %s7151_s28 = smov 0  }
   0xb LB: > { %12178 = sst [smem:[#allocation15_spill]] %s7039_s27  ;;  %s7166_s29 = sadd.s32 4294967295, %s7043_s28   ;;  %s7043_s28 = sphi %s7151_s28, %s12805_s28   ;;  %s7039_s27 = sphi %s7149_s27, %s12807_s27   ;;  %s7035_s26 = sphi %s7147_s26, %s12809_s26   ;;  %s7031_s25 = sphi %s7145_s25, %s12808_s25  }
   0xc   : > { %s6551_s30 = sadd.s32 4294967294, %s7043_s28   ;;  %s7170_s14 = sadd.s32 1, %s7043_s28  }
   0xd   : > { %12179 = sst [smem:[#allocation16_spill]] %s7170_s14  ;;  %s313_s15 = sadd.s32 1, %s7039_s27 }
   0xe   : > { %s310_s16 = ssub.s32 %s7043_s28, %s7170_s14  ;;  %p323_p0 = scmp.ne.s32.totalorder %s7039_s27, %s7035_s26 }
   0xf   : > { %p311_p1 = scmp.eq.s32.totalorder %s310_s16, 0  ;;  %p324_p2 = scmp.eq.s32.totalorder %s7166_s29, 1 }
  0x10   : > { %p329_p3 = scmp.ne.s32.totalorder %s7035_s26, %s7031_s25  ;;  %p330_p4 = scmp.eq.s32.totalorder %s6551_s30, 1 }
  0x11   : > { %s7181_s17 = scalar_select %p311_p1, %s7039_s27, %s313_s15  }
  0x12   : > { %p7183_p5 = por %p324_p2, %p323_p0  ;;  %p7187_p6 = por %p330_p4, %p329_p3 }
  0x13   : > { %12180 = sst [smem:[#allocation17_spill]] %s7181_s17  ;;  %p6552_p7 = scmp.ge.s32.totalorder %s7043_s28, 1 }
  0x14   : > { %p337_p8 = scmp.lt.s32.totalorder %s7043_s28, 3  ;;  %p6820_p9 = scmp.eq.s32.totalorder %s7166_s29, 0 }
  0x15   : > { %s12184_s11 = sld [smem:[#allocation260_spill]]  ;;  %s7045_s14 = smov [#allocation8]  }
  0x16   : > { %p7194_p10 = pnand %p6552_p7, %p337_p8  ;;  %s12185_s10 = sld [smem:[#allocation259_spill]] }
  0x17   : > { %s12186_s12 = sld [smem:[#allocation261_spill]]  ;;  %s7046_s21 = smov [#allocation5]  }
  0x18   : > { %p6806_p11 = pneg %p7194_p10  ;;  %s7047_s22 = smov [#allocation10]  }
  0x1a   : > { %p6807_p12 = pnand %p6820_p9, %p6806_p11 }
  0x1b   : > { %s386_s23 = sshll.u32 %s12184_s11, 4  ;;  %s387_s23 = int_to_ptr.vmem [resolvable:$true] %s386_s23 }
  0x1c   : > { %s376_s15 = sshll.u32 %s12185_s10, 4  ;;  %417 = sbr.rel (%p7194_p10) target bundleno = 2748 (0xabc), region = 72  ;;  %s377_s15 = int_to_ptr.vmem [resolvable:$true] %s376_s15 }
  0x1d   : > { %s396_s27 = sshll.u32 %s12186_s12, 4  ;;  %s397_s27 = int_to_ptr.vmem [resolvable:$true] %s396_s27 }
  0x1e   : > { %6812 = dma.vmem_to_smem (!%p6807_p12), %s387_s23, 16, %s7045_s14, [#allocation9]  }
  0x1f   : > { %6809 = dma.vmem_to_smem (!%p6807_p12), %s377_s15, 16, %s7046_s21, [#allocation7]  }
  0x20   : > { %6815 = dma.vmem_to_smem (!%p6807_p12), %s397_s27, 16, %s7047_s22, [#allocation9]  }
  0x21   : > { %7018 = dma.done.wait (%p6820_p9), [#allocation7], 16  }
  0x22   : > { %7020 = vsyncadd (%p6820_p9), [#allocation7], 4294967280 }
  0x23   : > { %7022 = dma.done.wait (%p6820_p9), [#allocation9], 32  }
  0x24   : > { %7024 = vsyncadd (%p6820_p9), [#allocation9], 4294967264 }
  0x25   : > { %434 = sfence }
  0x26   : > { %s12187_s1 = sld [smem:[#allocation258_spill]]  ;;  %p473_p13 = scmp.lt.s32.totalorder %s7166_s29, 1  ;;  %vm728_vm0 = vcmask 515072   ;;  %vm627_vm1 = vcmask 400384   ;;  %vm918_vm2 = vcmask 531456   ;;  %vm1019_vm3 = vcmask 646144  }
  0x27   : > { %s6566_s27 = sld [smem:[#allocation5 + $0x1]]  ;;  %s7048_s23 = smov 47   ;;  %vm2675_vm4 = vcmask 1045504   ;;  %vm1209_vm5 = vcmask 662528   ;;  %vm1332_vm6 = vcmask 1046528   ;;  %vm489_vm7 = vcmask 384000  }
  0x28   : > { %s474_s20 = scalar_select %p473_p13, %s7166_s29, 1  ;;  %vm543_vm8 = vcmask 1039360   ;;  %vm839_vm9 = vcmask 908288   ;;  %vm649_vm10 = vcmask 1031168   ;;  %vm750_vm11 = vcmask 916480  }
  0x29   : > { %s6567_s24 = sld [smem:[#allocation5 + $0x1c]]  ;;  %s12090_s22 = smov 127   ;;  %vm940_vm12 = vcmask 900096   ;;  %vm1041_vm13 = vcmask 785408   ;;  %vm1130_vm14 = vcmask 777216   ;;  %vm1231_vm15 = vcmask 769024  }
  0x2a   : > { %s6791_s30 = smul.u32 48, %s474_s20  ;;  %s12188_s0 = sld [smem:[#allocation257_spill]] }
  0x2b   : > { %s6568_s14 = sld [smem:[#allocation5 + $0x37]]  ;;  %s12096_s16 = smov 111  }
  0x2c   : > { %v481_v0 = vld [vmem:[%s12187_s1] ss:$4 sm:$0x3]  ;;  %s6569_s17 = sld [smem:[#allocation5 + $0x52]]  ;;  %s12086_s20 = smov 126  }
  0x2d   : > { %v7225_v1 = vperm.slane %v481_v0, 0  ;;  %v530_v3 = vstv %s6566_s27  ;;  %v7240_v5 = vperm.slane %v481_v0, 1  ;;  %v6570_v21 = vld [vmem:[%s12187_s1 + $0x2] ss:$4 sm:$0x3]  ;;  %s6580_s15 = sld [smem:[#allocation5 + $0x1f]] }
  0x2e   : > { %v7271_v22 = vperm.slane %v6570_v21, 0  ;;  %v7274_v24 = vperm.slane %v6570_v21, 1  ;;  %s6575_s27 = sld [smem:[#allocation5 + $0x3]]  ;;  %s12386_s1 = smov 111  }
  0x2f   : > { %485 = vrot.lane.b32.xlu0 %v7225_v1, %s7048_s23  ;;  %v553_v8 = vstv %s6567_s24  ;;  %s7051_s24 = smov 63   ;;  %s12752_s10 = smov 98  }
  0x30   : > { %s7232_s21 = scalar_lea.vmem %s12188_s0, %s6791_s30  ;;  %s6579_s30 = sld [smem:[#allocation5 + $0x4]] }
  0x31   : > { %v7235_v2 = vld [vmem:[%s7232_s21 + $0x10] sm:$0xff]  ;;  %v7238_v4 = vld [vmem:[%s7232_s21] sm:$0xff]  ;;  %v7248_v9 = vld [vmem:[%s7232_s21 + $0x8] sm:$0xff]  ;;  %v575_v13 = vstv %s6568_s14  ;;  %s6571_s14 = sld [smem:[#allocation5 + $0x2]]  ;;  %s12754_s11 = smov 2  }
  0x32   : > { %v533_v6 = vmul.f32 %v530_v3, %v7235_v2  ;;  %v531_v7 = vmul.f32 %v530_v3, %v7238_v4  ;;  %v554_v10 = vmul.f32 %v553_v8, %v7238_v4  ;;  %v532_v11 = vmul.f32 %v530_v3, %v7248_v9  ;;  %s8735_s0 = sld [smem:[#allocation5 + $0x3f]] }
  0x33   : > { %v555_v12 = vmul.f32 %v553_v8, %v7248_v9  ;;  %v576_v14 = vmul.f32 %v575_v13, %v7238_v4  ;;  %v556_v15 = vmul.f32 %v553_v8, %v7235_v2  ;;  %v577_v16 = vmul.f32 %v575_v13, %v7248_v9 }
  0x34   : > { %541 = vrot.lane.b32.xlu2 %v533_v6, %s12090_s22  ;;  %537 = vrot.lane.b32.xlu1 %v531_v7, %s12090_s22  ;;  %v597_v17 = vstv %s6569_s17  ;;  %v578_v19 = vmul.f32 %v575_v13, %v7235_v2  ;;  %v849_v28 = vstv %s6580_s15  ;;  %s6572_s17 = sld [smem:[#allocation5 + $0x1d]] }
  0x35   : > { %v598_v18 = vmul.f32 %v597_v17, %v7238_v4  ;;  %v599_v20 = vmul.f32 %v597_v17, %v7248_v9  ;;  %v600_v23 = vmul.f32 %v597_v17, %v7235_v2  ;;  %v851_v29 = vmul.f32 %v849_v28, %v7248_v9  ;;  %s6577_s15 = sld [smem:[#allocation5 + $0x39]] }
  0x36   : > { %v826_v25 = vstv %s6579_s30  ;;  %v852_v31 = vmul.f32 %v849_v28, %v7235_v2  ;;  %v850_v36 = vmul.f32 %v849_v28, %v7238_v4  ;;  %v737_v50 = vstv %s6575_s27  ;;  %s12088_s30 = smov 112   ;;  %s6581_s27 = sld [smem:[#allocation5 + $0x3a]] }
  0x37   : > { %487 = vrot.lane.b32.xlu0 %v7240_v5, %s7048_s23  ;;  %s7050_s23 = smov 49   ;;  %v828_v26 = vmul.f32 %v826_v25, %v7248_v9  ;;  %v829_v27 = vmul.f32 %v826_v25, %v7235_v2  ;;  %v827_v33 = vmul.f32 %v826_v25, %v7238_v4  ;;  %v636_v43 = vstv %s6571_s14  ;;  %s6574_s14 = sld [smem:[#allocation5 + $0x53]] }
  0x3a   : > { %v659_v46 = vstv %s6572_s17  ;;  %s6578_s17 = sld [smem:[#allocation5 + $0x54]] }
  0x3b   : > { %v782_v60 = vstv %s6577_s15  ;;  %s6583_s15 = sld [smem:[#allocation5 + $0x5]] }
  0x3c   : > { %560 = vrot.lane.b32.xlu2 %v554_v10, %s12090_s22  ;;  %539 = vrot.lane.b32.xlu1 %v532_v11, %s12090_s22 }
  0x3d   : > { %v703_v61 = vstv %s6574_s14  ;;  %s6584_s14 = sld [smem:[#allocation5 + $0x20]] }
  0x3f   : > { %562 = vrot.lane.b32.xlu0 %v555_v12, %s12090_s22 }
  0x40   : > { %v804_v8 = vstv %s6578_s17  ;;  %s12094_s17 = smov 110  }
  0x44   : > { %582 = vrot.lane.b32.xlu2 %v576_v14, %s12090_s22  ;;  %564 = vrot.lane.b32.xlu1 %v556_v15, %s12090_s22 }
  0x47   : > { %584 = vrot.lane.b32.xlu0 %v577_v16, %s12090_s22 }
  0x4c   : > { %604 = vrot.lane.b32.xlu2 %v598_v18, %s12090_s22  ;;  %586 = vrot.lane.b32.xlu1 %v578_v19, %s12090_s22 }
  0x4f   : > { %606 = vrot.lane.b32.xlu0 %v599_v20, %s12090_s22 }
  0x54   : > { %623 = vrot.lane.b32.xlu2 %v7271_v22, %s7050_s23  ;;  %608 = vrot.lane.b32.xlu1 %v600_v23, %s12090_s22 }
  0x57   : > { %625 = vrot.lane.b32.xlu0 %v7274_v24, %s7050_s23  ;;  %s6576_s23 = sld [smem:[#allocation5 + $0x1e]] }
  0x5c   : > { %726 = vrot.lane.b32.xlu2 %v7240_v5, %s7051_s24  ;;  %724 = vrot.lane.b32.xlu1 %v7225_v1, %s7051_s24  ;;  %s6573_s24 = sld [smem:[#allocation5 + $0x38]] }
  0x5d   : > { %v760_v54 = vstv %s6576_s23  ;;  %s6582_s23 = sld [smem:[#allocation5 + $0x55]] }
  0x5f   : > { %833 = vrot.lane.b32.xlu0 %v827_v33, %s12096_s16 }
  0x62   : > { %v681_v55 = vstv %s6573_s24  ;;  %s7055_s24 = smov 65  }
  0x64   : > { %835 = vrot.lane.b32.xlu1 %v828_v26, %s12096_s16  ;;  %837 = vrot.lane.b32.xlu2 %v829_v27, %s12096_s16 }
  0x67   : > { %856 = vrot.lane.b32.xlu0 %v850_v36, %s12096_s16 }
  0x6c   : > { %858 = vrot.lane.b32.xlu1 %v851_v29, %s12096_s16  ;;  %860 = vrot.lane.b32.xlu2 %v852_v31, %s12096_s16  ;;  %v871_v31 = vstv %s6581_s27  ;;  %s6585_s27 = sld [smem:[#allocation5 + $0x3b]] }
  0x6d   : > { %v873_v33 = vmul.f32 %v871_v31, %v7248_v9 }
  0x8e   : > { %v7287_v30 = vpop.permute.xlu2 %541 }
  0x96   : > { %v7291_v32 = vpop.permute.xlu2 %560 }
  0x9e   : > { %v7295_v34 = vpop.permute.xlu2 %582 }
  0xa1   : > { %v7297_v35 = vpop.permute.xlu0 %485 }
  0xa6   : > { %v7300_v37 = vpop.permute.xlu2 %604  ;;  %v7302_v38 = vpop.permute.xlu1 %537 }
  0xa7   : > { %12189 = vst [vmem:[#allocation18_spill] sm:$0xff] %v7300_v37 }
  0xa9   : > { %v7305_v39 = vpop.permute.xlu0 %487 }
  0xae   : > { %v7307_v40 = vpop.permute.xlu2 %623  ;;  %v7309_v41 = vpop.permute.xlu1 %539 }
  0xaf   : > { %v632_v44 = vmul.f32 %v7307_v40, %v7238_v4 }
  0xb1   : > { %v7311_v42 = vpop.permute.xlu0 %562  ;;  %v637_v45 = vmul.f32 %v636_v43, %v632_v44  ;;  %v660_v52 = vmul.f32 %v659_v46, %v632_v44  ;;  %v682_v59 = vmul.f32 %v681_v55, %v632_v44  ;;  %v704_v3 = vmul.f32 %v703_v61, %v632_v44 }
  0xb2   : > { %v893_v44 = vstv %s6582_s23  ;;  %s6586_s23 = sld [smem:[#allocation5 + $0x56]] }
  0xb3   : > { %643 = vrot.lane.b32.xlu1 %v637_v45, %s12086_s20  ;;  %v874_v45 = vmul.f32 %v871_v31, %v7235_v2 }
  0xb6   : > { %v7316_v47 = vpop.permute.xlu2 %726  ;;  %v7318_v48 = vpop.permute.xlu1 %564 }
  0xb7   : > { %v735_v51 = vmul.f32 %v7316_v47, %v7235_v2 }
  0xb9   : > { %v7320_v49 = vpop.permute.xlu0 %584  ;;  %v740_v53 = vmul.f32 %v737_v50, %v735_v51  ;;  %v763_v58 = vmul.f32 %v760_v54, %v735_v51  ;;  %v785_v0 = vmul.f32 %v782_v60, %v735_v51  ;;  %v807_v12 = vmul.f32 %v804_v8, %v735_v51 }
  0xba   : > { %v896_v51 = vmul.f32 %v893_v44, %v7235_v2 }
  0xbb   : > { %748 = vrot.lane.b32.xlu2 %v740_v53, %s12088_s30  ;;  %666 = vrot.lane.b32.xlu1 %v660_v52, %s12086_s20  ;;  %v872_v53 = vmul.f32 %v871_v31, %v7238_v4 }
  0xbe   : > { %v7326_v56 = vpop.permute.xlu1 %586  ;;  %v7435_v31 = vpop.permute.xlu2 %837 }
  0xbf   : > { %12214 = vst [vmem:[#allocation43_spill] sm:$0xff] %v7435_v31 }
  0xc1   : > { %v7328_v57 = vpop.permute.xlu0 %606 }
  0xc2   : > { %12190 = vst [vmem:[#allocation19_spill] sm:$0xff] %v7328_v57 }
  0xc3   : > { %771 = vrot.lane.b32.xlu2 %v763_v58, %s12088_s30  ;;  %688 = vrot.lane.b32.xlu1 %v682_v59, %s12086_s20 }
  0xc6   : > { %v7332_v62 = vpop.permute.xlu1 %608 }
  0xc7   : > { %12191 = vst [vmem:[#allocation20_spill] sm:$0xff] %v7332_v62 }
  0xc9   : > { %v7334_v63 = vpop.permute.xlu0 %625 }
  0xca   : > { %v634_v6 = vmul.f32 %v7334_v63, %v7235_v2  ;;  %v7351_v15 = vsel %vm627_vm1, %v7307_v40, %v7334_v63  ;;  %vm3992_vm1 = vcmask 261120  }
  0xcb   : > { %793 = vrot.lane.b32.xlu2 %v785_v0, %s12088_s30  ;;  %710 = vrot.lane.b32.xlu1 %v704_v3, %s12086_s20  ;;  %v633_v17 = vmul.f32 %v7351_v15, %v7248_v9 }
  0xcc   : > { %v639_v7 = vmul.f32 %v636_v43, %v634_v6  ;;  %v662_v16 = vmul.f32 %v659_v46, %v634_v6  ;;  %v684_v20 = vmul.f32 %v681_v55, %v634_v6  ;;  %v706_v25 = vmul.f32 %v703_v61, %v634_v6 }
  0xcd   : > { %v638_v19 = vmul.f32 %v636_v43, %v633_v17  ;;  %v661_v23 = vmul.f32 %v659_v46, %v633_v17  ;;  %v683_v29 = vmul.f32 %v681_v55, %v633_v17  ;;  %v705_v36 = vmul.f32 %v703_v61, %v633_v17 }
  0xce   : > { %647 = vrot.lane.b32.xlu0 %v639_v7, %s12086_s20  ;;  %v7341_v10 = vpop.permute.xlu1 %724  ;;  %v895_v46 = vmul.f32 %v893_v44, %v7248_v9 }
  0xcf   : > { %v7345_v11 = vsel %vm728_vm0, %v7341_v10, %v7316_v47  ;;  %v733_v26 = vmul.f32 %v7341_v10, %v7238_v4  ;;  %vm3994_vm0 = vcmask 1047808  }
  0xd0   : > { %v734_v13 = vmul.f32 %v7345_v11, %v7248_v9 }
  0xd1   : > { %v738_v28 = vmul.f32 %v737_v50, %v733_v26  ;;  %v761_v43 = vmul.f32 %v760_v54, %v733_v26  ;;  %v805_v52 = vmul.f32 %v804_v8, %v733_v26 }
  0xd2   : > { %v739_v14 = vmul.f32 %v737_v50, %v734_v13  ;;  %v762_v18 = vmul.f32 %v760_v54, %v734_v13  ;;  %v784_v21 = vmul.f32 %v782_v60, %v734_v13  ;;  %v806_v27 = vmul.f32 %v804_v8, %v734_v13 }
  0xd3   : > { %815 = vrot.lane.b32.xlu2 %v807_v12, %s12088_s30  ;;  %v783_v50 = vmul.f32 %v782_v60, %v733_v26  ;;  %v894_v54 = vmul.f32 %v893_v44, %v7238_v4  ;;  %v7393_v60 = vpop.permute.xlu0 %833 }
  0xd4   : > { %746 = vrot.lane.b32.xlu1 %v739_v14, %s12088_s30  ;;  %12195 = vst [vmem:[#allocation24_spill] sm:$0xff] %v7393_v60 }
  0xd6   : > { %670 = vrot.lane.b32.xlu0 %v662_v16, %s12086_s20  ;;  %v7385_v55 = vpop.permute.xlu1 %835 }
  0xd7   : > { %12192 = vst [vmem:[#allocation21_spill] sm:$0xff] %v7385_v55 }
  0xdb   : > { %645 = vrot.lane.b32.xlu2 %v638_v19, %s12086_s20  ;;  %v7397_v0 = vpop.permute.xlu0 %856 }
  0xdc   : > { %769 = vrot.lane.b32.xlu1 %v762_v18, %s12088_s30  ;;  %12197 = vst [vmem:[#allocation26_spill] sm:$0xff] %v7397_v0 }
  0xde   : > { %692 = vrot.lane.b32.xlu0 %v684_v20, %s12086_s20  ;;  %v7388_v58 = vpop.permute.xlu1 %858 }
  0xdf   : > { %12193 = vst [vmem:[#allocation22_spill] sm:$0xff] %v7388_v58 }
  0xe3   : > { %668 = vrot.lane.b32.xlu2 %v661_v23, %s12086_s20 }
  0xe4   : > { %791 = vrot.lane.b32.xlu1 %v784_v21, %s12088_s30 }
  0xe6   : > { %714 = vrot.lane.b32.xlu0 %v706_v25, %s12086_s20 }
  0xeb   : > { %690 = vrot.lane.b32.xlu2 %v683_v29, %s12086_s20 }
  0xec   : > { %813 = vrot.lane.b32.xlu1 %v806_v27, %s12088_s30 }
  0xee   : > { %744 = vrot.lane.b32.xlu0 %v738_v28, %s12088_s30  ;;  %v927_v28 = vstv %s6583_s15  ;;  %s6587_s15 = sld [smem:[#allocation5 + $0x6]] }
  0xf3   : > { %712 = vrot.lane.b32.xlu2 %v705_v36, %s12086_s20  ;;  %v950_v36 = vstv %s6584_s14  ;;  %s6588_s14 = sld [smem:[#allocation5 + $0x21]] }
  0xf4   : > { %880 = vrot.lane.b32.xlu1 %v873_v33, %s12096_s16 }
  0xf6   : > { %767 = vrot.lane.b32.xlu0 %v761_v43, %s12088_s30 }
  0xfb   : > { %882 = vrot.lane.b32.xlu2 %v874_v45, %s12096_s16  ;;  %v7440_v45 = vpop.permute.xlu2 %860 }
  0xfc   : > { %902 = vrot.lane.b32.xlu1 %v895_v46, %s12096_s16  ;;  %12216 = vst [vmem:[#allocation45_spill] sm:$0xff] %v7440_v45  ;;  %v972_v46 = vstv %s6585_s27  ;;  %s12004_s27 = smov 96  }
  0xfe   : > { %789 = vrot.lane.b32.xlu0 %v783_v50, %s12088_s30 }
 0x103   : > { %904 = vrot.lane.b32.xlu2 %v896_v51, %s12096_s16 }
 0x104   : > { %916 = vrot.lane.b32.xlu1 %v7274_v24, %s7055_s24 }
 0x106   : > { %811 = vrot.lane.b32.xlu0 %v805_v52, %s12088_s30 }
 0x10e   : > { %878 = vrot.lane.b32.xlu0 %v872_v53, %s12096_s16  ;;  %v994_v53 = vstv %s6586_s23  ;;  %s6589_s23 = sld [smem:[#allocation5 + $0x3c]] }
 0x115   : > { %v7446_v52 = vpop.permute.xlu2 %748 }
 0x116   : > { %900 = vrot.lane.b32.xlu0 %v894_v54, %s12096_s16  ;;  %12218 = vst [vmem:[#allocation47_spill] sm:$0xff] %v7446_v52 }
 0x11e   : > { %914 = vrot.lane.b32.xlu0 %v7271_v22, %s7055_s24  ;;  %s7057_s24 = smov 79  }
 0x125   : > { %v7391_v59 = vpop.permute.xlu1 %643 }
 0x126   : > { %12194 = vst [vmem:[#allocation23_spill] sm:$0xff] %v7391_v59 }
 0x12d   : > { %v7395_v61 = vpop.permute.xlu1 %666 }
 0x12e   : > { %12196 = vst [vmem:[#allocation25_spill] sm:$0xff] %v7395_v61 }
 0x135   : > { %v7399_v3 = vpop.permute.xlu1 %688 }
 0x136   : > { %12198 = vst [vmem:[#allocation27_spill] sm:$0xff] %v7399_v3 }
 0x13d   : > { %v7401_v6 = vpop.permute.xlu1 %710 }
 0x13e   : > { %12199 = vst [vmem:[#allocation28_spill] sm:$0xff] %v7401_v6 }
 0x140   : > { %v7403_v7 = vpop.permute.xlu0 %647 }
 0x141   : > { %12200 = vst [vmem:[#allocation29_spill] sm:$0xff] %v7403_v7 }
 0x146   : > { %v7405_v8 = vpop.permute.xlu1 %746 }
 0x147   : > { %12201 = vst [vmem:[#allocation30_spill] sm:$0xff] %v7405_v8 }
 0x148   : > { %v7407_v12 = vpop.permute.xlu0 %670 }
 0x149   : > { %12202 = vst [vmem:[#allocation31_spill] sm:$0xff] %v7407_v12 }
 0x14e   : > { %v7409_v13 = vpop.permute.xlu1 %769 }
 0x14f   : > { %12203 = vst [vmem:[#allocation32_spill] sm:$0xff] %v7409_v13 }
 0x150   : > { %v7411_v14 = vpop.permute.xlu0 %692 }
 0x151   : > { %12204 = vst [vmem:[#allocation33_spill] sm:$0xff] %v7411_v14 }
 0x156   : > { %v7413_v16 = vpop.permute.xlu1 %791 }
 0x157   : > { %12205 = vst [vmem:[#allocation34_spill] sm:$0xff] %v7413_v16 }
 0x158   : > { %v7415_v17 = vpop.permute.xlu0 %714 }
 0x159   : > { %12206 = vst [vmem:[#allocation35_spill] sm:$0xff] %v7415_v17 }
 0x15e   : > { %v7417_v18 = vpop.permute.xlu1 %813 }
 0x15f   : > { %12207 = vst [vmem:[#allocation36_spill] sm:$0xff] %v7417_v18 }
 0x160   : > { %v7419_v19 = vpop.permute.xlu0 %744 }
 0x161   : > { %12208 = vst [vmem:[#allocation37_spill] sm:$0xff] %v7419_v19 }
 0x166   : > { %v7421_v20 = vpop.permute.xlu1 %880 }
 0x167   : > { %12209 = vst [vmem:[#allocation38_spill] sm:$0xff] %v7421_v20 }
 0x168   : > { %v7423_v21 = vpop.permute.xlu0 %767 }
 0x169   : > { %12210 = vst [vmem:[#allocation39_spill] sm:$0xff] %v7423_v21 }
 0x16e   : > { %v7425_v23 = vpop.permute.xlu1 %902 }
 0x16f   : > { %12211 = vst [vmem:[#allocation40_spill] sm:$0xff] %v7425_v23 }
 0x170   : > { %v7427_v25 = vpop.permute.xlu0 %789 }
 0x171   : > { %12212 = vst [vmem:[#allocation41_spill] sm:$0xff] %v7427_v25 }
 0x176   : > { %v7429_v26 = vpop.permute.xlu1 %916 }
 0x177   : > { %v925_v29 = vmul.f32 %v7429_v26, %v7235_v2 }
 0x178   : > { %v7431_v27 = vpop.permute.xlu0 %811 }
 0x179   : > { %12213 = vst [vmem:[#allocation42_spill] sm:$0xff] %v7431_v27  ;;  %v930_v33 = vmul.f32 %v927_v28, %v925_v29  ;;  %v953_v44 = vmul.f32 %v950_v36, %v925_v29  ;;  %v975_v51 = vmul.f32 %v972_v46, %v925_v29 }
 0x17b   : > { %938 = vrot.lane.b32.xlu1 %v930_v33, %s12094_s17 }
 0x180   : > { %v7438_v43 = vpop.permute.xlu0 %878 }
 0x181   : > { %12215 = vst [vmem:[#allocation44_spill] sm:$0xff] %v7438_v43  ;;  %v997_v43 = vmul.f32 %v994_v53, %v925_v29 }
 0x183   : > { %961 = vrot.lane.b32.xlu1 %v953_v44, %s12094_s17 }
 0x188   : > { %v7443_v50 = vpop.permute.xlu0 %900 }
 0x189   : > { %12217 = vst [vmem:[#allocation46_spill] sm:$0xff] %v7443_v50 }
 0x18b   : > { %983 = vrot.lane.b32.xlu1 %v975_v51, %s12094_s17  ;;  %v7461_v51 = vpop.permute.xlu2 %771 }
 0x18c   : > { %12219 = vst [vmem:[#allocation48_spill] sm:$0xff] %v7461_v51 }
 0x190   : > { %v7448_v54 = vpop.permute.xlu0 %914 }
 0x191   : > { %v7452_v33 = vsel %vm918_vm2, %v7448_v54, %v7429_v26  ;;  %v923_v44 = vmul.f32 %v7448_v54, %v7238_v4  ;;  %vm4010_vm2 = vcmask 924672  }
 0x192   : > { %v924_v50 = vmul.f32 %v7452_v33, %v7248_v9 }
 0x193   : > { %v928_v23 = vmul.f32 %v927_v28, %v923_v44  ;;  %1005 = vrot.lane.b32.xlu1 %v997_v43, %s12094_s17  ;;  %v951_v25 = vmul.f32 %v950_v36, %v923_v44  ;;  %v7465_v29 = vpop.permute.xlu2 %793  ;;  %v973_v21 = vmul.f32 %v972_v46, %v923_v44 }
 0x194   : > { %v929_v27 = vmul.f32 %v927_v28, %v924_v50  ;;  %v952_v20 = vmul.f32 %v950_v36, %v924_v50  ;;  %12220 = vst [vmem:[#allocation49_spill] sm:$0xff] %v7465_v29  ;;  %v974_v18 = vmul.f32 %v972_v46, %v924_v50 }
 0x195   : > { %934 = vrot.lane.b32.xlu2 %v928_v23, %s12094_s17  ;;  %v995_v23 = vmul.f32 %v994_v53, %v923_v44 }
 0x196   : > { %936 = vrot.lane.b32.xlu0 %v929_v27, %s12094_s17  ;;  %v996_v27 = vmul.f32 %v994_v53, %v924_v50 }
 0x19b   : > { %v7469_v28 = vpop.permute.xlu2 %815 }
 0x19c   : > { %12221 = vst [vmem:[#allocation50_spill] sm:$0xff] %v7469_v28 }
 0x19d   : > { %957 = vrot.lane.b32.xlu2 %v951_v25, %s12094_s17 }
 0x19e   : > { %959 = vrot.lane.b32.xlu0 %v952_v20, %s12094_s17 }
 0x1a3   : > { %v7473_v36 = vpop.permute.xlu2 %645 }
 0x1a4   : > { %12222 = vst [vmem:[#allocation51_spill] sm:$0xff] %v7473_v36 }
 0x1a5   : > { %979 = vrot.lane.b32.xlu2 %v973_v21, %s12094_s17 }
 0x1a6   : > { %981 = vrot.lane.b32.xlu0 %v974_v18, %s12094_s17 }
 0x1ab   : > { %v7477_v20 = vpop.permute.xlu2 %668 }
 0x1ac   : > { %12223 = vst [vmem:[#allocation52_spill] sm:$0xff] %v7477_v20 }
 0x1ad   : > { %1001 = vrot.lane.b32.xlu2 %v995_v23, %s12094_s17 }
 0x1ae   : > { %1003 = vrot.lane.b32.xlu0 %v996_v27, %s12094_s17  ;;  %v1028_v27 = vstv %s6587_s15  ;;  %s6591_s15 = sld [smem:[#allocation5 + $0x7]] }
 0x1b3   : > { %v7479_v21 = vpop.permute.xlu2 %690 }
 0x1b4   : > { %12224 = vst [vmem:[#allocation53_spill] sm:$0xff] %v7479_v21 }
 0x1b5   : > { %1015 = vrot.lane.b32.xlu2 %v7225_v1, %s7057_s24 }
 0x1b6   : > { %1017 = vrot.lane.b32.xlu0 %v7240_v5, %s7057_s24  ;;  %s6590_s24 = sld [smem:[#allocation5 + $0x57]] }
 0x1bb   : > { %v7481_v18 = vpop.permute.xlu2 %712 }
 0x1bc   : > { %12225 = vst [vmem:[#allocation54_spill] sm:$0xff] %v7481_v18 }
 0x1c3   : > { %v7483_v25 = vpop.permute.xlu2 %882 }
 0x1c4   : > { %12226 = vst [vmem:[#allocation55_spill] sm:$0xff] %v7483_v25 }
 0x1cb   : > { %v7485_v43 = vpop.permute.xlu2 %904 }
 0x1cc   : > { %12227 = vst [vmem:[#allocation56_spill] sm:$0xff] %v7485_v43 }
 0x1ef   : > { %v7487_v46 = vpop.permute.xlu2 %934 }
 0x1f0   : > { %12228 = vst [vmem:[#allocation57_spill] sm:$0xff] %v7487_v46 }
 0x1f7   : > { %v7489_v50 = vpop.permute.xlu2 %957 }
 0x1f8   : > { %12229 = vst [vmem:[#allocation58_spill] sm:$0xff] %v7489_v50 }
 0x1ff   : > { %v7491_v53 = vpop.permute.xlu2 %979 }
 0x200   : > { %12230 = vst [vmem:[#allocation59_spill] sm:$0xff] %v7491_v53  ;;  %v1051_v53 = vstv %s6588_s14  ;;  %s6592_s14 = sld [smem:[#allocation5 + $0x22]] }
 0x207   : > { %v7493_v44 = vpop.permute.xlu2 %1001 }
 0x208   : > { %12231 = vst [vmem:[#allocation60_spill] sm:$0xff] %v7493_v44  ;;  %v7495_v1 = vpop.permute.xlu0 %936 }
 0x209   : > { %12232 = vst [vmem:[#allocation61_spill] sm:$0xff] %v7495_v1  ;;  %v1073_v1 = vstv %s6589_s23  ;;  %s12002_s23 = smov 95  }
 0x20f   : > { %v7497_v5 = vpop.permute.xlu2 %1015 }
 0x210   : > { %v7499_v23 = vpop.permute.xlu0 %959  ;;  %v1024_v43 = vmul.f32 %v7497_v5, %v7238_v4 }
 0x211   : > { %12233 = vst [vmem:[#allocation62_spill] sm:$0xff] %v7499_v23 }
 0x212   : > { %v1029_v28 = vmul.f32 %v1028_v27, %v1024_v43  ;;  %v1052_v44 = vmul.f32 %v1051_v53, %v1024_v43  ;;  %v1074_v23 = vmul.f32 %v1073_v1, %v1024_v43 }
 0x214   : > { %1035 = vrot.lane.b32.xlu1 %v1029_v28, %s12004_s27 }
 0x218   : > { %v7504_v50 = vpop.permute.xlu0 %981 }
 0x219   : > { %12234 = vst [vmem:[#allocation63_spill] sm:$0xff] %v7504_v50  ;;  %v1095_v50 = vstv %s6590_s24  ;;  %s6593_s24 = sld [smem:[#allocation5 + $0x3d]] }
 0x21c   : > { %1058 = vrot.lane.b32.xlu1 %v1052_v44, %s12004_s27 }
 0x220   : > { %v7507_v46 = vpop.permute.xlu0 %1003 }
 0x221   : > { %12235 = vst [vmem:[#allocation64_spill] sm:$0xff] %v7507_v46  ;;  %v1096_v46 = vmul.f32 %v1095_v50, %v1024_v43  ;;  %v1140_v43 = vstv %s6592_s14  ;;  %s7060_s14 = smov 81  }
 0x224   : > { %1080 = vrot.lane.b32.xlu1 %v1074_v23, %s12004_s27  ;;  %v1117_v23 = vstv %s6591_s15  ;;  %s6594_s15 = sld [smem:[#allocation5 + $0x58]] }
 0x225   : > { %v1118_v17 = vmul.f32 %v1117_v23, %v7238_v4 }
 0x228   : > { %v7510_v25 = vpop.permute.xlu0 %1017 }
 0x229   : > { %v7514_v28 = vsel %vm1019_vm3, %v7497_v5, %v7510_v25  ;;  %v1026_v19 = vmul.f32 %v7510_v25, %v7235_v2  ;;  %vm4151_vm3 = vcmask 252928  }
 0x22a   : > { %v1025_v44 = vmul.f32 %v7514_v28, %v7248_v9 }
 0x22b   : > { %v1031_v16 = vmul.f32 %v1028_v27, %v1026_v19  ;;  %v1054_v6 = vmul.f32 %v1051_v53, %v1026_v19 }
 0x22c   : > { %v1030_v29 = vmul.f32 %v1028_v27, %v1025_v44  ;;  %1102 = vrot.lane.b32.xlu1 %v1096_v46, %s12004_s27  ;;  %v1053_v18 = vmul.f32 %v1051_v53, %v1025_v44  ;;  %v1141_v46 = vmul.f32 %v1140_v43, %v7238_v4  ;;  %v1075_v27 = vmul.f32 %v1073_v1, %v1025_v44 }
 0x22d   : > { %1039 = vrot.lane.b32.xlu0 %v1031_v16, %s12004_s27  ;;  %v1076_v16 = vmul.f32 %v1073_v1, %v1026_v19  ;;  %v1098_v53 = vmul.f32 %v1095_v50, %v1026_v19  ;;  %v1143_v19 = vmul.f32 %v1140_v43, %v7235_v2 }
 0x22e   : > { %1037 = vrot.lane.b32.xlu2 %v1030_v29, %s12004_s27  ;;  %v1162_v29 = vstv %s6593_s24  ;;  %s6659_s24 = sld [smem:[#allocation5 + $0x18]] }
 0x234   : > { %1124 = vrot.lane.b32.xlu1 %v1118_v17, %s12002_s23  ;;  %v1163_v17 = vmul.f32 %v1162_v29, %v7238_v4 }
 0x235   : > { %1062 = vrot.lane.b32.xlu0 %v1054_v6, %s12004_s27  ;;  %v1097_v6 = vmul.f32 %v1095_v50, %v1025_v44  ;;  %v1142_v50 = vmul.f32 %v1140_v43, %v7248_v9  ;;  %v1165_v44 = vmul.f32 %v1162_v29, %v7235_v2 }
 0x236   : > { %1060 = vrot.lane.b32.xlu2 %v1053_v18, %s12004_s27  ;;  %v1184_v18 = vstv %s6594_s15  ;;  %s6595_s15 = sld [smem:[#allocation5 + $0x8]] }
 0x237   : > { %v1185_v1 = vmul.f32 %v1184_v18, %v7238_v4  ;;  %v1187_v43 = vmul.f32 %v1184_v18, %v7235_v2 }
 0x23c   : > { %1147 = vrot.lane.b32.xlu1 %v1141_v46, %s12002_s23  ;;  %v1120_v46 = vmul.f32 %v1117_v23, %v7235_v2 }
 0x23d   : > { %1084 = vrot.lane.b32.xlu0 %v1076_v16, %s12004_s27  ;;  %v1119_v16 = vmul.f32 %v1117_v23, %v7248_v9  ;;  %v1164_v23 = vmul.f32 %v1162_v29, %v7248_v9 }
 0x23e   : > { %1082 = vrot.lane.b32.xlu2 %v1075_v27, %s12004_s27  ;;  %v7550_v27 = vpop.permute.xlu1 %938 }
 0x23f   : > { %12236 = vst [vmem:[#allocation65_spill] sm:$0xff] %v7550_v27 }
 0x244   : > { %1169 = vrot.lane.b32.xlu1 %v1163_v17, %s12002_s23  ;;  %v1186_v17 = vmul.f32 %v1184_v18, %v7248_v9 }
 0x245   : > { %1106 = vrot.lane.b32.xlu0 %v1098_v53, %s12004_s27  ;;  %v2652_v53 = vld [vmem:[%s7232_s21 + $0x18] sm:$0x3] }
 0x246   : > { %1104 = vrot.lane.b32.xlu2 %v1097_v6, %s12004_s27  ;;  %v7562_v6 = vmul.f32 %v2652_v53, %v7497_v5  ;;  %v2650_v53 = vld [vmem:[%s7232_s21 + $0x8] sm:$0xfc]  ;;  %s6598_s27 = sld [smem:[#allocation5 + $0x59]] }
 0x24c   : > { %1191 = vrot.lane.b32.xlu1 %v1185_v1, %s12002_s23  ;;  %v7564_v1 = vpop.permute.xlu1 %961 }
 0x24d   : > { %1128 = vrot.lane.b32.xlu0 %v1120_v46, %s12002_s23  ;;  %12237 = vst [vmem:[#allocation66_spill] sm:$0xff] %v7564_v1  ;;  %v3543_v46 = vstv %s6659_s24  ;;  %s12092_s24 = smov 94  }
 0x24e   : > { %1126 = vrot.lane.b32.xlu2 %v1119_v16, %s12002_s23  ;;  %v3547_v16 = vmul.f32 %v3543_v46, %v7562_v6 }
 0x254   : > { %1205 = vrot.lane.b32.xlu1 %v7271_v22, %s7060_s14  ;;  %v2649_v22 = vld [vmem:[%s7232_s21] sm:$0xfc] }
 0x255   : > { %1151 = vrot.lane.b32.xlu0 %v1143_v19, %s12002_s23  ;;  %v7559_v29 = vmul.f32 %v2649_v22, %v7497_v5  ;;  %v2654_v22 = vld [vmem:[%s7232_s21 + $0x28] sm:$0x3] }
 0x256   : > { %1149 = vrot.lane.b32.xlu2 %v1142_v50, %s12002_s23  ;;  %v3557_v50 = vrot.slane %v3547_v16, 2  ;;  %v7589_v16 = vmul.f32 %v2650_v53, %v7514_v28 }
 0x257   : > { %v3544_v18 = vmul.f32 %v3543_v46, %v7559_v29 }
 0x259   : > { %v3556_v19 = vrot.slane %v3544_v18, 2  ;;  %v2653_v18 = vld [vmem:[%s7232_s21 + $0x20] sm:$0x3] }
 0x25d   : > { %1173 = vrot.lane.b32.xlu0 %v1165_v44, %s12002_s23  ;;  %v7570_v44 = vsel %vm2675_vm4, %v3556_v19, %v3557_v50  ;;  %v7594_v50 = vmul.f32 %v2653_v18, %v7514_v28 }
 0x25e   : > { %1171 = vrot.lane.b32.xlu2 %v1164_v23, %s12002_s23  ;;  %12238 = vst [vmem:[#allocation67_spill] sm:$0xff] %v7570_v44  ;;  %v7572_v23 = vpop.permute.xlu1 %983 }
 0x25f   : > { %12239 = vst [vmem:[#allocation68_spill] sm:$0xff] %v7572_v23 }
 0x265   : > { %1195 = vrot.lane.b32.xlu0 %v1187_v43, %s12002_s23 }
 0x266   : > { %1193 = vrot.lane.b32.xlu2 %v1186_v17, %s12002_s23  ;;  %v7574_v43 = vpop.permute.xlu1 %1005  ;;  %v2651_v17 = vld [vmem:[%s7232_s21 + $0x10] sm:$0xfc]  ;;  %s6603_s23 = sld [smem:[#allocation5 + $0xa]] }
 0x267   : > { %12240 = vst [vmem:[#allocation69_spill] sm:$0xff] %v7574_v43  ;;  %v7580_v1 = vmul.f32 %v2651_v17, %v7510_v25  ;;  %v3545_v17 = vmul.f32 %v3543_v46, %v7589_v16 }
 0x269   : > { %v3546_v43 = vmul.f32 %v3543_v46, %v7580_v1 }
 0x26b   : > { %v3562_v44 = vrot.slane %v3546_v43, 2 }
 0x26e   : > { %1207 = vrot.lane.b32.xlu2 %v7274_v24, %s7060_s14  ;;  %v7583_v24 = vmul.f32 %v2654_v22, %v7510_v25  ;;  %v3548_v22 = vmul.f32 %v3543_v46, %v7594_v50  ;;  %s6596_s14 = sld [smem:[#allocation5 + $0x23]] }
 0x270   : > { %v3549_v23 = vmul.f32 %v3543_v46, %v7583_v24  ;;  %v3560_v51 = vrot.slane %v3548_v22, 2 }
 0x272   : > { %v3563_v13 = vrot.slane %v3549_v23, 2 }
 0x274   : > { %v7603_v53 = vsel %vm2675_vm4, %v3562_v44, %v3563_v13 }
 0x275   : > { %12244 = vst [vmem:[#allocation73_spill] sm:$0xff] %v7603_v53 }
 0x286   : > { %v7585_v27 = vpop.permute.xlu1 %1035 }
 0x287   : > { %12241 = vst [vmem:[#allocation70_spill] sm:$0xff] %v7585_v27  ;;  %v3559_v27 = vrot.slane %v3545_v17, 2 }
 0x288   : > { %v7591_v19 = vpop.permute.xlu2 %1037 }
 0x289   : > { %12242 = vst [vmem:[#allocation71_spill] sm:$0xff] %v7591_v19  ;;  %v7608_v18 = vsel %vm2675_vm4, %v3559_v27, %v3560_v51 }
 0x28a   : > { %12246 = vst [vmem:[#allocation75_spill] sm:$0xff] %v7608_v18  ;;  %v7677_v18 = vld [vmem:[%s7232_s21 + $0x20] sm:$0x1] }
 0x28e   : > { %v7600_v14 = vpop.permute.xlu1 %1058 }
 0x28f   : > { %12243 = vst [vmem:[#allocation72_spill] sm:$0xff] %v7600_v14 }
 0x290   : > { %v7605_v19 = vpop.permute.xlu2 %1060 }
 0x291   : > { %12245 = vst [vmem:[#allocation74_spill] sm:$0xff] %v7605_v19 }
 0x296   : > { %v7610_v8 = vpop.permute.xlu1 %1080 }
 0x297   : > { %12247 = vst [vmem:[#allocation76_spill] sm:$0xff] %v7610_v8  ;;  %v1241_v8 = vstv %s6596_s14  ;;  %s6604_s14 = sld [smem:[#allocation5 + $0x25]] }
 0x298   : > { %v7612_v3 = vpop.permute.xlu2 %1082 }
 0x299   : > { %12248 = vst [vmem:[#allocation77_spill] sm:$0xff] %v7612_v3 }
 0x29d   : > { %v1473_v60 = vstv %s6604_s14  ;;  %s6608_s14 = sld [smem:[#allocation5 + $0x26]] }
 0x29e   : > { %v7614_v21 = vpop.permute.xlu1 %1102 }
 0x29f   : > { %12249 = vst [vmem:[#allocation78_spill] sm:$0xff] %v7614_v21 }
 0x2a0   : > { %v7616_v46 = vpop.permute.xlu2 %1104 }
 0x2a1   : > { %12250 = vst [vmem:[#allocation79_spill] sm:$0xff] %v7616_v46 }
 0x2a6   : > { %v7618_v23 = vpop.permute.xlu1 %1124 }
 0x2a7   : > { %12251 = vst [vmem:[#allocation80_spill] sm:$0xff] %v7618_v23 }
 0x2a8   : > { %v7620_v43 = vpop.permute.xlu2 %1126 }
 0x2a9   : > { %12252 = vst [vmem:[#allocation81_spill] sm:$0xff] %v7620_v43 }
 0x2ae   : > { %v7622_v17 = vpop.permute.xlu1 %1147 }
 0x2af   : > { %12253 = vst [vmem:[#allocation82_spill] sm:$0xff] %v7622_v17  ;;  %v1218_v17 = vstv %s6595_s15  ;;  %s6597_s15 = sld [smem:[#allocation5 + $0x3e]] }
 0x2b0   : > { %v7624_v13 = vpop.permute.xlu2 %1149 }
 0x2b1   : > { %12254 = vst [vmem:[#allocation83_spill] sm:$0xff] %v7624_v13 }
 0x2b6   : > { %v7626_v44 = vpop.permute.xlu1 %1169 }
 0x2b7   : > { %12255 = vst [vmem:[#allocation84_spill] sm:$0xff] %v7626_v44 }
 0x2b8   : > { %v7628_v51 = vpop.permute.xlu2 %1171 }
 0x2b9   : > { %12256 = vst [vmem:[#allocation85_spill] sm:$0xff] %v7628_v51 }
 0x2be   : > { %v7630_v27 = vpop.permute.xlu1 %1191 }
 0x2bf   : > { %12257 = vst [vmem:[#allocation86_spill] sm:$0xff] %v7630_v27 }
 0x2c0   : > { %v7632_v22 = vpop.permute.xlu2 %1193 }
 0x2c1   : > { %12258 = vst [vmem:[#allocation87_spill] sm:$0xff] %v7632_v22 }
 0x2c6   : > { %v7634_v21 = vpop.permute.xlu1 %1205 }
 0x2c7   : > { %12259 = vst [vmem:[#allocation88_spill] sm:$0xff] %v7634_v21  ;;  %v1214_v44 = vmul.f32 %v7634_v21, %v7238_v4 }
 0x2c8   : > { %v7636_v46 = vpop.permute.xlu2 %1207 }
 0x2c9   : > { %12260 = vst [vmem:[#allocation89_spill] sm:$0xff] %v7636_v46  ;;  %v7640_v23 = vsel %vm1209_vm5, %v7634_v21, %v7636_v46  ;;  %v1216_v27 = vmul.f32 %v7636_v46, %v7235_v2  ;;  %v1219_v51 = vmul.f32 %v1218_v17, %v1214_v44  ;;  %v1242_v3 = vmul.f32 %v1241_v8, %v1214_v44 }
 0x2ca   : > { %12261 = vst [vmem:[#allocation90_spill] sm:$0xff] %v7640_v23  ;;  %v1215_v22 = vmul.f32 %v7640_v23, %v7248_v9  ;;  %v1263_v2 = vstv %s6597_s15  ;;  %s6607_s15 = sld [smem:[#allocation5 + $0xb]]  ;;  %vm4251_vm5 = vcmask 130048  }
 0x2cb   : > { %v1221_v13 = vmul.f32 %v1218_v17, %v1216_v27  ;;  %1225 = vrot.lane.b32.xlu0 %v1219_v51, %s12092_s24  ;;  %v1244_v4 = vmul.f32 %v1241_v8, %v1216_v27  ;;  %v1264_v9 = vmul.f32 %v1263_v2, %v1214_v44  ;;  %v7664_v51 = vld [vmem:[%s7232_s21 + $0x10] sm:$0xfe] }
 0x2cc   : > { %v1220_v43 = vmul.f32 %v1218_v17, %v1215_v22  ;;  %v1243_v14 = vmul.f32 %v1241_v8, %v1215_v22  ;;  %v1265_v17 = vmul.f32 %v1263_v2, %v1215_v22  ;;  %v7658_v8 = vld [vmem:[%s7232_s21] sm:$0xfe] }
 0x2cd   : > { %1229 = vrot.lane.b32.xlu2 %v1221_v13, %s12092_s24  ;;  %v1285_v13 = vstv %s6598_s27  ;;  %s6605_s27 = sld [smem:[#allocation5 + $0x40]] }
 0x2ce   : > { %1227 = vrot.lane.b32.xlu1 %v1220_v43, %s12092_s24  ;;  %v1266_v43 = vmul.f32 %v1263_v2, %v1216_v27  ;;  %v1286_v53 = vmul.f32 %v1285_v13, %v1214_v44  ;;  %v1288_v52 = vmul.f32 %v1285_v13, %v1216_v27  ;;  %v1287_v20 = vmul.f32 %v1285_v13, %v1215_v22 }
 0x2d3   : > { %1248 = vrot.lane.b32.xlu0 %v1242_v3, %s12092_s24  ;;  %v1436_v3 = vstv %s6603_s23  ;;  %s6606_s23 = sld [smem:[#allocation5 + $0x5b]] }
 0x2d4   : > { %v1437_v2 = vmul.f32 %v1436_v3, %v7658_v8  ;;  %v1441_v61 = vmul.f32 %v1436_v3, %v7677_v18 }
 0x2d5   : > { %1252 = vrot.lane.b32.xlu2 %v1244_v4, %s12092_s24  ;;  %v7667_v4 = vld [vmem:[%s7232_s21 + $0x28] sm:$0x1] }
 0x2d6   : > { %1250 = vrot.lane.b32.xlu1 %v1243_v14, %s12092_s24  ;;  %v7661_v14 = vld [vmem:[%s7232_s21 + $0x18] sm:$0x1]  ;;  %v1449_v59 = vrot.slane %v1437_v2, 1  ;;  %v1453_v44 = vrot.slane %v1441_v61, 1 }
 0x2d7   : > { %v1440_v19 = vmul.f32 %v1436_v3, %v7661_v14 }
 0x2d9   : > { %v1450_v36 = vrot.slane %v1440_v19, 1  ;;  %v1479_v19 = vmul.f32 %v1473_v60, %v7667_v4 }
 0x2db   : > { %1270 = vrot.lane.b32.xlu0 %v1264_v9, %s12092_s24  ;;  %v1439_v9 = vmul.f32 %v1436_v3, %v7664_v51  ;;  %v1451_v27 = vsel %vm1332_vm6, %v1449_v59, %v1450_v36  ;;  %v1510_v36 = vstv %s6605_s27  ;;  %s6609_s27 = sld [smem:[#allocation5 + $0x41]] }
 0x2dd   : > { %1274 = vrot.lane.b32.xlu2 %v1266_v43, %s12092_s24  ;;  %v1442_v43 = vmul.f32 %v1436_v3, %v7667_v4  ;;  %v1455_v7 = vrot.slane %v1439_v9, 1 }
 0x2de   : > { %1272 = vrot.lane.b32.xlu1 %v1265_v17, %s12092_s24  ;;  %v7674_v17 = vld [vmem:[%s7232_s21 + $0x8] sm:$0xfe] }
 0x2df   : > { %v1438_v12 = vmul.f32 %v1436_v3, %v7674_v17  ;;  %v1456_v0 = vrot.slane %v1442_v43, 1  ;;  %v1474_v3 = vmul.f32 %v1473_v60, %v7658_v8  ;;  %v1475_v13 = vmul.f32 %v1473_v60, %v7674_v17  ;;  %v7696_v43 = vpop.permute.xlu0 %1039 }
 0x2e0   : > { %12262 = vst [vmem:[#allocation91_spill] sm:$0xff] %v7696_v43 }
 0x2e1   : > { %v1452_v58 = vrot.slane %v1438_v12, 1  ;;  %v1457_v22 = vsel %vm1332_vm6, %v1455_v7, %v1456_v0  ;;  %v1478_v12 = vmul.f32 %v1473_v60, %v7677_v18  ;;  %v1486_v59 = vrot.slane %v1474_v3, 1 }
 0x2e2   : > { %v1493_v7 = vrot.slane %v1479_v19, 1  ;;  %v1489_v2 = vrot.slane %v1475_v13, 1  ;;  %v1515_v19 = vmul.f32 %v1510_v36, %v7677_v18 }
 0x2e3   : > { %1292 = vrot.lane.b32.xlu0 %v1286_v53, %s12092_s24  ;;  %v1477_v53 = vmul.f32 %v1473_v60, %v7661_v14  ;;  %v1490_v9 = vrot.slane %v1478_v12, 1 }
 0x2e5   : > { %1296 = vrot.lane.b32.xlu2 %v1288_v52, %s12092_s24  ;;  %v1476_v52 = vmul.f32 %v1473_v60, %v7664_v51  ;;  %v1487_v61 = vrot.slane %v1477_v53, 1  ;;  %v1514_v60 = vmul.f32 %v1510_v36, %v7661_v14  ;;  %v1491_v53 = vsel %vm1332_vm6, %v1489_v2, %v1490_v9 }
 0x2e6   : > { %1294 = vrot.lane.b32.xlu1 %v1287_v20, %s12092_s24  ;;  %v1454_v20 = vsel %vm1332_vm6, %v1452_v58, %v1453_v44  ;;  %v1511_v58 = vmul.f32 %v1510_v36, %v7658_v8  ;;  %v1513_v44 = vmul.f32 %v1510_v36, %v7664_v51 }
 0x2e7   : > { %v1492_v0 = vrot.slane %v1476_v52, 1  ;;  %v1488_v3 = vsel %vm1332_vm6, %v1486_v59, %v1487_v61  ;;  %v1512_v52 = vmul.f32 %v1510_v36, %v7674_v17  ;;  %v1524_v13 = vrot.slane %v1514_v60, 1  ;;  %v7716_v60 = vpop.permute.xlu0 %1062 }
 0x2e8   : > { %v1529_v12 = vrot.slane %v1513_v44, 1  ;;  %v1527_v59 = vrot.slane %v1515_v19, 1  ;;  %v1547_v61 = vstv %s6606_s23  ;;  %12263 = vst [vmem:[#allocation92_spill] sm:$0xff] %v7716_v60  ;;  %s6610_s23 = sld [smem:[#allocation5 + $0x5c]] }
 0x2e9   : > { %v1526_v45 = vrot.slane %v1512_v52, 1  ;;  %v1551_v2 = vmul.f32 %v1547_v61, %v7661_v14  ;;  %v1550_v9 = vmul.f32 %v1547_v61, %v7664_v51 }
 0x2eb   : > { %1458 = vrot.lane.b32.xlu0 %v1451_v27, %s12090_s22  ;;  %v1516_v27 = vmul.f32 %v1510_v36, %v7667_v4  ;;  %v1548_v36 = vmul.f32 %v1547_v61, %v7658_v8  ;;  %v1528_v44 = vsel %vm1332_vm6, %v1526_v45, %v1527_v59  ;;  %v7726_v45 = vmul.f32 %v7658_v8, %v7307_v40 }
 0x2ec   : > { %v7738_v59 = vmul.f32 %v7667_v4, %v7334_v63 }
 0x2ed   : > { %1462 = vrot.lane.b32.xlu2 %v1457_v22, %s12090_s22  ;;  %v1494_v22 = vsel %vm1332_vm6, %v1492_v0, %v1493_v7  ;;  %v1530_v43 = vrot.slane %v1516_v27, 1  ;;  %v1549_v27 = vmul.f32 %v1547_v61, %v7674_v17 }
 0x2ee   : > { %1460 = vrot.lane.b32.xlu1 %v1454_v20, %s12090_s22  ;;  %v1523_v20 = vrot.slane %v1511_v58, 1  ;;  %v1553_v58 = vmul.f32 %v1547_v61, %v7667_v4 }
 0x2ef   : > { %v1531_v7 = vsel %vm1332_vm6, %v1529_v12, %v1530_v43  ;;  %v1560_v43 = vrot.slane %v1548_v36, 1  ;;  %v1563_v19 = vrot.slane %v1549_v27, 1  ;;  %v7734_v12 = vmul.f32 %v7664_v51, %v7334_v63  ;;  %v7755_v60 = vpop.permute.xlu0 %1084 }
 0x2f0   : > { %v1525_v0 = vsel %vm1332_vm6, %v1523_v20, %v1524_v13  ;;  %v1567_v52 = vrot.slane %v1553_v58, 1  ;;  %v7730_v13 = vmul.f32 %v7661_v14, %v7307_v40  ;;  %12264 = vst [vmem:[#allocation93_spill] sm:$0xff] %v7755_v60 }
 0x2f3   : > { %1495 = vrot.lane.b32.xlu0 %v1488_v3, %s12090_s22  ;;  %v1552_v3 = vmul.f32 %v1547_v61, %v7677_v18  ;;  %v1590_v61 = vstv %s6607_s15  ;;  %s6611_s15 = sld [smem:[#allocation5 + $0xc]] }
 0x2f4   : > { %v1591_v58 = vmul.f32 %v1590_v61, %v7726_v45  ;;  %v1593_v27 = vmul.f32 %v1590_v61, %v7734_v12 }
 0x2f5   : > { %1499 = vrot.lane.b32.xlu2 %v1494_v22, %s12090_s22  ;;  %v1561_v22 = vrot.slane %v1551_v2, 1  ;;  %v1564_v20 = vrot.slane %v1552_v3, 1  ;;  %v1596_v3 = vmul.f32 %v1590_v61, %v7738_v59 }
 0x2f6   : > { %1497 = vrot.lane.b32.xlu1 %v1491_v53, %s12090_s22  ;;  %v1566_v53 = vrot.slane %v1550_v9, 1 }
 0x2f7   : > { %v1562_v36 = vsel %vm1332_vm6, %v1560_v43, %v1561_v22  ;;  %v1565_v9 = vsel %vm1332_vm6, %v1563_v19, %v1564_v20  ;;  %v1609_v20 = vrot.slane %v1593_v27, 1  ;;  %v1610_v55 = vrot.slane %v1596_v3, 1  ;;  %v7774_v3 = vpop.permute.xlu0 %1106 }
 0x2f8   : > { %v1568_v2 = vsel %vm1332_vm6, %v1566_v53, %v1567_v52  ;;  %v1627_v53 = vstv %s6608_s14  ;;  %v1603_v52 = vrot.slane %v1591_v58, 1  ;;  %12265 = vst [vmem:[#allocation94_spill] sm:$0xff] %v7774_v3  ;;  %s6612_s14 = sld [smem:[#allocation5 + $0x27]] }
 0x2f9   : > { %v1628_v60 = vmul.f32 %v1627_v53, %v7726_v45  ;;  %v1611_v37 = vsel %vm1332_vm6, %v1609_v20, %v1610_v55 }
 0x2fb   : > { %1532 = vrot.lane.b32.xlu0 %v1525_v0, %s12090_s22  ;;  %v7742_v0 = vmul.f32 %v7674_v17, %v7351_v15  ;;  %v1640_v55 = vrot.slane %v1628_v60, 1 }
 0x2fd   : > { %1536 = vrot.lane.b32.xlu2 %v1531_v7, %s12090_s22  ;;  %v7746_v7 = vmul.f32 %v7677_v18, %v7351_v15  ;;  %v1592_v43 = vmul.f32 %v1590_v61, %v7742_v0 }
 0x2fe   : > { %1534 = vrot.lane.b32.xlu1 %v1528_v44, %s12090_s22  ;;  %v1594_v44 = vmul.f32 %v1590_v61, %v7730_v13 }
 0x2ff   : > { %v1595_v22 = vmul.f32 %v1590_v61, %v7746_v7  ;;  %v1606_v31 = vrot.slane %v1592_v43, 1  ;;  %v1630_v61 = vmul.f32 %v1627_v53, %v7734_v12  ;;  %v1632_v27 = vmul.f32 %v1627_v53, %v7746_v7 }
 0x300   : > { %v1604_v19 = vrot.slane %v1594_v44, 1  ;;  %v1629_v44 = vmul.f32 %v1627_v53, %v7742_v0  ;;  %v1664_v43 = vstv %s6609_s27  ;;  %s6613_s27 = sld [smem:[#allocation5 + $0x42]] }
 0x301   : > { %v1607_v62 = vrot.slane %v1595_v22, 1  ;;  %v1670_v3 = vmul.f32 %v1664_v43, %v7738_v59 }
 0x302   : > { %v1643_v20 = vrot.slane %v1629_v44, 1 }
 0x303   : > { %1569 = vrot.lane.b32.xlu0 %v1562_v36, %s12090_s22  ;;  %v1631_v36 = vmul.f32 %v1627_v53, %v7730_v13  ;;  %v1608_v58 = vsel %vm1332_vm6, %v1606_v31, %v1607_v62  ;;  %v1668_v62 = vmul.f32 %v1664_v43, %v7730_v13 }
 0x305   : > { %1573 = vrot.lane.b32.xlu2 %v1568_v2, %s12090_s22  ;;  %v1605_v2 = vsel %vm1332_vm6, %v1603_v52, %v1604_v19  ;;  %v1641_v22 = vrot.slane %v1631_v36, 1  ;;  %v1646_v52 = vrot.slane %v1630_v61, 1  ;;  %v1666_v36 = vmul.f32 %v1664_v43, %v7742_v0 }
 0x306   : > { %1571 = vrot.lane.b32.xlu1 %v1565_v9, %s12090_s22  ;;  %v1633_v9 = vmul.f32 %v1627_v53, %v7738_v59  ;;  %v1669_v61 = vmul.f32 %v1664_v43, %v7746_v7 }
 0x307   : > { %v1642_v31 = vsel %vm1332_vm6, %v1640_v55, %v1641_v22  ;;  %v1684_v22 = vrot.slane %v1670_v3, 1 }
 0x308   : > { %v1647_v19 = vrot.slane %v1633_v9, 1  ;;  %v1701_v9 = vstv %s6610_s23  ;;  %v1681_v57 = vrot.slane %v1669_v61, 1  ;;  %s6614_s23 = sld [smem:[#allocation5 + $0x5d]] }
 0x30a   : > { %v1648_v53 = vsel %vm1332_vm6, %v1646_v52, %v1647_v19  ;;  %v7788_v52 = vpop.permute.xlu0 %1128  ;;  %v1680_v19 = vrot.slane %v1666_v36, 1  ;;  %v7808_v36 = vmul.f32 %v7661_v14, %v7341_v10 }
 0x30b   : > { %1612 = vrot.lane.b32.xlu0 %v1605_v2, %s12086_s20  ;;  %v1644_v2 = vrot.slane %v1632_v27, 1  ;;  %v1678_v27 = vrot.slane %v1668_v62, 1  ;;  %12266 = vst [vmem:[#allocation95_spill] sm:$0xff] %v7788_v52 }
 0x30c   : > { %v1682_v3 = vsel %vm1332_vm6, %v1680_v19, %v1681_v57  ;;  %v7812_v57 = vmul.f32 %v7664_v51, %v7316_v47 }
 0x30d   : > { %1616 = vrot.lane.b32.xlu2 %v1611_v37, %s12086_s20  ;;  %v1665_v37 = vmul.f32 %v1664_v43, %v7726_v45  ;;  %v1645_v60 = vsel %vm1332_vm6, %v1643_v20, %v1644_v2  ;;  %v1705_v20 = vmul.f32 %v1701_v9, %v7730_v13  ;;  %v1704_v2 = vmul.f32 %v1701_v9, %v7734_v12 }
 0x30e   : > { %1614 = vrot.lane.b32.xlu1 %v1608_v58, %s12086_s20  ;;  %v1667_v58 = vmul.f32 %v1664_v43, %v7734_v12  ;;  %v1707_v43 = vmul.f32 %v1701_v9, %v7738_v59 }
 0x30f   : > { %v1677_v44 = vrot.slane %v1665_v37, 1  ;;  %v1715_v12 = vrot.slane %v1705_v20, 1 }
 0x310   : > { %v1683_v55 = vrot.slane %v1667_v58, 1  ;;  %v1720_v58 = vrot.slane %v1704_v2, 1  ;;  %v1721_v59 = vrot.slane %v1707_v43, 1 }
 0x311   : > { %v1679_v37 = vsel %vm1332_vm6, %v1677_v44, %v1678_v27  ;;  %v7820_v44 = vmul.f32 %v7674_v17, %v7345_v11  ;;  %v7824_v27 = vmul.f32 %v7677_v18, %v7345_v11 }
 0x312   : > { %v1685_v62 = vsel %vm1332_vm6, %v1683_v55, %v1684_v22  ;;  %v7826_v55 = vpop.permute.xlu0 %1151  ;;  %v1722_v19 = vsel %vm1332_vm6, %v1720_v58, %v1721_v59 }
 0x313   : > { %1649 = vrot.lane.b32.xlu0 %v1642_v31, %s12086_s20  ;;  %v1702_v31 = vmul.f32 %v1701_v9, %v7726_v45  ;;  %v1706_v45 = vmul.f32 %v1701_v9, %v7746_v7  ;;  %v7816_v7 = vmul.f32 %v7667_v4, %v7316_v47  ;;  %12267 = vst [vmem:[#allocation96_spill] sm:$0xff] %v7826_v55 }
 0x315   : > { %1653 = vrot.lane.b32.xlu2 %v1648_v53, %s12086_s20  ;;  %v1703_v53 = vmul.f32 %v1701_v9, %v7742_v0  ;;  %v1714_v13 = vrot.slane %v1702_v31, 1  ;;  %v7804_v0 = vmul.f32 %v7658_v8, %v7341_v10  ;;  %v1718_v61 = vrot.slane %v1706_v45, 1 }
 0x316   : > { %1651 = vrot.lane.b32.xlu1 %v1645_v60, %s12086_s20  ;;  %v1744_v9 = vstv %s6611_s15  ;;  %v1781_v45 = vstv %s6612_s14  ;;  %s6615_s15 = sld [smem:[#allocation5 + $0xd]] }
 0x317   : > { %v1717_v60 = vrot.slane %v1703_v53, 1  ;;  %v1716_v22 = vsel %vm1332_vm6, %v1714_v13, %v1715_v12  ;;  %v1745_v31 = vmul.f32 %v1744_v9, %v7804_v0  ;;  %v1748_v20 = vmul.f32 %v1744_v9, %v7808_v36  ;;  %s6616_s14 = sld [smem:[#allocation5 + $0x28]] }
 0x318   : > { %v1747_v2 = vmul.f32 %v1744_v9, %v7812_v57  ;;  %v1750_v43 = vmul.f32 %v1744_v9, %v7816_v7 }
 0x319   : > { %v1719_v53 = vsel %vm1332_vm6, %v1717_v60, %v1718_v61  ;;  %v1757_v13 = vrot.slane %v1745_v31, 1  ;;  %v1758_v12 = vrot.slane %v1748_v20, 1  ;;  %v1785_v60 = vmul.f32 %v1781_v45, %v7808_v36 }
 0x31a   : > { %v1763_v58 = vrot.slane %v1747_v2, 1  ;;  %v1764_v59 = vrot.slane %v1750_v43, 1  ;;  %v7848_v55 = vpop.permute.xlu0 %1173  ;;  %v1783_v20 = vmul.f32 %v1781_v45, %v7820_v44  ;;  %v1786_v2 = vmul.f32 %v1781_v45, %v7824_v27 }
 0x31b   : > { %1686 = vrot.lane.b32.xlu0 %v1679_v37, %s12086_s20  ;;  %v1746_v37 = vmul.f32 %v1744_v9, %v7820_v44  ;;  %v1759_v61 = vsel %vm1332_vm6, %v1757_v13, %v1758_v12  ;;  %12269 = vst [vmem:[#allocation98_spill] sm:$0xff] %v7848_v55 }
 0x31d   : > { %1690 = vrot.lane.b32.xlu2 %v1685_v62, %s12086_s20  ;;  %v1749_v62 = vmul.f32 %v1744_v9, %v7824_v27  ;;  %v1760_v52 = vrot.slane %v1746_v37, 1  ;;  %v1765_v9 = vsel %vm1332_vm6, %v1763_v58, %v1764_v59  ;;  %v1818_v58 = vstv %s6613_s27  ;;  %s6617_s27 = sld [smem:[#allocation5 + $0x43]] }
 0x31e   : > { %1688 = vrot.lane.b32.xlu1 %v1682_v3, %s12086_s20  ;;  %v1797_v59 = vrot.slane %v1783_v20, 1  ;;  %v1824_v55 = vmul.f32 %v1818_v58, %v7816_v7 }
 0x323   : > { %1723 = vrot.lane.b32.xlu0 %v1716_v22, %s12086_s20  ;;  %v1761_v22 = vrot.slane %v1749_v62, 1  ;;  %v1795_v62 = vrot.slane %v1785_v60, 1  ;;  %v1823_v60 = vmul.f32 %v1818_v58, %v7824_v27 }
 0x325   : > { %1727 = vrot.lane.b32.xlu2 %v1722_v19, %s12086_s20  ;;  %v1782_v19 = vmul.f32 %v1781_v45, %v7804_v0  ;;  %v1762_v31 = vsel %vm1332_vm6, %v1760_v52, %v1761_v22  ;;  %v1819_v52 = vmul.f32 %v1818_v58, %v7804_v0 }
 0x326   : > { %1725 = vrot.lane.b32.xlu1 %v1719_v53, %s12086_s20  ;;  %v1784_v53 = vmul.f32 %v1781_v45, %v7812_v57 }
 0x327   : > { %v7840_v3 = vpop.permute.xlu2 %1229  ;;  %v1794_v37 = vrot.slane %v1782_v19, 1  ;;  %v1820_v19 = vmul.f32 %v1818_v58, %v7820_v44 }
 0x328   : > { %12268 = vst [vmem:[#allocation97_spill] sm:$0xff] %v7840_v3  ;;  %v1787_v3 = vmul.f32 %v1781_v45, %v7816_v7  ;;  %v1800_v13 = vrot.slane %v1784_v53, 1  ;;  %v1822_v45 = vmul.f32 %v1818_v58, %v7808_v36  ;;  %v7870_v53 = vpop.permute.xlu0 %1195 }
 0x329   : > { %12271 = vst [vmem:[#allocation100_spill] sm:$0xff] %v7870_v53 }
 0x32a   : > { %v1801_v12 = vrot.slane %v1787_v3, 1 }
 0x32b   : > { %1766 = vrot.lane.b32.xlu0 %v1759_v61, %s12088_s30  ;;  %v1798_v61 = vrot.slane %v1786_v2, 1  ;;  %v1855_v2 = vstv %s6614_s23  ;;  %s6618_s23 = sld [smem:[#allocation5 + $0x5e]] }
 0x32c   : > { %v1802_v22 = vsel %vm1332_vm6, %v1800_v13, %v1801_v12  ;;  %v1838_v12 = vrot.slane %v1824_v55, 1  ;;  %v1861_v53 = vmul.f32 %v1855_v2, %v7816_v7 }
 0x32d   : > { %1770 = vrot.lane.b32.xlu2 %v1765_v9, %s12088_s30  ;;  %v1796_v9 = vsel %vm1332_vm6, %v1794_v37, %v1795_v62  ;;  %v1799_v3 = vsel %vm1332_vm6, %v1797_v59, %v1798_v61  ;;  %v1831_v37 = vrot.slane %v1819_v52, 1  ;;  %v1832_v62 = vrot.slane %v1822_v45, 1 }
 0x32e   : > { %1768 = vrot.lane.b32.xlu1 %v1762_v31, %s12088_s30  ;;  %v1821_v31 = vmul.f32 %v1818_v58, %v7812_v57  ;;  %v1856_v59 = vmul.f32 %v1855_v2, %v7804_v0  ;;  %v1859_v61 = vmul.f32 %v1855_v2, %v7808_v36  ;;  %v1857_v52 = vmul.f32 %v1855_v2, %v7820_v44 }
 0x32f   : > { %v7856_v43 = vpop.permute.xlu2 %1252  ;;  %v1833_v58 = vsel %vm1332_vm6, %v1831_v37, %v1832_v62  ;;  %v1860_v0 = vmul.f32 %v1855_v2, %v7824_v27  ;;  %v1892_v36 = vstv %s6615_s15  ;;  %v1875_v37 = vrot.slane %v1861_v53, 1  ;;  %s6619_s15 = sld [smem:[#allocation5 + $0xe]] }
 0x330   : > { %12270 = vst [vmem:[#allocation99_spill] sm:$0xff] %v7856_v43  ;;  %v1837_v13 = vrot.slane %v1821_v31, 1  ;;  %v1858_v43 = vmul.f32 %v1855_v2, %v7812_v57  ;;  %v1868_v7 = vrot.slane %v1856_v59, 1  ;;  %v1871_v62 = vrot.slane %v1857_v52, 1 }
 0x331   : > { %v1893_v44 = vmul.f32 %v1892_v36, %v7658_v8  ;;  %v1896_v27 = vmul.f32 %v1892_v36, %v7661_v14  ;;  %v1895_v2 = vmul.f32 %v1892_v36, %v7664_v51  ;;  %v1929_v52 = vstv %s6616_s14  ;;  %s6620_s14 = sld [smem:[#allocation5 + $0x29]] }
 0x333   : > { %1803 = vrot.lane.b32.xlu0 %v1796_v9, %s12088_s30  ;;  %v1834_v9 = vrot.slane %v1820_v19, 1  ;;  %v1869_v19 = vrot.slane %v1859_v61, 1  ;;  %v1905_v53 = vrot.slane %v1893_v44, 1  ;;  %v1906_v61 = vrot.slane %v1896_v27, 1 }
 0x334   : > { %v1933_v44 = vmul.f32 %v1929_v52, %v7661_v14  ;;  %v1932_v27 = vmul.f32 %v1929_v52, %v7664_v51 }
 0x335   : > { %1807 = vrot.lane.b32.xlu2 %v1802_v22, %s12088_s30  ;;  %v1835_v22 = vrot.slane %v1823_v60, 1  ;;  %v1874_v60 = vrot.slane %v1858_v43, 1 }
 0x336   : > { %1805 = vrot.lane.b32.xlu1 %v1799_v3, %s12088_s30  ;;  %v1839_v3 = vsel %vm1332_vm6, %v1837_v13, %v1838_v12  ;;  %v1872_v13 = vrot.slane %v1860_v0, 1  ;;  %v1898_v12 = vmul.f32 %v1892_v36, %v7667_v4 }
 0x337   : > { %v7872_v20 = vpop.permute.xlu2 %1274  ;;  %v1836_v55 = vsel %vm1332_vm6, %v1834_v9, %v1835_v22  ;;  %v1894_v9 = vmul.f32 %v1892_v36, %v7674_v17  ;;  %v1897_v22 = vmul.f32 %v1892_v36, %v7677_v18  ;;  %v1876_v59 = vsel %vm1332_vm6, %v1874_v60, %v1875_v37 }
 0x338   : > { %12272 = vst [vmem:[#allocation101_spill] sm:$0xff] %v7872_v20  ;;  %v1873_v43 = vsel %vm1332_vm6, %v1871_v62, %v1872_v13  ;;  %v1907_v37 = vsel %vm1332_vm6, %v1905_v53, %v1906_v61  ;;  %v1930_v62 = vmul.f32 %v1929_v52, %v7658_v8  ;;  %v1966_v61 = vstv %s6617_s27  ;;  %s6621_s27 = sld [smem:[#allocation5 + $0x44]] }
 0x33b   : > { %1840 = vrot.lane.b32.xlu0 %v1833_v58, %s12088_s30  ;;  %v1870_v58 = vsel %vm1332_vm6, %v1868_v7, %v1869_v19  ;;  %v1908_v7 = vrot.slane %v1894_v9, 1  ;;  %v1909_v19 = vrot.slane %v1897_v22, 1  ;;  %v1934_v9 = vmul.f32 %v1929_v52, %v7677_v18 }
 0x33c   : > { %v1942_v22 = vrot.slane %v1930_v62, 1  ;;  %v1969_v62 = vmul.f32 %v1966_v61, %v7664_v51 }
 0x33d   : > { %1844 = vrot.lane.b32.xlu2 %v1839_v3, %s12088_s30  ;;  %v7886_v45 = vpop.permute.xlu0 %1225  ;;  %v1911_v3 = vrot.slane %v1895_v2, 1  ;;  %v1935_v2 = vmul.f32 %v1929_v52, %v7667_v4 }
 0x33e   : > { %1842 = vrot.lane.b32.xlu1 %v1836_v55, %s12088_s30  ;;  %12273 = vst [vmem:[#allocation102_spill] sm:$0xff] %v7886_v45  ;;  %v1912_v55 = vrot.slane %v1898_v12, 1  ;;  %v1910_v12 = vsel %vm1332_vm6, %v1908_v7, %v1909_v19  ;;  %v1946_v19 = vrot.slane %v1934_v9, 1 }
 0x33f   : > { %v7888_v31 = vpop.permute.xlu2 %1296  ;;  %v1949_v53 = vrot.slane %v1935_v2, 1 }
 0x340   : > { %12274 = vst [vmem:[#allocation103_spill] sm:$0xff] %v7888_v31  ;;  %v7890_v57 = vpop.permute.xlu1 %1227  ;;  %v1913_v13 = vsel %vm1332_vm6, %v1911_v3, %v1912_v55  ;;  %v1985_v31 = vrot.slane %v1969_v62, 1 }
 0x341   : > { %12275 = vst [vmem:[#allocation104_spill] sm:$0xff] %v7890_v57 }
 0x343   : > { %1877 = vrot.lane.b32.xlu0 %v1870_v58, %s12088_s30  ;;  %v1931_v58 = vmul.f32 %v1929_v52, %v7674_v17  ;;  %v1967_v52 = vmul.f32 %v1966_v61, %v7658_v8 }
 0x345   : > { %1881 = vrot.lane.b32.xlu2 %v1876_v59, %s12088_s30  ;;  %v7904_v0 = vpop.permute.xlu0 %1248  ;;  %v1943_v59 = vrot.slane %v1933_v44, 1  ;;  %v1945_v7 = vrot.slane %v1931_v58, 1  ;;  %v1971_v58 = vmul.f32 %v1966_v61, %v7677_v18  ;;  %v1979_v9 = vrot.slane %v1967_v52, 1 }
 0x346   : > { %1879 = vrot.lane.b32.xlu1 %v1873_v43, %s12088_s30  ;;  %12276 = vst [vmem:[#allocation105_spill] sm:$0xff] %v7904_v0  ;;  %v1948_v43 = vrot.slane %v1932_v27, 1 }
 0x347   : > { %v7906_v36 = vpop.permute.xlu2 %1462  ;;  %v1944_v44 = vsel %vm1332_vm6, %v1942_v22, %v1943_v59  ;;  %v1947_v2 = vsel %vm1332_vm6, %v1945_v7, %v1946_v19 }
 0x348   : > { %12277 = vst [vmem:[#allocation106_spill] sm:$0xff] %v7906_v36  ;;  %v7908_v60 = vpop.permute.xlu1 %1250  ;;  %v1950_v27 = vsel %vm1332_vm6, %v1948_v43, %v1949_v53  ;;  %v1983_v43 = vrot.slane %v1971_v58, 1  ;;  %v2003_v53 = vstv %s6618_s23  ;;  %s6622_s23 = sld [smem:[#allocation5 + $0x5f]] }
 0x349   : > { %12278 = vst [vmem:[#allocation107_spill] sm:$0xff] %v7908_v60  ;;  %v2004_v52 = vmul.f32 %v2003_v53, %v7658_v8  ;;  %v2006_v62 = vmul.f32 %v2003_v53, %v7664_v51 }
 0x34b   : > { %1914 = vrot.lane.b32.xlu0 %v1907_v37, %s12096_s16  ;;  %v1970_v37 = vmul.f32 %v1966_v61, %v7661_v14 }
 0x34d   : > { %1918 = vrot.lane.b32.xlu2 %v1913_v13, %s12096_s16  ;;  %v7922_v3 = vpop.permute.xlu0 %1270  ;;  %v1972_v13 = vmul.f32 %v1966_v61, %v7667_v4 }
 0x34e   : > { %1916 = vrot.lane.b32.xlu1 %v1910_v12, %s12096_s16  ;;  %12279 = vst [vmem:[#allocation108_spill] sm:$0xff] %v7922_v3  ;;  %v1968_v12 = vmul.f32 %v1966_v61, %v7674_v17  ;;  %v1980_v3 = vrot.slane %v1970_v37, 1  ;;  %v2007_v37 = vmul.f32 %v2003_v53, %v7661_v14 }
 0x34f   : > { %v7924_v55 = vpop.permute.xlu2 %1499 }
 0x350   : > { %12280 = vst [vmem:[#allocation109_spill] sm:$0xff] %v7924_v55  ;;  %v7926_v36 = vpop.permute.xlu1 %1272  ;;  %v1982_v59 = vrot.slane %v1968_v12, 1  ;;  %v1981_v61 = vsel %vm1332_vm6, %v1979_v9, %v1980_v3  ;;  %v2022_v3 = vrot.slane %v2006_v62, 1  ;;  %v7982_v62 = vmul.f32 %v7674_v17, %v7452_v33 }
 0x351   : > { %12281 = vst [vmem:[#allocation110_spill] sm:$0xff] %v7926_v36  ;;  %v1986_v36 = vrot.slane %v1972_v13, 1  ;;  %v2009_v13 = vmul.f32 %v2003_v53, %v7667_v4 }
 0x353   : > { %1951 = vrot.lane.b32.xlu0 %v1944_v44, %s12096_s16  ;;  %v1987_v19 = vsel %vm1332_vm6, %v1985_v31, %v1986_v36  ;;  %v1984_v44 = vsel %vm1332_vm6, %v1982_v59, %v1983_v43  ;;  %v2016_v31 = vrot.slane %v2004_v52, 1  ;;  %v2017_v36 = vrot.slane %v2007_v37, 1 }
 0x354   : > { %v2023_v12 = vrot.slane %v2009_v13, 1  ;;  %v7964_v43 = vmul.f32 %v7664_v51, %v7429_v26  ;;  %v2046_v37 = vstv %s6619_s15  ;;  %v7986_v13 = vmul.f32 %v7677_v18, %v7452_v33  ;;  %s6623_s15 = sld [smem:[#allocation5 + $0xf]] }
 0x355   : > { %1955 = vrot.lane.b32.xlu2 %v1950_v27, %s12096_s16  ;;  %v7940_v20 = vpop.permute.xlu0 %1292  ;;  %v2005_v27 = vmul.f32 %v2003_v53, %v7674_v17 }
 0x356   : > { %1953 = vrot.lane.b32.xlu1 %v1947_v2, %s12096_s16  ;;  %12282 = vst [vmem:[#allocation111_spill] sm:$0xff] %v7940_v20  ;;  %v2008_v2 = vmul.f32 %v2003_v53, %v7677_v18  ;;  %v7968_v53 = vmul.f32 %v7667_v4, %v7429_v26 }
 0x357   : > { %v7942_v22 = vpop.permute.xlu2 %1536 }
 0x358   : > { %12283 = vst [vmem:[#allocation112_spill] sm:$0xff] %v7942_v22  ;;  %v7944_v7 = vpop.permute.xlu1 %1294  ;;  %v2019_v22 = vrot.slane %v2005_v27, 1  ;;  %v2020_v59 = vrot.slane %v2008_v2, 1  ;;  %v2024_v27 = vsel %vm1332_vm6, %v2022_v3, %v2023_v12  ;;  %v2052_v20 = vmul.f32 %v2046_v37, %v7968_v53 }
 0x359   : > { %12284 = vst [vmem:[#allocation113_spill] sm:$0xff] %v7944_v7  ;;  %v2048_v7 = vmul.f32 %v2046_v37, %v7982_v62  ;;  %v2083_v3 = vstv %s6620_s14  ;;  %s6624_s14 = sld [smem:[#allocation5 + $0x2a]] }
 0x35a   : > { %v2021_v2 = vsel %vm1332_vm6, %v2019_v22, %v2020_v59  ;;  %v2066_v45 = vrot.slane %v2052_v20, 1  ;;  %v2086_v57 = vmul.f32 %v2083_v3, %v7964_v43 }
 0x35b   : > { %1988 = vrot.lane.b32.xlu0 %v1981_v61, %s12096_s16  ;;  %v7972_v61 = vmul.f32 %v7658_v8, %v7448_v54 }
 0x35d   : > { %1992 = vrot.lane.b32.xlu2 %v1987_v19, %s12096_s16  ;;  %v7958_v58 = vpop.permute.xlu0 %1458  ;;  %v7976_v19 = vmul.f32 %v7661_v14, %v7448_v54 }
 0x35e   : > { %1990 = vrot.lane.b32.xlu1 %v1984_v44, %s12096_s16  ;;  %12285 = vst [vmem:[#allocation114_spill] sm:$0xff] %v7958_v58  ;;  %v2018_v44 = vsel %vm1332_vm6, %v2016_v31, %v2017_v36  ;;  %v2051_v31 = vmul.f32 %v2046_v37, %v7986_v13 }
 0x35f   : > { %v7960_v9 = vpop.permute.xlu2 %1573  ;;  %v2050_v58 = vmul.f32 %v2046_v37, %v7976_v19  ;;  %v2087_v55 = vmul.f32 %v2083_v3, %v7976_v19 }
 0x360   : > { %12286 = vst [vmem:[#allocation115_spill] sm:$0xff] %v7960_v9  ;;  %v7978_v52 = vpop.permute.xlu1 %1460  ;;  %v2047_v9 = vmul.f32 %v2046_v37, %v7972_v61 }
 0x361   : > { %12287 = vst [vmem:[#allocation116_spill] sm:$0xff] %v7978_v52  ;;  %v2049_v52 = vmul.f32 %v2046_v37, %v7964_v43  ;;  %v2060_v0 = vrot.slane %v2050_v58, 1  ;;  %v2089_v37 = vmul.f32 %v2083_v3, %v7968_v53  ;;  %v2088_v58 = vmul.f32 %v2083_v3, %v7986_v13 }
 0x362   : > { %v2059_v59 = vrot.slane %v2047_v9, 1 }
 0x363   : > { %2025 = vrot.lane.b32.xlu0 %v2018_v44, %s12096_s16  ;;  %v2065_v60 = vrot.slane %v2049_v52, 1  ;;  %v2062_v44 = vrot.slane %v2048_v7, 1  ;;  %v2085_v7 = vmul.f32 %v2083_v3, %v7982_v62 }
 0x365   : > { %2029 = vrot.lane.b32.xlu2 %v2024_v27, %s12096_s16  ;;  %v8000_v36 = vpop.permute.xlu0 %1495  ;;  %v2063_v27 = vrot.slane %v2051_v31, 1 }
 0x366   : > { %2027 = vrot.lane.b32.xlu1 %v2021_v2, %s12096_s16  ;;  %12288 = vst [vmem:[#allocation117_spill] sm:$0xff] %v8000_v36  ;;  %v2061_v2 = vsel %vm1332_vm6, %v2059_v59, %v2060_v0  ;;  %v2067_v36 = vsel %vm1332_vm6, %v2065_v60, %v2066_v45  ;;  %v2102_v45 = vrot.slane %v2086_v57, 1  ;;  %v2103_v60 = vrot.slane %v2089_v37, 1 }
 0x367   : > { %v8002_v22 = vpop.permute.xlu2 %1616  ;;  %v2064_v20 = vsel %vm1332_vm6, %v2062_v44, %v2063_v27  ;;  %v2097_v59 = vrot.slane %v2087_v55, 1  ;;  %v2100_v44 = vrot.slane %v2088_v58, 1 }
 0x368   : > { %12289 = vst [vmem:[#allocation118_spill] sm:$0xff] %v8002_v22  ;;  %v8004_v12 = vpop.permute.xlu1 %1497  ;;  %v2084_v22 = vmul.f32 %v2083_v3, %v7972_v61  ;;  %v2104_v27 = vsel %vm1332_vm6, %v2102_v45, %v2103_v60  ;;  %v2157_v45 = vstv %s6622_s23  ;;  %s12303_s23 = smov 96  }
 0x369   : > { %12290 = vst [vmem:[#allocation119_spill] sm:$0xff] %v8004_v12 }
 0x36a   : > { %v2096_v31 = vrot.slane %v2084_v22, 1 }
 0x36b   : > { %2068 = vrot.lane.b32.xlu0 %v2061_v2, %s12094_s17  ;;  %v2099_v2 = vrot.slane %v2085_v7, 1 }
 0x36d   : > { %2072 = vrot.lane.b32.xlu2 %v2067_v36, %s12094_s17  ;;  %v8018_v9 = vpop.permute.xlu0 %1532  ;;  %v2120_v36 = vstv %s6621_s27  ;;  %v2101_v55 = vsel %vm1332_vm6, %v2099_v2, %v2100_v44  ;;  %v2158_v2 = vmul.f32 %v2157_v45, %v7972_v61  ;;  %v2160_v44 = vmul.f32 %v2157_v45, %v7964_v43  ;;  %s6625_s27 = sld [smem:[#allocation5 + $0x45]] }
 0x36e   : > { %2070 = vrot.lane.b32.xlu1 %v2064_v20, %s12094_s17  ;;  %12291 = vst [vmem:[#allocation120_spill] sm:$0xff] %v8018_v9  ;;  %v2121_v3 = vmul.f32 %v2120_v36, %v7972_v61  ;;  %v2098_v20 = vsel %vm1332_vm6, %v2096_v31, %v2097_v59  ;;  %v2124_v9 = vmul.f32 %v2120_v36, %v7976_v19 }
 0x36f   : > { %v8020_v0 = vpop.permute.xlu2 %1653  ;;  %v2123_v12 = vmul.f32 %v2120_v36, %v7964_v43  ;;  %v2126_v57 = vmul.f32 %v2120_v36, %v7968_v53  ;;  %v2122_v22 = vmul.f32 %v2120_v36, %v7982_v62  ;;  %v2125_v37 = vmul.f32 %v2120_v36, %v7986_v13 }
 0x370   : > { %12292 = vst [vmem:[#allocation121_spill] sm:$0xff] %v8020_v0  ;;  %v8022_v52 = vpop.permute.xlu1 %1534  ;;  %v2133_v31 = vrot.slane %v2121_v3, 1  ;;  %v2134_v59 = vrot.slane %v2124_v9, 1  ;;  %v2161_v36 = vmul.f32 %v2157_v45, %v7976_v19  ;;  %v2162_v61 = vmul.f32 %v2157_v45, %v7986_v13 }
 0x371   : > { %12293 = vst [vmem:[#allocation122_spill] sm:$0xff] %v8022_v52  ;;  %v2140_v52 = vrot.slane %v2126_v57, 1  ;;  %v2137_v0 = vrot.slane %v2125_v37, 1  ;;  %v2170_v19 = vrot.slane %v2158_v2, 1  ;;  %v2176_v9 = vrot.slane %v2160_v44, 1 }
 0x372   : > { %v8068_v13 = vmul.f32 %v7664_v51, %v7510_v25  ;;  %v8072_v37 = vmul.f32 %v7667_v4, %v7510_v25  ;;  %v2237_v2 = vstv %s6624_s14  ;;  %s6627_s14 = sld [smem:[#allocation5 + $0x10]] }
 0x373   : > { %2105 = vrot.lane.b32.xlu0 %v2098_v20, %s12094_s17  ;;  %v2139_v20 = vrot.slane %v2123_v12, 1 }
 0x375   : > { %2109 = vrot.lane.b32.xlu2 %v2104_v27, %s12094_s17  ;;  %v8036_v7 = vpop.permute.xlu0 %1569  ;;  %v2136_v27 = vrot.slane %v2122_v22, 1  ;;  %v2141_v3 = vsel %vm1332_vm6, %v2139_v20, %v2140_v52  ;;  %v8060_v52 = vmul.f32 %v7658_v8, %v7497_v5  ;;  %v8078_v8 = vmul.f32 %v7674_v17, %v7514_v28 }
 0x376   : > { %2107 = vrot.lane.b32.xlu1 %v2101_v55, %s12094_s17  ;;  %12294 = vst [vmem:[#allocation123_spill] sm:$0xff] %v8036_v7  ;;  %v2163_v55 = vmul.f32 %v2157_v45, %v7968_v53  ;;  %v2135_v7 = vsel %vm1332_vm6, %v2133_v31, %v2134_v59 }
 0x377   : > { %v8038_v58 = vpop.permute.xlu2 %1690  ;;  %v2138_v12 = vsel %vm1332_vm6, %v2136_v27, %v2137_v0  ;;  %v8064_v0 = vmul.f32 %v7661_v14, %v7497_v5  ;;  %v8082_v5 = vmul.f32 %v7677_v18, %v7514_v28 }
 0x378   : > { %12295 = vst [vmem:[#allocation124_spill] sm:$0xff] %v8038_v58  ;;  %v8040_v60 = vpop.permute.xlu1 %1571  ;;  %v2159_v58 = vmul.f32 %v2157_v45, %v7982_v62  ;;  %v2171_v62 = vrot.slane %v2161_v36, 1  ;;  %v2177_v57 = vrot.slane %v2163_v55, 1  ;;  %v2200_v45 = vstv %s6623_s15  ;;  %s6626_s15 = sld [smem:[#allocation5 + $0x60]] }
 0x379   : > { %12296 = vst [vmem:[#allocation125_spill] sm:$0xff] %v8040_v60  ;;  %v2201_v31 = vmul.f32 %v2200_v45, %v8060_v52  ;;  %v2204_v25 = vmul.f32 %v2200_v45, %v8064_v0  ;;  %v2203_v4 = vmul.f32 %v2200_v45, %v8068_v13  ;;  %v2206_v59 = vmul.f32 %v2200_v45, %v8072_v37 }
 0x37a   : > { %v2173_v22 = vrot.slane %v2159_v58, 1  ;;  %v2174_v58 = vrot.slane %v2162_v61, 1  ;;  %v2172_v14 = vsel %vm1332_vm6, %v2170_v19, %v2171_v62  ;;  %v2178_v51 = vsel %vm1332_vm6, %v2176_v9, %v2177_v57 }
 0x37b   : > { %2142 = vrot.lane.b32.xlu0 %v2135_v7, %s12094_s17  ;;  %v2202_v28 = vmul.f32 %v2200_v45, %v8078_v8  ;;  %v2205_v18 = vmul.f32 %v2200_v45, %v8082_v5  ;;  %v2213_v44 = vrot.slane %v2201_v31, 1  ;;  %v2214_v55 = vrot.slane %v2204_v25, 1 }
 0x37c   : > { %v2175_v17 = vsel %vm1332_vm6, %v2173_v22, %v2174_v58  ;;  %v2238_v62 = vmul.f32 %v2237_v2, %v8060_v52  ;;  %v2241_v9 = vmul.f32 %v2237_v2, %v8064_v0  ;;  %v2240_v58 = vmul.f32 %v2237_v2, %v8068_v13 }
 0x37d   : > { %2146 = vrot.lane.b32.xlu2 %v2141_v3, %s12094_s17  ;;  %v8054_v43 = vpop.permute.xlu0 %1612  ;;  %v2219_v3 = vrot.slane %v2203_v4, 1  ;;  %v2216_v61 = vrot.slane %v2202_v28, 1  ;;  %v2217_v19 = vrot.slane %v2205_v18, 1  ;;  %v2215_v57 = vsel %vm1332_vm6, %v2213_v44, %v2214_v55 }
 0x37e   : > { %2144 = vrot.lane.b32.xlu1 %v2138_v12, %s12094_s17  ;;  %12297 = vst [vmem:[#allocation126_spill] sm:$0xff] %v8054_v43  ;;  %v2220_v12 = vrot.slane %v2206_v59, 1  ;;  %v2243_v45 = vmul.f32 %v2237_v2, %v8072_v37  ;;  %v2242_v31 = vmul.f32 %v2237_v2, %v8082_v5  ;;  %v2274_v59 = vstv %s6625_s27  ;;  %s8150_s27 = sld [smem:[#allocation5 + $0x2b]] }
 0x37f   : > { %v8056_v53 = vpop.permute.xlu2 %1727  ;;  %v2250_v28 = vrot.slane %v2238_v62, 1  ;;  %v2251_v18 = vrot.slane %v2241_v9, 1  ;;  %v2256_v44 = vrot.slane %v2240_v58, 1  ;;  %v2276_v9 = vmul.f32 %v2274_v59, %v8078_v8 }
 0x380   : > { %12298 = vst [vmem:[#allocation127_spill] sm:$0xff] %v8056_v53  ;;  %v8074_v7 = vpop.permute.xlu1 %1614  ;;  %v2221_v22 = vsel %vm1332_vm6, %v2219_v3, %v2220_v12  ;;  %v2257_v55 = vrot.slane %v2243_v45, 1  ;;  %v2254_v12 = vrot.slane %v2242_v31, 1  ;;  %v2279_v58 = vmul.f32 %v2274_v59, %v8082_v5 }
 0x381   : > { %12299 = vst [vmem:[#allocation128_spill] sm:$0xff] %v8074_v7  ;;  %v2311_v31 = vstv %s6626_s15  ;;  %s6629_s15 = sld [smem:[#allocation5 + $0x46]] }
 0x383   : > { %2179 = vrot.lane.b32.xlu0 %v2172_v14, %s12094_s17  ;;  %v2218_v14 = vsel %vm1332_vm6, %v2216_v61, %v2217_v19  ;;  %v2275_v61 = vmul.f32 %v2274_v59, %v8060_v52  ;;  %v2252_v19 = vsel %vm1332_vm6, %v2250_v28, %v2251_v18 }
 0x384   : > { %v2385_v53 = vstv %s8150_s27  ;;  %s6630_s27 = sld [smem:[#allocation5 + $0x61]] }
 0x385   : > { %2183 = vrot.lane.b32.xlu2 %v2178_v51, %s12094_s17  ;;  %v8096_v20 = vpop.permute.xlu0 %1649  ;;  %v2239_v51 = vmul.f32 %v2237_v2, %v8078_v8  ;;  %v2278_v2 = vmul.f32 %v2274_v59, %v8064_v0  ;;  %v2287_v18 = vrot.slane %v2275_v61, 1 }
 0x386   : > { %2181 = vrot.lane.b32.xlu1 %v2175_v17, %s12094_s17  ;;  %12300 = vst [vmem:[#allocation129_spill] sm:$0xff] %v8096_v20  ;;  %s8712_s17 = sld [smem:[#allocation5 + $0x24]] }
 0x387   : > { %v8098_v27 = vpop.permute.xlu2 %1770  ;;  %v2253_v3 = vrot.slane %v2239_v51, 1 }
 0x388   : > { %12301 = vst [vmem:[#allocation130_spill] sm:$0xff] %v8098_v27  ;;  %v8100_v36 = vpop.permute.xlu1 %1651 }
 0x389   : > { %12302 = vst [vmem:[#allocation131_spill] sm:$0xff] %v8100_v36  ;;  %v2255_v62 = vsel %vm1332_vm6, %v2253_v3, %v2254_v12  ;;  %v2291_v3 = vrot.slane %v2279_v58, 1  ;;  %v2312_v12 = vmul.f32 %v2311_v31, %v8060_v52  ;;  %v2316_v52 = vmul.f32 %v2311_v31, %v8082_v5 }
 0x38b   : > { %2222 = vrot.lane.b32.xlu0 %v2215_v57, %s12303_s23  ;;  %v2258_v57 = vsel %vm1332_vm6, %v2256_v44, %v2257_v55  ;;  %v2288_v44 = vrot.slane %v2278_v2, 1  ;;  %v2313_v2 = vmul.f32 %v2311_v31, %v8078_v8  ;;  %v2328_v58 = vrot.slane %v2316_v52, 1 }
 0x38d   : > { %2226 = vrot.lane.b32.xlu2 %v2221_v22, %s12303_s23  ;;  %v8114_v25 = vpop.permute.xlu0 %1686  ;;  %v2277_v22 = vmul.f32 %v2274_v59, %v8068_v13  ;;  %v2327_v5 = vrot.slane %v2313_v2, 1 }
 0x38e   : > { %2224 = vrot.lane.b32.xlu1 %v2218_v14, %s12303_s23  ;;  %12304 = vst [vmem:[#allocation132_spill] sm:$0xff] %v8114_v25  ;;  %v2280_v14 = vmul.f32 %v2274_v59, %v8072_v37  ;;  %v2315_v59 = vmul.f32 %v2311_v31, %v8064_v0  ;;  %v2348_v0 = vstv %s6627_s14  ;;  %s12316_s14 = smov 95  }
 0x38f   : > { %v8116_v4 = vpop.permute.xlu2 %1807  ;;  %v2293_v55 = vrot.slane %v2277_v22, 1  ;;  %v2324_v22 = vrot.slane %v2312_v12, 1  ;;  %v2329_v52 = vsel %vm1332_vm6, %v2327_v5, %v2328_v58 }
 0x390   : > { %12305 = vst [vmem:[#allocation133_spill] sm:$0xff] %v8116_v4  ;;  %v8118_v17 = vpop.permute.xlu1 %1688  ;;  %v2325_v8 = vrot.slane %v2315_v59, 1  ;;  %v8179_v59 = vld [vmem:[%s7232_s21 + $0x20] sm:$0x1] }
 0x391   : > { %12306 = vst [vmem:[#allocation134_spill] sm:$0xff] %v8118_v17 }
 0x393   : > { %2259 = vrot.lane.b32.xlu0 %v2252_v19, %s12303_s23  ;;  %v2294_v19 = vrot.slane %v2280_v14, 1 }
 0x395   : > { %2263 = vrot.lane.b32.xlu2 %v2258_v57, %s12303_s23  ;;  %v8132_v45 = vpop.permute.xlu0 %1723  ;;  %v2290_v57 = vrot.slane %v2276_v9, 1  ;;  %v2295_v27 = vsel %vm1332_vm6, %v2293_v55, %v2294_v19  ;;  %v8167_v19 = vld [vmem:[%s7232_s21 + $0x10] sm:$0xfe] }
 0x396   : > { %2261 = vrot.lane.b32.xlu1 %v2255_v62, %s12303_s23  ;;  %12307 = vst [vmem:[#allocation135_spill] sm:$0xff] %v8132_v45  ;;  %v2289_v62 = vsel %vm1332_vm6, %v2287_v18, %v2288_v44  ;;  %v2314_v45 = vmul.f32 %v2311_v31, %v8068_v13  ;;  %v8163_v44 = vld [vmem:[%s7232_s21 + $0x18] sm:$0x1] }
 0x397   : > { %v8134_v51 = vpop.permute.xlu2 %1844  ;;  %v2292_v61 = vsel %vm1332_vm6, %v2290_v57, %v2291_v3  ;;  %v2352_v55 = vmul.f32 %v8163_v44, %v2348_v0  ;;  %v2351_v57 = vmul.f32 %v8167_v19, %v2348_v0  ;;  %v8171_v3 = vld [vmem:[%s7232_s21 + $0x28] sm:$0x1] }
 0x398   : > { %12308 = vst [vmem:[#allocation136_spill] sm:$0xff] %v8134_v51  ;;  %v8136_v28 = vpop.permute.xlu1 %1725  ;;  %v2317_v51 = vmul.f32 %v2311_v31, %v8072_v37  ;;  %v2330_v14 = vrot.slane %v2314_v45, 1  ;;  %v8159_v31 = vld [vmem:[%s7232_s21] sm:$0xfe]  ;;  %v2354_v45 = vmul.f32 %v8171_v3, %v2348_v0 }
 0x399   : > { %12309 = vst [vmem:[#allocation137_spill] sm:$0xff] %v8136_v28  ;;  %v2349_v18 = vmul.f32 %v8159_v31, %v2348_v0  ;;  %v2386_v5 = vmul.f32 %v8159_v31, %v2385_v53 }
 0x39a   : > { %v2331_v9 = vrot.slane %v2317_v51, 1  ;;  %v8175_v51 = vld [vmem:[%s7232_s21 + $0x8] sm:$0xfe]  ;;  %v2368_v28 = vrot.slane %v2354_v45, 1 }
 0x39b   : > { %2296 = vrot.lane.b32.xlu0 %v2289_v62, %s12303_s23  ;;  %v2350_v12 = vmul.f32 %v8175_v51, %v2348_v0  ;;  %v2353_v62 = vmul.f32 %v8179_v59, %v2348_v0 }
 0x39c   : > { %v2332_v2 = vsel %vm1332_vm6, %v2330_v14, %v2331_v9 }
 0x39d   : > { %2300 = vrot.lane.b32.xlu2 %v2295_v27, %s12303_s23  ;;  %v8152_v13 = vpop.permute.xlu0 %1766 }
 0x39e   : > { %2298 = vrot.lane.b32.xlu1 %v2292_v61, %s12303_s23  ;;  %12310 = vst [vmem:[#allocation138_spill] sm:$0xff] %v8152_v13  ;;  %v2326_v61 = vsel %vm1332_vm6, %v2324_v22, %v2325_v8  ;;  %v2362_v13 = vrot.slane %v2352_v55, 1  ;;  %v2364_v22 = vrot.slane %v2350_v12, 1  ;;  %v2365_v8 = vrot.slane %v2353_v62, 1 }
 0x39f   : > { %v8154_v37 = vpop.permute.xlu2 %1881  ;;  %v2388_v55 = vmul.f32 %v8167_v19, %v2385_v53  ;;  %v2390_v12 = vmul.f32 %v8179_v59, %v2385_v53  ;;  %v2422_v62 = vstv %s6629_s15  ;;  %s6631_s15 = sld [smem:[#allocation5 + $0x11]] }
 0x3a0   : > { %12311 = vst [vmem:[#allocation139_spill] sm:$0xff] %v8154_v37  ;;  %v8156_v27 = vpop.permute.xlu1 %1768  ;;  %v2361_v37 = vrot.slane %v2349_v18, 1  ;;  %v2389_v18 = vmul.f32 %v8163_v44, %v2385_v53  ;;  %v2366_v45 = vsel %vm1332_vm6, %v2364_v22, %v2365_v8 }
 0x3a1   : > { %12312 = vst [vmem:[#allocation140_spill] sm:$0xff] %v8156_v27  ;;  %v2367_v27 = vrot.slane %v2351_v57, 1  ;;  %v2391_v57 = vmul.f32 %v8171_v3, %v2385_v53  ;;  %v2402_v8 = vrot.slane %v2390_v12, 1 }
 0x3a2   : > { %v2363_v9 = vsel %vm1332_vm6, %v2361_v37, %v2362_v13  ;;  %v2398_v13 = vrot.slane %v2386_v5, 1  ;;  %v2404_v37 = vrot.slane %v2388_v55, 1  ;;  %v2425_v5 = vmul.f32 %v8167_v19, %v2422_v62 }
 0x3a3   : > { %2333 = vrot.lane.b32.xlu0 %v2326_v61, %s12303_s23  ;;  %v2369_v58 = vsel %vm1332_vm6, %v2367_v27, %v2368_v28  ;;  %v2387_v61 = vmul.f32 %v8175_v51, %v2385_v53  ;;  %v2399_v28 = vrot.slane %v2389_v18, 1  ;;  %v2405_v27 = vrot.slane %v2391_v57, 1 }
 0x3a4   : > { %v2423_v53 = vmul.f32 %v8159_v31, %v2422_v62 }
 0x3a5   : > { %2337 = vrot.lane.b32.xlu2 %v2332_v2, %s12303_s23  ;;  %v8189_v25 = vpop.permute.xlu0 %1803  ;;  %v2401_v22 = vrot.slane %v2387_v61, 1  ;;  %v2400_v18 = vsel %vm1332_vm6, %v2398_v13, %v2399_v28  ;;  %v2406_v55 = vsel %vm1332_vm6, %v2404_v37, %v2405_v27  ;;  %v2427_v61 = vmul.f32 %v8179_v59, %v2422_v62 }
 0x3a6   : > { %2335 = vrot.lane.b32.xlu1 %v2329_v52, %s12303_s23  ;;  %12313 = vst [vmem:[#allocation141_spill] sm:$0xff] %v8189_v25  ;;  %v2435_v12 = vrot.slane %v2423_v53, 1  ;;  %v2459_v27 = vstv %s6630_s27  ;;  %s6632_s27 = sld [smem:[#allocation5 + $0x2c]] }
 0x3a7   : > { %v8191_v0 = vpop.permute.xlu2 %1918  ;;  %v2403_v57 = vsel %vm1332_vm6, %v2401_v22, %v2402_v8  ;;  %v2439_v37 = vrot.slane %v2427_v61, 1  ;;  %v2460_v53 = vmul.f32 %v8159_v31, %v2459_v27  ;;  %v8245_v61 = vmul.f32 %v8159_v31, %v7634_v21 }
 0x3a8   : > { %12314 = vst [vmem:[#allocation142_spill] sm:$0xff] %v8191_v0  ;;  %v8193_v14 = vpop.permute.xlu1 %1805 }
 0x3a9   : > { %12315 = vst [vmem:[#allocation143_spill] sm:$0xff] %v8193_v14 }
 0x3ab   : > { %2370 = vrot.lane.b32.xlu0 %v2363_v9, %s12316_s14  ;;  %v2426_v9 = vmul.f32 %v8163_v44, %v2422_v62 }
 0x3ad   : > { %2374 = vrot.lane.b32.xlu2 %v2369_v58, %s12316_s14  ;;  %v8207_v2 = vpop.permute.xlu0 %1840  ;;  %v2428_v58 = vmul.f32 %v8171_v3, %v2422_v62 }
 0x3ae   : > { %2372 = vrot.lane.b32.xlu1 %v2366_v45, %s12316_s14  ;;  %12317 = vst [vmem:[#allocation144_spill] sm:$0xff] %v8207_v2  ;;  %v2424_v45 = vmul.f32 %v8175_v51, %v2422_v62  ;;  %v2436_v2 = vrot.slane %v2426_v9, 1  ;;  %v2463_v9 = vmul.f32 %v8163_v44, %v2459_v27 }
 0x3af   : > { %v8209_v52 = vpop.permute.xlu2 %1955  ;;  %v2442_v25 = vrot.slane %v2428_v58, 1  ;;  %v2465_v58 = vmul.f32 %v8171_v3, %v2459_v27 }
 0x3b0   : > { %12318 = vst [vmem:[#allocation145_spill] sm:$0xff] %v8209_v52  ;;  %v8211_v0 = vpop.permute.xlu1 %1842  ;;  %v2438_v28 = vrot.slane %v2424_v45, 1  ;;  %v2437_v62 = vsel %vm1332_vm6, %v2435_v12, %v2436_v2  ;;  %v8249_v12 = vmul.f32 %v8163_v44, %v7634_v21  ;;  %v8267_v44 = vmul.f32 %v8175_v51, %v7640_v23 }
 0x3b1   : > { %12319 = vst [vmem:[#allocation146_spill] sm:$0xff] %v8211_v0  ;;  %v2441_v0 = vrot.slane %v2425_v5, 1  ;;  %v2462_v5 = vmul.f32 %v8167_v19, %v2459_v27  ;;  %v2479_v45 = vrot.slane %v2465_v58, 1 }
 0x3b3   : > { %2407 = vrot.lane.b32.xlu0 %v2400_v18, %s12316_s14  ;;  %v2443_v8 = vsel %vm1332_vm6, %v2441_v0, %v2442_v25  ;;  %v2440_v18 = vsel %vm1332_vm6, %v2438_v28, %v2439_v37  ;;  %v2472_v25 = vrot.slane %v2460_v53, 1  ;;  %v2473_v0 = vrot.slane %v2463_v9, 1 }
 0x3b4   : > { %v2478_v2 = vrot.slane %v2462_v5, 1  ;;  %v8261_v53 = vmul.f32 %v8171_v3, %v7636_v46  ;;  %v2502_v9 = vstv %s6631_s15  ;;  %v8271_v5 = vmul.f32 %v8179_v59, %v7640_v23  ;;  %s6633_s15 = sld [smem:[#allocation5 + $0x47]] }
 0x3b5   : > { %2411 = vrot.lane.b32.xlu2 %v2406_v55, %s12316_s14  ;;  %v8225_v14 = vpop.permute.xlu0 %1877  ;;  %v2461_v55 = vmul.f32 %v8175_v51, %v2459_v27  ;;  %v2474_v58 = vsel %vm1332_vm6, %v2472_v25, %v2473_v0  ;;  %v2503_v3 = vmul.f32 %v2502_v9, %v8245_v61  ;;  %v2504_v51 = vmul.f32 %v2502_v9, %v8267_v44 }
 0x3b6   : > { %2409 = vrot.lane.b32.xlu1 %v2403_v57, %s12316_s14  ;;  %12320 = vst [vmem:[#allocation147_spill] sm:$0xff] %v8225_v14  ;;  %v2464_v57 = vmul.f32 %v8179_v59, %v2459_v27  ;;  %v2507_v59 = vmul.f32 %v2502_v9, %v8271_v5 }
 0x3b7   : > { %v8227_v13 = vpop.permute.xlu2 %1992  ;;  %v2475_v27 = vrot.slane %v2461_v55, 1  ;;  %v2506_v55 = vmul.f32 %v2502_v9, %v8249_v12 }
 0x3b8   : > { %12321 = vst [vmem:[#allocation148_spill] sm:$0xff] %v8227_v13  ;;  %v8229_v22 = vpop.permute.xlu1 %1879 }
 0x3b9   : > { %12322 = vst [vmem:[#allocation149_spill] sm:$0xff] %v8229_v22 }
 0x3bb   : > { %2444 = vrot.lane.b32.xlu0 %v2437_v62, %s12316_s14  ;;  %v2476_v62 = vrot.slane %v2464_v57, 1 }
 0x3bd   : > { %2448 = vrot.lane.b32.xlu2 %v2443_v8, %s12316_s14  ;;  %v8251_v28 = vpop.permute.xlu0 %1914  ;;  %v8257_v8 = vmul.f32 %v8167_v19, %v7636_v46  ;;  %v2480_v19 = vsel %vm1332_vm6, %v2478_v2, %v2479_v45  ;;  %v2515_v2 = vrot.slane %v2503_v3, 1  ;;  %v2516_v45 = vrot.slane %v2506_v55, 1 }
 0x3be   : > { %2446 = vrot.lane.b32.xlu1 %v2440_v18, %s12316_s14  ;;  %12323 = vst [vmem:[#allocation150_spill] sm:$0xff] %v8251_v28  ;;  %v2477_v18 = vsel %vm1332_vm6, %v2475_v27, %v2476_v62 }
 0x3bf   : > { %v8253_v37 = vpop.permute.xlu2 %2029  ;;  %v2505_v57 = vmul.f32 %v2502_v9, %v8257_v8  ;;  %v2517_v14 = vsel %vm1332_vm6, %v2515_v2, %v2516_v45 }
 0x3c0   : > { %12324 = vst [vmem:[#allocation151_spill] sm:$0xff] %v8253_v37  ;;  %v8263_v31 = vpop.permute.xlu1 %1916  ;;  %v2508_v37 = vmul.f32 %v2502_v9, %v8261_v53 }
 0x3c1   : > { %12325 = vst [vmem:[#allocation152_spill] sm:$0xff] %v8263_v31  ;;  %v2521_v62 = vrot.slane %v2505_v57, 1  ;;  %v2539_v31 = vstv %s6632_s27  ;;  %s6634_s27 = sld [smem:[#allocation5 + $0x62]] }
 0x3c2   : > { %v2522_v28 = vrot.slane %v2508_v37, 1  ;;  %v2540_v9 = vmul.f32 %v2539_v31, %v8245_v61  ;;  %v2545_v3 = vmul.f32 %v2539_v31, %v8261_v53  ;;  %v2541_v55 = vmul.f32 %v2539_v31, %v8267_v44 }
 0x3c3   : > { %2481 = vrot.lane.b32.xlu0 %v2474_v58, %s12316_s14  ;;  %v2518_v58 = vrot.slane %v2504_v51, 1  ;;  %v2544_v57 = vmul.f32 %v2539_v31, %v8271_v5 }
 0x3c5   : > { %2485 = vrot.lane.b32.xlu2 %v2480_v19, %s12316_s14  ;;  %v8285_v25 = vpop.permute.xlu0 %1951  ;;  %v2519_v19 = vrot.slane %v2507_v59, 1  ;;  %v2552_v59 = vrot.slane %v2540_v9, 1 }
 0x3c6   : > { %2483 = vrot.lane.b32.xlu1 %v2477_v18, %s12316_s14  ;;  %12326 = vst [vmem:[#allocation153_spill] sm:$0xff] %v8285_v25  ;;  %v2523_v18 = vsel %vm1332_vm6, %v2521_v62, %v2522_v28  ;;  %v2543_v25 = vmul.f32 %v2539_v31, %v8249_v12 }
 0x3c7   : > { %v8287_v0 = vpop.permute.xlu2 %2072  ;;  %v2520_v37 = vsel %vm1332_vm6, %v2518_v58, %v2519_v19  ;;  %v2556_v58 = vrot.slane %v2544_v57, 1 }
 0x3c8   : > { %12327 = vst [vmem:[#allocation154_spill] sm:$0xff] %v8287_v0  ;;  %v8289_v27 = vpop.permute.xlu1 %1953  ;;  %v2542_v0 = vmul.f32 %v2539_v31, %v8257_v8  ;;  %v2553_v45 = vrot.slane %v2543_v25, 1 }
 0x3c9   : > { %12328 = vst [vmem:[#allocation155_spill] sm:$0xff] %v8289_v27  ;;  %v2576_v27 = vstv %s6633_s15  ;;  %s6639_s15 = sld [smem:[#allocation5 + $0x13]] }
 0x3ca   : > { %v2558_v62 = vrot.slane %v2542_v0, 1  ;;  %v2577_v19 = vmul.f32 %v2576_v27, %v8245_v61  ;;  %v2580_v31 = vmul.f32 %v2576_v27, %v8249_v12  ;;  %v2579_v22 = vmul.f32 %v2576_v27, %v8257_v8 }
 0x3cb   : > { %2524 = vrot.lane.b32.xlu0 %v2517_v14, %s12092_s24  ;;  %v2559_v14 = vrot.slane %v2545_v3, 1  ;;  %v2582_v9 = vmul.f32 %v2576_v27, %v8261_v53  ;;  %v2578_v0 = vmul.f32 %v2576_v27, %v8267_v44  ;;  %v2581_v3 = vmul.f32 %v2576_v27, %v8271_v5 }
 0x3cd   : > { %2528 = vrot.lane.b32.xlu2 %v2523_v18, %s12092_s24  ;;  %v8303_v51 = vpop.permute.xlu0 %1988  ;;  %v2555_v18 = vrot.slane %v2541_v55, 1 }
 0x3ce   : > { %2526 = vrot.lane.b32.xlu1 %v2520_v37, %s12092_s24  ;;  %12329 = vst [vmem:[#allocation156_spill] sm:$0xff] %v8303_v51  ;;  %v2554_v37 = vsel %vm1332_vm6, %v2552_v59, %v2553_v45  ;;  %v2560_v51 = vsel %vm1332_vm6, %v2558_v62, %v2559_v14  ;;  %v2589_v59 = vrot.slane %v2577_v19, 1  ;;  %v2590_v45 = vrot.slane %v2580_v31, 1 }
 0x3cf   : > { %v8305_v28 = vpop.permute.xlu2 %2109  ;;  %v2557_v25 = vsel %vm1332_vm6, %v2555_v18, %v2556_v58  ;;  %v2595_v14 = vrot.slane %v2579_v22, 1  ;;  %v2593_v18 = vrot.slane %v2581_v3, 1 }
 0x3d0   : > { %12330 = vst [vmem:[#allocation157_spill] sm:$0xff] %v8305_v28  ;;  %v8307_v2 = vpop.permute.xlu1 %1990  ;;  %v2591_v58 = vsel %vm1332_vm6, %v2589_v59, %v2590_v45  ;;  %v8348_v45 = vld [vmem:[%s7232_s21] sm:$0xfc] }
 0x3d1   : > { %12331 = vst [vmem:[#allocation158_spill] sm:$0xff] %v8307_v2  ;;  %v2592_v2 = vrot.slane %v2578_v0, 1 }
 0x3d3   : > { %2561 = vrot.lane.b32.xlu0 %v2554_v37, %s12092_s24  ;;  %v2596_v37 = vrot.slane %v2582_v9, 1  ;;  %v2594_v22 = vsel %vm1332_vm6, %v2592_v2, %v2593_v18  ;;  %v8356_v18 = vld [vmem:[%s7232_s21 + $0x10] sm:$0xfc] }
 0x3d5   : > { %2565 = vrot.lane.b32.xlu2 %v2560_v51, %s12092_s24  ;;  %v8321_v55 = vpop.permute.xlu0 %2025  ;;  %v2613_v51 = vstv %s6634_s27  ;;  %s8339_s27 = sld [smem:[#allocation5 + $0x2e]] }
 0x3d6   : > { %2563 = vrot.lane.b32.xlu1 %v2557_v25, %s12092_s24  ;;  %12332 = vst [vmem:[#allocation159_spill] sm:$0xff] %v8321_v55  ;;  %v2614_v27 = vmul.f32 %v2613_v51, %v8245_v61  ;;  %v2597_v25 = vsel %vm1332_vm6, %v2595_v14, %v2596_v37  ;;  %v2617_v13 = vmul.f32 %v2613_v51, %v8249_v12  ;;  %v2779_v12 = vstv %s6639_s15  ;;  %v8352_v37 = vld [vmem:[%s7232_s21 + $0x18] sm:$0x3]  ;;  %s6641_s15 = sld [smem:[#allocation5 + $0x49]] }
 0x3d7   : > { %v8323_v57 = vpop.permute.xlu2 %2146  ;;  %v2616_v55 = vmul.f32 %v2613_v51, %v8257_v8  ;;  %v2619_v19 = vmul.f32 %v2613_v51, %v8261_v53  ;;  %v2615_v31 = vmul.f32 %v2613_v51, %v8267_v44  ;;  %v2618_v61 = vmul.f32 %v2613_v51, %v8271_v5 }
 0x3d8   : > { %12333 = vst [vmem:[#allocation160_spill] sm:$0xff] %v8323_v57  ;;  %v8325_v62 = vpop.permute.xlu1 %2027  ;;  %v2626_v2 = vrot.slane %v2614_v27, 1  ;;  %v2627_v44 = vrot.slane %v2617_v13, 1  ;;  %v2780_v14 = vmul.f32 %v8348_v45, %v2779_v12  ;;  %v2783_v51 = vmul.f32 %v8352_v37, %v2779_v12 }
 0x3d9   : > { %12334 = vst [vmem:[#allocation161_spill] sm:$0xff] %v8325_v62  ;;  %v2632_v0 = vrot.slane %v2616_v55, 1  ;;  %v2633_v3 = vrot.slane %v2619_v19, 1  ;;  %v2629_v5 = vrot.slane %v2615_v31, 1  ;;  %v2630_v59 = vrot.slane %v2618_v61, 1 }
 0x3da   : > { %v8364_v55 = vld [vmem:[%s7232_s21 + $0x8] sm:$0xfc]  ;;  %v8368_v19 = vld [vmem:[%s7232_s21 + $0x20] sm:$0x3]  ;;  %v2628_v31 = vsel %vm1332_vm6, %v2626_v2, %v2627_v44 }
 0x3db   : > { %2598 = vrot.lane.b32.xlu0 %v2591_v58, %s12092_s24  ;;  %v2782_v58 = vmul.f32 %v8356_v18, %v2779_v12  ;;  %v2781_v27 = vmul.f32 %v8364_v55, %v2779_v12  ;;  %v2634_v61 = vsel %vm1332_vm6, %v2632_v0, %v2633_v3  ;;  %v2816_v17 = vstv %s8339_s27  ;;  %s6642_s27 = sld [smem:[#allocation5 + $0x64]] }
 0x3dd   : > { %2602 = vrot.lane.b32.xlu2 %v2597_v25, %s12092_s24  ;;  %v8341_v8 = vpop.permute.xlu0 %2068  ;;  %v8360_v25 = vld [vmem:[%s7232_s21 + $0x28] sm:$0x3]  ;;  %v2798_v62 = vrot.slane %v2782_v58, 2  ;;  %v2795_v2 = vrot.slane %v2781_v27, 2  ;;  %v2821_v27 = vmul.f32 %v8368_v19, %v2816_v17 }
 0x3de   : > { %2600 = vrot.lane.b32.xlu1 %v2594_v22, %s12092_s24  ;;  %12335 = vst [vmem:[#allocation162_spill] sm:$0xff] %v8341_v8  ;;  %v2785_v13 = vmul.f32 %v8360_v25, %v2779_v12  ;;  %v2784_v22 = vmul.f32 %v8368_v19, %v2779_v12  ;;  %v2631_v8 = vsel %vm1332_vm6, %v2629_v5, %v2630_v59 }
 0x3df   : > { %v8343_v53 = vpop.permute.xlu2 %2183  ;;  %v2817_v5 = vmul.f32 %v8348_v45, %v2816_v17 }
 0x3e0   : > { %12336 = vst [vmem:[#allocation163_spill] sm:$0xff] %v8343_v53  ;;  %v8345_v9 = vpop.permute.xlu1 %2070  ;;  %v2793_v53 = vrot.slane %v2783_v51, 2  ;;  %v2799_v57 = vrot.slane %v2785_v13, 2  ;;  %v2796_v44 = vrot.slane %v2784_v22, 2  ;;  %v2822_v51 = vmul.f32 %v8360_v25, %v2816_v17 }
 0x3e1   : > { %12337 = vst [vmem:[#allocation164_spill] sm:$0xff] %v8345_v9  ;;  %v2792_v9 = vrot.slane %v2780_v14, 2  ;;  %v2819_v14 = vmul.f32 %v8356_v18, %v2816_v17  ;;  %v2818_v13 = vmul.f32 %v8364_v55, %v2816_v17  ;;  %v2853_v22 = vstv %s6641_s15  ;;  %s6643_s15 = sld [smem:[#allocation5 + $0x14]] }
 0x3e2   : > { %v2800_v59 = vsel %vm2675_vm4, %v2798_v62, %v2799_v57  ;;  %v2797_v58 = vsel %vm2675_vm4, %v2795_v2, %v2796_v44  ;;  %v2833_v44 = vrot.slane %v2821_v27, 2 }
 0x3e3   : > { %2635 = vrot.lane.b32.xlu0 %v2628_v31, %s12092_s24  ;;  %v2794_v3 = vsel %vm2675_vm4, %v2792_v9, %v2793_v53  ;;  %v2829_v53 = vrot.slane %v2817_v5, 2  ;;  %v2835_v62 = vrot.slane %v2819_v14, 2  ;;  %v2836_v9 = vrot.slane %v2822_v51, 2 }
 0x3e4   : > { %v2832_v2 = vrot.slane %v2818_v13, 2  ;;  %v2856_v5 = vmul.f32 %v8356_v18, %v2853_v22  ;;  %v2858_v13 = vmul.f32 %v8368_v19, %v2853_v22 }
 0x3e5   : > { %2639 = vrot.lane.b32.xlu2 %v2634_v61, %s12092_s24  ;;  %v8378_v20 = vpop.permute.xlu0 %2105  ;;  %v2837_v14 = vsel %vm2675_vm4, %v2835_v62, %v2836_v9  ;;  %v2890_v9 = vstv %s6642_s27  ;;  %s6644_s27 = sld [smem:[#allocation5 + $0x2f]] }
 0x3e6   : > { %2637 = vrot.lane.b32.xlu1 %v2631_v8, %s12092_s24  ;;  %12338 = vst [vmem:[#allocation165_spill] sm:$0xff] %v8378_v20  ;;  %v2820_v8 = vmul.f32 %v8352_v37, %v2816_v17  ;;  %v2854_v17 = vmul.f32 %v8348_v45, %v2853_v22  ;;  %v2834_v51 = vsel %vm2675_vm4, %v2832_v2, %v2833_v44  ;;  %v2870_v62 = vrot.slane %v2858_v13, 2  ;;  %s8705_s24 = sld [smem:[#allocation5 + $0x9]] }
 0x3e7   : > { %v8380_v12 = vpop.permute.xlu2 %2226  ;;  %v8434_v13 = vmul.f32 %v8348_v45, %v7307_v40 }
 0x3e8   : > { %12339 = vst [vmem:[#allocation166_spill] sm:$0xff] %v8380_v12  ;;  %v8382_v0 = vpop.permute.xlu1 %2107  ;;  %v2830_v57 = vrot.slane %v2820_v8, 2  ;;  %v2866_v27 = vrot.slane %v2854_v17, 2  ;;  %v2891_v17 = vmul.f32 %v8348_v45, %v2890_v9 }
 0x3e9   : > { %12340 = vst [vmem:[#allocation167_spill] sm:$0xff] %v8382_v0 }
 0x3ea   : > { %v2831_v8 = vsel %vm2675_vm4, %v2829_v53, %v2830_v57 }
 0x3eb   : > { %2801 = vrot.lane.b32.xlu0 %v2794_v3, %s12090_s22  ;;  %v2857_v3 = vmul.f32 %v8352_v37, %v2853_v22 }
 0x3ed   : > { %2805 = vrot.lane.b32.xlu2 %v2800_v59, %s12090_s22  ;;  %v8396_v31 = vpop.permute.xlu0 %2142  ;;  %v2859_v59 = vmul.f32 %v8360_v25, %v2853_v22 }
 0x3ee   : > { %2803 = vrot.lane.b32.xlu1 %v2797_v58, %s12090_s22  ;;  %12341 = vst [vmem:[#allocation168_spill] sm:$0xff] %v8396_v31  ;;  %v2855_v58 = vmul.f32 %v8364_v55, %v2853_v22  ;;  %v2867_v31 = vrot.slane %v2857_v3, 2  ;;  %v2894_v3 = vmul.f32 %v8352_v37, %v2890_v9 }
 0x3ef   : > { %v8398_v61 = vpop.permute.xlu2 %2263  ;;  %v2873_v20 = vrot.slane %v2859_v59, 2  ;;  %v2896_v59 = vmul.f32 %v8360_v25, %v2890_v9 }
 0x3f0   : > { %12342 = vst [vmem:[#allocation169_spill] sm:$0xff] %v8398_v61  ;;  %v8400_v12 = vpop.permute.xlu1 %2144  ;;  %v2869_v57 = vrot.slane %v2855_v58, 2  ;;  %v2868_v22 = vsel %vm2675_vm4, %v2866_v27, %v2867_v31 }
 0x3f1   : > { %12343 = vst [vmem:[#allocation170_spill] sm:$0xff] %v8400_v12  ;;  %v2872_v12 = vrot.slane %v2856_v5, 2  ;;  %v2893_v5 = vmul.f32 %v8356_v18, %v2890_v9  ;;  %v2910_v58 = vrot.slane %v2896_v59, 2  ;;  %v8456_v59 = vmul.f32 %v8364_v55, %v7351_v15 }
 0x3f3   : > { %2838 = vrot.lane.b32.xlu0 %v2831_v8, %s12090_s22  ;;  %v2874_v44 = vsel %vm2675_vm4, %v2872_v12, %v2873_v20  ;;  %v2871_v8 = vsel %vm2675_vm4, %v2869_v57, %v2870_v62  ;;  %v2903_v20 = vrot.slane %v2891_v17, 2  ;;  %v2904_v12 = vrot.slane %v2894_v3, 2 }
 0x3f4   : > { %v2909_v31 = vrot.slane %v2893_v5, 2  ;;  %v8450_v17 = vmul.f32 %v8360_v25, %v7334_v63  ;;  %v2933_v5 = vstv %s6643_s15  ;;  %s6645_s15 = sld [smem:[#allocation5 + $0x4a]] }
 0x3f5   : > { %2842 = vrot.lane.b32.xlu2 %v2837_v14, %s12090_s22  ;;  %v8414_v0 = vpop.permute.xlu0 %2179  ;;  %v2892_v14 = vmul.f32 %v8364_v55, %v2890_v9 }
 0x3f6   : > { %2840 = vrot.lane.b32.xlu1 %v2834_v51, %s12090_s22  ;;  %12344 = vst [vmem:[#allocation171_spill] sm:$0xff] %v8414_v0  ;;  %v2895_v51 = vmul.f32 %v8368_v19, %v2890_v9  ;;  %v2939_v0 = vmul.f32 %v2933_v5, %v8450_v17 }
 0x3f7   : > { %v8416_v53 = vpop.permute.xlu2 %2300  ;;  %v2906_v62 = vrot.slane %v2892_v14, 2  ;;  %v2911_v14 = vsel %vm2675_vm4, %v2909_v31, %v2910_v58 }
 0x3f8   : > { %12345 = vst [vmem:[#allocation172_spill] sm:$0xff] %v8416_v53  ;;  %v8418_v2 = vpop.permute.xlu1 %2181  ;;  %v2907_v9 = vrot.slane %v2895_v51, 2  ;;  %v2970_v53 = vstv %s6644_s27  ;;  %s6646_s27 = sld [smem:[#allocation5 + $0x65]] }
 0x3f9   : > { %12346 = vst [vmem:[#allocation173_spill] sm:$0xff] %v8418_v2 }
 0x3fa   : > { %v2908_v51 = vsel %vm2675_vm4, %v2906_v62, %v2907_v9 }
 0x3fb   : > { %2875 = vrot.lane.b32.xlu0 %v2868_v22, %s12090_s22  ;;  %v8442_v22 = vmul.f32 %v8352_v37, %v7307_v40  ;;  %v8460_v40 = vmul.f32 %v8368_v19, %v7351_v15  ;;  %v2935_v15 = vmul.f32 %v2933_v5, %v8456_v59 }
 0x3fd   : > { %2879 = vrot.lane.b32.xlu2 %v2874_v44, %s12090_s22  ;;  %v8436_v27 = vpop.permute.xlu0 %2222  ;;  %v8446_v44 = vmul.f32 %v8356_v18, %v7334_v63  ;;  %v2934_v63 = vmul.f32 %v2933_v5, %v8434_v13 }
 0x3fe   : > { %2877 = vrot.lane.b32.xlu1 %v2871_v8, %s12090_s22  ;;  %12347 = vst [vmem:[#allocation174_spill] sm:$0xff] %v8436_v27  ;;  %v2905_v8 = vsel %vm2675_vm4, %v2903_v20, %v2904_v12  ;;  %v2937_v27 = vmul.f32 %v2933_v5, %v8442_v22  ;;  %v2938_v20 = vmul.f32 %v2933_v5, %v8460_v40 }
 0x3ff   : > { %v8438_v57 = vpop.permute.xlu2 %2337  ;;  %v2946_v58 = vrot.slane %v2934_v63, 2 }
 0x400   : > { %12348 = vst [vmem:[#allocation175_spill] sm:$0xff] %v8438_v57  ;;  %v8452_v3 = vpop.permute.xlu1 %2224  ;;  %v2947_v9 = vrot.slane %v2937_v27, 2  ;;  %v2953_v57 = vrot.slane %v2939_v0, 2  ;;  %v2950_v36 = vrot.slane %v2938_v20, 2  ;;  %v2972_v27 = vmul.f32 %v2970_v53, %v8456_v59 }
 0x401   : > { %12349 = vst [vmem:[#allocation176_spill] sm:$0xff] %v8452_v3  ;;  %v2936_v3 = vmul.f32 %v2933_v5, %v8446_v44  ;;  %v2974_v5 = vmul.f32 %v2970_v53, %v8442_v22 }
 0x403   : > { %2912 = vrot.lane.b32.xlu0 %v2905_v8, %s12090_s22  ;;  %v2952_v2 = vrot.slane %v2936_v3, 2  ;;  %v2949_v8 = vrot.slane %v2935_v15, 2  ;;  %v2975_v3 = vmul.f32 %v2970_v53, %v8460_v40 }
 0x405   : > { %2916 = vrot.lane.b32.xlu2 %v2911_v14, %s12090_s22  ;;  %v8474_v12 = vpop.permute.xlu0 %2259  ;;  %v2971_v14 = vmul.f32 %v2970_v53, %v8434_v13  ;;  %v2954_v63 = vsel %vm2675_vm4, %v2952_v2, %v2953_v57  ;;  %v2951_v0 = vsel %vm2675_vm4, %v2949_v8, %v2950_v36  ;;  %v3007_v36 = vstv %s6645_s15  ;;  %s6647_s15 = sld [smem:[#allocation5 + $0x15]] }
 0x406   : > { %2914 = vrot.lane.b32.xlu1 %v2908_v51, %s12090_s22  ;;  %12350 = vst [vmem:[#allocation177_spill] sm:$0xff] %v8474_v12  ;;  %v2973_v51 = vmul.f32 %v2970_v53, %v8446_v44  ;;  %v2976_v12 = vmul.f32 %v2970_v53, %v8450_v17  ;;  %v3010_v43 = vmul.f32 %v3007_v36, %v8446_v44  ;;  %s8701_s22 = sld [smem:[#allocation5 + $0x51]] }
 0x407   : > { %v8476_v31 = vpop.permute.xlu2 %2374 }
 0x408   : > { %12351 = vst [vmem:[#allocation178_spill] sm:$0xff] %v8476_v31  ;;  %v8478_v62 = vpop.permute.xlu1 %2261  ;;  %v2948_v31 = vsel %vm2675_vm4, %v2946_v58, %v2947_v9  ;;  %v2984_v58 = vrot.slane %v2974_v5, 2  ;;  %v2989_v9 = vrot.slane %v2973_v51, 2  ;;  %v2990_v2 = vrot.slane %v2976_v12, 2 }
 0x409   : > { %12352 = vst [vmem:[#allocation179_spill] sm:$0xff] %v8478_v62  ;;  %v2983_v62 = vrot.slane %v2971_v14, 2  ;;  %v3013_v14 = vmul.f32 %v3007_v36, %v8450_v17  ;;  %v3009_v5 = vmul.f32 %v3007_v36, %v8456_v59 }
 0x40a   : > { %v2991_v53 = vsel %vm2675_vm4, %v2989_v9, %v2990_v2 }
 0x40b   : > { %2955 = vrot.lane.b32.xlu0 %v2948_v31, %s12086_s20  ;;  %v2986_v31 = vrot.slane %v2972_v27, 2  ;;  %v2985_v8 = vsel %vm2675_vm4, %v2983_v62, %v2984_v58  ;;  %v3012_v62 = vmul.f32 %v3007_v36, %v8460_v40 }
 0x40d   : > { %2959 = vrot.lane.b32.xlu2 %v2954_v63, %s12086_s20  ;;  %v8492_v15 = vpop.permute.xlu0 %2296  ;;  %v2987_v63 = vrot.slane %v2975_v3, 2  ;;  %v3044_v3 = vstv %s6646_s27  ;;  %s6648_s27 = sld [smem:[#allocation5 + $0x30]] }
 0x40e   : > { %2957 = vrot.lane.b32.xlu1 %v2951_v0, %s12086_s20  ;;  %12353 = vst [vmem:[#allocation180_spill] sm:$0xff] %v8492_v15  ;;  %v3008_v0 = vmul.f32 %v3007_v36, %v8434_v13  ;;  %v3011_v15 = vmul.f32 %v3007_v36, %v8442_v22  ;;  %v3048_v36 = vmul.f32 %v3044_v3, %v8442_v22 }
 0x40f   : > { %v8494_v20 = vpop.permute.xlu2 %2411  ;;  %v2988_v12 = vsel %vm2675_vm4, %v2986_v31, %v2987_v63  ;;  %v3024_v31 = vrot.slane %v3012_v62, 2  ;;  %v3045_v63 = vmul.f32 %v3044_v3, %v8434_v13  ;;  %v3050_v7 = vmul.f32 %v3044_v3, %v8450_v17 }
 0x410   : > { %12354 = vst [vmem:[#allocation181_spill] sm:$0xff] %v8494_v20  ;;  %v8496_v57 = vpop.permute.xlu1 %2298  ;;  %v3020_v9 = vrot.slane %v3008_v0, 2  ;;  %v3021_v2 = vrot.slane %v3011_v15, 2  ;;  %v3046_v15 = vmul.f32 %v3044_v3, %v8456_v59  ;;  %v3049_v13 = vmul.f32 %v3044_v3, %v8460_v40 }
 0x411   : > { %12355 = vst [vmem:[#allocation182_spill] sm:$0xff] %v8496_v57  ;;  %v3027_v57 = vrot.slane %v3013_v14, 2  ;;  %v8529_v22 = vmul.f32 %v8356_v18, %v7316_v47  ;;  %v8538_v17 = vmul.f32 %v8348_v45, %v7341_v10  ;;  %v3057_v59 = vrot.slane %v3045_v63, 2 }
 0x412   : > { %v3058_v40 = vrot.slane %v3048_v36, 2  ;;  %v8546_v14 = vmul.f32 %v8352_v37, %v7341_v10 }
 0x413   : > { %2992 = vrot.lane.b32.xlu0 %v2985_v8, %s12086_s20  ;;  %v3026_v8 = vrot.slane %v3010_v43, 2 }
 0x415   : > { %2996 = vrot.lane.b32.xlu2 %v2991_v53, %s12086_s20  ;;  %v8510_v51 = vpop.permute.xlu0 %2333  ;;  %v3023_v53 = vrot.slane %v3009_v5, 2 }
 0x416   : > { %2994 = vrot.lane.b32.xlu1 %v2988_v12, %s12086_s20  ;;  %12356 = vst [vmem:[#allocation183_spill] sm:$0xff] %v8510_v51  ;;  %v3022_v12 = vsel %vm2675_vm4, %v3020_v9, %v3021_v2  ;;  %v3028_v51 = vsel %vm2675_vm4, %v3026_v8, %v3027_v57  ;;  %v3061_v9 = vrot.slane %v3049_v13, 2  ;;  %v8552_v2 = vmul.f32 %v8364_v55, %v7345_v11 }
 0x417   : > { %v8512_v27 = vpop.permute.xlu2 %2448  ;;  %v3025_v43 = vsel %vm2675_vm4, %v3023_v53, %v3024_v31  ;;  %v8556_v8 = vmul.f32 %v8368_v19, %v7345_v11  ;;  %v3059_v53 = vsel %vm2675_vm4, %v3057_v59, %v3058_v40 }
 0x418   : > { %12357 = vst [vmem:[#allocation184_spill] sm:$0xff] %v8512_v27  ;;  %v8514_v58 = vpop.permute.xlu1 %2335  ;;  %v3047_v27 = vmul.f32 %v3044_v3, %v8446_v44  ;;  %v8534_v44 = vmul.f32 %v8360_v25, %v7316_v47  ;;  %v3087_v47 = vstv %s6647_s15  ;;  %v3060_v3 = vrot.slane %v3046_v15, 2  ;;  %s6649_s15 = sld [smem:[#allocation5 + $0x4b]] }
 0x419   : > { %12358 = vst [vmem:[#allocation185_spill] sm:$0xff] %v8514_v58  ;;  %v3088_v10 = vmul.f32 %v3087_v47, %v8538_v17  ;;  %v3089_v11 = vmul.f32 %v3087_v47, %v8552_v2 }
 0x41a   : > { %v3063_v62 = vrot.slane %v3047_v27, 2  ;;  %v3090_v27 = vmul.f32 %v3087_v47, %v8529_v22  ;;  %v3093_v63 = vmul.f32 %v3087_v47, %v8534_v44  ;;  %v3062_v36 = vsel %vm2675_vm4, %v3060_v3, %v3061_v9 }
 0x41b   : > { %3029 = vrot.lane.b32.xlu0 %v3022_v12, %s12086_s20  ;;  %v3092_v12 = vmul.f32 %v3087_v47, %v8556_v8  ;;  %v3100_v13 = vrot.slane %v3088_v10, 2 }
 0x41d   : > { %3033 = vrot.lane.b32.xlu2 %v3028_v51, %s12086_s20  ;;  %v8540_v57 = vpop.permute.xlu0 %2370  ;;  %v3064_v51 = vrot.slane %v3050_v7, 2  ;;  %v3091_v7 = vmul.f32 %v3087_v47, %v8546_v14 }
 0x41e   : > { %3031 = vrot.lane.b32.xlu1 %v3025_v43, %s12086_s20  ;;  %12359 = vst [vmem:[#allocation186_spill] sm:$0xff] %v8540_v57  ;;  %v3104_v57 = vrot.slane %v3092_v12, 2 }
 0x41f   : > { %v8542_v0 = vpop.permute.xlu2 %2485  ;;  %v3065_v31 = vsel %vm2675_vm4, %v3063_v62, %v3064_v51  ;;  %v3101_v40 = vrot.slane %v3091_v7, 2  ;;  %v3106_v62 = vrot.slane %v3090_v27, 2  ;;  %v3107_v51 = vrot.slane %v3093_v63, 2 }
 0x420   : > { %12360 = vst [vmem:[#allocation187_spill] sm:$0xff] %v8542_v0  ;;  %v8548_v5 = vpop.permute.xlu1 %2372 }
 0x421   : > { %12361 = vst [vmem:[#allocation188_spill] sm:$0xff] %v8548_v5  ;;  %v3102_v5 = vsel %vm2675_vm4, %v3100_v13, %v3101_v40  ;;  %v3108_v10 = vsel %vm2675_vm4, %v3106_v62, %v3107_v51 }
 0x423   : > { %3066 = vrot.lane.b32.xlu0 %v3059_v53, %s12086_s20  ;;  %v3124_v53 = vstv %s6648_s27  ;;  %s6650_s27 = sld [smem:[#allocation5 + $0x66]] }
 0x424   : > { %v3125_v3 = vmul.f32 %v3124_v53, %v8538_v17  ;;  %v3128_v47 = vmul.f32 %v3124_v53, %v8546_v14  ;;  %v3127_v9 = vmul.f32 %v3124_v53, %v8529_v22  ;;  %v3126_v27 = vmul.f32 %v3124_v53, %v8552_v2 }
 0x425   : > { %3070 = vrot.lane.b32.xlu2 %v3065_v31, %s12086_s20  ;;  %v8570_v43 = vpop.permute.xlu0 %2407  ;;  %v3103_v31 = vrot.slane %v3089_v11, 2  ;;  %v3129_v63 = vmul.f32 %v3124_v53, %v8556_v8 }
 0x426   : > { %3068 = vrot.lane.b32.xlu1 %v3062_v36, %s12086_s20  ;;  %12362 = vst [vmem:[#allocation189_spill] sm:$0xff] %v8570_v43  ;;  %v3130_v36 = vmul.f32 %v3124_v53, %v8534_v44  ;;  %v3138_v13 = vrot.slane %v3128_v47, 2  ;;  %v3143_v40 = vrot.slane %v3127_v9, 2  ;;  %v3140_v51 = vrot.slane %v3126_v27, 2  ;;  %s8688_s20 = sld [smem:[#allocation5]] }
 0x427   : > { %v8572_v15 = vpop.permute.xlu2 %2528  ;;  %v3105_v7 = vsel %vm2675_vm4, %v3103_v31, %v3104_v57  ;;  %v3161_v57 = vstv %s6649_s15  ;;  %s6651_s15 = sld [smem:[#allocation5 + $0x16]] }
 0x428   : > { %12363 = vst [vmem:[#allocation190_spill] sm:$0xff] %v8572_v15  ;;  %v8574_v59 = vpop.permute.xlu1 %2409  ;;  %v3137_v15 = vrot.slane %v3125_v3, 2  ;;  %v3144_v62 = vrot.slane %v3130_v36, 2  ;;  %v3164_v58 = vmul.f32 %v3161_v57, %v8529_v22  ;;  %v3167_v3 = vmul.f32 %v3161_v57, %v8534_v44 }
 0x429   : > { %12364 = vst [vmem:[#allocation191_spill] sm:$0xff] %v8574_v59  ;;  %v3163_v9 = vmul.f32 %v3161_v57, %v8552_v2 }
 0x42a   : > { %v3139_v31 = vsel %vm2675_vm4, %v3137_v15, %v3138_v13  ;;  %v3145_v53 = vsel %vm2675_vm4, %v3143_v40, %v3144_v62  ;;  %v3166_v15 = vmul.f32 %v3161_v57, %v8556_v8 }
 0x42b   : > { %3109 = vrot.lane.b32.xlu0 %v3102_v5, %s12088_s30 }
 0x42d   : > { %3113 = vrot.lane.b32.xlu2 %v3108_v10, %s12088_s30  ;;  %v8588_v11 = vpop.permute.xlu0 %2444  ;;  %v3141_v10 = vrot.slane %v3129_v63, 2  ;;  %v3198_v63 = vstv %s6650_s27  ;;  %s6652_s27 = sld [smem:[#allocation5 + $0x31]] }
 0x42e   : > { %3111 = vrot.lane.b32.xlu1 %v3105_v7, %s12088_s30  ;;  %12365 = vst [vmem:[#allocation192_spill] sm:$0xff] %v8588_v11  ;;  %v3162_v7 = vmul.f32 %v3161_v57, %v8538_v17  ;;  %v3165_v11 = vmul.f32 %v3161_v57, %v8546_v14  ;;  %v3202_v57 = vmul.f32 %v3198_v63, %v8546_v14  ;;  %v3235_v14 = vstv %s6651_s15  ;;  %s6653_s15 = sld [smem:[#allocation5 + $0x4c]] }
 0x42f   : > { %v8590_v12 = vpop.permute.xlu2 %2565  ;;  %v3142_v47 = vsel %vm2675_vm4, %v3140_v51, %v3141_v10  ;;  %v3178_v51 = vrot.slane %v3166_v15, 2  ;;  %v3199_v10 = vmul.f32 %v3198_v63, %v8538_v17  ;;  %v3204_v43 = vmul.f32 %v3198_v63, %v8534_v44 }
 0x430   : > { %12366 = vst [vmem:[#allocation193_spill] sm:$0xff] %v8590_v12  ;;  %v8592_v5 = vpop.permute.xlu1 %2446  ;;  %v3174_v40 = vrot.slane %v3162_v7, 2  ;;  %v3175_v62 = vrot.slane %v3165_v11, 2  ;;  %v3200_v11 = vmul.f32 %v3198_v63, %v8552_v2  ;;  %v3203_v17 = vmul.f32 %v3198_v63, %v8556_v8 }
 0x431   : > { %12367 = vst [vmem:[#allocation194_spill] sm:$0xff] %v8592_v5  ;;  %v3177_v5 = vrot.slane %v3163_v9, 2  ;;  %v3211_v44 = vrot.slane %v3199_v10, 2  ;;  %v3212_v9 = vrot.slane %v3202_v57, 2  ;;  %v3236_v2 = vmul.f32 %v8348_v45, %v3235_v14 }
 0x432   : > { %v3239_v8 = vmul.f32 %v8352_v37, %v3235_v14 }
 0x433   : > { %3146 = vrot.lane.b32.xlu0 %v3139_v31, %s12088_s30  ;;  %v3180_v31 = vrot.slane %v3164_v58, 2  ;;  %v3179_v58 = vsel %vm2675_vm4, %v3177_v5, %v3178_v51  ;;  %v3215_v5 = vrot.slane %v3203_v17, 2  ;;  %v3213_v51 = vsel %vm2675_vm4, %v3211_v44, %v3212_v9 }
 0x434   : > { %v3249_v57 = vrot.slane %v3239_v8, 2 }
 0x435   : > { %3150 = vrot.lane.b32.xlu2 %v3145_v53, %s12088_s30  ;;  %v8606_v36 = vpop.permute.xlu0 %2481  ;;  %v3181_v53 = vrot.slane %v3167_v3, 2 }
 0x436   : > { %3148 = vrot.lane.b32.xlu1 %v3142_v47, %s12088_s30  ;;  %12368 = vst [vmem:[#allocation195_spill] sm:$0xff] %v8606_v36  ;;  %v3176_v47 = vsel %vm2675_vm4, %v3174_v40, %v3175_v62  ;;  %v3201_v36 = vmul.f32 %v3198_v63, %v8529_v22  ;;  %v3214_v40 = vrot.slane %v3200_v11, 2  ;;  %v3238_v63 = vmul.f32 %v8356_v18, %v3235_v14 }
 0x437   : > { %v8608_v27 = vpop.permute.xlu2 %2602  ;;  %v3182_v0 = vsel %vm2675_vm4, %v3180_v31, %v3181_v53  ;;  %v3241_v62 = vmul.f32 %v8360_v25, %v3235_v14  ;;  %v3237_v31 = vmul.f32 %v8364_v55, %v3235_v14  ;;  %v3240_v53 = vmul.f32 %v8368_v19, %v3235_v14 }
 0x438   : > { %12369 = vst [vmem:[#allocation196_spill] sm:$0xff] %v8608_v27  ;;  %v8610_v13 = vpop.permute.xlu1 %2483  ;;  %v3217_v15 = vrot.slane %v3201_v36, 2  ;;  %v3248_v36 = vrot.slane %v3236_v2, 2  ;;  %v3272_v11 = vstv %s6652_s27  ;;  %s6654_s27 = sld [smem:[#allocation5 + $0x67]] }
 0x439   : > { %12370 = vst [vmem:[#allocation197_spill] sm:$0xff] %v8610_v13  ;;  %v3251_v44 = vrot.slane %v3237_v31, 2  ;;  %v3252_v9 = vrot.slane %v3240_v53, 2  ;;  %v3276_v2 = vmul.f32 %v8352_v37, %v3272_v11  ;;  %v3275_v8 = vmul.f32 %v8356_v18, %v3272_v11 }
 0x43a   : > { %v3277_v31 = vmul.f32 %v8368_v19, %v3272_v11 }
 0x43b   : > { %3183 = vrot.lane.b32.xlu0 %v3176_v47, %s12088_s30  ;;  %v3254_v47 = vrot.slane %v3238_v63, 2  ;;  %v3278_v63 = vmul.f32 %v8360_v25, %v3272_v11 }
 0x43d   : > { %3187 = vrot.lane.b32.xlu2 %v3182_v0, %s12088_s30  ;;  %v8624_v7 = vpop.permute.xlu0 %2524  ;;  %v3218_v0 = vrot.slane %v3204_v43, 2  ;;  %v3216_v43 = vsel %vm2675_vm4, %v3214_v40, %v3215_v5  ;;  %v3273_v40 = vmul.f32 %v8348_v45, %v3272_v11 }
 0x43e   : > { %3185 = vrot.lane.b32.xlu1 %v3179_v58, %s12088_s30  ;;  %12371 = vst [vmem:[#allocation198_spill] sm:$0xff] %v8624_v7  ;;  %v3255_v58 = vrot.slane %v3241_v62, 2  ;;  %v3253_v62 = vsel %vm2675_vm4, %v3251_v44, %v3252_v9  ;;  %v3289_v9 = vrot.slane %v3277_v31, 2 }
 0x43f   : > { %v8626_v3 = vpop.permute.xlu2 %2639  ;;  %v3219_v10 = vsel %vm2675_vm4, %v3217_v15, %v3218_v0  ;;  %v3250_v0 = vsel %vm2675_vm4, %v3248_v36, %v3249_v57  ;;  %v3285_v53 = vrot.slane %v3273_v40, 2  ;;  %v3292_v36 = vrot.slane %v3278_v63, 2 }
 0x440   : > { %12372 = vst [vmem:[#allocation199_spill] sm:$0xff] %v8626_v3  ;;  %v8628_v22 = vpop.permute.xlu1 %2526  ;;  %v3256_v5 = vsel %vm2675_vm4, %v3254_v47, %v3255_v58  ;;  %v3309_v57 = vstv %s6653_s15  ;;  %s8684_s15 = sld [smem:[#allocation5 + $0x17]] }
 0x441   : > { %12373 = vst [vmem:[#allocation200_spill] sm:$0xff] %v8628_v22  ;;  %v3312_v40 = vmul.f32 %v8356_v18, %v3309_v57 }
 0x443   : > { %3220 = vrot.lane.b32.xlu0 %v3213_v51, %s12088_s30  ;;  %v3274_v51 = vmul.f32 %v8364_v55, %v3272_v11  ;;  %v3310_v11 = vmul.f32 %v8348_v45, %v3309_v57 }
 0x445   : > { %3224 = vrot.lane.b32.xlu2 %v3219_v10, %s12088_s30  ;;  %v8642_v17 = vpop.permute.xlu0 %2561  ;;  %v3286_v10 = vrot.slane %v3276_v2, 2  ;;  %v3288_v44 = vrot.slane %v3274_v51, 2  ;;  %v3314_v51 = vmul.f32 %v8368_v19, %v3309_v57  ;;  %v3322_v31 = vrot.slane %v3310_v11, 2 }
 0x446   : > { %3222 = vrot.lane.b32.xlu1 %v3216_v43, %s12088_s30  ;;  %12374 = vst [vmem:[#allocation201_spill] sm:$0xff] %v8642_v17  ;;  %v3291_v43 = vrot.slane %v3275_v8, 2  ;;  %s8694_s30 = sld [smem:[#allocation5 + $0x1b]] }
 0x447   : > { %v8644_v14 = vpop.permute.xlu2 %2805  ;;  %v3287_v2 = vsel %vm2675_vm4, %v3285_v53, %v3286_v10  ;;  %v3290_v63 = vsel %vm2675_vm4, %v3288_v44, %v3289_v9 }
 0x448   : > { %12375 = vst [vmem:[#allocation202_spill] sm:$0xff] %v8644_v14  ;;  %v8646_v15 = vpop.permute.xlu1 %2563  ;;  %v3293_v8 = vsel %vm2675_vm4, %v3291_v43, %v3292_v36  ;;  %v3328_v14 = vrot.slane %v3312_v40, 2  ;;  %v3326_v43 = vrot.slane %v3314_v51, 2  ;;  %v3346_v36 = vstv %s6654_s27  ;;  %s8699_s27 = sld [smem:[#allocation5 + $0x36]] }
 0x449   : > { %12376 = vst [vmem:[#allocation203_spill] sm:$0xff] %v8646_v15  ;;  %v3347_v11 = vmul.f32 %v8348_v45, %v3346_v36  ;;  %v3349_v40 = vmul.f32 %v8356_v18, %v3346_v36  ;;  %v8710_v51 = vmul.f32 %v8348_v45, %v7448_v54 }
 0x44b   : > { %3257 = vrot.lane.b32.xlu0 %v3250_v0, %s12096_s16  ;;  %v3313_v0 = vmul.f32 %v8352_v37, %v3309_v57 }
 0x44d   : > { %3261 = vrot.lane.b32.xlu2 %v3256_v5, %s12096_s16  ;;  %v8660_v47 = vpop.permute.xlu0 %2598  ;;  %v3315_v5 = vmul.f32 %v8360_v25, %v3309_v57  ;;  %v3323_v22 = vrot.slane %v3313_v0, 2  ;;  %v3350_v0 = vmul.f32 %v8352_v37, %v3346_v36 }
 0x44e   : > { %3259 = vrot.lane.b32.xlu1 %v3253_v62, %s12096_s16  ;;  %12377 = vst [vmem:[#allocation204_spill] sm:$0xff] %v8660_v47  ;;  %v3311_v62 = vmul.f32 %v8364_v55, %v3309_v57 }
 0x44f   : > { %v8662_v58 = vpop.permute.xlu2 %2842  ;;  %v3329_v47 = vrot.slane %v3315_v5, 2  ;;  %v3324_v57 = vsel %vm2675_vm4, %v3322_v31, %v3323_v22  ;;  %v3352_v5 = vmul.f32 %v8360_v25, %v3346_v36  ;;  %v3351_v22 = vmul.f32 %v8368_v19, %v3346_v36 }
 0x450   : > { %12378 = vst [vmem:[#allocation205_spill] sm:$0xff] %v8662_v58  ;;  %v8664_v7 = vpop.permute.xlu1 %2600  ;;  %v3325_v10 = vrot.slane %v3311_v62, 2 }
 0x451   : > { %12379 = vst [vmem:[#allocation206_spill] sm:$0xff] %v8664_v7  ;;  %v3330_v9 = vsel %vm2675_vm4, %v3328_v14, %v3329_v47  ;;  %v3359_v14 = vrot.slane %v3347_v11, 2  ;;  %v3360_v47 = vrot.slane %v3350_v0, 2  ;;  %v3366_v62 = vrot.slane %v3352_v5, 2 }
 0x452   : > { %v8728_v11 = vmul.f32 %v8352_v37, %v7448_v54  ;;  %v8739_v5 = vmul.f32 %v8364_v55, %v7452_v33 }
 0x453   : > { %3294 = vrot.lane.b32.xlu0 %v3287_v2, %s12096_s16  ;;  %v3327_v2 = vsel %vm2675_vm4, %v3325_v10, %v3326_v43 }
 0x455   : > { %3298 = vrot.lane.b32.xlu2 %v3293_v8, %s12096_s16  ;;  %v8678_v13 = vpop.permute.xlu0 %2635  ;;  %v3348_v8 = vmul.f32 %v8364_v55, %v3346_v36  ;;  %v3363_v36 = vrot.slane %v3351_v22, 2 }
 0x456   : > { %3296 = vrot.lane.b32.xlu1 %v3290_v63, %s12096_s16  ;;  %12380 = vst [vmem:[#allocation207_spill] sm:$0xff] %v8678_v13  ;;  %v3365_v63 = vrot.slane %v3349_v40, 2  ;;  %v3389_v40 = vstv %s8684_s15  ;;  %s8758_s15 = sld [smem:[#allocation5 + $0x5a]]  ;;  %v8773_v13 = vstv %s8699_s27 }
 0x457   : > { %v8680_v53 = vpop.permute.xlu2 %2879  ;;  %v3362_v43 = vrot.slane %v3348_v8, 2  ;;  %v3390_v22 = vmul.f32 %v3389_v40, %v8710_v51  ;;  %s9130_s27 = sld [smem:[#allocation5 + $0x12]] }
 0x458   : > { %12381 = vst [vmem:[#allocation208_spill] sm:$0xff] %v8680_v53  ;;  %v8682_v44 = vpop.permute.xlu1 %2637  ;;  %v3367_v54 = vsel %vm2675_vm4, %v3365_v63, %v3366_v62  ;;  %v6909_v63 = vld [vmem:[%s7232_s21] sm:$0xfe] }
 0x459   : > { %12382 = vst [vmem:[#allocation209_spill] sm:$0xff] %v8682_v44  ;;  %v3364_v8 = vsel %vm2675_vm4, %v3362_v43, %v3363_v36  ;;  %v8766_v62 = vmul.f32 %v6909_v63, %v7297_v35  ;;  %v6910_v43 = vld [vmem:[%s7232_s21 + $0x18] sm:$0x1]  ;;  %v8776_v44 = vstv %s8701_s22  ;;  %v8785_v63 = vstv %s8712_s17  ;;  %s8801_s22 = sld [smem:[#allocation5 + $0x4d]] }
 0x45a   : > { %v8770_v36 = vmul.f32 %v6910_v43, %v7297_v35  ;;  %s9037_s17 = sld [smem:[#allocation5 + $0x34]] }
 0x45b   : > { %3331 = vrot.lane.b32.xlu0 %v3324_v57, %s12096_s16  ;;  %v8720_v57 = vmul.f32 %v8356_v18, %v7429_v26 }
 0x45c   : > { %v8827_v60 = vstv %s8758_s15  ;;  %s9187_s15 = sld [smem:[#allocation5 + $0x2d]] }
 0x45d   : > { %3335 = vrot.lane.b32.xlu2 %v3330_v9, %s12096_s16  ;;  %v8714_v31 = vpop.permute.xlu0 %2801  ;;  %v8724_v9 = vmul.f32 %v8360_v25, %v7429_v26  ;;  %v8743_v26 = vmul.f32 %v8368_v19, %v7452_v33  ;;  %v3392_v55 = vmul.f32 %v3389_v40, %v8720_v57  ;;  %v8753_v33 = vstv %s8688_s20  ;;  %s8878_s20 = sld [smem:[#allocation5 + $0x33]] }
 0x45e   : > { %3333 = vrot.lane.b32.xlu1 %v3327_v2, %s12096_s16  ;;  %12383 = vst [vmem:[#allocation210_spill] sm:$0xff] %v8714_v31  ;;  %s8733_s16 = sld [smem:[#allocation5 + $0x32]]  ;;  %v3361_v2 = vsel %vm2675_vm4, %v3359_v14, %v3360_v47  ;;  %v3393_v31 = vmul.f32 %v3389_v40, %v8728_v11  ;;  %v8756_v19 = vstv %s8694_s30  ;;  %v3391_v14 = vmul.f32 %v3389_v40, %v8739_v5 }
 0x45f   : > { %v8716_v10 = vpop.permute.xlu2 %2916  ;;  %v3394_v47 = vmul.f32 %v3389_v40, %v8743_v26  ;;  %v3408_v15 = vrot.slane %v3392_v55, 2  ;;  %s8986_s30 = sld [smem:[#allocation5 + $0x4e]] }
 0x460   : > { %12384 = vst [vmem:[#allocation211_spill] sm:$0xff] %v8716_v10  ;;  %v8730_v0 = vpop.permute.xlu1 %2803  ;;  %v3402_v10 = vrot.slane %v3390_v22, 2  ;;  %v3403_v17 = vrot.slane %v3393_v31, 2  ;;  %v3405_v27 = vrot.slane %v3391_v14, 2  ;;  %v8805_v22 = vmul.f32 %v8352_v37, %v7297_v35 }
 0x461   : > { %12385 = vst [vmem:[#allocation212_spill] sm:$0xff] %v8730_v0  ;;  %v3395_v0 = vmul.f32 %v3389_v40, %v8724_v9  ;;  %v3406_v58 = vrot.slane %v3394_v47, 2 }
 0x462   : > { %12391 = vst [vmem:[#allocation217_spill] sm:$0xff] %v8805_v22 }
 0x463   : > { %3368 = vrot.lane.b32.xlu0 %v3361_v2, %s12386_s1  ;;  %v6911_v2 = vld [vmem:[%s7232_s21] sm:$0xff]  ;;  %v3409_v53 = vrot.slane %v3395_v0, 2  ;;  %v3407_v20 = vsel %vm2675_vm4, %v3405_v27, %v3406_v58 }
 0x464   : > { %v494_v40 = vmul.f32 %v6911_v2, %v7297_v35  ;;  %v3426_v59 = vstv %s8733_s16  ;;  %v8799_v2 = vstv %s8735_s0  ;;  %s12392_s0 = smov 110   ;;  %s8845_s16 = sld [smem:[#allocation5 + $0x68]] }
 0x465   : > { %3372 = vrot.lane.b32.xlu2 %v3367_v54, %s12386_s1  ;;  %v8782_v54 = vstv %s8705_s24  ;;  %v8787_v7 = vpop.permute.xlu0 %2838  ;;  %v3427_v55 = vmul.f32 %v3426_v59, %v8710_v51  ;;  %v3430_v14 = vmul.f32 %v3426_v59, %v8728_v11  ;;  %v3429_v47 = vmul.f32 %v3426_v59, %v8720_v57  ;;  %s9112_s24 = sld [smem:[#allocation5 + $0x69]] }
 0x466   : > { %3370 = vrot.lane.b32.xlu1 %v3364_v8, %s12386_s1  ;;  %12387 = vst [vmem:[#allocation213_spill] sm:$0xff] %v8787_v7  ;;  %v8796_v8 = vmul.f32 %v8348_v45, %v7297_v35  ;;  %v1320_v31 = vmul.f32 %v8782_v54, %v8766_v62  ;;  %v1323_v0 = vmul.f32 %v8782_v54, %v8770_v36 }
 0x467   : > { %v8789_v43 = vpop.permute.xlu2 %2959  ;;  %v8813_v45 = vmul.f32 %v8785_v63, %v8766_v62  ;;  %v8820_v37 = vmul.f32 %v8753_v33, %v494_v40  ;;  %v1353_v7 = vmul.f32 %v8785_v63, %v8770_v36  ;;  %v3410_v12 = vsel %vm2675_vm4, %v3408_v15, %v3409_v53 }
 0x468   : > { %12388 = vst [vmem:[#allocation214_spill] sm:$0xff] %v8789_v43  ;;  %v8791_v3 = vpop.permute.xlu1 %2840  ;;  %v3432_v43 = vmul.f32 %v3426_v59, %v8724_v9  ;;  %v3428_v61 = vmul.f32 %v3426_v59, %v8739_v5  ;;  %v3431_v28 = vmul.f32 %v3426_v59, %v8743_v26  ;;  %v8835_v52 = vmul.f32 %v8756_v19, %v494_v40 }
 0x469   : > { %12389 = vst [vmem:[#allocation215_spill] sm:$0xff] %v8791_v3  ;;  %v3404_v3 = vsel %vm2675_vm4, %v3402_v10, %v3403_v17  ;;  %v8838_v4 = vmul.f32 %v8773_v13, %v494_v40  ;;  %v1333_v17 = vrot.slane %v1320_v31, 1  ;;  %v1334_v15 = vrot.slane %v1323_v0, 1 }
 0x46a   : > { %12390 = vst [vmem:[#allocation216_spill] sm:$0xff] %v8796_v8  ;;  %v3439_v27 = vrot.slane %v3427_v55, 2  ;;  %v3440_v58 = vrot.slane %v3430_v14, 2  ;;  %v3445_v53 = vrot.slane %v3429_v47, 2  ;;  %v3446_v10 = vrot.slane %v3432_v43, 2 }
 0x46b   : > { %3411 = vrot.lane.b32.xlu0 %v3404_v3, %s12392_s0  ;;  %v8848_v59 = vmul.f32 %v8776_v44, %v494_v40  ;;  %v1362_v31 = vrot.slane %v8813_v45, 1  ;;  %v1363_v0 = vrot.slane %v1353_v7, 1  ;;  %v8859_v55 = vmul.f32 %v8799_v2, %v8770_v36 }
 0x46c   : > { %v3442_v43 = vrot.slane %v3428_v61, 2  ;;  %v3443_v14 = vrot.slane %v3431_v28, 2  ;;  %v3463_v47 = vstv %s8801_s22  ;;  %v8865_v40 = vsel %vm489_vm7, %v7297_v35, %v7305_v39  ;;  %v6912_v28 = vld [vmem:[%s7232_s21 + $0x10] sm:$0xfe]  ;;  %v6913_v35 = vld [vmem:[%s7232_s21 + $0x28] sm:$0x1] }
 0x46d   : > { %3415 = vrot.lane.b32.xlu2 %v3410_v12, %s12392_s0  ;;  %v8841_v3 = vpop.permute.xlu0 %2875  ;;  %v8868_v7 = vsel %vm1332_vm6, %v1333_v17, %v1334_v15  ;;  %v8872_v45 = vmul.f32 %v8827_v60, %v8766_v62  ;;  %v8882_v61 = vmul.f32 %v6912_v28, %v7305_v39  ;;  %v8886_v17 = vmul.f32 %v6913_v35, %v7305_v39  ;;  %v6915_v35 = vld [vmem:[%s7232_s21 + $0x10] sm:$0xff]  ;;  %s9197_s22 = sld [smem:[#allocation5 + $0x48]] }
 0x46e   : > { %3413 = vrot.lane.b32.xlu1 %v3407_v20, %s12392_s0  ;;  %12393 = vst [vmem:[#allocation218_spill] sm:$0xff] %v8841_v3  ;;  %v8853_v20 = vmul.f32 %v8799_v2, %v8766_v62  ;;  %v3441_v15 = vsel %vm2675_vm4, %v3439_v27, %v3440_v58  ;;  %v3447_v62 = vsel %vm2675_vm4, %v3445_v53, %v3446_v10  ;;  %v6914_v53 = vld [vmem:[%s7232_s21 + $0x8] sm:$0xff]  ;;  %vm4350_vm7 = vcmask 121856  }
 0x46f   : > { %v8843_v12 = vpop.permute.xlu2 %2996  ;;  %12396 = vst [vmem:[#allocation221_spill] sm:$0xff] %v8868_v7  ;;  %v3466_v7 = vmul.f32 %v3463_v47, %v8720_v57  ;;  %v3469_v22 = vmul.f32 %v3463_v47, %v8724_v9  ;;  %v3444_v28 = vsel %vm2675_vm4, %v3442_v43, %v3443_v14  ;;  %v3465_v27 = vmul.f32 %v3463_v47, %v8739_v5 }
 0x470   : > { %12394 = vst [vmem:[#allocation219_spill] sm:$0xff] %v8843_v12  ;;  %v8855_v3 = vpop.permute.xlu1 %2877  ;;  %v3464_v12 = vmul.f32 %v3463_v47, %v8710_v51  ;;  %v3468_v58 = vmul.f32 %v3463_v47, %v8743_v26  ;;  %v495_v10 = vmul.f32 %v6914_v53, %v8865_v40  ;;  %v496_v8 = vmul.f32 %v6915_v35, %v7305_v39 }
 0x471   : > { %12395 = vst [vmem:[#allocation220_spill] sm:$0xff] %v8855_v3  ;;  %v8876_v3 = vmul.f32 %v8827_v60, %v8770_v36  ;;  %v3467_v36 = vmul.f32 %v3463_v47, %v8728_v11  ;;  %v8904_v23 = vsel %vm1332_vm6, %v1362_v31, %v1363_v0  ;;  %v8910_v43 = vmul.f32 %v8356_v18, %v7305_v39 }
 0x472   : > { %12397 = vst [vmem:[#allocation222_spill] sm:$0xff] %v8904_v23  ;;  %v8914_v14 = vmul.f32 %v8360_v25, %v7305_v39  ;;  %v8918_v47 = vmul.f32 %v8782_v54, %v8882_v61  ;;  %v8925_v0 = vstv %s8845_s16  ;;  %v3476_v53 = vrot.slane %v3464_v12, 2  ;;  %s9239_s16 = sld [smem:[#allocation5 + $0x35]] }
 0x473   : > { %3448 = vrot.lane.b32.xlu0 %v3441_v15, %s12392_s0  ;;  %12398 = vst [vmem:[#allocation223_spill] sm:$0xff] %v8910_v43  ;;  %v3477_v18 = vrot.slane %v3467_v36, 2  ;;  %v3482_v35 = vrot.slane %v3466_v7, 2  ;;  %v3483_v15 = vrot.slane %v3469_v22, 2  ;;  %v8931_v39 = vmul.f32 %v8782_v54, %v8886_v17 }
 0x474   : > { %12399 = vst [vmem:[#allocation224_spill] sm:$0xff] %v8914_v14  ;;  %v8935_v25 = vmul.f32 %v8785_v63, %v8882_v61  ;;  %v3479_v23 = vrot.slane %v3465_v27, 2  ;;  %v508_v46 = vmul.f32 %v8756_v19, %v495_v10  ;;  %v3580_v12 = vstv %s8878_s20  ;;  %s9283_s20 = sld [smem:[#allocation5 + $0x6a]] }
 0x475   : > { %3452 = vrot.lane.b32.xlu2 %v3447_v62, %s12392_s0  ;;  %v8920_v62 = vpop.permute.xlu0 %2912  ;;  %v8942_v7 = vmul.f32 %v8773_v13, %v495_v10  ;;  %v8945_v22 = vmul.f32 %v8773_v13, %v496_v8  ;;  %v3501_v36 = vmul.f32 %v8925_v0, %v8710_v51  ;;  %v3504_v27 = vmul.f32 %v8925_v0, %v8728_v11 }
 0x476   : > { %3450 = vrot.lane.b32.xlu1 %v3444_v28, %s12392_s0  ;;  %12400 = vst [vmem:[#allocation225_spill] sm:$0xff] %v8920_v62  ;;  %v3480_v62 = vrot.slane %v3468_v58, 2  ;;  %v3478_v58 = vsel %vm2675_vm4, %v3476_v53, %v3477_v18  ;;  %v3484_v21 = vsel %vm2675_vm4, %v3482_v35, %v3483_v15  ;;  %v3582_v14 = vmul.f32 %v3580_v12, %v7589_v16 }
 0x477   : > { %v8922_v31 = vpop.permute.xlu2 %3033  ;;  %v3581_v51 = vmul.f32 %v3580_v12, %v7559_v29  ;;  %v3584_v11 = vmul.f32 %v3580_v12, %v7562_v6  ;;  %v8962_v53 = vmul.f32 %v8776_v44, %v495_v10  ;;  %v8965_v15 = vmul.f32 %v8776_v44, %v496_v8 }
 0x478   : > { %12401 = vst [vmem:[#allocation226_spill] sm:$0xff] %v8922_v31  ;;  %v8927_v28 = vpop.permute.xlu1 %2914  ;;  %v500_v31 = vmul.f32 %v8753_v33, %v495_v10  ;;  %v3481_v13 = vsel %vm2675_vm4, %v3479_v23, %v3480_v62  ;;  %v501_v18 = vmul.f32 %v8753_v33, %v496_v8  ;;  %v1339_v35 = vrot.slane %v8918_v47, 1 }
 0x479   : > { %12402 = vst [vmem:[#allocation227_spill] sm:$0xff] %v8927_v28  ;;  %v509_v28 = vmul.f32 %v8756_v19, %v496_v8  ;;  %v3585_v19 = vmul.f32 %v3580_v12, %v7594_v50  ;;  %v545_v23 = vsel %vm543_vm8, %v7309_v41, %v7287_v30  ;;  %v566_v10 = vsel %vm543_vm8, %v7291_v32, %v7311_v42 }
 0x47a   : > { %v1340_v44 = vrot.slane %v8931_v39, 1  ;;  %v3513_v47 = vrot.slane %v3501_v36, 2  ;;  %v1381_v32 = vmul.f32 %v8799_v2, %v8882_v61  ;;  %v3593_v43 = vrot.slane %v3581_v51, 2 }
 0x47b   : > { %3485 = vrot.lane.b32.xlu0 %v3478_v58, %s12392_s0  ;;  %v3514_v58 = vrot.slane %v3504_v27, 2  ;;  %v3594_v39 = vrot.slane %v3584_v11, 2  ;;  %v8998_v36 = vadd.f32 %v566_v10, %v8835_v52  ;;  %v567_v27 = vsel %vm543_vm8, %v7311_v42, %v7318_v48 }
 0x47c   : > { %v3583_v11 = vmul.f32 %v3580_v12, %v7580_v1  ;;  %v1368_v42 = vrot.slane %v8935_v25, 1  ;;  %v9028_v25 = vadd.f32 %v567_v27, %v508_v46  ;;  %v6916_v27 = vld [vmem:[%s7232_s21 + $0x8] sm:$0xfe] }
 0x47d   : > { %3489 = vrot.lane.b32.xlu2 %v3484_v21, %s12392_s0  ;;  %v544_v21 = vsel %vm543_vm8, %v7302_v38, %v7309_v41  ;;  %v8980_v62 = vpop.permute.xlu0 %2955  ;;  %v3597_v38 = vrot.slane %v3585_v19, 2  ;;  %v1355_v41 = vmul.f32 %v8785_v63, %v8886_v17  ;;  %v588_v19 = vsel %vm543_vm8, %v7295_v34, %v7320_v49 }
 0x47e   : > { %3487 = vrot.lane.b32.xlu1 %v3481_v13, %s12392_s0  ;;  %12403 = vst [vmem:[#allocation228_spill] sm:$0xff] %v8980_v62  ;;  %v3596_v13 = vrot.slane %v3582_v14, 2  ;;  %v8993_v62 = vadd.f32 %v544_v21, %v8820_v37  ;;  %v1384_v14 = vmul.f32 %v8799_v2, %v8886_v17  ;;  %v3503_v37 = vmul.f32 %v8925_v0, %v8720_v57 }
 0x47f   : > { %v8982_v33 = vpop.permute.xlu2 %3070  ;;  %v3515_v52 = vsel %vm2675_vm4, %v3513_v47, %v3514_v58  ;;  %v3586_v21 = vmul.f32 %v3580_v12, %v7583_v24  ;;  %v3595_v34 = vsel %vm2675_vm4, %v3593_v43, %v3594_v39  ;;  %v3502_v57 = vmul.f32 %v8925_v0, %v8739_v5 }
 0x480   : > { %12404 = vst [vmem:[#allocation229_spill] sm:$0xff] %v8982_v33  ;;  %v8984_v8 = vpop.permute.xlu1 %2957  ;;  %v8995_v33 = vadd.f32 %v545_v23, %v500_v31  ;;  %v3506_v31 = vmul.f32 %v8925_v0, %v8724_v9  ;;  %v3598_v51 = vsel %vm2675_vm4, %v3596_v13, %v3597_v38  ;;  %v3505_v9 = vmul.f32 %v8925_v0, %v8743_v26 }
 0x481   : > { %12405 = vst [vmem:[#allocation230_spill] sm:$0xff] %v8984_v8  ;;  %v9025_v23 = vadd.f32 %v7287_v30, %v501_v18  ;;  %v1369_v10 = vrot.slane %v1355_v41, 1  ;;  %v1397_v12 = vrot.slane %v1381_v32, 1  ;;  %v1398_v47 = vrot.slane %v1384_v14, 1  ;;  %v9137_v8 = vld [vmem:[%s7232_s21 + $0x20] sm:$0x3] }
 0x482   : > { %v9031_v58 = vadd.f32 %v7318_v48, %v509_v28  ;;  %v3519_v26 = vrot.slane %v3503_v37, 2  ;;  %v3520_v0 = vrot.slane %v3506_v31, 2  ;;  %v9040_v30 = vadd.f32 %v588_v19, %v8838_v4 }
 0x483   : > { %3522 = vrot.lane.b32.xlu0 %v3515_v52, %s12392_s0  ;;  %v3599_v46 = vrot.slane %v3583_v11, 2  ;;  %v3600_v13 = vrot.slane %v3586_v21, 2  ;;  %v3617_v38 = vstv %s8986_s30  ;;  %v9046_v48 = vsel %vm1332_vm6, %v1339_v35, %v1340_v44  ;;  %v6917_v44 = vld [vmem:[%s7232_s21 + $0x20] sm:$0x1]  ;;  %s9362_s30 = sld [smem:[#allocation5 + $0x50]] }
 0x484   : > { %12409 = vst [vmem:[#allocation234_spill] sm:$0xff] %v9046_v48  ;;  %v9050_v28 = vmul.f32 %v8827_v60, %v8882_v61  ;;  %v3516_v41 = vrot.slane %v3502_v57, 2  ;;  %v3517_v32 = vrot.slane %v3505_v9, 2  ;;  %v9053_v39 = vsel %vm1332_vm6, %v1368_v42, %v1369_v10 }
 0x485   : > { %3604 = vrot.lane.b32.xlu2 %v3598_v51, %s12303_s23  ;;  %v9033_v43 = vpop.permute.xlu0 %2992  ;;  %v9056_v4 = vsel %vm1332_vm6, %v1397_v12, %v1398_v47  ;;  %v9060_v14 = vmul.f32 %v8827_v60, %v8886_v17  ;;  %v1313_v35 = vmul.f32 %v6916_v27, %v8865_v40  ;;  %v9066_v19 = vmul.f32 %v6917_v44, %v8865_v40  ;;  %v12414_v47 = vld [vmem:[#allocation19_spill] sm:$0xff] }
 0x486   : > { %3602 = vrot.lane.b32.xlu1 %v3595_v34, %s12303_s23  ;;  %12406 = vst [vmem:[#allocation231_spill] sm:$0xff] %v9033_v43  ;;  %v12411_v61 = vrot.slane %v8859_v55, 1  ;;  %v12412_v37 = vrot.slane %v8853_v20, 1  ;;  %v3521_v52 = vsel %vm2675_vm4, %v3519_v26, %v3520_v0  ;;  %v3618_v51 = vmul.f32 %v3617_v38, %v7559_v29  ;;  %v12415_v26 = vld [vmem:[#allocation18_spill] sm:$0xff] }
 0x487   : > { %v9035_v5 = vpop.permute.xlu2 %3113  ;;  %12410 = vst [vmem:[#allocation235_spill] sm:$0xff] %v9056_v4  ;;  %v3601_v17 = vsel %vm2675_vm4, %v3599_v46, %v3600_v13  ;;  %v3621_v11 = vmul.f32 %v3617_v38, %v7562_v6  ;;  %v3620_v21 = vmul.f32 %v3617_v38, %v7580_v1  ;;  %v3623_v42 = vmul.f32 %v3617_v38, %v7583_v24 }
 0x488   : > { %12407 = vst [vmem:[#allocation232_spill] sm:$0xff] %v9035_v5  ;;  %v9042_v18 = vpop.permute.xlu1 %2994  ;;  %v9073_v31 = vsel %vm1332_vm6, %v12412_v37, %v12411_v61  ;;  %v3518_v20 = vsel %vm2675_vm4, %v3516_v41, %v3517_v32  ;;  %v3619_v55 = vmul.f32 %v3617_v38, %v7589_v16  ;;  %v3622_v34 = vmul.f32 %v3617_v38, %v7594_v50  ;;  %v9115_v37 = vld [vmem:[%s7232_s21] sm:$0xfc] }
 0x489   : > { %12408 = vst [vmem:[#allocation233_spill] sm:$0xff] %v9042_v18  ;;  %v589_v57 = vsel %vm543_vm8, %v7320_v49, %v7326_v56  ;;  %v9091_v9 = vadd.f32 %v7326_v56, %v8945_v22  ;;  %v1426_v10 = vrot.slane %v9050_v28, 1  ;;  %v1427_v12 = vrot.slane %v9060_v14, 1 }
 0x48a   : > { %12413 = vst [vmem:[#allocation236_spill] sm:$0xff] %v9073_v31  ;;  %v610_v0 = vsel %vm543_vm8, %v12415_v26, %v12414_v47  ;;  %v1321_v46 = vmul.f32 %v8782_v54, %v1313_v35  ;;  %v1324_v49 = vmul.f32 %v8782_v54, %v9066_v19  ;;  %v3728_v22 = vstv %s9037_s17  ;;  %s12457_s17 = smov 94  }
 0x48b   : > { %3606 = vrot.lane.b32.xlu0 %v3601_v17, %s12303_s23  ;;  %v3630_v28 = vrot.slane %v3618_v51, 2  ;;  %v3631_v41 = vrot.slane %v3621_v11, 2  ;;  %v3636_v32 = vrot.slane %v3620_v21, 2  ;;  %v3637_v14 = vrot.slane %v3623_v42, 2  ;;  %v9119_v17 = vld [vmem:[%s7232_s21 + $0x18] sm:$0x3] }
 0x48c   : > { %v1351_v27 = vmul.f32 %v8785_v63, %v1313_v35  ;;  %v1354_v54 = vmul.f32 %v8785_v63, %v9066_v19  ;;  %v3633_v44 = vrot.slane %v3619_v55, 2  ;;  %v3634_v61 = vrot.slane %v3622_v34, 2  ;;  %v9123_v11 = vld [vmem:[%s7232_s21 + $0x10] sm:$0xfc]  ;;  %v9127_v42 = vld [vmem:[%s7232_s21 + $0x28] sm:$0x3] }
 0x48d   : > { %3526 = vrot.lane.b32.xlu2 %v3521_v52, %s12392_s0  ;;  %v9102_v13 = vpop.permute.xlu0 %3029  ;;  %v3729_v52 = vmul.f32 %v9115_v37, %v3728_v22  ;;  %v3732_v51 = vmul.f32 %v9119_v17, %v3728_v22  ;;  %v3731_v21 = vmul.f32 %v9123_v11, %v3728_v22  ;;  %v3734_v63 = vmul.f32 %v9127_v42, %v3728_v22  ;;  %v9133_v34 = vld [vmem:[%s7232_s21 + $0x8] sm:$0xfc]  ;;  %s9159_s21 = sld [smem:[#allocation5 + $0x4f]] }
 0x48e   : > { %3524 = vrot.lane.b32.xlu1 %v3518_v20, %s12392_s0  ;;  %12416 = vst [vmem:[#allocation19_spill] sm:$0xff] %v9102_v13  ;;  %v1336_v20 = vrot.slane %v1321_v46, 1  ;;  %v1337_v55 = vrot.slane %v1324_v49, 1  ;;  %v3730_v26 = vmul.f32 %v9133_v34, %v3728_v22  ;;  %v3733_v5 = vmul.f32 %v9137_v8, %v3728_v22  ;;  %s9224_s0 = sld [smem:[#allocation5 + $0x63]] }
 0x48f   : > { %v9104_v56 = vpop.permute.xlu2 %3150  ;;  %v1380_v13 = vmul.f32 %v8799_v2, %v1313_v35  ;;  %v3632_v43 = vsel %vm2675_vm4, %v3630_v28, %v3631_v41  ;;  %v3638_v46 = vsel %vm2675_vm4, %v3636_v32, %v3637_v14  ;;  %v1365_v49 = vrot.slane %v1351_v27, 1 }
 0x490   : > { %12417 = vst [vmem:[#allocation18_spill] sm:$0xff] %v9104_v56  ;;  %v9107_v38 = vpop.permute.xlu1 %3031  ;;  %v1366_v18 = vrot.slane %v1354_v54, 1  ;;  %v1409_v56 = vmul.f32 %v8827_v60, %v1313_v35  ;;  %v3635_v31 = vsel %vm2675_vm4, %v3633_v44, %v3634_v61  ;;  %v3741_v22 = vrot.slane %v3729_v52, 2 }
 0x491   : > { %12418 = vst [vmem:[#allocation237_spill] sm:$0xff] %v9107_v38  ;;  %v1383_v38 = vmul.f32 %v8799_v2, %v9066_v19  ;;  %v3742_v4 = vrot.slane %v3732_v51, 2  ;;  %v3747_v48 = vrot.slane %v3731_v21, 2  ;;  %v3748_v2 = vrot.slane %v3734_v63, 2 }
 0x492   : > { %v9151_v28 = vadd.f32 %v589_v57, %v8942_v7  ;;  %v1412_v41 = vmul.f32 %v8827_v60, %v9066_v19  ;;  %v3744_v32 = vrot.slane %v3730_v26, 2  ;;  %v3745_v14 = vrot.slane %v3733_v5, 2 }
 0x493   : > { %3639 = vrot.lane.b32.xlu0 %v3632_v43, %s12303_s23  ;;  %v9165_v27 = vsel %vm1332_vm6, %v1426_v10, %v1427_v12  ;;  %v9168_v7 = vsel %vm1332_vm6, %v1336_v20, %v1337_v55  ;;  %v1394_v57 = vrot.slane %v1380_v13, 1  ;;  %v9173_v19 = vsel %vm1332_vm6, %v1365_v49, %v1366_v18  ;;  %v12425_v12 = vld [vmem:[#allocation20_spill] sm:$0xff] }
 0x494   : > { %12421 = vst [vmem:[#allocation240_spill] sm:$0xff] %v9165_v27  ;;  %v1395_v54 = vrot.slane %v1383_v38, 1  ;;  %v1420_v5 = vrot.slane %v8872_v45, 1  ;;  %v3654_v44 = vstv %s9112_s24  ;;  %v1421_v61 = vrot.slane %v8876_v3, 1  ;;  %s9413_s24 = sld [smem:[#allocation5 + $0x6b]] }
 0x495   : > { %3643 = vrot.lane.b32.xlu2 %v3638_v46, %s12303_s23  ;;  %v9155_v35 = vpop.permute.xlu0 %3066  ;;  %12422 = vst [vmem:[#allocation241_spill] sm:$0xff] %v9168_v7  ;;  %v3749_v10 = vsel %vm2675_vm4, %v3747_v48, %v3748_v2  ;;  %v611_v13 = vsel %vm543_vm8, %v12414_v47, %v12425_v12  ;;  %v1424_v52 = vrot.slane %v1412_v41, 1  ;;  %v9184_v51 = vstv %s9130_s27  ;;  %v12426_v48 = vld [vmem:[#allocation223_spill] sm:$0xff]  ;;  %v12435_v41 = vld [vmem:[#allocation21_spill] sm:$0xff]  ;;  %s9515_s27 = sld [smem:[#allocation5 + $0x19]] }
 0x496   : > { %3641 = vrot.lane.b32.xlu1 %v3635_v31, %s12303_s23  ;;  %12419 = vst [vmem:[#allocation238_spill] sm:$0xff] %v9155_v35  ;;  %v9162_v31 = vadd.f32 %v610_v0, %v8848_v59  ;;  %v1423_v59 = vrot.slane %v1409_v56, 1  ;;  %v3743_v0 = vsel %vm2675_vm4, %v3741_v22, %v3742_v4  ;;  %v3746_v18 = vsel %vm2675_vm4, %v3744_v32, %v3745_v14  ;;  %v12434_v2 = vld [vmem:[#allocation43_spill] sm:$0xff] }
 0x497   : > { %v9157_v43 = vpop.permute.xlu2 %3187  ;;  %12424 = vst [vmem:[#allocation243_spill] sm:$0xff] %v9173_v19  ;;  %v3655_v45 = vmul.f32 %v3654_v44, %v7559_v29  ;;  %v3658_v3 = vmul.f32 %v3654_v44, %v7562_v6  ;;  %v3657_v56 = vmul.f32 %v3654_v44, %v7580_v1  ;;  %v3660_v4 = vmul.f32 %v3654_v44, %v7583_v24 }
 0x498   : > { %12420 = vst [vmem:[#allocation239_spill] sm:$0xff] %v9157_v43  ;;  %v9170_v60 = vpop.permute.xlu1 %3068  ;;  %v9195_v38 = vmul.f32 %v9184_v51, %v12426_v48  ;;  %v3656_v47 = vmul.f32 %v3654_v44, %v7589_v16  ;;  %v3659_v29 = vmul.f32 %v3654_v44, %v7594_v50  ;;  %v9205_v6 = vadd.f32 %v12425_v12, %v8965_v15  ;;  %v12430_v50 = vld [vmem:[#allocation224_spill] sm:$0xff] }
 0x499   : > { %12423 = vst [vmem:[#allocation242_spill] sm:$0xff] %v9170_v60  ;;  %v9208_v1 = vsel %vm1332_vm6, %v1394_v57, %v1395_v54  ;;  %v9211_v24 = vsel %vm1332_vm6, %v1420_v5, %v1421_v61  ;;  %v9215_v21 = vadd.f32 %v611_v13, %v8962_v53  ;;  %v9218_v16 = vsel %vm1332_vm6, %v1423_v59, %v1424_v52 }
 0x49a   : > { %12427 = vst [vmem:[#allocation20_spill] sm:$0xff] %v9208_v1  ;;  %v9222_v63 = vmul.f32 %v9184_v51, %v12430_v50  ;;  %v3765_v55 = vstv %s9159_s21  ;;  %v3667_v46 = vrot.slane %v3655_v45, 2  ;;  %v3668_v49 = vrot.slane %v3658_v3, 2  ;;  %v12438_v45 = vld [vmem:[#allocation24_spill] sm:$0xff]  ;;  %s9582_s21 = sld [smem:[#allocation5 + $0x1a]] }
 0x49b   : > { %3750 = vrot.lane.b32.xlu0 %v3743_v0, %s12316_s14  ;;  %12428 = vst [vmem:[#allocation223_spill] sm:$0xff] %v9211_v24  ;;  %v3673_v53 = vrot.slane %v3657_v56, 2  ;;  %v3674_v22 = vrot.slane %v3660_v4, 2  ;;  %v9236_v32 = vsel %vm839_vm9, %v12435_v41, %v12434_v2  ;;  %v2682_v14 = vrot.slane %v9195_v38, 2  ;;  %v12436_v0 = vld [vmem:[#allocation45_spill] sm:$0xff] }
 0x49c   : > { %12429 = vst [vmem:[#allocation244_spill] sm:$0xff] %v9218_v16  ;;  %v3670_v57 = vrot.slane %v3656_v47, 2  ;;  %v3671_v54 = vrot.slane %v3659_v29, 2  ;;  %v3766_v5 = vmul.f32 %v9115_v37, %v3765_v55  ;;  %v3769_v44 = vmul.f32 %v9119_v17, %v3765_v55 }
 0x49d   : > { %3754 = vrot.lane.b32.xlu2 %v3749_v10, %s12316_s14  ;;  %v9226_v15 = vpop.permute.xlu0 %3109  ;;  %v3768_v61 = vmul.f32 %v9123_v11, %v3765_v55  ;;  %v3771_v59 = vmul.f32 %v9127_v42, %v3765_v55  ;;  %v12437_v10 = vld [vmem:[#allocation22_spill] sm:$0xff]  ;;  %v2683_v13 = vrot.slane %v9222_v63, 2  ;;  %v3767_v52 = vmul.f32 %v9133_v34, %v3765_v55 }
 0x49e   : > { %3752 = vrot.lane.b32.xlu1 %v3746_v18, %s12316_s14  ;;  %12431 = vst [vmem:[#allocation224_spill] sm:$0xff] %v9226_v15  ;;  %v9248_v12 = vsel %vm839_vm9, %v12437_v10, %v12436_v0  ;;  %v3770_v18 = vmul.f32 %v9137_v8, %v3765_v55  ;;  %v9256_v3 = vsel %vm839_vm9, %v12438_v45, %v12435_v41  ;;  %v9259_v56 = vstv %s9187_s15  ;;  %s7062_s15 = smov 113  }
 0x49f   : > { %v9228_v20 = vpop.permute.xlu2 %3224  ;;  %v3669_v4 = vsel %vm2675_vm4, %v3667_v46, %v3668_v49  ;;  %v3675_v38 = vsel %vm2675_vm4, %v3673_v53, %v3674_v22  ;;  %v2695_v47 = vmul.f32 %v9259_v56, %v12426_v48  ;;  %v2698_v29 = vmul.f32 %v9259_v56, %v12430_v50 }
 0x4a0   : > { %12432 = vst [vmem:[#allocation245_spill] sm:$0xff] %v9228_v20  ;;  %v9231_v26 = vpop.permute.xlu1 %3111  ;;  %v9268_v63 = vstv %s9197_s22  ;;  %v3672_v55 = vsel %vm2675_vm4, %v3670_v57, %v3671_v54  ;;  %v3778_v41 = vrot.slane %v3766_v5, 2  ;;  %v3779_v46 = vrot.slane %v3769_v44, 2  ;;  %v12441_v57 = vld [vmem:[#allocation88_spill] sm:$0xff]  ;;  %v12442_v44 = vld [vmem:[#allocation89_spill] sm:$0xff]  ;;  %s10023_s22 = sld [smem:[#allocation8 + $0x2]] }
 0x4a1   : > { %12433 = vst [vmem:[#allocation246_spill] sm:$0xff] %v9231_v26  ;;  %v3784_v49 = vrot.slane %v3768_v61, 2  ;;  %v3785_v53 = vrot.slane %v3771_v59, 2  ;;  %v2724_v22 = vmul.f32 %v9268_v63, %v12426_v48  ;;  %v9277_v45 = vstv %s9224_s0  ;;  %s10083_s0 = sld [smem:[#allocation8 + $0x3]] }
 0x4a2   : > { %v9287_v54 = vmul.f32 %v9115_v37, %v12441_v57  ;;  %v9291_v5 = vmul.f32 %v9119_v17, %v12441_v57  ;;  %v9295_v61 = vmul.f32 %v9123_v11, %v12442_v44  ;;  %v9299_v59 = vmul.f32 %v9127_v42, %v12442_v44 }
 0x4a3   : > { %3676 = vrot.lane.b32.xlu0 %v3669_v4, %s12303_s23  ;;  %v3781_v4 = vrot.slane %v3767_v52, 2  ;;  %v2711_v60 = vrot.slane %v2695_v47, 2  ;;  %v9316_v20 = vmul.f32 %v9277_v45, %v12426_v48  ;;  %v3780_v44 = vsel %vm2675_vm4, %v3778_v41, %v3779_v46 }
 0x4a4   : > { %v2756_v43 = vmul.f32 %v9277_v45, %v12430_v50  ;;  %v9324_v24 = vmul.f32 %v9133_v34, %v8865_v40  ;;  %v2740_v46 = vrot.slane %v2724_v22, 2  ;;  %v12446_v22 = vld [vmem:[#allocation216_spill] sm:$0xff] }
 0x4a5   : > { %3680 = vrot.lane.b32.xlu2 %v3675_v38, %s12303_s23  ;;  %v9279_v15 = vpop.permute.xlu0 %3146  ;;  %v3782_v38 = vrot.slane %v3770_v18, 2  ;;  %v2727_v18 = vmul.f32 %v9268_v63, %v12430_v50 }
 0x4a6   : > { %3678 = vrot.lane.b32.xlu1 %v3672_v55, %s12303_s23  ;;  %12439 = vst [vmem:[#allocation43_spill] sm:$0xff] %v9279_v15  ;;  %v3882_v55 = vstv %s9239_s16  ;;  %v3786_v15 = vsel %vm2675_vm4, %v3784_v49, %v3785_v53  ;;  %v9336_v53 = vsel %vm2675_vm4, %v2682_v14, %v2683_v13  ;;  %v9353_v14 = vmul.f32 %v9184_v51, %v9324_v24  ;;  %s10230_s16 = sld [smem:[#allocation8]] }
 0x4a7   : > { %v9281_v26 = vpop.permute.xlu2 %3261  ;;  %v3883_v47 = vmul.f32 %v3882_v55, %v9287_v54  ;;  %v3886_v16 = vmul.f32 %v3882_v55, %v9291_v5  ;;  %v3885_v48 = vmul.f32 %v3882_v55, %v9295_v61  ;;  %v3888_v41 = vmul.f32 %v3882_v55, %v9299_v59  ;;  %12445 = vst [vmem:[#allocation22_spill] sm:$0xff] %v9336_v53 }
 0x4a8   : > { %12440 = vst [vmem:[#allocation21_spill] sm:$0xff] %v9281_v26  ;;  %v9301_v52 = vpop.permute.xlu1 %3148  ;;  %v12444_v26 = vld [vmem:[#allocation90_spill] sm:$0xff] }
 0x4a9   : > { %12443 = vst [vmem:[#allocation45_spill] sm:$0xff] %v9301_v52  ;;  %v9308_v35 = vmul.f32 %v9133_v34, %v12444_v26  ;;  %v9312_v57 = vmul.f32 %v9137_v8, %v12444_v26  ;;  %v2712_v52 = vrot.slane %v2698_v29, 2  ;;  %v3783_v26 = vsel %vm2675_vm4, %v3781_v4, %v3782_v38 }
 0x4aa   : > { %v2741_v29 = vrot.slane %v2727_v18, 2  ;;  %v2769_v4 = vrot.slane %v9316_v20, 2  ;;  %v9341_v38 = vmul.f32 %v9137_v8, %v8865_v40  ;;  %v9345_v18 = vmul.f32 %v9184_v51, %v12446_v22  ;;  %12449 = vst [vmem:[#allocation89_spill] sm:$0xff] %v9353_v14 }
 0x4ab   : > { %3787 = vrot.lane.b32.xlu0 %v3780_v44, %s12316_s14  ;;  %v3884_v50 = vmul.f32 %v3882_v55, %v9308_v35  ;;  %v3887_v49 = vmul.f32 %v3882_v55, %v9312_v57  ;;  %v2770_v44 = vrot.slane %v2756_v43, 2  ;;  %v3802_v40 = vstv %s9283_s20  ;;  %v12454_v43 = vld [vmem:[#allocation217_spill] sm:$0xff]  ;;  %s12749_s20 = smov 127  }
 0x4ac   : > { %12447 = vst [vmem:[#allocation24_spill] sm:$0xff] %v9345_v18  ;;  %v3895_v53 = vrot.slane %v3883_v47, 2  ;;  %v3896_v1 = vrot.slane %v3886_v16, 2  ;;  %v3901_v18 = vrot.slane %v3885_v48, 2  ;;  %v3902_v19 = vrot.slane %v3888_v41, 2 }
 0x4ad   : > { %3791 = vrot.lane.b32.xlu2 %v3786_v15, %s12316_s14  ;;  %v9349_v15 = vsel %vm2675_vm4, %v2711_v60, %v2712_v52  ;;  %v9355_v13 = vpop.permute.xlu0 %3183  ;;  %v9365_v60 = vsel %vm2675_vm4, %v2740_v46, %v2741_v29  ;;  %v9369_v52 = vmul.f32 %v9184_v51, %v12454_v43  ;;  %v3899_v14 = vrot.slane %v3887_v49, 2 }
 0x4ae   : > { %3789 = vrot.lane.b32.xlu1 %v3783_v26, %s12316_s14  ;;  %12448 = vst [vmem:[#allocation88_spill] sm:$0xff] %v9349_v15  ;;  %v3898_v26 = vrot.slane %v3884_v50, 2  ;;  %v3805_v47 = vmul.f32 %v9123_v11, %v3802_v40  ;;  %v3808_v16 = vmul.f32 %v9127_v42, %v3802_v40  ;;  %v9377_v48 = vmul.f32 %v9184_v51, %v9341_v38 }
 0x4af   : > { %12450 = vst [vmem:[#allocation90_spill] sm:$0xff] %v9355_v13  ;;  %v9357_v20 = vpop.permute.xlu2 %3298  ;;  %v3803_v13 = vmul.f32 %v9115_v37, %v3802_v40  ;;  %v2693_v41 = vmul.f32 %v9259_v56, %v12446_v22  ;;  %v3804_v46 = vmul.f32 %v9133_v34, %v3802_v40  ;;  %v3807_v29 = vmul.f32 %v9137_v8, %v3802_v40 }
 0x4b0   : > { %12451 = vst [vmem:[#allocation216_spill] sm:$0xff] %v9357_v20  ;;  %v9360_v55 = vpop.permute.xlu1 %3185  ;;  %v3806_v20 = vmul.f32 %v9119_v17, %v3802_v40  ;;  %v2694_v50 = vmul.f32 %v9259_v56, %v9324_v24  ;;  %v2696_v49 = vmul.f32 %v9259_v56, %v12454_v43  ;;  %v2697_v51 = vmul.f32 %v9259_v56, %v9341_v38 }
 0x4b1   : > { %12452 = vst [vmem:[#allocation247_spill] sm:$0xff] %v9360_v55  ;;  %v3903_v55 = vsel %vm2675_vm4, %v3901_v18, %v3902_v19  ;;  %v3900_v40 = vsel %vm2675_vm4, %v3898_v26, %v3899_v14  ;;  %v9398_v19 = vsel %vm2675_vm4, %v2769_v4, %v2770_v44  ;;  %v2725_v56 = vmul.f32 %v9268_v63, %v12454_v43 }
 0x4b2   : > { %12453 = vst [vmem:[#allocation248_spill] sm:$0xff] %v9365_v60  ;;  %v3815_v60 = vrot.slane %v3803_v13, 2  ;;  %v3816_v15 = vrot.slane %v3806_v20, 2  ;;  %v3819_v14 = vrot.slane %v3807_v29, 2  ;;  %v2705_v26 = vrot.slane %v2693_v41, 2 }
 0x4b3   : > { %12455 = vst [vmem:[#allocation217_spill] sm:$0xff] %v9369_v52  ;;  %v3897_v52 = vsel %vm2675_vm4, %v3895_v53, %v3896_v1  ;;  %v3821_v1 = vrot.slane %v3805_v47, 2  ;;  %v3822_v53 = vrot.slane %v3808_v16, 2  ;;  %v2723_v13 = vmul.f32 %v9268_v63, %v9324_v24 }
 0x4b4   : > { %12456 = vst [vmem:[#allocation249_spill] sm:$0xff] %v9377_v48  ;;  %v2722_v48 = vmul.f32 %v9268_v63, %v12446_v22  ;;  %3904 = vrot.lane.b32.xlu0 %v3897_v52, %s12457_s17  ;;  %v2726_v20 = vmul.f32 %v9268_v63, %v9341_v38  ;;  %v3919_v4 = vstv %s9362_s30  ;;  %v2706_v44 = vrot.slane %v2696_v49, 2  ;;  %s12750_s30 = smov 112  }
 0x4b5   : > { %3908 = vrot.lane.b32.xlu2 %v3903_v55, %s12457_s17  ;;  %12458 = vst [vmem:[#allocation250_spill] sm:$0xff] %v9398_v19  ;;  %v9402_v18 = vpop.permute.xlu0 %3220  ;;  %v3818_v55 = vrot.slane %v3804_v46, 2  ;;  %v2708_v16 = vrot.slane %v2694_v50, 2  ;;  %v2754_v46 = vmul.f32 %v9277_v45, %v12454_v43  ;;  %v2709_v41 = vrot.slane %v2697_v51, 2 }
 0x4b6   : > { %3906 = vrot.lane.b32.xlu1 %v3900_v40, %s12457_s17  ;;  %12459 = vst [vmem:[#allocation251_spill] sm:$0xff] %v9402_v18  ;;  %v2751_v40 = vmul.f32 %v9277_v45, %v12446_v22  ;;  %v2734_v29 = vrot.slane %v2722_v48, 2  ;;  %v3817_v18 = vsel %vm2675_vm4, %v3815_v60, %v3816_v15  ;;  %v2735_v63 = vrot.slane %v2725_v56, 2  ;;  %v12462_v48 = vld [vmem:[#allocation26_spill] sm:$0xff] }
 0x4b7   : > { %v9404_v52 = vpop.permute.xlu2 %3335  ;;  %v3920_v19 = vmul.f32 %v3919_v4, %v9287_v54  ;;  %v3923_v49 = vmul.f32 %v3919_v4, %v9291_v5  ;;  %v2737_v50 = vrot.slane %v2723_v13, 2  ;;  %v2738_v7 = vrot.slane %v2726_v20, 2  ;;  %v12466_v20 = vld [vmem:[#allocation29_spill] sm:$0xff] }
 0x4b8   : > { %12460 = vst [vmem:[#allocation252_spill] sm:$0xff] %v9404_v52  ;;  %v9410_v47 = vpop.permute.xlu1 %3222  ;;  %v3823_v52 = vsel %vm2675_vm4, %v3821_v1, %v3822_v53  ;;  %v3922_v22 = vmul.f32 %v3919_v4, %v9295_v61  ;;  %v3925_v27 = vmul.f32 %v3919_v4, %v9299_v59  ;;  %v2763_v43 = vrot.slane %v2751_v40, 2 }
 0x4b9   : > { %12461 = vst [vmem:[#allocation253_spill] sm:$0xff] %v9410_v47  ;;  %v3820_v47 = vsel %vm2675_vm4, %v3818_v55, %v3819_v14  ;;  %v2764_v51 = vrot.slane %v2754_v46, 2  ;;  %v3921_v15 = vmul.f32 %v3919_v4, %v9308_v35  ;;  %v3924_v60 = vmul.f32 %v3919_v4, %v9312_v57  ;;  %v12467_v4 = vld [vmem:[#allocation51_spill] sm:$0xff] }
 0x4ba   : > { %v9433_v1 = vsel %vm839_vm9, %v12462_v48, %v12437_v10  ;;  %v9436_v53 = vsel %vm2675_vm4, %v2705_v26, %v2706_v44  ;;  %v9439_v56 = vsel %vm2675_vm4, %v2708_v16, %v2709_v41  ;;  %v9451_v55 = vmul.f32 %v9277_v45, %v9341_v38 }
 0x4bb   : > { %v3932_v26 = vrot.slane %v3920_v19, 2  ;;  %v3933_v13 = vrot.slane %v3923_v49, 2  ;;  %v3939_v16 = vrot.slane %v3925_v27, 2  ;;  %v3956_v40 = vstv %s9413_s24  ;;  %v12471_v19 = vld [vmem:[#allocation23_spill] sm:$0xff]  ;;  %v12473_v49 = vld [vmem:[#allocation25_spill] sm:$0xff]  ;;  %s7066_s24 = smov 16  }
 0x4bc   : > { %3824 = vrot.lane.b32.xlu0 %v3817_v18, %s12316_s14  ;;  %v9443_v18 = vmul.f32 %v9277_v45, %v9324_v24  ;;  %v651_v24 = vsel %vm649_vm10, %v12467_v4, %v12466_v20  ;;  %v9464_v46 = vsel %vm2675_vm4, %v2737_v50, %v2738_v7  ;;  %v9467_v45 = vsel %vm2675_vm4, %v2763_v43, %v2764_v51  ;;  %v12474_v50 = vld [vmem:[#allocation31_spill] sm:$0xff] }
 0x4bd   : > { %3828 = vrot.lane.b32.xlu2 %v3823_v52, %s12316_s14  ;;  %v9447_v52 = vsel %vm2675_vm4, %v2734_v29, %v2735_v63  ;;  %v9453_v10 = vpop.permute.xlu0 %3257  ;;  %12469 = vst [vmem:[#allocation51_spill] sm:$0xff] %v9464_v46  ;;  %v3935_v38 = vrot.slane %v3921_v15, 2  ;;  %v3936_v41 = vrot.slane %v3924_v60, 2  ;;  %v650_v29 = vsel %vm649_vm10, %v12471_v19, %v12467_v4  ;;  %v12472_v63 = vld [vmem:[#allocation52_spill] sm:$0xff] }
 0x4be   : > { %3826 = vrot.lane.b32.xlu1 %v3820_v47, %s12316_s14  ;;  %12463 = vst [vmem:[#allocation26_spill] sm:$0xff] %v9447_v52  ;;  %v3938_v47 = vrot.slane %v3922_v22, 2  ;;  %v672_v48 = vsel %vm649_vm10, %v12473_v49, %v12472_v63  ;;  %v657_v27 = vadd.f32 %v12466_v20, %v9025_v23  ;;  %v656_v7 = vadd.f32 %v651_v24, %v8995_v33  ;;  %v12476_v24 = vld [vmem:[#allocation53_spill] sm:$0xff]  ;;  %v12478_v49 = vld [vmem:[#allocation30_spill] sm:$0xff] }
 0x4bf   : > { %12464 = vst [vmem:[#allocation254_spill] sm:$0xff] %v9453_v10  ;;  %v9455_v14 = vpop.permute.xlu2 %3372  ;;  %v673_v22 = vsel %vm649_vm10, %v12472_v63, %v12474_v50  ;;  %v3934_v43 = vsel %vm2675_vm4, %v3932_v26, %v3933_v13  ;;  %v3957_v51 = vmul.f32 %v3956_v40, %v9287_v54  ;;  %v3960_v60 = vmul.f32 %v3956_v40, %v9291_v5  ;;  %v12475_v13 = vld [vmem:[#allocation47_spill] sm:$0xff] }
 0x4c0   : > { %12465 = vst [vmem:[#allocation255_spill] sm:$0xff] %v9455_v14  ;;  %v9460_v44 = vpop.permute.xlu1 %3259  ;;  %v3940_v15 = vsel %vm2675_vm4, %v3938_v47, %v3939_v16  ;;  %v3959_v4 = vmul.f32 %v3956_v40, %v9295_v61  ;;  %v3962_v19 = vmul.f32 %v3956_v40, %v9299_v59  ;;  %v3937_v33 = vsel %vm2675_vm4, %v3935_v38, %v3936_v41  ;;  %v12477_v47 = vld [vmem:[#allocation27_spill] sm:$0xff]  ;;  %v12479_v41 = vld [vmem:[#allocation33_spill] sm:$0xff] }
 0x4c1   : > { %12468 = vst [vmem:[#allocation29_spill] sm:$0xff] %v9460_v44  ;;  %v3958_v23 = vmul.f32 %v3956_v40, %v9308_v35  ;;  %v3961_v26 = vmul.f32 %v3956_v40, %v9312_v57  ;;  %v758_v20 = vadd.f32 %v12475_v13, %v657_v27  ;;  %v694_v16 = vsel %vm649_vm10, %v12477_v47, %v12476_v24  ;;  %v12481_v47 = vld [vmem:[#allocation32_spill] sm:$0xff] }
 0x4c2   : > { %12470 = vst [vmem:[#allocation256_spill] sm:$0xff] %v9467_v45  ;;  %v679_v63 = vadd.f32 %v12474_v50, %v9031_v58  ;;  %v678_v38 = vadd.f32 %v673_v22, %v9028_v25  ;;  %v695_v40 = vsel %vm649_vm10, %v12476_v24, %v12479_v41  ;;  %v701_v27 = vadd.f32 %v12479_v41, %v9091_v9 }
 0x4c3   : > { %v3969_v25 = vrot.slane %v3957_v51, 2  ;;  %v3970_v22 = vrot.slane %v3960_v60, 2  ;;  %v3976_v44 = vrot.slane %v3962_v19, 2  ;;  %v655_v24 = vadd.f32 %v650_v29, %v8993_v62  ;;  %v12486_v51 = vld [vmem:[#allocation28_spill] sm:$0xff]  ;;  %v12487_v62 = vld [vmem:[#allocation35_spill] sm:$0xff]  ;;  %v12488_v29 = vld [vmem:[#allocation49_spill] sm:$0xff] }
 0x4c4   : > { %3941 = vrot.lane.b32.xlu0 %v3934_v43, %s12457_s17  ;;  %v752_v43 = vsel %vm750_vm11, %v12478_v49, %v12475_v13  ;;  %v3975_v13 = vrot.slane %v3959_v4, 2  ;;  %v677_v9 = vadd.f32 %v672_v48, %v8998_v36  ;;  %v3972_v41 = vrot.slane %v3958_v23, 2  ;;  %v12489_v19 = vld [vmem:[#allocation34_spill] sm:$0xff] }
 0x4c5   : > { %3945 = vrot.lane.b32.xlu2 %v3940_v15, %s12457_s17  ;;  %v12480_v15 = vld [vmem:[#allocation48_spill] sm:$0xff]  ;;  %v9511_v58 = vpop.permute.xlu0 %3294  ;;  %v3973_v45 = vrot.slane %v3961_v26, 2  ;;  %v757_v46 = vadd.f32 %v752_v43, %v656_v7  ;;  %v700_v4 = vadd.f32 %v695_v40, %v9151_v28  ;;  %v723_v36 = vadd.f32 %v12487_v62, %v9205_v6  ;;  %v12490_v28 = vld [vmem:[#allocation37_spill] sm:$0xff] }
 0x4c6   : > { %3943 = vrot.lane.b32.xlu1 %v3937_v33, %s12457_s17  ;;  %v774_v10 = vsel %vm750_vm11, %v12481_v47, %v12480_v15  ;;  %12482 = vst [vmem:[#allocation23_spill] sm:$0xff] %v9511_v58  ;;  %v780_v52 = vadd.f32 %v12480_v15, %v679_v63  ;;  %v699_v58 = vadd.f32 %v694_v16, %v9040_v30  ;;  %v12491_v63 = vld [vmem:[#allocation55_spill] sm:$0xff] }
 0x4c7   : > { %v9513_v50 = vpop.permute.xlu2 %3415  ;;  %v779_v14 = vadd.f32 %v774_v10, %v678_v38  ;;  %v802_v48 = vadd.f32 %v12488_v29, %v701_v27  ;;  %v796_v10 = vsel %vm750_vm11, %v12489_v19, %v12488_v29  ;;  %v3977_v7 = vsel %vm2675_vm4, %v3975_v13, %v3976_v44  ;;  %v12492_v38 = vld [vmem:[#allocation50_spill] sm:$0xff] }
 0x4c8   : > { %12483 = vst [vmem:[#allocation52_spill] sm:$0xff] %v9513_v50  ;;  %v9517_v33 = vpop.permute.xlu1 %3296  ;;  %v9523_v50 = vadd.f32 %v12434_v2, %v758_v20  ;;  %v3971_v2 = vsel %vm2675_vm4, %v3969_v25, %v3970_v22  ;;  %v751_v23 = vsel %vm750_vm11, %v12490_v28, %v12478_v49  ;;  %v3974_v6 = vsel %vm2675_vm4, %v3972_v41, %v3973_v45  ;;  %v12498_v22 = vld [vmem:[#allocation38_spill] sm:$0xff]  ;;  %v12499_v41 = vld [vmem:[#allocation41_spill] sm:$0xff] }
 0x4c9   : > { %12484 = vst [vmem:[#allocation25_spill] sm:$0xff] %v9517_v33  ;;  %v12485_v33 = vld [vmem:[#allocation54_spill] sm:$0xff]  ;;  %v869_v20 = vadd.f32 %v12436_v0, %v780_v52  ;;  %v9550_v44 = vadd.f32 %v9236_v32, %v757_v46  ;;  %v9553_v16 = vadd.f32 %v9248_v12, %v779_v14  ;;  %v891_v49 = vadd.f32 %v12491_v63, %v802_v48  ;;  %v12494_v32 = vld [vmem:[#allocation36_spill] sm:$0xff]  ;;  %v12495_v14 = vld [vmem:[#allocation39_spill] sm:$0xff] }
 0x4ca   : > { %v716_v60 = vsel %vm649_vm10, %v12486_v51, %v12485_v33  ;;  %v717_v30 = vsel %vm649_vm10, %v12485_v33, %v12487_v62  ;;  %v801_v43 = vadd.f32 %v796_v10, %v700_v4  ;;  %v824_v40 = vadd.f32 %v12492_v38, %v723_v36  ;;  %v12497_v33 = vld [vmem:[#allocation56_spill] sm:$0xff] }
 0x4cb   : > { %v721_v26 = vadd.f32 %v716_v60, %v9162_v31  ;;  %v3691_v31 = vstv %s9515_s27  ;;  %v722_v0 = vadd.f32 %v717_v30, %v9215_v21  ;;  %v756_v52 = vadd.f32 %v751_v23, %v655_v24  ;;  %v12500_v24 = vld [vmem:[#allocation42_spill] sm:$0xff]  ;;  %v12501_v30 = vld [vmem:[#allocation40_spill] sm:$0xff]  ;;  %s12751_s27 = smov 126  }
 0x4cc   : > { %3978 = vrot.lane.b32.xlu0 %v3971_v2, %s12457_s17  ;;  %v818_v12 = vsel %vm750_vm11, %v12494_v32, %v12492_v38  ;;  %v773_v46 = vsel %vm750_vm11, %v12495_v14, %v12481_v47  ;;  %v913_v25 = vadd.f32 %v12497_v33, %v824_v40  ;;  %v885_v13 = vsel %vm839_vm9, %v12498_v22, %v12491_v63 }
 0x4cd   : > { %3982 = vrot.lane.b32.xlu2 %v3977_v7, %s12457_s17  ;;  %v9558_v27 = vpop.permute.xlu0 %3331  ;;  %v795_v21 = vsel %vm750_vm11, %v12499_v41, %v12489_v19  ;;  %v817_v51 = vsel %vm750_vm11, %v12500_v24, %v12494_v32  ;;  %v3692_v47 = vmul.f32 %v9115_v37, %v3691_v31  ;;  %v3695_v60 = vmul.f32 %v9119_v17, %v3691_v31  ;;  %v12512_v41 = vld [vmem:[#allocation69_spill] sm:$0xff] }
 0x4ce   : > { %3980 = vrot.lane.b32.xlu1 %v3974_v6, %s12457_s17  ;;  %12493 = vst [vmem:[#allocation31_spill] sm:$0xff] %v9558_v27  ;;  %v3694_v4 = vmul.f32 %v9123_v11, %v3691_v31  ;;  %v3697_v62 = vmul.f32 %v9127_v42, %v3691_v31  ;;  %v823_v36 = vadd.f32 %v818_v12, %v722_v0  ;;  %v12502_v11 = vld [vmem:[#allocation44_spill] sm:$0xff]  ;;  %v12508_v12 = vld [vmem:[#allocation65_spill] sm:$0xff]  ;;  %v3845_v24 = vstv %s9582_s21  ;;  %s7064_s21 = smov 31  }
 0x4cf   : > { %v9560_v45 = vpop.permute.xlu2 %3452  ;;  %v778_v29 = vadd.f32 %v773_v46, %v677_v9  ;;  %v3693_v48 = vmul.f32 %v9133_v34, %v3691_v31  ;;  %v3696_v19 = vmul.f32 %v9137_v8, %v3691_v31  ;;  %v845_v10 = vadd.f32 %v9256_v3, %v756_v52  ;;  %v12503_v9 = vld [vmem:[#allocation46_spill] sm:$0xff]  ;;  %v12504_v8 = vld [vmem:[#allocation67_spill] sm:$0xff]  ;;  %v12505_v3 = vld [vmem:[#allocation73_spill] sm:$0xff] }
 0x4d0   : > { %v9570_v15 = vpop.permute.xlu1 %3333  ;;  %v9591_v2 = vadd.f32 %v885_v13, %v801_v43  ;;  %v800_v7 = vadd.f32 %v795_v21, %v699_v58  ;;  %v907_v37 = vsel %vm839_vm9, %v12501_v30, %v12497_v33  ;;  %v822_v17 = vadd.f32 %v817_v51, %v721_v26  ;;  %v12506_v58 = vld [vmem:[#allocation75_spill] sm:$0xff]  ;;  %v12510_v33 = vld [vmem:[#allocation66_spill] sm:$0xff]  ;;  %v12511_v13 = vld [vmem:[#allocation68_spill] sm:$0xff] }
 0x4d1   : > { %12496 = vst [vmem:[#allocation47_spill] sm:$0xff] %v9570_v15  ;;  %v884_v42 = vsel %vm839_vm9, %v12502_v11, %v12498_v22  ;;  %v906_v34 = vsel %vm839_vm9, %v12503_v9, %v12501_v30  ;;  %v3704_v28 = vrot.slane %v3692_v47, 2  ;;  %v3705_v23 = vrot.slane %v3695_v60, 2  ;;  %v12513_v51 = vld [vmem:[#allocation61_spill] sm:$0xff] }
 0x4d2   : > { %v3710_v6 = vrot.slane %v3694_v4, 2  ;;  %v3711_v26 = vrot.slane %v3697_v62, 2  ;;  %v867_v63 = vadd.f32 %v9433_v1, %v778_v29  ;;  %v3707_v40 = vrot.slane %v3693_v48, 2  ;;  %v12514_v47 = vld [vmem:[#allocation57_spill] sm:$0xff] }
 0x4d3   : > { %v3708_v31 = vrot.slane %v3696_v19, 2  ;;  %v912_v0 = vadd.f32 %v907_v37, %v823_v36  ;;  %v889_v52 = vadd.f32 %v884_v42, %v800_v7  ;;  %v911_v32 = vadd.f32 %v906_v34, %v822_v17  ;;  %v12516_v36 = vld [vmem:[#allocation58_spill] sm:$0xff]  ;;  %v12517_v34 = vld [vmem:[#allocation63_spill] sm:$0xff] }
 0x4d4   : > { %3565 = vrot.lane.b32.xlu0 %v12504_v8, %s12303_s23  ;;  %v9615_v14 = vadd.f32 %v12508_v12, %v9523_v50  ;;  %v970_v22 = vadd.f32 %v12510_v33, %v869_v20  ;;  %v9621_v1 = vadd.f32 %v12511_v13, %v891_v49  ;;  %v9624_v21 = vadd.f32 %v12512_v41, %v913_v25  ;;  %v12515_v20 = vld [vmem:[#allocation62_spill] sm:$0xff]  ;;  %v12519_v8 = vld [vmem:[#allocation64_spill] sm:$0xff] }
 0x4d5   : > { %3569 = vrot.lane.b32.xlu2 %v12505_v3, %s12303_s23  ;;  %v9609_v43 = vpop.permute.xlu0 %3368  ;;  %v941_v60 = vsel %vm940_vm12, %v12514_v47, %v12513_v51  ;;  %v942_v50 = vsel %vm940_vm12, %v12513_v51, %v12508_v12  ;;  %v3706_v4 = vsel %vm2675_vm4, %v3704_v28, %v3705_v23  ;;  %v3712_v62 = vsel %vm2675_vm4, %v3710_v6, %v3711_v26  ;;  %v12520_v3 = vld [vmem:[#allocation60_spill] sm:$0xff] }
 0x4d6   : > { %3567 = vrot.lane.b32.xlu1 %v12506_v58, %s12303_s23  ;;  %12507 = vst [vmem:[#allocation53_spill] sm:$0xff] %v9609_v43  ;;  %v963_v49 = vsel %vm940_vm12, %v12516_v36, %v12515_v20  ;;  %v964_v25 = vsel %vm940_vm12, %v12515_v20, %v12510_v33  ;;  %v3709_v29 = vsel %vm2675_vm4, %v3707_v40, %v3708_v31  ;;  %v2766_v17 = vrot.slane %v9443_v18, 2  ;;  %v12522_v58 = vld [vmem:[#allocation70_spill] sm:$0xff]  ;;  %v12525_v47 = vld [vmem:[#allocation92_spill] sm:$0xff]  ;;  %v12528_v36 = vld [vmem:[#allocation77_spill] sm:$0xff] }
 0x4d7   : > { %v9611_v38 = vpop.permute.xlu2 %3489  ;;  %v3846_v48 = vmul.f32 %v3845_v24, %v9287_v54  ;;  %v3849_v19 = vmul.f32 %v3845_v24, %v9291_v5  ;;  %v3848_v7 = vmul.f32 %v3845_v24, %v9295_v61  ;;  %v3851_v30 = vmul.f32 %v3845_v24, %v9299_v59  ;;  %v12518_v5 = vld [vmem:[#allocation59_spill] sm:$0xff] }
 0x4d8   : > { %v9617_v46 = vpop.permute.xlu1 %3370  ;;  %v946_v37 = vadd.f32 %v941_v60, %v845_v10  ;;  %v3847_v11 = vmul.f32 %v3845_v24, %v9308_v35  ;;  %v3850_v42 = vmul.f32 %v3845_v24, %v9312_v57  ;;  %v947_v9 = vadd.f32 %v942_v50, %v9550_v44  ;;  %v12521_v44 = vld [vmem:[#allocation71_spill] sm:$0xff] }
 0x4d9   : > { %12509 = vst [vmem:[#allocation27_spill] sm:$0xff] %v9617_v46  ;;  %v968_v54 = vadd.f32 %v963_v49, %v867_v63  ;;  %v985_v61 = vsel %vm940_vm12, %v12518_v5, %v12517_v34  ;;  %v986_v59 = vsel %vm940_vm12, %v12517_v34, %v12511_v13  ;;  %v969_v10 = vadd.f32 %v964_v25, %v9553_v16  ;;  %v12529_v49 = vld [vmem:[#allocation76_spill] sm:$0xff] }
 0x4da   : > { %v1007_v35 = vsel %vm940_vm12, %v12520_v3, %v12519_v8  ;;  %v1008_v57 = vsel %vm940_vm12, %v12519_v8, %v12512_v41  ;;  %v1042_v28 = vsel %vm1041_vm13, %v12522_v58, %v12521_v44  ;;  %v3858_v63 = vrot.slane %v3846_v48, 2  ;;  %v12532_v48 = vld [vmem:[#allocation78_spill] sm:$0xff]  ;;  %v12536_v8 = vld [vmem:[#allocation93_spill] sm:$0xff] }
 0x4db   : > { %v3859_v16 = vrot.slane %v3849_v19, 2  ;;  %v3864_v40 = vrot.slane %v3848_v7, 2  ;;  %v3865_v31 = vrot.slane %v3851_v30, 2  ;;  %v990_v12 = vadd.f32 %v985_v61, %v889_v52  ;;  %v12531_v52 = vld [vmem:[#allocation79_spill] sm:$0xff] }
 0x4dc   : > { %3713 = vrot.lane.b32.xlu0 %v3706_v4, %s12316_s14  ;;  %v991_v33 = vadd.f32 %v986_v59, %v9591_v2  ;;  %v3861_v13 = vrot.slane %v3847_v11, 2  ;;  %v3862_v24 = vrot.slane %v3850_v42, 2  ;;  %v1012_v41 = vadd.f32 %v1007_v35, %v911_v32  ;;  %v12526_v4 = vld [vmem:[#allocation74_spill] sm:$0xff]  ;;  %v12533_v32 = vld [vmem:[#allocation96_spill] sm:$0xff]  ;;  %v12537_v35 = vld [vmem:[#allocation99_spill] sm:$0xff] }
 0x4dd   : > { %3717 = vrot.lane.b32.xlu2 %v3712_v62, %s12316_s14  ;;  %v9669_v23 = vpop.permute.xlu0 %3411  ;;  %v1013_v51 = vadd.f32 %v1008_v57, %v912_v0  ;;  %v1071_v60 = vadd.f32 %v12525_v47, %v970_v22  ;;  %v1047_v50 = vadd.f32 %v1042_v28, %v946_v37  ;;  %v12527_v62 = vld [vmem:[#allocation72_spill] sm:$0xff]  ;;  %v1086_v25 = vsel %vm1041_vm13, %v12529_v49, %v12528_v36  ;;  %v12534_v37 = vld [vmem:[#allocation81_spill] sm:$0xff] }
 0x4de   : > { %3715 = vrot.lane.b32.xlu1 %v3709_v29, %s12316_s14  ;;  %12523 = vst [vmem:[#allocation30_spill] sm:$0xff] %v9669_v23  ;;  %v1064_v20 = vsel %vm1041_vm13, %v12527_v62, %v12526_v4  ;;  %v12530_v29 = vld [vmem:[#allocation91_spill] sm:$0xff]  ;;  %v1108_v0 = vsel %vm1041_vm13, %v12532_v48, %v12531_v52  ;;  %v3860_v19 = vsel %vm2675_vm4, %v3858_v63, %v3859_v16  ;;  %v12535_v11 = vld [vmem:[#allocation80_spill] sm:$0xff]  ;;  %v2767_v34 = vrot.slane %v9451_v55, 2  ;;  %v12539_v16 = vld [vmem:[#allocation82_spill] sm:$0xff]  ;;  %s9913_s14 = sld [smem:[#allocation8 + $0x1]] }
 0x4df   : > { %v9671_v6 = vpop.permute.xlu2 %3604  ;;  %v1043_v2 = vsel %vm1041_vm13, %v12521_v44, %v12530_v29  ;;  %v1160_v22 = vadd.f32 %v12533_v32, %v1071_v60  ;;  %v3866_v7 = vsel %vm2675_vm4, %v3864_v40, %v3865_v31  ;;  %v1065_v30 = vsel %vm1041_vm13, %v12526_v4, %v12525_v47  ;;  %v12538_v63 = vld [vmem:[#allocation83_spill] sm:$0xff]  ;;  %v12541_v60 = vld [vmem:[#allocation85_spill] sm:$0xff] }
 0x4e0   : > { %v9673_v26 = vpop.permute.xlu1 %3413  ;;  %v1131_v42 = vsel %vm1130_vm14, %v12535_v11, %v12534_v37  ;;  %v3863_v5 = vsel %vm2675_vm4, %v3861_v13, %v3862_v24  ;;  %v1069_v61 = vadd.f32 %v1064_v20, %v968_v54  ;;  %v1091_v59 = vadd.f32 %v1086_v25, %v990_v12  ;;  %v12540_v24 = vld [vmem:[#allocation94_spill] sm:$0xff]  ;;  %v12543_v20 = vld [vmem:[#allocation95_spill] sm:$0xff]  ;;  %v12548_v11 = vld [vmem:[#allocation100_spill] sm:$0xff] }
 0x4e1   : > { %12524 = vst [vmem:[#allocation33_spill] sm:$0xff] %v9673_v26  ;;  %v1087_v3 = vsel %vm1041_vm13, %v12528_v36, %v12536_v8  ;;  %v1261_v57 = vadd.f32 %v12537_v35, %v1160_v22  ;;  %v1048_v44 = vadd.f32 %v1043_v2, %v947_v9  ;;  %v1049_v58 = vadd.f32 %v12530_v29, %v9615_v14  ;;  %v12542_v9 = vld [vmem:[#allocation84_spill] sm:$0xff]  ;;  %v12544_v25 = vld [vmem:[#allocation98_spill] sm:$0xff] }
 0x4e2   : > { %v1113_v28 = vadd.f32 %v1108_v0, %v1012_v41  ;;  %v1153_v40 = vsel %vm1130_vm14, %v12539_v16, %v12538_v63  ;;  %v1070_v12 = vadd.f32 %v1065_v30, %v969_v10  ;;  %v1136_v13 = vadd.f32 %v1131_v42, %v1047_v50  ;;  %v12545_v0 = vld [vmem:[#allocation87_spill] sm:$0xff]  ;;  %v12546_v22 = vld [vmem:[#allocation86_spill] sm:$0xff]  ;;  %v12549_v42 = vld [vmem:[#allocation104_spill] sm:$0xff] }
 0x4e3   : > { %v1109_v47 = vsel %vm1041_vm13, %v12531_v52, %v12540_v24  ;;  %v1175_v4 = vsel %vm1130_vm14, %v12542_v9, %v12541_v60  ;;  %v1092_v41 = vadd.f32 %v1087_v3, %v991_v33  ;;  %v1093_v62 = vadd.f32 %v12536_v8, %v9621_v1  ;;  %v12552_v3 = vld [vmem:[#allocation107_spill] sm:$0xff]  ;;  %v12624_v26 = vld [vmem:[#allocation216_spill] sm:$0xff] }
 0x4e4   : > { %3867 = vrot.lane.b32.xlu0 %v3860_v19, %s12457_s17  ;;  %v1132_v36 = vsel %vm1130_vm14, %v12534_v37, %v12543_v20  ;;  %v1154_v10 = vsel %vm1130_vm14, %v12538_v63, %v12533_v32  ;;  %v1158_v50 = vadd.f32 %v1153_v40, %v1069_v61  ;;  %v1115_v49 = vadd.f32 %v12540_v24, %v9624_v21  ;;  %v12555_v40 = vld [vmem:[#allocation101_spill] sm:$0xff] }
 0x4e5   : > { %3871 = vrot.lane.b32.xlu2 %v3866_v7, %s12457_s17  ;;  %v9712_v31 = vpop.permute.xlu0 %3448  ;;  %v1176_v29 = vsel %vm1130_vm14, %v12541_v60, %v12544_v25  ;;  %v1376_v33 = vadd.f32 %v9053_v39, %v1261_v57  ;;  %v1114_v2 = vadd.f32 %v1109_v47, %v1013_v51  ;;  %v1180_v1 = vadd.f32 %v1175_v4, %v1091_v59  ;;  %v12547_v7 = vld [vmem:[#allocation109_spill] sm:$0xff]  ;;  %v12556_v47 = vld [vmem:[#allocation110_spill] sm:$0xff] }
 0x4e6   : > { %3869 = vrot.lane.b32.xlu1 %v3863_v5, %s12457_s17  ;;  %v1138_v52 = vadd.f32 %v12543_v20, %v1049_v58  ;;  %v1137_v48 = vadd.f32 %v1132_v36, %v1048_v44  ;;  %v1197_v32 = vsel %vm1130_vm14, %v12546_v22, %v12545_v0  ;;  %v1159_v19 = vadd.f32 %v1154_v10, %v1070_v12  ;;  %v12550_v5 = vld [vmem:[#allocation102_spill] sm:$0xff]  ;;  %v12551_v59 = vld [vmem:[#allocation97_spill] sm:$0xff]  ;;  %v12559_v20 = vld [vmem:[#allocation108_spill] sm:$0xff] }
 0x4e7   : > { %v9714_v54 = vpop.permute.xlu2 %3526  ;;  %v1508_v30 = vadd.f32 %v12547_v7, %v1376_v33  ;;  %v1181_v21 = vadd.f32 %v1176_v29, %v1092_v41  ;;  %v1182_v37 = vadd.f32 %v12544_v25, %v1093_v62  ;;  %v1198_v39 = vsel %vm1130_vm14, %v12545_v0, %v12548_v11  ;;  %v12553_v57 = vld [vmem:[#allocation105_spill] sm:$0xff]  ;;  %v12558_v41 = vld [vmem:[#allocation103_spill] sm:$0xff] }
 0x4e8   : > { %v9722_v14 = vpop.permute.xlu1 %3450  ;;  %v1204_v51 = vadd.f32 %v12548_v11, %v1115_v49  ;;  %v1232_v61 = vsel %vm1231_vm15, %v12550_v5, %v12549_v42  ;;  %v1233_v8 = vsel %vm1231_vm15, %v12549_v42, %v12551_v59  ;;  %v1254_v44 = vsel %vm1231_vm15, %v12553_v57, %v12552_v3  ;;  %v12554_v58 = vld [vmem:[#allocation121_spill] sm:$0xff]  ;;  %v12563_v11 = vld [vmem:[#allocation111_spill] sm:$0xff] }
 0x4e9   : > { %v1662_v63 = vadd.f32 %v12554_v58, %v1508_v30  ;;  %v1239_v16 = vadd.f32 %v12551_v59, %v1138_v52  ;;  %v1283_v12 = vadd.f32 %v12555_v40, %v1182_v37  ;;  %v1255_v24 = vsel %vm1231_vm15, %v12552_v3, %v12537_v35  ;;  %v12560_v10 = vld [vmem:[#allocation113_spill] sm:$0xff]  ;;  %v12565_v3 = vld [vmem:[#allocation234_spill] sm:$0xff] }
 0x4ea   : > { %v1277_v60 = vsel %vm1231_vm15, %v12556_v47, %v12555_v40  ;;  %v1305_v62 = vadd.f32 %v12558_v41, %v1204_v51  ;;  %v1276_v36 = vsel %vm1231_vm15, %v12559_v20, %v12556_v47  ;;  %v1299_v49 = vsel %vm1231_vm15, %v12560_v10, %v12558_v41  ;;  %v12561_v25 = vld [vmem:[#allocation133_spill] sm:$0xff]  ;;  %v12567_v20 = vld [vmem:[#allocation240_spill] sm:$0xff] }
 0x4eb   : > { %v1816_v35 = vadd.f32 %v12561_v25, %v1662_v63  ;;  %v1203_v33 = vadd.f32 %v1198_v39, %v1114_v2  ;;  %v1237_v52 = vadd.f32 %v1232_v61, %v1136_v13  ;;  %v1238_v0 = vadd.f32 %v1233_v8, %v1137_v48  ;;  %v12564_v42 = vld [vmem:[#allocation145_spill] sm:$0xff]  ;;  %v12566_v63 = vld [vmem:[#allocation235_spill] sm:$0xff] }
 0x4ec   : > { %v1259_v22 = vadd.f32 %v1254_v44, %v1158_v50  ;;  %v1260_v30 = vadd.f32 %v1255_v24, %v1159_v19  ;;  %v1282_v37 = vadd.f32 %v1277_v60, %v1181_v21  ;;  %v1298_v51 = vsel %vm1231_vm15, %v12563_v11, %v12560_v10  ;;  %v12568_v13 = vld [vmem:[#allocation157_spill] sm:$0xff]  ;;  %v12570_v19 = vld [vmem:[#allocation106_spill] sm:$0xff]  ;;  %v12573_v8 = vld [vmem:[#allocation243_spill] sm:$0xff] }
 0x4ed   : > { %v9766_v9 = vpop.permute.xlu0 %3485  ;;  %v1964_v5 = vadd.f32 %v12564_v42, %v1816_v35  ;;  %v1202_v59 = vadd.f32 %v1197_v32, %v1113_v28  ;;  %v1347_v57 = vadd.f32 %v12565_v3, %v1239_v16  ;;  %v1281_v40 = vadd.f32 %v1276_v36, %v1180_v1  ;;  %v12571_v32 = vld [vmem:[#allocation241_spill] sm:$0xff]  ;;  %v12574_v16 = vld [vmem:[#allocation222_spill] sm:$0xff]  ;;  %v12575_v24 = vld [vmem:[#allocation20_spill] sm:$0xff] }
 0x4ee   : > { %12557 = vst [vmem:[#allocation48_spill] sm:$0xff] %v9766_v9  ;;  %v1304_v47 = vadd.f32 %v1299_v49, %v1203_v33  ;;  %v1405_v41 = vadd.f32 %v12566_v63, %v1283_v12  ;;  %v1434_v2 = vadd.f32 %v12567_v20, %v1305_v62  ;;  %v9793_v50 = vsel %vm2675_vm4, %v2766_v17, %v2767_v34  ;;  %v12572_v1 = vld [vmem:[#allocation221_spill] sm:$0xff]  ;;  %v12577_v36 = vld [vmem:[#allocation112_spill] sm:$0xff]  ;;  %v12579_v17 = vld [vmem:[#allocation114_spill] sm:$0xff] }
 0x4ef   : > { %v9768_v4 = vpop.permute.xlu2 %3643  ;;  %v2118_v48 = vadd.f32 %v12568_v13, %v1964_v5  ;;  %12569 = vst [vmem:[#allocation54_spill] sm:$0xff] %v9793_v50  ;;  %v1471_v21 = vadd.f32 %v12570_v19, %v1347_v57  ;;  %v1303_v28 = vadd.f32 %v1298_v51, %v1202_v59  ;;  %v1346_v39 = vadd.f32 %v12571_v32, %v1238_v0  ;;  %v12576_v62 = vld [vmem:[#allocation169_spill] sm:$0xff]  ;;  %v12578_v10 = vld [vmem:[#allocation116_spill] sm:$0xff]  ;;  %v12587_v63 = vld [vmem:[#allocation122_spill] sm:$0xff] }
 0x4f0   : > { %v9778_v29 = vpop.permute.xlu1 %3487  ;;  %v1345_v61 = vadd.f32 %v12572_v1, %v1237_v52  ;;  %v1375_v44 = vadd.f32 %v12573_v8, %v1260_v30  ;;  %v1374_v12 = vadd.f32 %v12574_v16, %v1259_v22  ;;  %v1404_v60 = vadd.f32 %v12575_v24, %v1282_v37  ;;  %v12580_v49 = vld [vmem:[#allocation236_spill] sm:$0xff]  ;;  %v12583_v30 = vld [vmem:[#allocation119_spill] sm:$0xff]  ;;  %v12584_v37 = vld [vmem:[#allocation117_spill] sm:$0xff] }
 0x4f1   : > { %12562 = vst [vmem:[#allocation32_spill] sm:$0xff] %v9778_v29  ;;  %v2272_v55 = vadd.f32 %v12576_v62, %v2118_v48  ;;  %v1545_v18 = vadd.f32 %v12577_v36, %v1405_v41  ;;  %v1464_v34 = vsel %vm543_vm8, %v12579_v17, %v12578_v10  ;;  %v1403_v35 = vadd.f32 %v12580_v49, %v1281_v40  ;;  %v12581_v33 = vld [vmem:[#allocation244_spill] sm:$0xff]  ;;  %v12585_v59 = vld [vmem:[#allocation181_spill] sm:$0xff]  ;;  %v12586_v40 = vld [vmem:[#allocation115_spill] sm:$0xff] }
 0x4f2   : > { %v1433_v0 = vadd.f32 %v12581_v33, %v1304_v47  ;;  %v1465_v22 = vsel %vm543_vm8, %v12578_v10, %v12570_v19  ;;  %v1501_v51 = vsel %vm543_vm8, %v12584_v37, %v12583_v30  ;;  %v1502_v5 = vsel %vm543_vm8, %v12583_v30, %v12547_v7  ;;  %v12588_v41 = vld [vmem:[#allocation120_spill] sm:$0xff]  ;;  %v12589_v19 = vld [vmem:[#allocation223_spill] sm:$0xff]  ;;  %v12590_v8 = vld [vmem:[#allocation125_spill] sm:$0xff] }
 0x4f3   : > { %v2420_v3 = vadd.f32 %v12585_v59, %v2272_v55  ;;  %v1582_v47 = vadd.f32 %v12586_v40, %v1434_v2  ;;  %v1538_v20 = vsel %vm543_vm8, %v12588_v41, %v12587_v63  ;;  %v1539_v48 = vsel %vm543_vm8, %v12587_v63, %v12577_v36  ;;  %v12591_v16 = vld [vmem:[#allocation123_spill] sm:$0xff]  ;;  %v12592_v2 = vld [vmem:[#allocation193_spill] sm:$0xff]  ;;  %v12593_v17 = vld [vmem:[#allocation118_spill] sm:$0xff] }
 0x4f4   : > { %v1432_v32 = vadd.f32 %v12589_v19, %v1303_v28  ;;  %v1469_v1 = vadd.f32 %v1464_v34, %v1345_v61  ;;  %v1575_v7 = vsel %vm543_vm8, %v12591_v16, %v12590_v8  ;;  %v1576_v24 = vsel %vm543_vm8, %v12590_v8, %v12586_v40  ;;  %v12594_v63 = vld [vmem:[#allocation128_spill] sm:$0xff]  ;;  %v12595_v28 = vld [vmem:[#allocation126_spill] sm:$0xff]  ;;  %v12604_v16 = vld [vmem:[#allocation135_spill] sm:$0xff] }
 0x4f5   : > { %v9808_v11 = vpop.permute.xlu0 %3522  ;;  %v2574_v55 = vadd.f32 %v12592_v2, %v2420_v3  ;;  %v1470_v10 = vadd.f32 %v1465_v22, %v1346_v39  ;;  %v1625_v49 = vadd.f32 %v12593_v17, %v1471_v21  ;;  %v1506_v33 = vadd.f32 %v1501_v51, %v1374_v12  ;;  %v12596_v41 = vld [vmem:[#allocation124_spill] sm:$0xff]  ;;  %v12597_v3 = vld [vmem:[#allocation131_spill] sm:$0xff]  ;;  %v12598_v39 = vld [vmem:[#allocation129_spill] sm:$0xff] }
 0x4f6   : > { %12582 = vst [vmem:[#allocation28_spill] sm:$0xff] %v9808_v11  ;;  %v1507_v30 = vadd.f32 %v1502_v5, %v1375_v44  ;;  %v1543_v37 = vadd.f32 %v1538_v20, %v1403_v35  ;;  %v1544_v36 = vadd.f32 %v1539_v48, %v1404_v60  ;;  %v1618_v61 = vsel %vm649_vm10, %v12595_v28, %v12594_v63  ;;  %v12599_v12 = vld [vmem:[#allocation134_spill] sm:$0xff]  ;;  %v12600_v60 = vld [vmem:[#allocation132_spill] sm:$0xff]  ;;  %v12602_v5 = vld [vmem:[#allocation127_spill] sm:$0xff] }
 0x4f7   : > { %v9810_v52 = vpop.permute.xlu2 %3754  ;;  %v1619_v34 = vsel %vm649_vm10, %v12594_v63, %v12593_v17  ;;  %v1699_v19 = vadd.f32 %v12596_v41, %v1545_v18  ;;  %v1580_v40 = vadd.f32 %v1575_v7, %v1432_v32  ;;  %v1581_v8 = vadd.f32 %v1576_v24, %v1433_v0  ;;  %v12601_v51 = vld [vmem:[#allocation88_spill] sm:$0xff]  ;;  %v12603_v32 = vld [vmem:[#allocation137_spill] sm:$0xff]  ;;  %v12605_v17 = vld [vmem:[#allocation130_spill] sm:$0xff] }
 0x4f8   : > { %v9822_v57 = vpop.permute.xlu1 %3602  ;;  %v1655_v21 = vsel %vm649_vm10, %v12598_v39, %v12597_v3  ;;  %v1656_v44 = vsel %vm649_vm10, %v12597_v3, %v12554_v58  ;;  %v1692_v35 = vsel %vm649_vm10, %v12600_v60, %v12599_v12  ;;  %v1693_v22 = vsel %vm649_vm10, %v12599_v12, %v12596_v41  ;;  %v12609_v60 = vld [vmem:[#allocation140_spill] sm:$0xff]  ;;  %v12660_v50 = vld [vmem:[#allocation201_spill] sm:$0xff] }
 0x4f9   : > { %v2719_v18 = vadd.f32 %v12601_v51, %v2574_v55  ;;  %v1736_v0 = vadd.f32 %v12602_v5, %v1582_v47  ;;  %v1623_v20 = vadd.f32 %v1618_v61, %v1469_v1  ;;  %v1624_v48 = vadd.f32 %v1619_v34, %v1470_v10  ;;  %v12606_v55 = vld [vmem:[#allocation205_spill] sm:$0xff]  ;;  %v12608_v34 = vld [vmem:[#allocation136_spill] sm:$0xff]  ;;  %v12610_v51 = vld [vmem:[#allocation138_spill] sm:$0xff] }
 0x4fa   : > { %v1729_v7 = vsel %vm649_vm10, %v12604_v16, %v12603_v32  ;;  %v1779_v63 = vadd.f32 %v12605_v17, %v1625_v49  ;;  %v1660_v28 = vadd.f32 %v1655_v21, %v1506_v33  ;;  %v1730_v41 = vsel %vm649_vm10, %v12603_v32, %v12602_v5  ;;  %v12611_v33 = vld [vmem:[#allocation219_spill] sm:$0xff]  ;;  %v12613_v32 = vld [vmem:[#allocation141_spill] sm:$0xff] }
 0x4fb   : > { %v2851_v3 = vadd.f32 %v12606_v55, %v2719_v18  ;;  %v1661_v1 = vadd.f32 %v1656_v44, %v1507_v30  ;;  %v1697_v10 = vadd.f32 %v1692_v35, %v1543_v37  ;;  %v1698_v61 = vadd.f32 %v1693_v22, %v1544_v36  ;;  %v12612_v18 = vld [vmem:[#allocation143_spill] sm:$0xff]  ;;  %v12614_v36 = vld [vmem:[#allocation146_spill] sm:$0xff]  ;;  %v12616_v35 = vld [vmem:[#allocation148_spill] sm:$0xff] }
 0x4fc   : > { %v1853_v39 = vadd.f32 %v12608_v34, %v1699_v19  ;;  %v1734_v12 = vadd.f32 %v1729_v7, %v1580_v40  ;;  %v1772_v16 = vsel %vm750_vm11, %v12610_v51, %v12609_v60  ;;  %v1773_v49 = vsel %vm750_vm11, %v12609_v60, %v12605_v17  ;;  %v12615_v19 = vld [vmem:[#allocation144_spill] sm:$0xff]  ;;  %v12617_v7 = vld [vmem:[#allocation149_spill] sm:$0xff]  ;;  %v12620_v60 = vld [vmem:[#allocation139_spill] sm:$0xff] }
 0x4fd   : > { %v9864_v24 = vpop.permute.xlu0 %3606  ;;  %v3005_v21 = vadd.f32 %v12611_v33, %v2851_v3  ;;  %v1735_v5 = vadd.f32 %v1730_v41, %v1581_v8  ;;  %v1809_v30 = vsel %vm750_vm11, %v12613_v32, %v12612_v18  ;;  %v1810_v37 = vsel %vm750_vm11, %v12612_v18, %v12561_v25  ;;  %v12618_v8 = vld [vmem:[#allocation147_spill] sm:$0xff]  ;;  %v12619_v41 = vld [vmem:[#allocation18_spill] sm:$0xff] }
 0x4fe   : > { %v1846_v40 = vsel %vm750_vm11, %v12615_v19, %v12614_v36  ;;  %v1847_v44 = vsel %vm750_vm11, %v12614_v36, %v12608_v34  ;;  %v2001_v22 = vadd.f32 %v12616_v35, %v1853_v39  ;;  %v1883_v17 = vsel %vm750_vm11, %v12618_v8, %v12617_v7  ;;  %v12622_v19 = vld [vmem:[#allocation142_spill] sm:$0xff]  ;;  %v12623_v36 = vld [vmem:[#allocation160_spill] sm:$0xff] }
 0x4ff   : > { %v9866_v58 = vpop.permute.xlu2 %3680  ;;  %v3159_v3 = vadd.f32 %v12619_v41, %v3005_v21  ;;  %v1890_v51 = vadd.f32 %v12620_v60, %v1736_v0  ;;  %v1777_v32 = vadd.f32 %v1772_v16, %v1623_v20  ;;  %v9901_v25 = vadd.f32 %v1773_v49, %v1624_v48  ;;  %v12626_v48 = vld [vmem:[#allocation152_spill] sm:$0xff]  ;;  %v12627_v16 = vld [vmem:[#allocation150_spill] sm:$0xff] }
 0x500   : > { %v9873_v47 = vpop.permute.xlu1 %3524  ;;  %v1884_v18 = vsel %vm750_vm11, %v12617_v7, %v12620_v60  ;;  %v1927_v23 = vadd.f32 %v12622_v19, %v1779_v63  ;;  %v1814_v34 = vadd.f32 %v1809_v30, %v1660_v28  ;;  %v2155_v39 = vadd.f32 %v12623_v36, %v2001_v22  ;;  %v12628_v28 = vld [vmem:[#allocation172_spill] sm:$0xff] }
 0x501   : > { %12607 = vst [vmem:[#allocation35_spill] sm:$0xff] %v9873_v47  ;;  %v3307_v11 = vadd.f32 %v12624_v26, %v3159_v3  ;;  %v1815_v47 = vadd.f32 %v1810_v37, %v1661_v1  ;;  %v1851_v8 = vadd.f32 %v1846_v40, %v1697_v10  ;;  %v1852_v43 = vadd.f32 %v1847_v44, %v1698_v61  ;;  %v12630_v1 = vld [vmem:[#allocation151_spill] sm:$0xff]  ;;  %v12633_v40 = vld [vmem:[#allocation158_spill] sm:$0xff]  ;;  %v12634_v44 = vld [vmem:[#allocation156_spill] sm:$0xff] }
 0x502   : > { %12621 = vst [vmem:[#allocation49_spill] sm:$0xff] %v9901_v25  ;;  %v1888_v21 = vadd.f32 %v1883_v17, %v1734_v12  ;;  %v1889_v20 = vadd.f32 %v1884_v18, %v1735_v5  ;;  %v1920_v63 = vsel %vm839_vm9, %v12627_v16, %v12626_v48  ;;  %v2309_v49 = vadd.f32 %v12628_v28, %v2155_v39  ;;  %v12631_v61 = vld [vmem:[#allocation155_spill] sm:$0xff]  ;;  %v12632_v12 = vld [vmem:[#allocation153_spill] sm:$0xff] }
 0x503   : > { %v3461_v30 = vadd.f32 %v9560_v45, %v3307_v11  ;;  %v2038_v10 = vadd.f32 %v12630_v1, %v1890_v51  ;;  %v1957_v37 = vsel %vm839_vm9, %v12632_v12, %v12631_v61  ;;  %v1958_v5 = vsel %vm839_vm9, %v12631_v61, %v12564_v42  ;;  %v12635_v17 = vld [vmem:[#allocation161_spill] sm:$0xff]  ;;  %v12636_v3 = vld [vmem:[#allocation159_spill] sm:$0xff]  ;;  %v12637_v51 = vld [vmem:[#allocation184_spill] sm:$0xff] }
 0x504   : > { %v1994_v7 = vsel %vm839_vm9, %v12634_v44, %v12633_v40  ;;  %v1995_v11 = vsel %vm839_vm9, %v12633_v40, %v12616_v35  ;;  %v2031_v60 = vsel %vm839_vm9, %v12636_v3, %v12635_v17  ;;  %v2457_v18 = vadd.f32 %v12637_v51, %v2309_v49  ;;  %v12640_v61 = vld [vmem:[#allocation154_spill] sm:$0xff]  ;;  %v12641_v44 = vld [vmem:[#allocation167_spill] sm:$0xff] }
 0x505   : > { %v9909_v46 = vpop.permute.xlu0 %3639  ;;  %v3615_v39 = vadd.f32 %v9864_v24, %v3461_v30  ;;  %v9943_v42 = vsel %vm839_vm9, %v12626_v48, %v12622_v19  ;;  %v9945_v16 = vadd.f32 %v1920_v63, %v1777_v32  ;;  %v2081_v12 = vadd.f32 %v12640_v61, %v1927_v23  ;;  %v12643_v30 = vld [vmem:[#allocation196_spill] sm:$0xff]  ;;  %v12644_v48 = vld [vmem:[#allocation163_spill] sm:$0xff] }
 0x506   : > { %12625 = vst [vmem:[#allocation34_spill] sm:$0xff] %v9909_v46  ;;  %v12642_v46 = vld [vmem:[#allocation165_spill] sm:$0xff]  ;;  %v1962_v40 = vadd.f32 %v1957_v37, %v1814_v34  ;;  %v1963_v3 = vadd.f32 %v1958_v5, %v1815_v47  ;;  %v2112_v49 = vsel %vm940_vm12, %v12641_v44, %v12568_v13  ;;  %v1999_v9 = vadd.f32 %v1994_v7, %v1851_v8  ;;  %v12647_v13 = vld [vmem:[#allocation170_spill] sm:$0xff] }
 0x507   : > { %v9911_v0 = vpop.permute.xlu2 %3791  ;;  %12638 = vst [vmem:[#allocation55_spill] sm:$0xff] %v9943_v42  ;;  %v2111_v35 = vsel %vm940_vm12, %v12642_v46, %v12641_v44  ;;  %v2000_v19 = vadd.f32 %v1995_v11, %v1852_v43  ;;  %v2032_v32 = vsel %vm839_vm9, %v12635_v17, %v12630_v1  ;;  %v2036_v23 = vadd.f32 %v2031_v60, %v1888_v21  ;;  %v12645_v46 = vld [vmem:[#allocation179_spill] sm:$0xff]  ;;  %v12646_v34 = vld [vmem:[#allocation177_spill] sm:$0xff]  ;;  %v12648_v44 = vld [vmem:[#allocation168_spill] sm:$0xff] }
 0x508   : > { %v9920_v22 = vpop.permute.xlu1 %3641  ;;  %12639 = vst [vmem:[#allocation50_spill] sm:$0xff] %v9945_v16  ;;  %v2192_v63 = vadd.f32 %v12644_v48, %v2038_v10  ;;  %v2116_v16 = vadd.f32 %v2111_v35, %v1962_v40  ;;  %v2265_v47 = vsel %vm1041_vm13, %v12646_v34, %v12645_v46  ;;  %v3763_v37 = vadd.f32 %v9810_v52, %v3615_v39  ;;  %v12649_v11 = vld [vmem:[#allocation175_spill] sm:$0xff]  ;;  %v12650_v60 = vld [vmem:[#allocation248_spill] sm:$0xff]  ;;  %v12651_v40 = vld [vmem:[#allocation173_spill] sm:$0xff] }
 0x509   : > { %12629 = vst [vmem:[#allocation37_spill] sm:$0xff] %v9920_v22  ;;  %v2611_v22 = vadd.f32 %v12643_v30, %v2457_v18  ;;  %v2117_v5 = vadd.f32 %v2112_v49, %v1963_v3  ;;  %v2148_v8 = vsel %vm940_vm12, %v12648_v44, %v12647_v13  ;;  %v2266_v43 = vsel %vm1041_vm13, %v12645_v46, %v12576_v62  ;;  %v12652_v62 = vld [vmem:[#allocation171_spill] sm:$0xff]  ;;  %v12654_v34 = vld [vmem:[#allocation189_spill] sm:$0xff] }
 0x50a   : > { %v9972_v21 = vstv %s9913_s14  ;;  %v2149_v7 = vsel %vm940_vm12, %v12647_v13, %v12623_v36  ;;  %v2346_v17 = vadd.f32 %v12649_v11, %v2192_v63  ;;  %v2185_v3 = vsel %vm940_vm12, %v12652_v62, %v12651_v40  ;;  %v12653_v46 = vld [vmem:[#allocation191_spill] sm:$0xff]  ;;  %s12165_s14 = smov 32  }
 0x50b   : > { %v2748_v18 = vadd.f32 %v12650_v60, %v2611_v22  ;;  %v2270_v49 = vadd.f32 %v2265_v47, %v2116_v16  ;;  %v2413_v44 = vsel %vm1130_vm14, %v12654_v34, %v12653_v46  ;;  %v2414_v36 = vsel %vm1130_vm14, %v12653_v46, %v12585_v59  ;;  %v12655_v13 = vld [vmem:[#allocation187_spill] sm:$0xff]  ;;  %v12656_v60 = vld [vmem:[#allocation208_spill] sm:$0xff]  ;;  %v12657_v16 = vld [vmem:[#allocation182_spill] sm:$0xff] }
 0x50c   : > { %v2271_v63 = vadd.f32 %v2266_v43, %v2117_v5  ;;  %v2494_v22 = vadd.f32 %v12655_v13, %v2346_v17  ;;  %v2186_v62 = vsel %vm940_vm12, %v12651_v40, %v12644_v48  ;;  %v12658_v47 = vld [vmem:[#allocation180_spill] sm:$0xff]  ;;  %v12659_v34 = vld [vmem:[#allocation203_spill] sm:$0xff]  ;;  %v2037_v48 = vadd.f32 %v2032_v32, %v1889_v20  ;;  %v12663_v40 = vld [vmem:[#allocation166_spill] sm:$0xff] }
 0x50d   : > { %v9969_v1 = vpop.permute.xlu0 %3750  ;;  %v2302_v29 = vsel %vm1041_vm13, %v12658_v47, %v12657_v16  ;;  %v2567_v27 = vsel %vm1231_vm15, %v12660_v50, %v12659_v34  ;;  %v2568_v59 = vsel %vm1231_vm15, %v12659_v34, %v12592_v2  ;;  %v2418_v5 = vadd.f32 %v2413_v44, %v2270_v49  ;;  %v12661_v17 = vld [vmem:[#allocation199_spill] sm:$0xff] }
 0x50e   : > { %v2419_v43 = vadd.f32 %v2414_v36, %v2271_v63  ;;  %v2235_v47 = vadd.f32 %v12663_v40, %v2081_v12  ;;  %v2153_v15 = vadd.f32 %v2148_v8, %v1999_v9  ;;  %v2154_v42 = vadd.f32 %v2149_v7, %v2000_v19  ;;  %v12664_v49 = vld [vmem:[#allocation239_spill] sm:$0xff]  ;;  %v12666_v9 = vld [vmem:[#allocation185_spill] sm:$0xff]  ;;  %v12668_v19 = vld [vmem:[#allocation250_spill] sm:$0xff] }
 0x50f   : > { %v9974_v10 = vpop.permute.xlu2 %3908  ;;  %v2303_v50 = vsel %vm1041_vm13, %v12657_v16, %v12628_v28  ;;  %v2572_v25 = vadd.f32 %v2567_v27, %v2418_v5  ;;  %v2190_v36 = vadd.f32 %v2185_v3, %v2036_v23  ;;  %v2191_v63 = vadd.f32 %v2186_v62, %v2037_v48  ;;  %v12667_v12 = vld [vmem:[#allocation183_spill] sm:$0xff]  ;;  %v12669_v23 = vld [vmem:[#allocation252_spill] sm:$0xff] }
 0x510   : > { %v3917_v39 = vadd.f32 %v9974_v10, %v3763_v37  ;;  %v9982_v35 = vpop.permute.xlu1 %3752  ;;  %v2888_v37 = vadd.f32 %v12656_v60, %v2748_v18  ;;  %v2648_v18 = vadd.f32 %v12661_v17, %v2494_v22  ;;  %v2573_v2 = vadd.f32 %v2568_v59, %v2419_v43  ;;  %v12665_v22 = vld [vmem:[#allocation178_spill] sm:$0xff]  ;;  %v12671_v3 = vld [vmem:[#allocation192_spill] sm:$0xff]  ;;  %v12672_v16 = vld [vmem:[#allocation215_spill] sm:$0xff] }
 0x511   : > { %v2307_v34 = vadd.f32 %v2302_v29, %v2153_v15  ;;  %v2339_v28 = vsel %vm1041_vm13, %v12667_v12, %v12666_v9  ;;  %v2340_v27 = vsel %vm1041_vm13, %v12666_v9, %v12649_v11  ;;  %v2308_v15 = vadd.f32 %v2303_v50, %v2154_v42  ;;  %v12670_v29 = vld [vmem:[#allocation194_spill] sm:$0xff]  ;;  %v12673_v59 = vld [vmem:[#allocation213_spill] sm:$0xff]  ;;  %v12674_v11 = vld [vmem:[#allocation211_spill] sm:$0xff] }
 0x512   : > { %v4084_v61 = vadd.f32 %v9972_v21, %v3917_v39  ;;  %v12662_v39 = vld [vmem:[#allocation226_spill] sm:$0xff]  ;;  %v2777_v32 = vadd.f32 %v12668_v19, %v2648_v18  ;;  %v2450_v62 = vsel %vm1130_vm14, %v12671_v3, %v12670_v29  ;;  %v2844_v5 = vsel %vm543_vm8, %v12673_v59, %v12672_v16  ;;  %v12676_v9 = vld [vmem:[#allocation231_spill] sm:$0xff] }
 0x513   : > { %v3042_v46 = vadd.f32 %v12662_v39, %v2888_v37  ;;  %v10017_v37 = vadd.f32 %v12665_v22, %v2235_v47  ;;  %v2845_v43 = vsel %vm543_vm8, %v12672_v16, %v12606_v55  ;;  %v2718_v18 = vadd.f32 %v9439_v56, %v2573_v2  ;;  %v12678_v2 = vld [vmem:[#allocation45_spill] sm:$0xff] }
 0x514   : > { %4092 = vrot.lane.b32.xlu2 %v4084_v61, %s7062_s15  ;;  %v2717_v48 = vadd.f32 %v9436_v53, %v2572_v25  ;;  %v2344_v47 = vadd.f32 %v2339_v28, %v2190_v36  ;;  %v2345_v50 = vadd.f32 %v2340_v27, %v2191_v63  ;;  %v2451_v53 = vsel %vm1130_vm14, %v12670_v29, %v12637_v51  ;;  %v12679_v36 = vld [vmem:[#allocation43_spill] sm:$0xff]  ;;  %v12682_v51 = vld [vmem:[#allocation25_spill] sm:$0xff] }
 0x515   : > { %v3196_v44 = vadd.f32 %v12664_v49, %v3042_v46  ;;  %v10019_v61 = vpop.permute.xlu0 %3676  ;;  %v2925_v46 = vadd.f32 %v12674_v11, %v2777_v32  ;;  %v2850_v55 = vadd.f32 %v2845_v43, %v2718_v18  ;;  %v12677_v32 = vld [vmem:[#allocation229_spill] sm:$0xff]  ;;  %v2455_v25 = vadd.f32 %v2450_v62, %v2307_v34  ;;  %v12681_v43 = vld [vmem:[#allocation206_spill] sm:$0xff]  ;;  %v12683_v34 = vld [vmem:[#allocation23_spill] sm:$0xff] }
 0x516   : > { %v2849_v3 = vadd.f32 %v2844_v5, %v2717_v48  ;;  %v3152_v63 = vsel %vm750_vm11, %v12679_v36, %v12678_v2  ;;  %v3300_v29 = vsel %vm839_vm9, %v12683_v34, %v12682_v51  ;;  %v3301_v62 = vsel %vm839_vm9, %v12682_v51, %v12624_v26 }
 0x517   : > { %v10021_v20 = vpop.permute.xlu2 %3828  ;;  %v3344_v8 = vadd.f32 %v12669_v23, %v3196_v44  ;;  %v12675_v44 = vld [vmem:[#allocation233_spill] sm:$0xff]  ;;  %v3079_v16 = vadd.f32 %v12677_v32, %v2925_v46  ;;  %v2605_v46 = vsel %vm1231_vm15, %v12681_v43, %v12643_v30 }
 0x518   : > { %v10033_v7 = vpop.permute.xlu1 %3678  ;;  %v2998_v12 = vsel %vm649_vm10, %v12676_v9, %v12675_v44  ;;  %v2999_v19 = vsel %vm649_vm10, %v12675_v44, %v12611_v33  ;;  %v3153_v33 = vsel %vm750_vm11, %v12678_v2, %v12619_v41  ;;  %v10079_v41 = vstv %s10023_s22  ;;  %v12684_v9 = vld [vmem:[#allocation255_spill] sm:$0xff]  ;;  %s7069_s22 = smov 17  }
 0x519   : > { %v3498_v42 = vadd.f32 %v9611_v38, %v3344_v8  ;;  %v3003_v28 = vadd.f32 %v2998_v12, %v2849_v3  ;;  %v3004_v27 = vadd.f32 %v2999_v19, %v2850_v55  ;;  %v12680_v8 = vld [vmem:[#allocation245_spill] sm:$0xff]  ;;  %v2456_v3 = vadd.f32 %v2451_v53, %v2308_v15  ;;  %v12687_v15 = vld [vmem:[#allocation204_spill] sm:$0xff] }
 0x51a   : > { %v3233_v59 = vadd.f32 %v12680_v8, %v3079_v16  ;;  %v12685_v55 = vld [vmem:[#allocation197_spill] sm:$0xff]  ;;  %v12686_v16 = vld [vmem:[#allocation195_spill] sm:$0xff]  ;;  %v3455_v2 = vsel %vm940_vm12, %v9722_v14, %v9560_v45  ;;  %v2604_v53 = vsel %vm1231_vm15, %v12687_v15, %v12681_v43  ;;  %v12688_v43 = vld [vmem:[#allocation190_spill] sm:$0xff] }
 0x51b   : > { %v3652_v56 = vadd.f32 %v9768_v4, %v3498_v42  ;;  %v3157_v42 = vadd.f32 %v3152_v63, %v3003_v28  ;;  %v3158_v44 = vadd.f32 %v3153_v33, %v3004_v27  ;;  %v2487_v26 = vsel %vm1130_vm14, %v12686_v16, %v12685_v55 }
 0x51c   : > { %v3381_v30 = vadd.f32 %v12684_v9, %v3233_v59  ;;  %v2610_v27 = vadd.f32 %v2605_v46, %v2456_v3  ;;  %v3608_v59 = vsel %vm1041_vm13, %v9822_v57, %v9671_v6  ;;  %v2488_v45 = vsel %vm1130_vm14, %v12685_v55, %v12655_v13 }
 0x51d   : > { %v3800_v5 = vadd.f32 %v9911_v0, %v3652_v56  ;;  %v10076_v18 = vpop.permute.xlu0 %3787  ;;  %v3454_v56 = vsel %vm940_vm12, %v9712_v31, %v9722_v14  ;;  %v3305_v36 = vadd.f32 %v3300_v29, %v3157_v42  ;;  %v3306_v63 = vadd.f32 %v3301_v62, %v3158_v44  ;;  %v12689_v44 = vld [vmem:[#allocation209_spill] sm:$0xff] }
 0x51e   : > { %v3535_v33 = vadd.f32 %v9714_v54, %v3381_v30  ;;  %v3609_v31 = vsel %vm1041_vm13, %v9671_v6, %v9864_v24  ;;  %v2537_v46 = vadd.f32 %v12688_v43, %v10017_v37  ;;  %v2492_v34 = vadd.f32 %v2487_v26, %v2344_v47  ;;  %v12690_v30 = vld [vmem:[#allocation207_spill] sm:$0xff]  ;;  %v12692_v26 = vld [vmem:[#allocation220_spill] sm:$0xff] }
 0x51f   : > { %v10081_v48 = vpop.permute.xlu2 %3945  ;;  %v3459_v14 = vadd.f32 %v3454_v56, %v3305_v36  ;;  %v3756_v57 = vsel %vm1130_vm14, %v9969_v1, %v9982_v35  ;;  %v3757_v6 = vsel %vm1130_vm14, %v9982_v35, %v9810_v52  ;;  %v2609_v24 = vadd.f32 %v2604_v53, %v2455_v25  ;;  %v12691_v37 = vld [vmem:[#allocation51_spill] sm:$0xff]  ;;  %v12693_v56 = vld [vmem:[#allocation218_spill] sm:$0xff] }
 0x520   : > { %v3954_v12 = vadd.f32 %v10081_v48, %v3800_v5  ;;  %v10087_v19 = vpop.permute.xlu1 %3789  ;;  %v3460_v5 = vadd.f32 %v3455_v2, %v3306_v63  ;;  %v3689_v51 = vadd.f32 %v9866_v58, %v3535_v33  ;;  %v2493_v42 = vadd.f32 %v2488_v45, %v2345_v50  ;;  %v12695_v45 = vld [vmem:[#allocation237_spill] sm:$0xff] }
 0x521   : > { %v3613_v13 = vadd.f32 %v3608_v59, %v3459_v14  ;;  %v2747_v47 = vadd.f32 %v12691_v37, %v2610_v27  ;;  %v10128_v55 = vstv %s10083_s0  ;;  %v2642_v52 = vsel %vm1231_vm15, %v12689_v44, %v12661_v17  ;;  %v12696_v14 = vld [vmem:[#allocation19_spill] sm:$0xff]  ;;  %v12703_v37 = vld [vmem:[#allocation225_spill] sm:$0xff]  ;;  %s12163_s0 = smov 34  }
 0x522   : > { %v4184_v28 = vadd.f32 %v10079_v41, %v3954_v12  ;;  %v3614_v29 = vadd.f32 %v3609_v31, %v3460_v5  ;;  %v3837_v62 = vadd.f32 %v10021_v20, %v3689_v51  ;;  %v2641_v12 = vsel %vm1231_vm15, %v12690_v30, %v12689_v44  ;;  %v12701_v44 = vld [vmem:[#allocation90_spill] sm:$0xff] }
 0x523   : > { %v3761_v35 = vadd.f32 %v3756_v57, %v3613_v13  ;;  %v2881_v2 = vsel %vm543_vm8, %v12693_v56, %v12692_v26  ;;  %v2882_v36 = vsel %vm543_vm8, %v12692_v26, %v12656_v60  ;;  %v2646_v59 = vadd.f32 %v2641_v12, %v2492_v34  ;;  %v12698_v13 = vld [vmem:[#allocation55_spill] sm:$0xff] }
 0x524   : > { %4192 = vrot.lane.b32.xlu2 %v4184_v28, %s7062_s15  ;;  %v3762_v25 = vadd.f32 %v3757_v6, %v3614_v29  ;;  %v12694_v28 = vld [vmem:[#allocation26_spill] sm:$0xff]  ;;  %v2647_v31 = vadd.f32 %v2642_v52, %v2493_v42  ;;  %v3035_v5 = vsel %vm649_vm10, %v12696_v14, %v12695_v45  ;;  %v3036_v60 = vsel %vm649_vm10, %v12695_v45, %v12662_v39  ;;  %v12700_v42 = vld [vmem:[#allocation247_spill] sm:$0xff]  ;;  %v12710_v45 = vld [vmem:[#allocation32_spill] sm:$0xff] }
 0x525   : > { %v2746_v17 = vadd.f32 %v12694_v28, %v2609_v24  ;;  %v2887_v57 = vadd.f32 %v2882_v36, %v2747_v47  ;;  %v12697_v24 = vld [vmem:[#allocation49_spill] sm:$0xff]  ;;  %v12699_v29 = vld [vmem:[#allocation22_spill] sm:$0xff]  ;;  %v3189_v30 = vsel %vm750_vm11, %v12701_v44, %v12700_v42  ;;  %v3190_v39 = vsel %vm750_vm11, %v12700_v42, %v12664_v49  ;;  %v12702_v12 = vld [vmem:[#allocation227_spill] sm:$0xff] }
 0x526   : > { %v3905_v3 = vpop.permute.xlu0 %3904  ;;  %v10158_v34 = vadd.f32 %v12698_v13, %v12697_v24  ;;  %v12704_v52 = vld [vmem:[#allocation202_spill] sm:$0xff]  ;;  %v12711_v14 = vld [vmem:[#allocation48_spill] sm:$0xff]  ;;  %v12717_v44 = vld [vmem:[#allocation253_spill] sm:$0xff] }
 0x527   : > { %v10130_v1 = vpop.permute.xlu2 %3982  ;;  %v2886_v51 = vadd.f32 %v2881_v2, %v2746_v17  ;;  %v12708_v36 = vld [vmem:[#allocation54_spill] sm:$0xff]  ;;  %v12714_v24 = vld [vmem:[#allocation232_spill] sm:$0xff] }
 0x528   : > { %v3991_v16 = vadd.f32 %v10130_v1, %v3837_v62  ;;  %v3907_v50 = vpop.permute.xlu1 %3906  ;;  %v2690_v62 = vadd.f32 %v12699_v29, %v2537_v46  ;;  %v12715_v29 = vld [vmem:[#allocation37_spill] sm:$0xff] }
 0x529   : > { %v3910_v63 = vsel %vm1231_vm15, %v3905_v3, %v3907_v50  ;;  %v3911_v33 = vsel %vm1231_vm15, %v3907_v50, %v9974_v10  ;;  %v3040_v47 = vadd.f32 %v3035_v5, %v2886_v51  ;;  %v3041_v3 = vadd.f32 %v3036_v60, %v2887_v57  ;;  %v12707_v50 = vld [vmem:[#allocation31_spill] sm:$0xff]  ;;  %v12712_v60 = vld [vmem:[#allocation242_spill] sm:$0xff] }
 0x52a   : > { %v4283_v15 = vadd.f32 %v10128_v55, %v3991_v16  ;;  %v3915_v53 = vadd.f32 %v3910_v63, %v3761_v35  ;;  %v3916_v27 = vadd.f32 %v3911_v33, %v3762_v25  ;;  %v2814_v46 = vadd.f32 %v12704_v52, %v2690_v62  ;;  %v12705_v35 = vld [vmem:[#allocation256_spill] sm:$0xff]  ;;  %v12706_v16 = vld [vmem:[#allocation47_spill] sm:$0xff]  ;;  %v12716_v62 = vld [vmem:[#allocation34_spill] sm:$0xff] }
 0x52b   : > { %v2775_v25 = vadd.f32 %v12705_v35, %v2646_v59  ;;  %v3337_v26 = vsel %vm839_vm9, %v12707_v50, %v12706_v16  ;;  %v3338_v49 = vsel %vm839_vm9, %v12706_v16, %v12669_v23  ;;  %v2776_v63 = vadd.f32 %v12708_v36, %v2647_v31  ;;  %v12713_v31 = vld [vmem:[#allocation238_spill] sm:$0xff]  ;;  %v12721_v16 = vld [vmem:[#allocation53_spill] sm:$0xff] }
 0x52c   : > { %v4082_v10 = vadd.f32 %v9972_v21, %v3915_v53  ;;  %v4083_v6 = vadd.f32 %v9972_v21, %v3916_v27  ;;  %4291 = vrot.lane.b32.xlu2 %v4283_v15, %s7062_s15  ;;  %v2918_v21 = vsel %vm543_vm8, %v12703_v37, %v12702_v12  ;;  %v2919_v33 = vsel %vm543_vm8, %v12702_v12, %v12674_v11  ;;  %v12709_v53 = vld [vmem:[#allocation214_spill] sm:$0xff] }
 0x52d   : > { %v3194_v28 = vadd.f32 %v3189_v30, %v3040_v47  ;;  %v3195_v17 = vadd.f32 %v3190_v39, %v3041_v3  ;;  %v2968_v27 = vadd.f32 %v12709_v53, %v2814_v46  ;;  %v2923_v59 = vadd.f32 %v2918_v21, %v2775_v25  ;;  %v12718_v30 = vld [vmem:[#allocation251_spill] sm:$0xff]  ;;  %v12719_v46 = vld [vmem:[#allocation21_spill] sm:$0xff]  ;;  %v12723_v36 = vld [vmem:[#allocation162_spill] sm:$0xff] }
 0x52e   : > { %4090 = vrot.lane.b32.xlu1 %v4083_v6, %s7062_s15  ;;  %4088 = vrot.lane.b32.xlu0 %v4082_v10, %s7062_s15  ;;  %v3825_v56 = vpop.permute.xlu0 %3824  ;;  %v3491_v5 = vsel %vm940_vm12, %v12711_v14, %v12710_v45  ;;  %v3492_v23 = vsel %vm940_vm12, %v12710_v45, %v9611_v38  ;;  %v3072_v51 = vsel %vm649_vm10, %v12713_v31, %v12712_v60  ;;  %v12720_v25 = vld [vmem:[#allocation27_spill] sm:$0xff]  ;;  %v12726_v45 = vld [vmem:[#allocation28_spill] sm:$0xff] }
 0x52f   : > { %v10180_v2 = vpop.permute.xlu2 %3569  ;;  %v3073_v11 = vsel %vm649_vm10, %v12712_v60, %v12677_v32  ;;  %v3342_v57 = vadd.f32 %v3337_v26, %v3194_v28  ;;  %v3343_v10 = vadd.f32 %v3338_v49, %v3195_v17  ;;  %v2924_v6 = vadd.f32 %v2919_v33, %v2776_v63  ;;  %v12722_v49 = vld [vmem:[#allocation164_spill] sm:$0xff] }
 0x530   : > { %v3827_v15 = vpop.permute.xlu1 %3826  ;;  %v3122_v13 = vadd.f32 %v12714_v24, %v2968_v27  ;;  %v3645_v42 = vsel %vm1041_vm13, %v12716_v62, %v12715_v29  ;;  %v3646_v38 = vsel %vm1041_vm13, %v12715_v29, %v9768_v4  ;;  %v3226_v39 = vsel %vm750_vm11, %v12718_v30, %v12717_v44  ;;  %v12727_v29 = vld [vmem:[#allocation154_spill] sm:$0xff] }
 0x531   : > { %v3227_v32 = vsel %vm750_vm11, %v12717_v44, %v12680_v8  ;;  %v3496_v12 = vadd.f32 %v3491_v5, %v3342_v57  ;;  %v3497_v37 = vadd.f32 %v3492_v23, %v3343_v10  ;;  %v3077_v21 = vadd.f32 %v3072_v51, %v2923_v59  ;;  %v12725_v59 = vld [vmem:[#allocation35_spill] sm:$0xff] }
 0x532   : > { %v3078_v47 = vadd.f32 %v3073_v11, %v2924_v6  ;;  %v3793_v3 = vsel %vm1130_vm14, %v10076_v18, %v10087_v19  ;;  %v3794_v4 = vsel %vm1130_vm14, %v10087_v19, %v9911_v0  ;;  %v3270_v35 = vadd.f32 %v12719_v46, %v3122_v13  ;;  %v12724_v19 = vld [vmem:[#allocation52_spill] sm:$0xff] }
 0x533   : > { %v3374_v50 = vsel %vm839_vm9, %v12721_v16, %v12720_v25  ;;  %v3650_v26 = vadd.f32 %v3645_v42, %v3496_v12  ;;  %v3651_v8 = vadd.f32 %v3646_v38, %v3497_v37  ;;  %v2074_v63 = vsel %vm940_vm12, %v12723_v36, %v12722_v49  ;;  %v12728_v42 = vld [vmem:[#allocation50_spill] sm:$0xff] }
 0x534   : > { %v3231_v33 = vadd.f32 %v3226_v39, %v3077_v21  ;;  %v3232_v28 = vadd.f32 %v3227_v32, %v3078_v47  ;;  %v3375_v18 = vsel %vm839_vm9, %v12720_v25, %v12684_v9  ;;  %v3424_v27 = vadd.f32 %v12724_v19, %v3270_v35  ;;  %v12729_v32 = vld [vmem:[#allocation176_spill] sm:$0xff]  ;;  %v12730_v12 = vld [vmem:[#allocation174_spill] sm:$0xff] }
 0x535   : > { %v3528_v14 = vsel %vm940_vm12, %v12726_v45, %v12725_v59  ;;  %v3798_v5 = vadd.f32 %v3793_v3, %v3650_v26  ;;  %v3799_v23 = vadd.f32 %v3794_v4, %v3651_v8  ;;  %v3529_v51 = vsel %vm940_vm12, %v12725_v59, %v9714_v54  ;;  %v12732_v16 = vld [vmem:[#allocation186_spill] sm:$0xff]  ;;  %v12733_v45 = vld [vmem:[#allocation200_spill] sm:$0xff] }
 0x536   : > { %v3942_v17 = vpop.permute.xlu0 %3941  ;;  %v3379_v31 = vadd.f32 %v3374_v50, %v3231_v33  ;;  %v3380_v57 = vadd.f32 %v3375_v18, %v3232_v28  ;;  %v3682_v10 = vsel %vm1041_vm13, %v10019_v61, %v10033_v7  ;;  %v2075_v62 = vsel %vm940_vm12, %v12722_v49, %v12727_v29 }
 0x537   : > { %v10228_v0 = vpop.permute.xlu2 %3717  ;;  %v2079_v38 = vadd.f32 %v2074_v63, %v12728_v42  ;;  %v3683_v54 = vsel %vm1041_vm13, %v10033_v7, %v9866_v58  ;;  %v2228_v37 = vsel %vm1041_vm13, %v12730_v12, %v12729_v32  ;;  %v3830_v47 = vsel %vm1130_vm14, %v3825_v56, %v3827_v15  ;;  %v12742_v12 = vld [vmem:[#allocation228_spill] sm:$0xff] }
 0x538   : > { %v3944_v60 = vpop.permute.xlu1 %3943  ;;  %v3533_v44 = vadd.f32 %v3528_v14, %v3379_v31  ;;  %v3534_v30 = vadd.f32 %v3529_v51, %v3380_v57  ;;  %v3831_v3 = vsel %vm1130_vm14, %v3827_v15, %v10021_v20  ;;  %v2080_v7 = vadd.f32 %v2075_v62, %v10158_v34  ;;  %v12731_v15 = vld [vmem:[#allocation188_spill] sm:$0xff]  ;;  %v12734_v14 = vld [vmem:[#allocation198_spill] sm:$0xff]  ;;  %v12737_v57 = vld [vmem:[#allocation89_spill] sm:$0xff] }
 0x539   : > { %v3947_v9 = vsel %vm1231_vm15, %v3942_v17, %v3944_v60  ;;  %v3948_v11 = vsel %vm1231_vm15, %v3944_v60, %v10081_v48  ;;  %v3578_v48 = vadd.f32 %v10180_v2, %v3424_v27  ;;  %v10269_v25 = vstv %s10230_s16  ;;  %v12735_v31 = vld [vmem:[#allocation24_spill] sm:$0xff]  ;;  %s7065_s16 = smov 15  }
 0x53a   : > { %v3952_v6 = vadd.f32 %v3947_v9, %v3798_v5  ;;  %v3953_v13 = vadd.f32 %v3948_v11, %v3799_v23  ;;  %v3687_v21 = vadd.f32 %v3682_v10, %v3533_v44  ;;  %v3688_v4 = vadd.f32 %v3683_v54, %v3534_v30  ;;  %v12736_v9 = vld [vmem:[#allocation217_spill] sm:$0xff]  ;;  %v12739_v44 = vld [vmem:[#allocation212_spill] sm:$0xff]  ;;  %v12740_v54 = vld [vmem:[#allocation210_spill] sm:$0xff] }
 0x53b   : > { %v3726_v58 = vadd.f32 %v10228_v0, %v3578_v48  ;;  %v7063_v20 = vmov 0.0   ;;  %v2376_v50 = vsel %vm1130_vm14, %v12732_v16, %v12731_v15  ;;  %v2377_v36 = vsel %vm1130_vm14, %v12731_v15, %v12665_v22  ;;  %v12745_v15 = vld [vmem:[#allocation29_spill] sm:$0xff]  ;;  %v12746_v16 = vld [vmem:[#allocation254_spill] sm:$0xff] }
 0x53c   : > { %v4182_v39 = vadd.f32 %v10079_v41, %v3952_v6  ;;  %v4183_v61 = vadd.f32 %v10079_v41, %v3953_v13  ;;  %v2229_v41 = vsel %vm1041_vm13, %v12729_v32, %v12663_v40  ;;  %4079 = vst.msk [vmem:[#allocation3 + $0x28] sm:$0xff] %vm3994_vm0, %v7063_v20  ;;  %v3835_v26 = vadd.f32 %v3830_v47, %v3687_v21  ;;  %v12741_v32 = vld [vmem:[#allocation230_spill] sm:$0xff] }
 0x53d   : > { %v3836_v34 = vadd.f32 %v3831_v3, %v3688_v4  ;;  %3993 = vst.msk [vmem:[#allocation3] sm:$0xff] %vm3992_vm1, %v7063_v20  ;;  %v2233_v40 = vadd.f32 %v2228_v37, %v2079_v38  ;;  %v2234_v28 = vadd.f32 %v2229_v41, %v2080_v7  ;;  %v2530_v22 = vsel %vm1231_vm15, %v12734_v14, %v12733_v45  ;;  %v12743_v4 = vld [vmem:[#allocation246_spill] sm:$0xff] }
 0x53e   : > { %4190 = vrot.lane.b32.xlu1 %v4183_v61, %s7062_s15  ;;  %4188 = vrot.lane.b32.xlu0 %v4182_v39, %s7062_s15  ;;  %v3979_v35 = vpop.permute.xlu0 %3978  ;;  %3995 = vst.msk [vmem:[#allocation3 + $0x10] sm:$0xff] %vm3994_vm0, %v7063_v20  ;;  %v2676_v51 = vrot.slane %v12735_v31, 2  ;;  %v2677_v11 = vrot.slane %v12736_v9, 2  ;;  %v2679_v10 = vrot.slane %v12737_v57, 2  ;;  %v2807_v30 = vsel %vm543_vm8, %v12740_v54, %v12739_v44 }
 0x53f   : > { %v10271_v56 = vpop.permute.xlu2 %3871  ;;  %4078 = vst.msk [vmem:[#allocation3 + $0x18] sm:$0xff] %vm3992_vm1, %v7063_v20  ;;  %v2381_v59 = vadd.f32 %v2376_v50, %v2233_v40  ;;  %v2382_v5 = vadd.f32 %v2377_v36, %v2234_v28  ;;  %v2808_v48 = vsel %vm543_vm8, %v12739_v44, %v12704_v52  ;;  %v2961_v37 = vsel %vm649_vm10, %v12742_v12, %v12741_v32  ;;  %v12747_v40 = vld [vmem:[#allocation33_spill] sm:$0xff]  ;;  %v12748_v36 = vld [vmem:[#allocation30_spill] sm:$0xff] }
 0x540   : > { %v3880_v8 = vadd.f32 %v10271_v56, %v3726_v58  ;;  %v3981_v49 = vpop.permute.xlu1 %3980  ;;  %4178 = vst.msk [vmem:[#allocation3 + $0x30] sm:$0xff] %vm3992_vm1, %v7063_v20  ;;  %v2678_v42 = vsel %vm2675_vm4, %v2676_v51, %v2677_v11  ;;  %v2962_v21 = vsel %vm649_vm10, %v12741_v32, %v12709_v53  ;;  %v12744_v58 = vld [vmem:[#allocation224_spill] sm:$0xff]  ;;  %v3116_v7 = vsel %vm750_vm11, %v12743_v4, %v12714_v24 }
 0x541   : > { %v3984_v63 = vsel %vm1231_vm15, %v3979_v35, %v3981_v49  ;;  %v3985_v33 = vsel %vm1231_vm15, %v3981_v49, %v10130_v1  ;;  %v2531_v1 = vsel %vm1231_vm15, %v12733_v45, %v12688_v43  ;;  %4179 = vst.msk [vmem:[#allocation3 + $0x40] sm:$0xff] %vm3994_vm0, %v7063_v20  ;;  %v12738_v43 = vld [vmem:[#allocation249_spill] sm:$0xff]  ;;  %v2535_v13 = vadd.f32 %v2530_v22, %v2381_v59 }
 0x542   : > { %v4000_v18 = vadd.f32 %v10269_v25, %v3880_v8  ;;  %v3989_v17 = vadd.f32 %v3984_v63, %v3835_v26  ;;  %v3990_v27 = vadd.f32 %v3985_v33, %v3836_v34  ;;  %v2680_v6 = vrot.slane %v12738_v43, 2  ;;  %4277 = vst.msk [vmem:[#allocation3 + $0x48] sm:$0xff] %vm3992_vm1, %v7063_v20 }
 0x543   : > { %v2536_v29 = vadd.f32 %v2531_v1, %v2382_v5  ;;  %4278 = vst.msk [vmem:[#allocation3 + $0x58] sm:$0xff] %vm3994_vm0, %v7063_v20  ;;  %v2688_v61 = vadd.f32 %v2678_v42, %v2535_v13  ;;  %v3115_v52 = vsel %vm750_vm11, %v12744_v58, %v12743_v4  ;;  %v3263_v50 = vsel %vm839_vm9, %v12746_v16, %v12745_v15 }
 0x544   : > { %v4281_v23 = vadd.f32 %v10128_v55, %v3989_v17  ;;  %v4282_v60 = vadd.f32 %v10128_v55, %v3990_v27  ;;  %4008 = vrot.lane.b32.xlu2 %v4000_v18, %s7062_s15  ;;  %4385 = vst [vmem:[#allocation2] sm:$0xfe] %v7063_v20  ;;  %v2681_v38 = vsel %vm2675_vm4, %v2679_v10, %v2680_v6 }
 0x545   : > { %4386 = vst [vmem:[#allocation2 + $0x20] sm:$0x1] %v7063_v20  ;;  %v2689_v39 = vadd.f32 %v2681_v38, %v2536_v29  ;;  %v2812_v47 = vadd.f32 %v2807_v30, %v2688_v61  ;;  %v3264_v53 = vsel %vm839_vm9, %v12745_v15, %v12719_v46  ;;  %v3417_v63 = vsel %vm940_vm12, %v12748_v36, %v12747_v40 }
 0x546   : > { %4289 = vrot.lane.b32.xlu1 %v4282_v60, %s7062_s15  ;;  %4287 = vrot.lane.b32.xlu0 %v4281_v23, %s7062_s15  ;;  %v3566_v55 = vpop.permute.xlu0 %3565  ;;  %4387 = vst [vmem:[#allocation2 + $0x18] sm:$0xfe] %v7063_v20  ;;  %v3418_v24 = vsel %vm940_vm12, %v12747_v40, %v12724_v19  ;;  %vm4168_vm12 = vcmask 7168  }
 0x547   : > { %4388 = vst [vmem:[#allocation2 + $0x38] sm:$0x1] %v7063_v20  ;;  %v2813_v3 = vadd.f32 %v2808_v48, %v2689_v39  ;;  %v2966_v41 = vadd.f32 %v2961_v37, %v2812_v47 }
 0x548   : > { %v3568_v62 = vpop.permute.xlu1 %3567 }
 0x549   : > { %v2967_v35 = vadd.f32 %v2962_v21, %v2813_v3  ;;  %v3120_v34 = vadd.f32 %v3115_v52, %v2966_v41  ;;  %v3571_v18 = vsel %vm1041_vm13, %v3566_v55, %v3568_v62  ;;  %v3572_v17 = vsel %vm1041_vm13, %v3568_v62, %v10180_v2 }
 0x54b   : > { %v3121_v8 = vadd.f32 %v3116_v7, %v2967_v35  ;;  %v3268_v33 = vadd.f32 %v3263_v50, %v3120_v34 }
 0x54d   : > { %v3269_v28 = vadd.f32 %v3264_v53, %v3121_v8  ;;  %v3422_v46 = vadd.f32 %v3417_v63, %v3268_v33  ;;  %v6672_v63 = vld [vmem:[%s11957_s2 + $0x1] ss:$4 sm:$0x3] }
 0x54e   : > { %v3714_v26 = vpop.permute.xlu0 %3713 }
 0x54f   : > { %v3423_v27 = vadd.f32 %v3418_v24, %v3269_v28  ;;  %v3576_v14 = vadd.f32 %v3571_v18, %v3422_v46  ;;  %v4146_v24 = vperm.slane %v6672_v63, 1 }
 0x550   : > { %v3716_v49 = vpop.permute.xlu1 %3715 }
 0x551   : > { %v3719_v59 = vsel %vm1130_vm14, %v3714_v26, %v3716_v49  ;;  %v3720_v45 = vsel %vm1130_vm14, %v3716_v49, %v10228_v0  ;;  %v3577_v22 = vadd.f32 %v3572_v17, %v3423_v27  ;;  %vm4367_vm14 = vcmask 138240  }
 0x552   : > { %v3724_v1 = vadd.f32 %v3719_v59, %v3576_v14  ;;  %v4145_v59 = vperm.slane %v6672_v63, 0 }
 0x553   : > { %v3725_v5 = vadd.f32 %v3720_v45, %v3577_v22 }
 0x556   : > { %v3868_v23 = vpop.permute.xlu0 %3867 }
 0x558   : > { %v3870_v19 = vpop.permute.xlu1 %3869 }
 0x559   : > { %v3873_v60 = vsel %vm1231_vm15, %v3868_v23, %v3870_v19  ;;  %v3874_v31 = vsel %vm1231_vm15, %v3870_v19, %v10271_v56 }
 0x55a   : > { %v3878_v51 = vadd.f32 %v3873_v60, %v3724_v1  ;;  %v3879_v2 = vadd.f32 %v3874_v31, %v3725_v5  ;;  %v6676_v1 = vld [vmem:[%s11957_s2 + $0x3] ss:$4 sm:$0x3]  ;;  %v6674_v5 = vld [vmem:[%s11957_s2 + $0x2] ss:$4 sm:$0x3] }
 0x55b   : > { %v4344_v19 = vperm.slane %v6676_v1, 0  ;;  %v4245_v60 = vperm.slane %v6674_v5, 0 }
 0x55c   : > { %v3998_v9 = vadd.f32 %v10269_v25, %v3878_v51  ;;  %v3999_v11 = vadd.f32 %v10269_v25, %v3879_v2 }
 0x55e   : > { %4006 = vrot.lane.b32.xlu1 %v3999_v11, %s7062_s15  ;;  %4004 = vrot.lane.b32.xlu0 %v3998_v9, %s7062_s15  ;;  %v4246_v9 = vperm.slane %v6674_v5, 1  ;;  %v4345_v11 = vperm.slane %v6676_v1, 1  ;;  %s7068_s15 = smov 1  }
 0x56e   : > { %v4093_v0 = vpop.permute.xlu2 %4092 }
 0x56f   : > { %4101 = vst.msk [vmem:[#allocation3 + $0x28] sm:$0xff] %vm3992_vm1, %v4093_v0 }
 0x576   : > { %v4104_v57 = vld [vmem:[#allocation3 + $0x28] sm:$0xff] }
 0x577   : > { %4112 = vrot.lane.b32.xlu2 %v4104_v57, %s12749_s20 }
 0x57e   : > { %v4193_v10 = vpop.permute.xlu2 %4192 }
 0x57f   : > { %4201 = vst.msk [vmem:[#allocation3 + $0x40] sm:$0xff] %vm3992_vm1, %v4193_v10 }
 0x586   : > { %v4292_v56 = vpop.permute.xlu2 %4291  ;;  %v4204_v43 = vld [vmem:[#allocation3 + $0x40] sm:$0xff] }
 0x587   : > { %4300 = vst.msk [vmem:[#allocation3 + $0x58] sm:$0xff] %vm3992_vm1, %v4292_v56  ;;  %4212 = vrot.lane.b32.xlu2 %v4204_v43, %s12749_s20 }
 0x58e   : > { %v10369_v25 = vld [vmem:[#allocation3 + $0x58] sm:$0xff] }
 0x58f   : > { %4311 = vrot.lane.b32.xlu2 %v10369_v25, %s12749_s20 }
 0x59e   : > { %v4009_v6 = vpop.permute.xlu2 %4008 }
 0x59f   : > { %4018 = vst.msk [vmem:[#allocation3 + $0x10] sm:$0xff] %vm3992_vm1, %v4009_v6 }
 0x5a0   : > { %v4091_v13 = vpop.permute.xlu1 %4090  ;;  %v4089_v29 = vpop.permute.xlu0 %4088 }
 0x5a1   : > { %v4095_v55 = vsel %vm4010_vm2, %v4091_v13, %v4093_v0  ;;  %v4094_v62 = vsel %vm4010_vm2, %v4089_v29, %v4091_v13 }
 0x5a2   : > { %4110 = vrot.lane.b32.xlu1 %v4095_v55, %s12749_s20  ;;  %4099 = vst.msk [vmem:[#allocation3 + $0x18] sm:$0xff] %vm3994_vm0, %v4094_v62 }
 0x5a6   : > { %v10378_v42 = vld [vmem:[#allocation3 + $0x10] sm:$0xff] }
 0x5a7   : > { %4029 = vrot.lane.b32.xlu2 %v10378_v42, %s12749_s20 }
 0x5a9   : > { %v4102_v38 = vld [vmem:[#allocation3 + $0x18] sm:$0xff] }
 0x5aa   : > { %4108 = vrot.lane.b32.xlu0 %v4102_v38, %s12749_s20 }
 0x5b0   : > { %v4191_v44 = vpop.permute.xlu1 %4190  ;;  %v4189_v54 = vpop.permute.xlu0 %4188 }
 0x5b1   : > { %v4195_v30 = vsel %vm4010_vm2, %v4191_v44, %v4193_v10  ;;  %v4194_v48 = vsel %vm4010_vm2, %v4189_v54, %v4191_v44  ;;  %v4059_v10 = vld [vmem:[%s11957_s2] ss:$4 sm:$0x3] }
 0x5b2   : > { %4210 = vrot.lane.b32.xlu1 %v4195_v30, %s12749_s20  ;;  %4199 = vst.msk [vmem:[#allocation3 + $0x30] sm:$0xff] %vm3994_vm0, %v4194_v48  ;;  %v4061_v29 = vperm.slane %v4059_v10, 0 }
 0x5b8   : > { %v4290_v39 = vpop.permute.xlu1 %4289  ;;  %v4288_v61 = vpop.permute.xlu0 %4287 }
 0x5b9   : > { %v4294_v32 = vsel %vm4010_vm2, %v4290_v39, %v4292_v56  ;;  %v4293_v12 = vsel %vm4010_vm2, %v4288_v61, %v4290_v39  ;;  %v4202_v37 = vld [vmem:[#allocation3 + $0x30] sm:$0xff]  ;;  %v4062_v56 = vperm.slane %v4059_v10, 1 }
 0x5ba   : > { %4309 = vrot.lane.b32.xlu1 %v4294_v32, %s12749_s20  ;;  %4298 = vst.msk [vmem:[#allocation3 + $0x48] sm:$0xff] %vm3994_vm0, %v4293_v12  ;;  %4208 = vrot.lane.b32.xlu0 %v4202_v37, %s12749_s20 }
 0x5c1   : > { %v4301_v21 = vld [vmem:[#allocation3 + $0x48] sm:$0xff] }
 0x5c2   : > { %4307 = vrot.lane.b32.xlu0 %v4301_v21, %s12749_s20 }
 0x5d0   : > { %v4007_v47 = vpop.permute.xlu1 %4006  ;;  %v4005_v3 = vpop.permute.xlu0 %4004 }
 0x5d1   : > { %v4012_v4 = vsel %vm4010_vm2, %v4007_v47, %v4009_v6  ;;  %v4011_v58 = vsel %vm4010_vm2, %v4005_v3, %v4007_v47  ;;  %v4113_v52 = vpop.permute.xlu2 %4112  ;;  %vm4427_vm2 = vcmask 277504  }
 0x5d2   : > { %v10395_v7 = vmax.f32 %v4104_v57, %v4113_v52  ;;  %4027 = vrot.lane.b32.xlu1 %v4012_v4, %s12749_s20  ;;  %4016 = vst.msk [vmem:[#allocation3] sm:$0xff] %vm3994_vm0, %v4011_v58 }
 0x5d4   : > { %4129 = vrot.lane.b32.xlu2 %v10395_v7, %s12750_s30 }
 0x5d9   : > { %v4019_v41 = vld [vmem:[#allocation3] sm:$0xff] }
 0x5da   : > { %4025 = vrot.lane.b32.xlu0 %v4019_v41, %s12749_s20 }
 0x5e1   : > { %v4213_v35 = vpop.permute.xlu2 %4212 }
 0x5e2   : > { %v10402_v15 = vmax.f32 %v4204_v43, %v4213_v35 }
 0x5e4   : > { %4229 = vrot.lane.b32.xlu2 %v10402_v15, %s12750_s30 }
 0x5e9   : > { %v4312_v17 = vpop.permute.xlu2 %4311 }
 0x5ea   : > { %v10430_v45 = vmax.f32 %v10369_v25, %v4312_v17 }
 0x601   : > { %v4030_v51 = vpop.permute.xlu2 %4029 }
 0x602   : > { %v10462_v6 = vmax.f32 %v10378_v42, %v4030_v51 }
 0x614   : > { %v4111_v16 = vpop.permute.xlu1 %4110 }
 0x615   : > { %v4115_v50 = vsel %vm543_vm8, %v4111_v16, %v4113_v52 }
 0x616   : > { %v10407_v53 = vmax.f32 %v4095_v55, %v4115_v50 }
 0x618   : > { %4127 = vrot.lane.b32.xlu1 %v10407_v53, %s12750_s30 }
 0x61c   : > { %v4109_v26 = vpop.permute.xlu0 %4108 }
 0x61d   : > { %v4114_v34 = vsel %vm543_vm8, %v4109_v26, %v4111_v16 }
 0x61e   : > { %v10412_v8 = vmax.f32 %v4102_v38, %v4114_v34 }
 0x620   : > { %4125 = vrot.lane.b32.xlu0 %v10412_v8, %s12750_s30 }
 0x624   : > { %v4211_v49 = vpop.permute.xlu1 %4210 }
 0x625   : > { %v4215_v40 = vsel %vm543_vm8, %v4211_v49, %v4213_v35 }
 0x626   : > { %v10417_v36 = vmax.f32 %v4195_v30, %v4215_v40 }
 0x628   : > { %4227 = vrot.lane.b32.xlu1 %v10417_v36, %s12750_s30 }
 0x62c   : > { %v4209_v33 = vpop.permute.xlu0 %4208  ;;  %v4310_v46 = vpop.permute.xlu1 %4309 }
 0x62d   : > { %v4214_v28 = vsel %vm543_vm8, %v4209_v33, %v4211_v49  ;;  %v4314_v23 = vsel %vm543_vm8, %v4310_v46, %v4312_v17 }
 0x62e   : > { %v10425_v18 = vmax.f32 %v4202_v37, %v4214_v28  ;;  %v10446_v31 = vmax.f32 %v4294_v32, %v4314_v23  ;;  %v4130_v62 = vpop.permute.xlu2 %4129 }
 0x62f   : > { %v4138_v42 = vmax.f32 %v10395_v7, %v4130_v62 }
 0x630   : > { %4149 = vrot.lane.b32.xlu1 %v4146_v24, %s7064_s21  ;;  %4225 = vrot.lane.b32.xlu0 %v10425_v18, %s12750_s30 }
 0x631   : > { %v4141_v54 = vmax.f32 %v4138_v42, 0.0 }
 0x634   : > { %v4308_v27 = vpop.permute.xlu0 %4307 }
 0x635   : > { %v4313_v14 = vsel %vm543_vm8, %v4308_v27, %v4310_v46 }
 0x636   : > { %v10433_v22 = vmax.f32 %v4301_v21, %v4313_v14 }
 0x638   : > { %4328 = vrot.lane.b32.xlu1 %v10430_v45, %s12750_s30  ;;  %4147 = vrot.lane.b32.xlu0 %v4145_v59, %s7064_s21  ;;  %s12161_s21 = smov 98  }
 0x639   : > { %4324 = vrot.lane.b32.xlu2 %v10433_v22, %s12750_s30 }
 0x63e   : > { %v4230_v30 = vpop.permute.xlu2 %4229 }
 0x63f   : > { %v4238_v24 = vmax.f32 %v10402_v15, %v4230_v30 }
 0x640   : > { %4346 = vrot.lane.b32.xlu1 %v4344_v19, %s7065_s16  ;;  %4326 = vrot.lane.b32.xlu0 %v10446_v31, %s12750_s30 }
 0x641   : > { %4247 = vrot.lane.b32.xlu2 %v4245_v60, %s7066_s24 }
 0x644   : > { %v4028_v2 = vpop.permute.xlu1 %4027 }
 0x645   : > { %v4032_v0 = vsel %vm543_vm8, %v4028_v2, %v4030_v51 }
 0x646   : > { %v10452_v57 = vmax.f32 %v4012_v4, %v4032_v0 }
 0x648   : > { %4044 = vrot.lane.b32.xlu1 %v10452_v57, %s12750_s30  ;;  %4249 = vrot.lane.b32.xlu0 %v4246_v9, %s7066_s24 }
 0x649   : > { %4348 = vrot.lane.b32.xlu2 %v4345_v11, %s7065_s16  ;;  %s12159_s16 = smov 30  }
 0x64c   : > { %v4026_v43 = vpop.permute.xlu0 %4025 }
 0x64d   : > { %v4031_v25 = vsel %vm543_vm8, %v4026_v43, %v4028_v2 }
 0x64e   : > { %v10464_v13 = vmax.f32 %v4019_v41, %v4031_v25 }
 0x650   : > { %4065 = vrot.lane.b32.xlu1 %v4062_v56, %s12165_s14  ;;  %4042 = vrot.lane.b32.xlu0 %v10464_v13, %s12750_s30 }
 0x651   : > { %4046 = vrot.lane.b32.xlu2 %v10462_v6, %s12750_s30 }
 0x658   : > { %4063 = vrot.lane.b32.xlu0 %v4061_v29, %s12165_s14 }
 0x68a   : > { %v4128_v55 = vpop.permute.xlu1 %4127 }
 0x68b   : > { %v4132_v12 = vsel %vm750_vm11, %v4128_v55, %v4130_v62 }
 0x68c   : > { %v4137_v21 = vmax.f32 %v10407_v53, %v4132_v12 }
 0x68e   : > { %v4140_v58 = vmax.f32 %v4137_v21, 0.0 }
 0x692   : > { %v4126_v44 = vpop.permute.xlu0 %4125 }
 0x693   : > { %v4131_v39 = vsel %vm750_vm11, %v4126_v44, %v4128_v55  ;;  %v4325_v47 = vpop.permute.xlu2 %4324 }
 0x694   : > { %v4136_v37 = vmax.f32 %v10412_v8, %v4131_v39 }
 0x696   : > { %v4139_v4 = vmax.f32 %v4136_v37, 0.0 }
 0x69a   : > { %v4228_v38 = vpop.permute.xlu1 %4227 }
 0x69b   : > { %v4248_v34 = vpop.permute.xlu2 %4247  ;;  %v4232_v53 = vsel %vm750_vm11, %v4228_v38, %v4230_v30 }
 0x69c   : > { %v4237_v33 = vmax.f32 %v10417_v36, %v4232_v53 }
 0x69e   : > { %v4240_v46 = vmax.f32 %v4237_v33, 0.0  ;;  %v4376_v33 = vlaneseq }
 0x6a0   : > { %vm4378_vm0 = vcmp.lt.s32.totalorder %v4376_v33, 512 }
 0x6a1   : > { %4380 = vst.msk [vmem:[#allocation2] ss:$8 sm:$0xf] %vm4378_vm0, %v7063_v20 }
 0x6a2   : > { %v4150_v48 = vpop.permute.xlu1 %4149  ;;  %v4226_v61 = vpop.permute.xlu0 %4225  ;;  %4383 = vst.msk [vmem:[#allocation2 + $0x21] ss:$8 sm:$0xf] %vm4378_vm0, %v7063_v20 }
 0x6a3   : > { %v4158_v32 = vmul.f32 %v4150_v48, %v4141_v54  ;;  %v4231_v3 = vsel %vm750_vm11, %v4226_v61, %v4228_v38  ;;  %v4349_v19 = vpop.permute.xlu2 %4348 }
 0x6a4   : > { %v4236_v7 = vmax.f32 %v10425_v18, %v4231_v3  ;;  %v4241_v18 = vmax.f32 %v4238_v24, 0.0 }
 0x6a5   : > { %4166 = vrot.lane.b32.xlu1 %v4158_v32, %s7068_s15 }
 0x6a6   : > { %v4239_v50 = vmax.f32 %v4236_v7, 0.0 }
 0x6a8   : > { %v4256_v49 = vmul.f32 %v4248_v34, %v4239_v50 }
 0x6aa   : > { %v4148_v52 = vpop.permute.xlu0 %4147  ;;  %v4329_v26 = vpop.permute.xlu1 %4328 }
 0x6ab   : > { %v4152_v41 = vsel %vm4151_vm3, %v4148_v52, %v4150_v48  ;;  %v4156_v35 = vmul.f32 %v4148_v52, %v4139_v4  ;;  %v4337_v14 = vmax.f32 %v10430_v45, %v4329_v26  ;;  %v4047_v9 = vpop.permute.xlu2 %4046  ;;  %vm4536_vm3 = vcmask 244736  }
 0x6ac   : > { %v4157_v16 = vmul.f32 %v4152_v41, %v4140_v58  ;;  %v4055_v32 = vmax.f32 %v10462_v6, %v4047_v9 }
 0x6ad   : > { %4162 = vrot.lane.b32.xlu2 %v4156_v35, %s7068_s15  ;;  %v4340_v36 = vmax.f32 %v4337_v14, 0.0 }
 0x6ae   : > { %4164 = vrot.lane.b32.xlu0 %v4157_v16, %s7068_s15  ;;  %s12753_s15 = smov 30  }
 0x6af   : > { %v4357_v2 = vmul.f32 %v4349_v19, %v4340_v36  ;;  %v4677_v36 = vld [vmem:[#allocation2 + $0x18] sm:$0xff] }
 0x6b2   : > { %v4327_v8 = vpop.permute.xlu0 %4326  ;;  %v4347_v27 = vpop.permute.xlu1 %4346 }
 0x6b3   : > { %v4330_v40 = vsel %vm750_vm11, %v4325_v47, %v4327_v8  ;;  %v4331_v17 = vsel %vm750_vm11, %v4327_v8, %v4329_v26  ;;  %v4351_v51 = vsel %vm4350_vm7, %v4347_v27, %v4349_v19  ;;  %v4058_v47 = vmax.f32 %v4055_v32, 0.0  ;;  %v10610_v32 = vld [vmem:[%s11958_s3] ss:$8 sm:$0x3] }
 0x6b4   : > { %v4335_v63 = vmax.f32 %v10433_v22, %v4330_v40  ;;  %v4336_v15 = vmax.f32 %v10446_v31, %v4331_v17  ;;  %vm4746_vm7 = vcmask 801792  }
 0x6b5   : > { %4262 = vrot.lane.b32.xlu2 %v4256_v49, %s7066_s24 }
 0x6b6   : > { %v4338_v28 = vmax.f32 %v4335_v63, 0.0  ;;  %v4339_v60 = vmax.f32 %v4336_v15, 0.0 }
 0x6b8   : > { %v4355_v1 = vmul.f32 %v4347_v27, %v4338_v28  ;;  %v4356_v45 = vmul.f32 %v4351_v51, %v4339_v60  ;;  %v4409_v28 = vld [vmem:[#allocation2] sm:$0xff] }
 0x6ba   : > { %v4250_v59 = vpop.permute.xlu0 %4249  ;;  %v4045_v31 = vpop.permute.xlu1 %4044 }
 0x6bb   : > { %v4252_v5 = vsel %vm4251_vm5, %v4248_v34, %v4250_v59  ;;  %v4258_v22 = vmul.f32 %v4250_v59, %v4241_v18  ;;  %v4049_v61 = vsel %vm750_vm11, %v4045_v31, %v4047_v9 }
 0x6bc   : > { %v4257_v23 = vmul.f32 %v4252_v5, %v4240_v46  ;;  %v4899_v5 = vld [vmem:[#allocation2 + $0x20] sm:$0x1] }
 0x6bd   : > { %4361 = vrot.lane.b32.xlu2 %v4355_v1, %s7069_s22  ;;  %4266 = vrot.lane.b32.xlu1 %v4258_v22, %s7066_s24  ;;  %v4896_v1 = vld [vmem:[#allocation2] sm:$0xfe]  ;;  %v4916_v15 = vrot.slane %v4899_v5, 1 }
 0x6be   : > { %4264 = vrot.lane.b32.xlu0 %v4257_v23, %s7066_s24  ;;  %s12157_s24 = smov 2   ;;  %v4915_v22 = vrot.slane %v4896_v1, 1  ;;  %v6694_v1 = vld [vmem:[%s11958_s3 + $0x72] ss:$8 sm:$0x3] }
 0x6bf   : > { %v10684_v5 = vld [vmem:[%s11958_s3 + $0xa5] ss:$8 sm:$0x3] }
 0x6c0   : > { %v4917_v23 = vsel %vm1332_vm6, %v4915_v22, %v4916_v15  ;;  %v10689_v22 = vld [vmem:[%s11958_s3 + $0x15] ss:$8 sm:$0x3] }
 0x6c2   : > { %v4043_v11 = vpop.permute.xlu0 %4042  ;;  %v4066_v30 = vpop.permute.xlu1 %4065 }
 0x6c3   : > { %v4048_v10 = vsel %vm750_vm11, %v4043_v11, %v4045_v31  ;;  %v4073_v52 = vmul.f32 %v4066_v30, %v4058_v47  ;;  %v10631_v47 = vld [vmem:[%s11958_s3 + $0xa1] ss:$8 sm:$0x3] }
 0x6c4   : > { %v4053_v56 = vmax.f32 %v10464_v13, %v4048_v10  ;;  %v4054_v13 = vmax.f32 %v10452_v57, %v4049_v61 }
 0x6c5   : > { %4365 = vrot.lane.b32.xlu1 %v4357_v2, %s7069_s22 }
 0x6c6   : > { %4363 = vrot.lane.b32.xlu0 %v4356_v45, %s7069_s22  ;;  %v4056_v29 = vmax.f32 %v4053_v56, 0.0  ;;  %v4057_v3 = vmax.f32 %v4054_v13, 0.0  ;;  %v10615_v13 = vld [vmem:[%s11958_s3 + $0x33] ss:$8 sm:$0x3]  ;;  %s6993_s22 = scalar_lea.hbm %s11968_s13, 16 }
 0x6ca   : > { %v4064_v43 = vpop.permute.xlu0 %4063 }
 0x6cb   : > { %v4071_v55 = vmul.f32 %v4064_v43, %v4056_v29  ;;  %v4067_v21 = vsel %vm3992_vm1, %v4064_v43, %v4066_v30  ;;  %v5459_v29 = vld [vmem:[#allocation2 + $0x20] sm:$0x3] }
 0x6cc   : > { %v4072_v7 = vmul.f32 %v4067_v21, %v4057_v3  ;;  %v4415_v21 = vperm.slane %v10610_v32, 1  ;;  %v4439_v3 = vperm.slane %v10615_v13, 0 }
 0x707   : > { %v4163_v0 = vpop.permute.xlu2 %4162 }
 0x708   : > { %v4174_v62 = vadd.f32 %v4163_v0, %v4071_v55  ;;  %v5233_v55 = vld [vmem:[#allocation2 + $0x18] sm:$0xfe] }
 0x70f   : > { %v4263_v25 = vpop.permute.xlu2 %4262 }
 0x710   : > { %v4273_v38 = vadd.f32 %v4263_v25, %v4174_v62  ;;  %v5234_v62 = vld [vmem:[#allocation2 + $0x38] sm:$0x1] }
 0x711   : > { %v5245_v30 = vrot.slane %v5234_v62, 1 }
 0x717   : > { %v4362_v44 = vpop.permute.xlu2 %4361  ;;  %v4167_v48 = vpop.permute.xlu1 %4166 }
 0x718   : > { %v4373_v42 = vadd.f32 %v4362_v44, %v4273_v38 }
 0x71a   : > { %v4392_v54 = vrot.slane %v4373_v42, 7  ;;  %v5476_v42 = vrot.slane %v5459_v29, 2  ;;  %v4659_v29 = vperm.slane %v6694_v1, 1 }
 0x71c   : > { %4395 = vrot.lane.b32.xlu2 %v4392_v54, %s12303_s23  ;;  %v5244_v54 = vrot.slane %v5233_v55, 1 }
 0x720   : > { %v4165_v39 = vpop.permute.xlu0 %4164 }
 0x721   : > { %v4169_v4 = vsel %vm4168_vm12, %v4163_v0, %v4165_v39  ;;  %v4170_v58 = vsel %vm4168_vm12, %v4165_v39, %v4167_v48  ;;  %v10597_v39 = vsel %vm1332_vm6, %v5244_v54, %v5245_v30 }
 0x722   : > { %v4175_v16 = vadd.f32 %v4169_v4, %v4072_v7  ;;  %v4176_v50 = vadd.f32 %v4170_v58, %v4073_v52  ;;  %v4440_v4 = vperm.slane %v10615_v13, 1 }
 0x724   : > { %4421 = vrot.lane.b32.xlu2 %v4409_v28, %s12163_s0 }
 0x72c   : > { %4476 = vrot.lane.b32.xlu2 %v4409_v28, %s12165_s14 }
 0x72f   : > { %v4267_v12 = vpop.permute.xlu1 %4266 }
 0x730   : > { %v4265_v37 = vpop.permute.xlu0 %4264 }
 0x731   : > { %v4268_v41 = vsel %vm4251_vm5, %v4263_v25, %v4265_v37  ;;  %v4269_v35 = vsel %vm4251_vm5, %v4265_v37, %v4267_v12  ;;  %v5456_v25 = vld [vmem:[#allocation2] sm:$0xfc]  ;;  %v4414_v37 = vperm.slane %v10610_v32, 0  ;;  %vm4591_vm5 = vcmask 15360  }
 0x732   : > { %v4274_v57 = vadd.f32 %v4268_v41, %v4175_v16  ;;  %v4275_v26 = vadd.f32 %v4269_v35, %v4176_v50  ;;  %v10620_v12 = vld [vmem:[%s11958_s3 + $0x66] ss:$8 sm:$0x3]  ;;  %v4461_v16 = vperm.slane %v10631_v47, 0 }
 0x733   : > { %v4450_v58 = vperm.slane %v10620_v12, 0  ;;  %v4451_v52 = vperm.slane %v10620_v12, 1 }
 0x734   : > { %4530 = vrot.lane.b32.xlu2 %v4409_v28, %s12159_s16 }
 0x737   : > { %v4366_v6 = vpop.permute.xlu1 %4365 }
 0x738   : > { %v4364_v34 = vpop.permute.xlu0 %4363 }
 0x739   : > { %v4368_v8 = vsel %vm4367_vm14, %v4362_v44, %v4364_v34  ;;  %v4369_v53 = vsel %vm4367_vm14, %v4364_v34, %v4366_v6  ;;  %v5475_v44 = vrot.slane %v5456_v25, 2  ;;  %v6692_v6 = vld [vmem:[%s11958_s3 + $0x4] ss:$8 sm:$0x3]  ;;  %v4658_v25 = vperm.slane %v6694_v1, 0 }
 0x73a   : > { %v4374_v49 = vadd.f32 %v4368_v8, %v4274_v57  ;;  %v4375_v40 = vadd.f32 %v4369_v53, %v4275_v26  ;;  %v10648_v26 = vld [vmem:[%s11958_s3 + $0x1] ss:$8 sm:$0x3]  ;;  %v10653_v34 = vld [vmem:[%s11958_s3 + $0x34] ss:$8 sm:$0x3] }
 0x73b   : > { %v10594_v48 = vsel %vm2675_vm4, %v5475_v44, %v5476_v42  ;;  %v4462_v8 = vperm.slane %v10631_v47, 1  ;;  %v4637_v33 = vperm.slane %v6692_v6, 1  ;;  %v4669_v44 = vperm.slane %v10684_v5, 0 }
 0x73c   : > { %v4393_v63 = vrot.slane %v4374_v49, 7  ;;  %v4394_v24 = vrot.slane %v4375_v40, 7  ;;  %4585 = vrot.lane.b32.xlu2 %v4409_v28, %s12157_s24  ;;  %v6693_v28 = vld [vmem:[%s11958_s3 + $0x37] ss:$8 sm:$0x3]  ;;  %v12167_v42 = vperm.slane %v10689_v22, 0 }
 0x73e   : > { %4399 = vrot.lane.b32.xlu1 %v4394_v24, %s12303_s23  ;;  %4397 = vrot.lane.b32.xlu0 %v4393_v63, %s12303_s23  ;;  %v4636_v24 = vperm.slane %v6692_v6, 0  ;;  %v10722_v6 = vld [vmem:[%s11958_s3 + $0x35] ss:$8 sm:$0x3] }
 0x776   : > { %v4396_v18 = vpop.permute.xlu2 %4395 }
 0x77e   : > { %v10575_v56 = vpop.permute.xlu2 %4421 }
 0x786   : > { %v10581_v43 = vpop.permute.xlu2 %4476 }
 0x78e   : > { %v10587_v38 = vpop.permute.xlu2 %4530 }
 0x796   : > { %v10605_v61 = vpop.permute.xlu2 %4585 }
 0x7b0   : > { %v4400_v17 = vpop.permute.xlu1 %4399  ;;  %v4398_v46 = vpop.permute.xlu0 %4397 }
 0x7b1   : > { %v4401_v27 = vsel %vm1041_vm13, %v4396_v18, %v4398_v46  ;;  %v4402_v59 = vsel %vm1041_vm13, %v4398_v46, %v4400_v17  ;;  %v4472_v18 = vperm.slane %v10648_v26, 0  ;;  %v4473_v17 = vperm.slane %v10648_v26, 1  ;;  %v10793_v26 = vld [vmem:[%s11958_s3 + $0x3] ss:$8 sm:$0x3] }
 0x7b2   : > { %4405 = vst [vmem:[#allocation2 + $0x8] sm:$0xfe] %v4401_v27  ;;  %v4493_v46 = vperm.slane %v10653_v34, 0 }
 0x7b3   : > { %4406 = vst [vmem:[#allocation2 + $0x10] sm:$0xfe] %v4402_v59 }
 0x7b4   : > { %4407 = vst [vmem:[#allocation2 + $0x28] sm:$0x1] %v4401_v27  ;;  %v10665_v27 = vld [vmem:[%s11958_s3 + $0x67] ss:$8 sm:$0x3] }
 0x7b5   : > { %4408 = vst [vmem:[#allocation2 + $0x30] sm:$0x1] %v4402_v59  ;;  %v10674_v59 = vld [vmem:[%s11958_s3 + $0xa2] ss:$8 sm:$0x3] }
 0x7b6   : > { %v4516_v62 = vperm.slane %v10674_v59, 1 }
 0x7b9   : > { %v10510_v20 = vld [vmem:[#allocation2 + $0x8] sm:$0xff] }
 0x7ba   : > { %v10512_v14 = vld [vmem:[#allocation2 + $0x10] sm:$0xff]  ;;  %4686 = vrot.lane.b32.xlu2 %v10510_v20, %s12751_s27  ;;  %4423 = vrot.lane.b32.xlu0 %v10510_v20, %s12163_s0  ;;  %v10554_v19 = vld [vmem:[#allocation2 + $0x8] sm:$0xfe] }
 0x7bb   : > { %4425 = vrot.lane.b32.xlu1 %v10512_v14, %s12163_s0  ;;  %v10556_v60 = vld [vmem:[#allocation2 + $0x28] sm:$0x1]  ;;  %v10559_v51 = vld [vmem:[#allocation2 + $0x10] sm:$0xfe]  ;;  %v4918_v45 = vrot.slane %v10554_v19, 1 }
 0x7bc   : > { %v10561_v2 = vld [vmem:[#allocation2 + $0x30] sm:$0x1]  ;;  %v4919_v9 = vrot.slane %v10556_v60, 1  ;;  %v4921_v11 = vrot.slane %v10559_v51, 1  ;;  %v5458_v7 = vld [vmem:[#allocation2 + $0x10] sm:$0xfc] }
 0x7bd   : > { %v4922_v0 = vrot.slane %v10561_v2, 1  ;;  %v5461_v41 = vld [vmem:[#allocation2 + $0x30] sm:$0x3]  ;;  %v5457_v35 = vld [vmem:[#allocation2 + $0x8] sm:$0xfc]  ;;  %v5481_v53 = vrot.slane %v5458_v7, 2 }
 0x7be   : > { %v4920_v31 = vsel %vm1332_vm6, %v4918_v45, %v4919_v9  ;;  %v5460_v50 = vld [vmem:[#allocation2 + $0x28] sm:$0x3]  ;;  %v5482_v49 = vrot.slane %v5461_v41, 2  ;;  %v5478_v40 = vrot.slane %v5457_v35, 2  ;;  %v4505_v45 = vperm.slane %v10665_v27, 1 }
 0x7bf   : > { %v10569_v10 = vsel %vm1332_vm6, %v4921_v11, %v4922_v0  ;;  %v5479_v63 = vrot.slane %v5460_v50, 2  ;;  %v4648_v9 = vperm.slane %v6693_v28, 1  ;;  %v4515_v0 = vperm.slane %v10674_v59, 0  ;;  %v10708_v7 = vld [vmem:[%s11958_s3 + $0x2] ss:$8 sm:$0x3] }
 0x7c0   : > { %v10700_v54 = vsel %vm2675_vm4, %v5481_v53, %v5482_v49  ;;  %v10713_v41 = vld [vmem:[%s11958_s3 + $0x50] ss:$8 sm:$0x3]  ;;  %v10730_v53 = vmul.f32 %v4637_v33, %v10512_v14 }
 0x7c1   : > { %v10703_v30 = vsel %vm2675_vm4, %v5478_v40, %v5479_v63  ;;  %v10733_v49 = vmul.f32 %v4648_v9, %v10512_v14  ;;  %v10736_v40 = vmul.f32 %v4636_v24, %v10510_v20  ;;  %v4670_v63 = vperm.slane %v10684_v5, 1 }
 0x7c2   : > { %4740 = vrot.lane.b32.xlu2 %v10510_v20, %s12161_s21  ;;  %4478 = vrot.lane.b32.xlu0 %v10510_v20, %s12165_s14  ;;  %v4526_v24 = vperm.slane %v10708_v7, 0 }
 0x7c3   : > { %4480 = vrot.lane.b32.xlu1 %v10512_v14, %s12165_s14 }
 0x7ca   : > { %4795 = vrot.lane.b32.xlu2 %v10510_v20, %s12303_s23  ;;  %4532 = vrot.lane.b32.xlu0 %v10510_v20, %s12159_s16 }
 0x7cb   : > { %4534 = vrot.lane.b32.xlu1 %v10512_v14, %s12159_s16 }
 0x7d2   : > { %4849 = vrot.lane.b32.xlu2 %v10510_v20, %s12457_s17  ;;  %4587 = vrot.lane.b32.xlu0 %v10510_v20, %s12157_s24 }
 0x7d3   : > { %4589 = vrot.lane.b32.xlu1 %v10512_v14, %s12157_s24 }
 0x7da   : > { %4924 = vrot.lane.b32.xlu2 %v4917_v23, %s12163_s0  ;;  %4688 = vrot.lane.b32.xlu0 %v10512_v14, %s12751_s27 }
 0x7db   : > { %4690 = vrot.lane.b32.xlu1 %v4677_v36, %s12751_s27 }
 0x7e2   : > { %4978 = vrot.lane.b32.xlu2 %v4917_v23, %s12165_s14  ;;  %4742 = vrot.lane.b32.xlu0 %v10512_v14, %s12161_s21 }
 0x7e3   : > { %4744 = vrot.lane.b32.xlu1 %v4677_v36, %s12161_s21 }
 0x7ea   : > { %5032 = vrot.lane.b32.xlu2 %v4917_v23, %s12159_s16  ;;  %4797 = vrot.lane.b32.xlu0 %v10512_v14, %s12303_s23 }
 0x7eb   : > { %4799 = vrot.lane.b32.xlu1 %v4677_v36, %s12303_s23 }
 0x7f2   : > { %5086 = vrot.lane.b32.xlu2 %v4917_v23, %s12157_s24  ;;  %4851 = vrot.lane.b32.xlu0 %v10512_v14, %s12457_s17  ;;  %v4494_v23 = vperm.slane %v10653_v34, 1  ;;  %v10727_v34 = vld [vmem:[%s11958_s3 + $0x70] ss:$8 sm:$0x3] }
 0x7f3   : > { %4853 = vrot.lane.b32.xlu1 %v4677_v36, %s12457_s17  ;;  %v4504_v36 = vperm.slane %v10665_v27, 0  ;;  %v10746_v27 = vmul.f32 %v4658_v25, %v10510_v20 }
 0x7fa   : > { %5247 = vrot.lane.b32.xlu2 %v4920_v31, %s12751_s27  ;;  %4926 = vrot.lane.b32.xlu0 %v4920_v31, %s12163_s0 }
 0x7fb   : > { %4928 = vrot.lane.b32.xlu1 %v10569_v10, %s12163_s0 }
 0x802   : > { %5301 = vrot.lane.b32.xlu2 %v4920_v31, %s12161_s21  ;;  %4980 = vrot.lane.b32.xlu0 %v4920_v31, %s12165_s14  ;;  %s12757_s21 = smov 32  }
 0x803   : > { %4982 = vrot.lane.b32.xlu1 %v10569_v10, %s12165_s14 }
 0x80a   : > { %5355 = vrot.lane.b32.xlu2 %v4920_v31, %s12303_s23  ;;  %5034 = vrot.lane.b32.xlu0 %v4920_v31, %s12159_s16 }
 0x80b   : > { %5036 = vrot.lane.b32.xlu1 %v10569_v10, %s12159_s16  ;;  %s12755_s16 = smov 34  }
 0x812   : > { %5409 = vrot.lane.b32.xlu2 %v4920_v31, %s12457_s17  ;;  %5088 = vrot.lane.b32.xlu0 %v4920_v31, %s12157_s24  ;;  %v4647_v31 = vperm.slane %v6693_v28, 0 }
 0x813   : > { %5090 = vrot.lane.b32.xlu1 %v10569_v10, %s12157_s24  ;;  %s6785_s24 = sld [smem:[#allocation10 + $0x2]] }
 0x814   : > { %v10643_v57 = vpop.permute.xlu2 %4686  ;;  %v10743_v28 = vmul.f32 %v4647_v31, %v10510_v20 }
 0x81a   : > { %5484 = vrot.lane.b32.xlu2 %v10594_v48, %s12163_s0  ;;  %5249 = vrot.lane.b32.xlu0 %v10569_v10, %s12751_s27  ;;  %s6053_s0 = sld [smem:[#allocation10]] }
 0x81b   : > { %5251 = vrot.lane.b32.xlu1 %v10597_v39, %s12751_s27 }
 0x81c   : > { %v10715_v35 = vpop.permute.xlu2 %4740 }
 0x822   : > { %5538 = vrot.lane.b32.xlu2 %v10594_v48, %s12165_s14  ;;  %5303 = vrot.lane.b32.xlu0 %v10569_v10, %s12752_s10 }
 0x823   : > { %5305 = vrot.lane.b32.xlu1 %v10597_v39, %s12752_s10 }
 0x82a   : > { %5592 = vrot.lane.b32.xlu2 %v10594_v48, %s12753_s15  ;;  %5357 = vrot.lane.b32.xlu0 %v10569_v10, %s12303_s23 }
 0x82b   : > { %5359 = vrot.lane.b32.xlu1 %v10597_v39, %s12303_s23 }
 0x82c   : > { %v4424_v15 = vpop.permute.xlu0 %4423 }
 0x82d   : > { %v4426_v11 = vpop.permute.xlu1 %4425  ;;  %v4428_v50 = vsel %vm4427_vm2, %v10575_v56, %v4424_v15  ;;  %v10739_v56 = vmul.f32 %v4659_v29, %v10512_v14 }
 0x82e   : > { %v4429_v55 = vsel %vm4427_vm2, %v4424_v15, %v4426_v11  ;;  %v4432_v1 = vmul.f32 %v4428_v50, %v4414_v37  ;;  %v4548_v15 = vperm.slane %v10722_v6, 0  ;;  %v4443_v11 = vmul.f32 %v4439_v3, %v4428_v50 }
 0x82f   : > { %v4433_v9 = vmul.f32 %v4429_v55, %v4415_v21  ;;  %v4444_v37 = vmul.f32 %v4440_v4, %v4429_v55  ;;  %v4455_v25 = vmul.f32 %v4451_v52, %v4429_v55  ;;  %v4465_v29 = vmul.f32 %v4461_v16, %v4428_v50 }
 0x830   : > { %v4466_v32 = vmul.f32 %v4462_v8, %v4429_v55 }
 0x832   : > { %5646 = vrot.lane.b32.xlu2 %v10594_v48, %s12754_s11  ;;  %5411 = vrot.lane.b32.xlu0 %v10569_v10, %s12457_s17  ;;  %v4559_v48 = vperm.slane %v10727_v34, 0  ;;  %v10764_v10 = vmul.f32 %v12167_v42, %v10554_v19 }
 0x833   : > { %5413 = vrot.lane.b32.xlu1 %v10597_v39, %s12457_s17  ;;  %v4454_v39 = vmul.f32 %v4450_v58, %v4428_v50 }
 0x834   : > { %v4479_v31 = vpop.permute.xlu0 %4478 }
 0x835   : > { %v4481_v21 = vpop.permute.xlu1 %4480  ;;  %v4482_v3 = vsel %vm3992_vm1, %v10581_v43, %v4479_v31  ;;  %v6687_v43 = vld [vmem:[%s11958_s3 + $0xa3] ss:$8 sm:$0x3] }
 0x836   : > { %v4483_v13 = vsel %vm3992_vm1, %v4479_v31, %v4481_v21  ;;  %v4486_v4 = vmul.f32 %v4482_v3, %v4472_v18  ;;  %v4497_v58 = vmul.f32 %v4493_v46, %v4482_v3  ;;  %v4508_v59 = vmul.f32 %v4504_v36, %v4482_v3  ;;  %v10809_v36 = vld [vmem:[%s11958_s3 + $0x71] ss:$8 sm:$0x3] }
 0x837   : > { %v4487_v12 = vmul.f32 %v4483_v13, %v4473_v17  ;;  %v4498_v52 = vmul.f32 %v4494_v23, %v4483_v13  ;;  %v4509_v42 = vmul.f32 %v4505_v45, %v4483_v13  ;;  %v4519_v16 = vmul.f32 %v4515_v0, %v4482_v3  ;;  %v10795_v17 = vpop.permute.xlu2 %4795  ;;  %v10804_v23 = vld [vmem:[%s11958_s3 + $0x36] ss:$8 sm:$0x3] }
 0x838   : > { %v4488_v50 = vadd.f32 %v4486_v4, %v4432_v1  ;;  %v4499_v47 = vadd.f32 %v4497_v58, %v4443_v11  ;;  %v4510_v8 = vadd.f32 %v4508_v59, %v4454_v39  ;;  %v4520_v55 = vmul.f32 %v4516_v62, %v4483_v13 }
 0x839   : > { %v4489_v31 = vadd.f32 %v4487_v12, %v4433_v9  ;;  %v4500_v21 = vadd.f32 %v4498_v52, %v4444_v37  ;;  %v4511_v33 = vadd.f32 %v4509_v42, %v4455_v25  ;;  %v4521_v18 = vadd.f32 %v4519_v16, %v4465_v29 }
 0x83a   : > { %v4522_v46 = vadd.f32 %v4520_v55, %v4466_v32  ;;  %5807 = vrot.lane.b32.xlu2 %v10703_v30, %s12751_s27  ;;  %5486 = vrot.lane.b32.xlu0 %v10703_v30, %s12755_s16  ;;  %v10812_v45 = vmul.f32 %v4670_v63, %v10512_v14  ;;  %v10817_v0 = vmul.f32 %v4669_v44, %v10510_v20  ;;  %v4527_v62 = vperm.slane %v10708_v7, 1 }
 0x83b   : > { %5488 = vrot.lane.b32.xlu1 %v10700_v54, %s12755_s16  ;;  %v4549_v42 = vperm.slane %v10722_v6, 1  ;;  %v4560_v59 = vperm.slane %v10727_v34, 1  ;;  %v4570_v1 = vperm.slane %v6687_v43, 0  ;;  %v4571_v9 = vperm.slane %v6687_v43, 1  ;;  %s6788_s16 = sshll.u32 %s7166_s29, 3 }
 0x83c   : > { %v4533_v11 = vpop.permute.xlu0 %4532  ;;  %v12756_v14 = vperm.slane %v10689_v22, 1  ;;  %v4581_v7 = vperm.slane %v10793_v26, 0  ;;  %v4603_v6 = vperm.slane %v10804_v23, 0  ;;  %v4614_v34 = vperm.slane %v10809_v36, 0 }
 0x83d   : > { %v4535_v5 = vpop.permute.xlu1 %4534  ;;  %v4537_v44 = vsel %vm4536_vm3, %v10587_v38, %v4533_v11  ;;  %v6691_v38 = vld [vmem:[%s11958_s3 + $0xa4] ss:$8 sm:$0x3] }
 0x83e   : > { %v10827_v63 = vmul.f32 %v12756_v14, %v10559_v51  ;;  %v4538_v37 = vsel %vm4536_vm3, %v4533_v11, %v4535_v5  ;;  %v4541_v39 = vmul.f32 %v4537_v44, %v4526_v24  ;;  %v4552_v25 = vmul.f32 %v4548_v15, %v4537_v44  ;;  %v10842_v24 = vld [vmem:[%s11958_s3 + $0x5] ss:$8 sm:$0x3] }
 0x83f   : > { %v4563_v29 = vmul.f32 %v4559_v48, %v4537_v44  ;;  %v4542_v32 = vmul.f32 %v4538_v37, %v4527_v62  ;;  %v4553_v3 = vmul.f32 %v4549_v42, %v4538_v37  ;;  %v4564_v13 = vmul.f32 %v4560_v59, %v4538_v37  ;;  %v10851_v48 = vld [vmem:[%s11958_s3 + $0x40] ss:$8 sm:$0x3]  ;;  %v10873_v42 = vpop.permute.xlu2 %4849 }
 0x840   : > { %v4574_v4 = vmul.f32 %v4570_v1, %v4537_v44  ;;  %v4543_v58 = vadd.f32 %v4541_v39, %v4488_v50  ;;  %v4554_v12 = vadd.f32 %v4552_v25, %v4499_v47  ;;  %v4575_v16 = vmul.f32 %v4571_v9, %v4538_v37 }
 0x841   : > { %v4565_v52 = vadd.f32 %v4563_v29, %v4510_v8  ;;  %v4544_v55 = vadd.f32 %v4542_v32, %v4489_v31  ;;  %v4555_v43 = vadd.f32 %v4553_v3, %v4500_v21  ;;  %v4566_v14 = vadd.f32 %v4564_v13, %v4511_v33  ;;  %v10856_v33 = vld [vmem:[%s11958_s3 + $0x73] ss:$8 sm:$0x3] }
 0x842   : > { %v4576_v20 = vadd.f32 %v4574_v4, %v4521_v18  ;;  %v4577_v15 = vadd.f32 %v4575_v16, %v4522_v46  ;;  %5861 = vrot.lane.b32.xlu2 %v10703_v30, %s12752_s10  ;;  %5540 = vrot.lane.b32.xlu0 %v10703_v30, %s12757_s21  ;;  %v12758_v50 = vperm.slane %v10689_v22, 0  ;;  %v12759_v8 = vperm.slane %v10689_v22, 1 }
 0x843   : > { %5542 = vrot.lane.b32.xlu1 %v10700_v54, %s12757_s21  ;;  %v4582_v21 = vperm.slane %v10793_v26, 1  ;;  %v4604_v18 = vperm.slane %v10804_v23, 1  ;;  %v4615_v46 = vperm.slane %v10809_v36, 1  ;;  %v4625_v62 = vperm.slane %v6691_v38, 0 }
 0x844   : > { %v10861_v47 = vmul.f32 %v12758_v50, %v10556_v60  ;;  %v10866_v31 = vmul.f32 %v12759_v8, %v10561_v2  ;;  %v4626_v59 = vperm.slane %v6691_v38, 1  ;;  %v4588_v1 = vpop.permute.xlu0 %4587  ;;  %v4681_v9 = vperm.slane %v10842_v24, 0  ;;  %v6699_v38 = vld [vmem:[%s11958_s3 + $0xa6] ss:$8 sm:$0x3] }
 0x845   : > { %v4682_v22 = vperm.slane %v10842_v24, 1  ;;  %v12760_v11 = vperm.slane %v10713_v41, 0  ;;  %v4590_v44 = vpop.permute.xlu1 %4589  ;;  %v4592_v26 = vsel %vm4591_vm5, %v10605_v61, %v4588_v1  ;;  %v4703_v23 = vperm.slane %v10851_v48, 0 }
 0x846   : > { %v4704_v36 = vperm.slane %v10851_v48, 1  ;;  %v4714_v37 = vperm.slane %v10856_v33, 0  ;;  %v4593_v39 = vsel %vm4591_vm5, %v4588_v1, %v4590_v44  ;;  %v4596_v25 = vmul.f32 %v4592_v26, %v4581_v7  ;;  %v10891_v48 = vld [vmem:[#allocation2 + $0x18] sm:$0xfc] }
 0x847   : > { %v10880_v5 = vmul.f32 %v12760_v11, %v10554_v19  ;;  %v4607_v29 = vmul.f32 %v4603_v6, %v4592_v26  ;;  %v4618_v32 = vmul.f32 %v4614_v34, %v4592_v26  ;;  %v4597_v3 = vmul.f32 %v4593_v39, %v4582_v21  ;;  %v10893_v11 = vld [vmem:[#allocation2 + $0x38] sm:$0x3] }
 0x848   : > { %v4608_v13 = vmul.f32 %v4604_v18, %v4593_v39  ;;  %v4619_v4 = vmul.f32 %v4615_v46, %v4593_v39  ;;  %v4629_v16 = vmul.f32 %v4625_v62, %v4592_v26  ;;  %v4598_v61 = vadd.f32 %v4596_v25, %v4543_v58 }
 0x849   : > { %v4609_v24 = vadd.f32 %v4607_v29, %v4554_v12  ;;  %v4620_v50 = vadd.f32 %v4618_v32, %v4565_v52  ;;  %v4630_v8 = vmul.f32 %v4626_v59, %v4593_v39  ;;  %v4599_v1 = vadd.f32 %v4597_v3, %v4544_v55  ;;  %v10914_v39 = vpop.permute.xlu2 %4924 }
 0x84a   : > { %v4610_v7 = vadd.f32 %v4608_v13, %v4555_v43  ;;  %v4621_v6 = vadd.f32 %v4619_v4, %v4566_v14  ;;  %v4631_v34 = vadd.f32 %v4629_v16, %v4576_v20  ;;  %5915 = vrot.lane.b32.xlu2 %v10703_v30, %s12303_s23  ;;  %5594 = vrot.lane.b32.xlu0 %v10703_v30, %s12753_s15  ;;  %v4715_v58 = vperm.slane %v10856_v33, 1  ;;  %v6703_v13 = vld [vmem:[%s11958_s3 + $0xa7] ss:$8 sm:$0x3] }
 0x84b   : > { %v4632_v21 = vadd.f32 %v4630_v8, %v4577_v15  ;;  %v4725_v12 = vperm.slane %v6699_v38, 0  ;;  %v4726_v52 = vperm.slane %v6699_v38, 1  ;;  %5596 = vrot.lane.b32.xlu1 %v10700_v54, %s12753_s15  ;;  %v4642_v18 = vadd.f32 %v10736_v40, %v4598_v61  ;;  %s11873_s15 = sld [smem:[#allocation10 + $0x3]] }
 0x84c   : > { %v5804_v55 = vrot.slane %v10891_v48, 2  ;;  %v5805_v20 = vrot.slane %v10893_v11, 2  ;;  %v4643_v43 = vadd.f32 %v10730_v53, %v4599_v1  ;;  %v4654_v14 = vadd.f32 %v10733_v49, %v4610_v7  ;;  %v4689_v46 = vpop.permute.xlu0 %4688 }
 0x84d   : > { %v4665_v15 = vadd.f32 %v10739_v56, %v4621_v6  ;;  %v4653_v33 = vadd.f32 %v10743_v28, %v4609_v24  ;;  %v4691_v62 = vpop.permute.xlu1 %4690  ;;  %v4676_v59 = vadd.f32 %v10812_v45, %v4632_v21  ;;  %v4664_v44 = vadd.f32 %v10746_v27, %v4620_v50  ;;  %v6700_v28 = vld [vmem:[%s11958_s3 + $0x6] ss:$8 sm:$0x3] }
 0x84e   : > { %v4675_v40 = vadd.f32 %v10817_v0, %v4631_v34  ;;  %v4692_v26 = vsel %vm649_vm10, %v10643_v57, %v4689_v46  ;;  %v4693_v53 = vsel %vm649_vm10, %v4689_v46, %v4691_v62  ;;  %v6701_v0 = vld [vmem:[%s11958_s3 + $0x41] ss:$8 sm:$0x3]  ;;  %v6702_v57 = vld [vmem:[%s11958_s3 + $0x74] ss:$8 sm:$0x3] }
 0x84f   : > { %v4696_v49 = vmul.f32 %v4692_v26, %v4681_v9  ;;  %v4707_v25 = vmul.f32 %v4703_v23, %v4692_v26  ;;  %v4718_v56 = vmul.f32 %v4714_v37, %v4692_v26  ;;  %v4697_v29 = vmul.f32 %v4693_v53, %v4682_v22  ;;  %v6705_v62 = vld [vmem:[%s11958_s3 + $0x42] ss:$8 sm:$0x3] }
 0x850   : > { %v4708_v45 = vmul.f32 %v4704_v36, %v4693_v53  ;;  %v4719_v32 = vmul.f32 %v4715_v58, %v4693_v53  ;;  %v4729_v27 = vmul.f32 %v4725_v12, %v4692_v26  ;;  %v4730_v37 = vmul.f32 %v4726_v52, %v4693_v53 }
 0x851   : > { %v4698_v3 = vadd.f32 %v4696_v49, %v4642_v18  ;;  %v4709_v9 = vadd.f32 %v4707_v25, %v4653_v33  ;;  %v4720_v23 = vadd.f32 %v4718_v56, %v4664_v44  ;;  %v4699_v22 = vadd.f32 %v4697_v29, %v4643_v43  ;;  %v10959_v44 = vpop.permute.xlu2 %4978  ;;  %v6707_v25 = vld [vmem:[%s11958_s3 + $0xb0] ss:$8 sm:$0x3] }
 0x852   : > { %v4710_v36 = vadd.f32 %v4708_v45, %v4654_v14  ;;  %v4721_v4 = vadd.f32 %v4719_v32, %v4665_v15  ;;  %v4731_v16 = vadd.f32 %v4729_v27, %v4675_v40  ;;  %v4732_v38 = vadd.f32 %v4730_v37, %v4676_v59  ;;  %5969 = vrot.lane.b32.xlu2 %v10703_v30, %s12457_s17  ;;  %v6706_v59 = vld [vmem:[%s11958_s3 + $0x75] ss:$8 sm:$0x3]  ;;  %v10967_v32 = vld [vmem:[%s11958_s3 + $0x83] ss:$8 sm:$0x3] }
 0x853   : > { %5648 = vrot.lane.b32.xlu0 %v10703_v30, %s12754_s11  ;;  %v4736_v61 = vperm.slane %v6700_v28, 0  ;;  %v4758_v24 = vperm.slane %v6701_v0, 0  ;;  %v4769_v50 = vperm.slane %v6702_v57, 0  ;;  %5650 = vrot.lane.b32.xlu1 %v10700_v54, %s12754_s11  ;;  %v4737_v8 = vperm.slane %v6700_v28, 1  ;;  %s6456_s11 = scalar_lea.hbm %s11968_s13, %s6788_s16 }
 0x854   : > { %v4759_v48 = vperm.slane %v6701_v0, 1  ;;  %v4770_v11 = vperm.slane %v6702_v57, 1  ;;  %v4780_v1 = vperm.slane %v6703_v13, 0  ;;  %v4781_v7 = vperm.slane %v6703_v13, 1  ;;  %v4743_v6 = vpop.permute.xlu0 %4742  ;;  %s6460_s21 = sshll.u32 %s6456_s11, 4  ;;  %s6461_s21 = int_to_ptr.hbm [resolvable:$true] %s6460_s21 }
 0x855   : > { %v5149_v34 = vrot.slane %v10861_v47, 1  ;;  %v5151_v21 = vrot.slane %v10827_v63, 1  ;;  %v5152_v58 = vrot.slane %v10866_v31, 1  ;;  %v4745_v12 = vpop.permute.xlu1 %4744  ;;  %v4747_v30 = vsel %vm4746_vm7, %v10715_v35, %v4743_v6  ;;  %v6704_v31 = vld [vmem:[%s11958_s3 + $0x7] ss:$8 sm:$0x3] }
 0x856   : > { %v10941_v52 = vsel %vm2675_vm4, %v5804_v55, %v5805_v20  ;;  %v5162_v18 = vperm.slane %v10713_v41, 1  ;;  %v12761_v43 = vperm.slane %v10713_v41, 0  ;;  %v4748_v47 = vsel %vm4746_vm7, %v4743_v6, %v4745_v12  ;;  %s6987_s12 = sshra.s32 %s6461_s21, 4  ;;  %s6988_s12 = int_to_ptr.hbm [resolvable:$true] %s6987_s12 }
 0x857   : > { %v4751_v15 = vmul.f32 %v4747_v30, %v4736_v61  ;;  %v4762_v63 = vmul.f32 %v4758_v24, %v4747_v30  ;;  %v4773_v46 = vmul.f32 %v4769_v50, %v4747_v30  ;;  %v4752_v35 = vmul.f32 %v4748_v47, %v4737_v8  ;;  %s6989_s14 = scalar_lea.hbm %s6988_s12, 8  ;;  %p6994_p3 = scmp.lt.s32.totalorder %s6988_s12, %s11968_s13 }
 0x858   : > { %v10947_v14 = vmul.f32 %v12761_v43, %v10556_v60  ;;  %v4763_v33 = vmul.f32 %v4759_v48, %v4748_v47  ;;  %v4774_v55 = vmul.f32 %v4770_v11, %v4748_v47  ;;  %v4784_v20 = vmul.f32 %v4780_v1, %v4747_v30  ;;  %p6990_p0 = scmp.ne.s32.totalorder %s6988_s12, %s6989_s14  ;;  %p6995_p4 = scmp.lt.s32.totalorder %s6993_s22, %s6989_s14 }
 0x859   : > { %v4753_v40 = vadd.f32 %v4751_v15, %v4698_v3  ;;  %v4764_v26 = vadd.f32 %v4762_v63, %v4709_v9  ;;  %v4775_v53 = vadd.f32 %v4773_v46, %v4720_v23  ;;  %v4785_v49 = vmul.f32 %v4781_v7, %v4748_v47  ;;  %v6711_v63 = vld [vmem:[%s11958_s3 + $0xb1] ss:$8 sm:$0x3] }
 0x85a   : > { %v4754_v56 = vadd.f32 %v4752_v35, %v4699_v22  ;;  %v4765_v28 = vadd.f32 %v4763_v33, %v4710_v36  ;;  %v4776_v29 = vadd.f32 %v4774_v55, %v4721_v4  ;;  %v4786_v45 = vadd.f32 %v4784_v20, %v4731_v16  ;;  %v11000_v55 = vpop.permute.xlu2 %5032  ;;  %p6991_p1 = pnand %p6990_p0, %p7183_p5  ;;  %p6996_p7 = por %p6995_p4, %p6994_p3 }
 0x85b   : > { %v4787_v27 = vadd.f32 %v4785_v49, %v4732_v38  ;;  %5809 = vrot.lane.b32.xlu0 %v10700_v54, %s12751_s27  ;;  %v4791_v0 = vperm.slane %v6704_v31, 0  ;;  %v4812_v57 = vperm.slane %v6705_v62, 0  ;;  %v4823_v3 = vperm.slane %v6706_v59, 0  ;;  %5811 = vrot.lane.b32.xlu1 %v10941_v52, %s12751_s27 }
 0x85c   : > { %v4792_v9 = vperm.slane %v6704_v31, 1  ;;  %v4813_v23 = vperm.slane %v6705_v62, 1  ;;  %v4824_v37 = vperm.slane %v6706_v59, 1  ;;  %v4834_v13 = vperm.slane %v6707_v25, 0  ;;  %v4798_v36 = vpop.permute.xlu0 %4797  ;;  %p6992_p2 = pneg %p6991_p1 }
 0x85d   : > { %v4835_v22 = vperm.slane %v6707_v25, 1  ;;  %v12762_v4 = vrot.slane %v10764_v10, 1  ;;  %v5173_v38 = vrot.slane %v10880_v5, 1  ;;  %v5186_v61 = vperm.slane %v10967_v32, 0  ;;  %v4800_v24 = vpop.permute.xlu1 %4799 }
 0x85e   : > { %v4801_v50 = vsel %vm1041_vm13, %v10795_v17, %v4798_v36  ;;  %v10983_v8 = vsel %vm1332_vm6, %v5151_v21, %v5152_v58  ;;  %v5174_v48 = vrot.slane %v10947_v14, 1  ;;  %v5187_v11 = vperm.slane %v10967_v32, 1  ;;  %v6708_v5 = vld [vmem:[%s11958_s3 + $0x10] ss:$8 sm:$0x3]  ;;  %p6997_p8 = pnand %p6996_p7, %p6992_p2 }
 0x85f   : > { %v10976_v16 = vsel %vm1332_vm6, %v12762_v4, %v5149_v34  ;;  %v4802_v10 = vsel %vm1041_vm13, %v4798_v36, %v4800_v24  ;;  %v4805_v1 = vmul.f32 %v4801_v50, %v4791_v0  ;;  %v4816_v7 = vmul.f32 %v4812_v57, %v4801_v50  ;;  %v6709_v21 = vld [vmem:[%s11958_s3 + $0x43] ss:$8 sm:$0x3]  ;;  %v6710_v58 = vld [vmem:[%s11958_s3 + $0x76] ss:$8 sm:$0x3] }
 0x860   : > { %v4827_v6 = vmul.f32 %v4823_v3, %v4801_v50  ;;  %v4806_v34 = vmul.f32 %v4802_v10, %v4792_v9  ;;  %v4817_v12 = vmul.f32 %v4813_v23, %v4802_v10  ;;  %v4828_v30 = vmul.f32 %v4824_v37, %v4802_v10  ;;  %v6713_v24 = vld [vmem:[%s11958_s3 + $0x44] ss:$8 sm:$0x3] }
 0x861   : > { %v4838_v17 = vmul.f32 %v4834_v13, %v4801_v50  ;;  %v4807_v43 = vadd.f32 %v4805_v1, %v4753_v40  ;;  %v4818_v14 = vadd.f32 %v4816_v7, %v4764_v26  ;;  %v4839_v15 = vmul.f32 %v4835_v22, %v4802_v10  ;;  %v6715_v7 = vld [vmem:[%s11958_s3 + $0xb2] ss:$8 sm:$0x3] }
 0x862   : > { %v4829_v47 = vadd.f32 %v4827_v6, %v4775_v53  ;;  %v4808_v46 = vadd.f32 %v4806_v34, %v4754_v56  ;;  %v4819_v31 = vadd.f32 %v4817_v12, %v4765_v28  ;;  %v4830_v35 = vadd.f32 %v4828_v30, %v4776_v29 }
 0x863   : > { %v4840_v33 = vadd.f32 %v4838_v17, %v4786_v45  ;;  %v4841_v20 = vadd.f32 %v4839_v15, %v4787_v27  ;;  %5863 = vrot.lane.b32.xlu0 %v10700_v54, %s12752_s10  ;;  %v4845_v62 = vperm.slane %v6708_v5, 0  ;;  %v4866_v59 = vperm.slane %v6709_v21, 0  ;;  %5865 = vrot.lane.b32.xlu1 %v10941_v52, %s12752_s10 }
 0x864   : > { %v4877_v40 = vperm.slane %v6710_v58, 0  ;;  %v4846_v26 = vperm.slane %v6708_v5, 1  ;;  %v4867_v53 = vperm.slane %v6709_v21, 1  ;;  %v4878_v49 = vperm.slane %v6710_v58, 1  ;;  %v4852_v28 = vpop.permute.xlu0 %4851 }
 0x865   : > { %v4888_v25 = vperm.slane %v6711_v63, 0  ;;  %v4889_v56 = vperm.slane %v6711_v63, 1  ;;  %v11009_v29 = vmul.f32 %v5162_v18, %v10559_v51  ;;  %v11014_v45 = vmul.f32 %v5162_v18, %v10561_v2  ;;  %v4854_v0 = vpop.permute.xlu1 %4853 }
 0x866   : > { %v11017_v27 = vmul.f32 %v5186_v61, %v10554_v19  ;;  %v4855_v57 = vsel %vm1231_vm15, %v10873_v42, %v4852_v28  ;;  %v11022_v3 = vsel %vm1332_vm6, %v5173_v38, %v5174_v48  ;;  %v11027_v9 = vmul.f32 %v5187_v11, %v10559_v51  ;;  %v6712_v42 = vld [vmem:[%s11958_s3 + $0x11] ss:$8 sm:$0x3] }
 0x867   : > { %v11030_v23 = vmul.f32 %v5186_v61, %v10556_v60  ;;  %v4856_v41 = vsel %vm1231_vm15, %v4852_v28, %v4854_v0  ;;  %v4859_v18 = vmul.f32 %v4855_v57, %v4845_v62  ;;  %v4870_v37 = vmul.f32 %v4866_v59, %v4855_v57  ;;  %v6714_v61 = vld [vmem:[%s11958_s3 + $0x77] ss:$8 sm:$0x3] }
 0x868   : > { %v4881_v13 = vmul.f32 %v4877_v40, %v4855_v57  ;;  %v4860_v22 = vmul.f32 %v4856_v41, %v4846_v26  ;;  %v4871_v36 = vmul.f32 %v4867_v53, %v4856_v41  ;;  %v4882_v4 = vmul.f32 %v4878_v49, %v4856_v41 }
 0x869   : > { %v4892_v38 = vmul.f32 %v4888_v25, %v4855_v57  ;;  %v4861_v50 = vadd.f32 %v4859_v18, %v4807_v43  ;;  %v4872_v48 = vadd.f32 %v4870_v37, %v4818_v14  ;;  %v4893_v1 = vmul.f32 %v4889_v56, %v4856_v41  ;;  %v6731_v43 = vld [vmem:[%s11958_s3 + $0xb6] ss:$8 sm:$0x3]  ;;  %v6718_v41 = vld [vmem:[%s11958_s3 + $0x80] ss:$8 sm:$0x3] }
 0x86a   : > { %v4883_v10 = vadd.f32 %v4881_v13, %v4829_v47  ;;  %v4862_v6 = vadd.f32 %v4860_v22, %v4808_v46  ;;  %v4873_v5 = vadd.f32 %v4871_v36, %v4819_v31  ;;  %v4884_v34 = vadd.f32 %v4882_v4, %v4830_v35  ;;  %v11052_v46 = vpop.permute.xlu2 %5086  ;;  %v6719_v22 = vld [vmem:[%s11958_s3 + $0xb3] ss:$8 sm:$0x3] }
 0x86b   : > { %v4894_v12 = vadd.f32 %v4892_v38, %v4840_v33  ;;  %v4895_v30 = vadd.f32 %v4893_v1, %v4841_v20  ;;  %5917 = vrot.lane.b32.xlu0 %v10700_v54, %s12303_s23  ;;  %v4905_v17 = vperm.slane %v6712_v42, 0  ;;  %v4941_v21 = vperm.slane %v6713_v24, 0  ;;  %5919 = vrot.lane.b32.xlu1 %v10941_v52, %s12303_s23  ;;  %s6784_s23 = sld [smem:[#allocation10 + $0x1]] }
 0x86c   : > { %v4952_v58 = vperm.slane %v6714_v61, 0  ;;  %v4906_v14 = vperm.slane %v6712_v42, 1  ;;  %v4942_v47 = vperm.slane %v6713_v24, 1  ;;  %v4953_v15 = vperm.slane %v6714_v61, 1  ;;  %v4927_v35 = vpop.permute.xlu0 %4926 }
 0x86d   : > { %v4963_v63 = vperm.slane %v6715_v7, 0  ;;  %v4964_v31 = vperm.slane %v6715_v7, 1  ;;  %v5176_v33 = vrot.slane %v11009_v29, 1  ;;  %v5177_v20 = vrot.slane %v11014_v45, 1  ;;  %v4929_v59 = vpop.permute.xlu1 %4928 }
 0x86e   : > { %v11059_v62 = vmul.f32 %v5187_v11, %v10561_v2  ;;  %v4930_v40 = vsel %vm4427_vm2, %v10914_v39, %v4927_v35  ;;  %v5198_v26 = vrot.slane %v11017_v27, 1  ;;  %v5211_v53 = vperm.slane %v6731_v43, 0  ;;  %v6716_v45 = vld [vmem:[%s11958_s3 + $0x12] ss:$8 sm:$0x3] }
 0x86f   : > { %v5212_v49 = vperm.slane %v6731_v43, 1  ;;  %v4931_v25 = vsel %vm4427_vm2, %v4927_v35, %v4929_v59  ;;  %v4934_v56 = vmul.f32 %v4930_v40, %v4905_v17  ;;  %v4945_v28 = vmul.f32 %v4941_v21, %v4930_v40  ;;  %v6717_v39 = vld [vmem:[%s11958_s3 + $0x45] ss:$8 sm:$0x3] }
 0x870   : > { %v4956_v29 = vmul.f32 %v4952_v58, %v4930_v40  ;;  %v4935_v32 = vmul.f32 %v4931_v25, %v4906_v14  ;;  %v4946_v11 = vmul.f32 %v4942_v47, %v4931_v25  ;;  %v4957_v0 = vmul.f32 %v4953_v15, %v4931_v25 }
 0x871   : > { %v4967_v57 = vmul.f32 %v4963_v63, %v4930_v40  ;;  %v4936_v18 = vadd.f32 %v4934_v56, %v4861_v50  ;;  %v4947_v37 = vadd.f32 %v4945_v28, %v4872_v48  ;;  %v4968_v42 = vmul.f32 %v4964_v31, %v4931_v25  ;;  %v6723_v25 = vld [vmem:[%s11958_s3 + $0xb4] ss:$8 sm:$0x3] }
 0x872   : > { %v4958_v13 = vadd.f32 %v4956_v29, %v4883_v10  ;;  %v4937_v36 = vadd.f32 %v4935_v32, %v4862_v6  ;;  %v4948_v4 = vadd.f32 %v4946_v11, %v4873_v5  ;;  %v4959_v38 = vadd.f32 %v4957_v0, %v4884_v34  ;;  %v11099_v47 = vpop.permute.xlu2 %5247 }
 0x873   : > { %v4969_v24 = vadd.f32 %v4967_v57, %v4894_v12  ;;  %v4970_v61 = vadd.f32 %v4968_v42, %v4895_v30  ;;  %5971 = vrot.lane.b32.xlu0 %v10700_v54, %s12457_s17  ;;  %v4974_v1 = vperm.slane %v6716_v45, 0  ;;  %v4995_v7 = vperm.slane %v6717_v39, 0  ;;  %5973 = vrot.lane.b32.xlu1 %v10941_v52, %s12457_s17 }
 0x874   : > { %v5006_v17 = vperm.slane %v6718_v41, 0  ;;  %v4975_v50 = vperm.slane %v6716_v45, 1  ;;  %v4996_v48 = vperm.slane %v6717_v39, 1  ;;  %v5007_v10 = vperm.slane %v6718_v41, 1  ;;  %v4981_v43 = vpop.permute.xlu0 %4980 }
 0x875   : > { %v5017_v21 = vperm.slane %v6719_v22, 0  ;;  %v5018_v58 = vperm.slane %v6719_v22, 1  ;;  %v11082_v6 = vsel %vm1332_vm6, %v5176_v33, %v5177_v20  ;;  %v5199_v5 = vrot.slane %v11030_v23, 1  ;;  %v4983_v54 = vpop.permute.xlu1 %4982 }
 0x876   : > { %v11086_v34 = vmul.f32 %v5211_v53, %v10554_v19  ;;  %v4984_v12 = vsel %vm3992_vm1, %v10959_v44, %v4981_v43  ;;  %v11091_v52 = vmul.f32 %v5212_v49, %v10559_v51  ;;  %v11094_v30 = vmul.f32 %v5211_v53, %v10556_v60  ;;  %v6720_v44 = vld [vmem:[%s11958_s3 + $0x13] ss:$8 sm:$0x3]  ;;  %v6721_v60 = vld [vmem:[%s11958_s3 + $0x46] ss:$8 sm:$0x3] }
 0x877   : > { %v11097_v14 = vmul.f32 %v5212_v49, %v10561_v2  ;;  %v4985_v15 = vsel %vm3992_vm1, %v4981_v43, %v4983_v54  ;;  %v4988_v63 = vmul.f32 %v4984_v12, %v4974_v1  ;;  %v4999_v19 = vmul.f32 %v4995_v7, %v4984_v12  ;;  %v6722_v2 = vld [vmem:[%s11958_s3 + $0x81] ss:$8 sm:$0x3] }
 0x878   : > { %v5010_v31 = vmul.f32 %v5006_v17, %v4984_v12  ;;  %v4989_v35 = vmul.f32 %v4985_v15, %v4975_v50  ;;  %v5000_v51 = vmul.f32 %v4996_v48, %v4985_v15  ;;  %v5011_v33 = vmul.f32 %v5007_v10, %v4985_v15 }
 0x879   : > { %v5021_v20 = vmul.f32 %v5017_v21, %v4984_v12  ;;  %v4990_v59 = vadd.f32 %v4988_v63, %v4936_v18  ;;  %v5001_v40 = vadd.f32 %v4999_v19, %v4947_v37  ;;  %v5022_v49 = vmul.f32 %v5018_v58, %v4985_v15  ;;  %v6727_v15 = vld [vmem:[%s11958_s3 + $0xb5] ss:$8 sm:$0x3] }
 0x87a   : > { %v5012_v53 = vadd.f32 %v5010_v31, %v4958_v13  ;;  %v4991_v56 = vadd.f32 %v4989_v35, %v4937_v36  ;;  %v5002_v28 = vadd.f32 %v5000_v51, %v4948_v4  ;;  %v5013_v29 = vadd.f32 %v5011_v33, %v4959_v38  ;;  %v11132_v54 = vpop.permute.xlu2 %5301 }
 0x87b   : > { %v5023_v45 = vadd.f32 %v5021_v20, %v4969_v24  ;;  %v5024_v32 = vadd.f32 %v5022_v49, %v4970_v61  ;;  %v5028_v11 = vperm.slane %v6720_v44, 0  ;;  %v5049_v0 = vperm.slane %v6721_v60, 0 }
 0x87c   : > { %v5060_v57 = vperm.slane %v6722_v2, 0  ;;  %v5029_v39 = vperm.slane %v6720_v44, 1  ;;  %v5050_v41 = vperm.slane %v6721_v60, 1  ;;  %v5061_v42 = vperm.slane %v6722_v2, 1  ;;  %v5035_v37 = vpop.permute.xlu0 %5034 }
 0x87d   : > { %v5071_v22 = vperm.slane %v6723_v25, 0  ;;  %v5072_v18 = vperm.slane %v6723_v25, 1  ;;  %v5201_v13 = vrot.slane %v11027_v9, 1  ;;  %v5202_v1 = vrot.slane %v11059_v62, 1  ;;  %v5037_v36 = vpop.permute.xlu1 %5036 }
 0x87e   : > { %v5223_v7 = vrot.slane %v11086_v34, 1  ;;  %v5038_v4 = vsel %vm4536_vm3, %v11000_v55, %v5035_v37  ;;  %v5224_v38 = vrot.slane %v11094_v30, 1  ;;  %v5226_v24 = vrot.slane %v11091_v52, 1  ;;  %v6724_v9 = vld [vmem:[%s11958_s3 + $0x14] ss:$8 sm:$0x3] }
 0x87f   : > { %v5227_v61 = vrot.slane %v11097_v14, 1  ;;  %v5039_v17 = vsel %vm4536_vm3, %v5035_v37, %v5037_v36  ;;  %v5042_v50 = vmul.f32 %v5038_v4, %v5028_v11  ;;  %v5053_v48 = vmul.f32 %v5049_v0, %v5038_v4  ;;  %v6725_v55 = vld [vmem:[%s11958_s3 + $0x47] ss:$8 sm:$0x3] }
 0x880   : > { %v5064_v10 = vmul.f32 %v5060_v57, %v5038_v4  ;;  %v5043_v62 = vmul.f32 %v5039_v17, %v5029_v39  ;;  %v5054_v21 = vmul.f32 %v5050_v41, %v5039_v17  ;;  %v5065_v58 = vmul.f32 %v5061_v42, %v5039_v17  ;;  %v6726_v34 = vld [vmem:[%s11958_s3 + $0x82] ss:$8 sm:$0x3]  ;;  %v6732_v60 = vld [vmem:[%s11958_s3 + $0x16] ss:$8 sm:$0x3] }
 0x881   : > { %v5075_v43 = vmul.f32 %v5071_v22, %v5038_v4  ;;  %v5044_v12 = vadd.f32 %v5042_v50, %v4990_v59  ;;  %v5055_v52 = vadd.f32 %v5053_v48, %v5001_v40  ;;  %v5076_v14 = vmul.f32 %v5072_v18, %v5039_v17  ;;  %v6733_v18 = vld [vmem:[%s11958_s3 + $0x51] ss:$8 sm:$0x3]  ;;  %v6735_v36 = vld [vmem:[%s11958_s3 + $0xb7] ss:$8 sm:$0x3] }
 0x882   : > { %v5066_v30 = vadd.f32 %v5064_v10, %v5012_v53  ;;  %v5045_v63 = vadd.f32 %v5043_v62, %v4991_v56  ;;  %v5056_v19 = vadd.f32 %v5054_v21, %v5002_v28  ;;  %v5067_v31 = vadd.f32 %v5065_v58, %v5013_v29  ;;  %v11160_v17 = vpop.permute.xlu2 %5355 }
 0x883   : > { %v5077_v44 = vadd.f32 %v5075_v43, %v5023_v45  ;;  %v5078_v35 = vadd.f32 %v5076_v14, %v5024_v32  ;;  %v5082_v51 = vperm.slane %v6724_v9, 0  ;;  %v5103_v33 = vperm.slane %v6725_v55, 0 }
 0x884   : > { %v5114_v20 = vperm.slane %v6726_v34, 0  ;;  %v5083_v2 = vperm.slane %v6724_v9, 1  ;;  %v5104_v59 = vperm.slane %v6725_v55, 1  ;;  %v5115_v40 = vperm.slane %v6726_v34, 1  ;;  %v5089_v25 = vpop.permute.xlu0 %5088 }
 0x885   : > { %v5125_v53 = vperm.slane %v6727_v15, 0  ;;  %v5126_v49 = vperm.slane %v6727_v15, 1  ;;  %v5200_v56 = vsel %vm1332_vm6, %v5198_v26, %v5199_v5  ;;  %v5203_v28 = vsel %vm1332_vm6, %v5201_v13, %v5202_v1  ;;  %v5091_v45 = vpop.permute.xlu1 %5090 }
 0x886   : > { %v5225_v29 = vsel %vm1332_vm6, %v5223_v7, %v5224_v38  ;;  %v5092_v32 = vsel %vm4591_vm5, %v11052_v46, %v5089_v25  ;;  %v5228_v11 = vsel %vm1332_vm6, %v5226_v24, %v5227_v61  ;;  %v5238_v0 = vperm.slane %v6732_v60, 0  ;;  %v6734_v46 = vld [vmem:[%s11958_s3 + $0x84] ss:$8 sm:$0x3] }
 0x887   : > { %v5239_v57 = vperm.slane %v6732_v60, 1  ;;  %v5093_v39 = vsel %vm4591_vm5, %v5089_v25, %v5091_v45  ;;  %v5096_v41 = vmul.f32 %v5092_v32, %v5082_v51  ;;  %v5107_v23 = vmul.f32 %v5103_v33, %v5092_v32 }
 0x888   : > { %v5118_v42 = vmul.f32 %v5114_v20, %v5092_v32  ;;  %v5097_v27 = vmul.f32 %v5093_v39, %v5083_v2  ;;  %v5108_v22 = vmul.f32 %v5104_v59, %v5093_v39  ;;  %v5119_v26 = vmul.f32 %v5115_v40, %v5093_v39 }
 0x889   : > { %v5129_v5 = vmul.f32 %v5125_v53, %v5092_v32  ;;  %v5098_v37 = vadd.f32 %v5096_v41, %v5044_v12  ;;  %v5109_v13 = vadd.f32 %v5107_v23, %v5055_v52  ;;  %v5130_v7 = vmul.f32 %v5126_v49, %v5093_v39  ;;  %v6764_v41 = vld [vmem:[%s11958_s3 + $0x26] ss:$8 sm:$0x3]  ;;  %v6765_v23 = vld [vmem:[%s11958_s3 + $0x61] ss:$8 sm:$0x3] }
 0x88a   : > { %v5120_v1 = vadd.f32 %v5118_v42, %v5066_v30  ;;  %v5099_v4 = vadd.f32 %v5097_v27, %v5045_v63  ;;  %v5110_v38 = vadd.f32 %v5108_v22, %v5056_v19  ;;  %v5121_v24 = vadd.f32 %v5119_v26, %v5067_v31 }
 0x88b   : > { %v5131_v61 = vadd.f32 %v5129_v5, %v5077_v44  ;;  %v5132_v50 = vadd.f32 %v5130_v7, %v5078_v35  ;;  %v5264_v48 = vperm.slane %v6733_v18, 0  ;;  %v5265_v10 = vperm.slane %v6733_v18, 1 }
 0x88c   : > { %v5275_v9 = vperm.slane %v6734_v46, 0  ;;  %v5276_v62 = vperm.slane %v6734_v46, 1  ;;  %v5286_v21 = vperm.slane %v6735_v36, 0  ;;  %v5287_v58 = vperm.slane %v6735_v36, 1  ;;  %v5250_v12 = vpop.permute.xlu0 %5249  ;;  %v11222_v36 = vld [vmem:[#allocation2 + $0x28] sm:$0x3] }
 0x88d   : > { %v5156_v43 = vadd.f32 %v10976_v16, %v5098_v37  ;;  %v5157_v55 = vadd.f32 %v10983_v8, %v5099_v4  ;;  %v5182_v34 = vadd.f32 %v11082_v6, %v5110_v38  ;;  %v5181_v52 = vadd.f32 %v11022_v3, %v5109_v13  ;;  %v5252_v14 = vpop.permute.xlu1 %5251  ;;  %v6766_v46 = vld [vmem:[%s11958_s3 + $0x94] ss:$8 sm:$0x3]  ;;  %v11216_v37 = vld [vmem:[#allocation2 + $0x8] sm:$0xfc]  ;;  %12767 = vst [vmem:[#allocation41_spill] sm:$0xff] %v11222_v36 }
 0x88e   : > { %v5206_v30 = vadd.f32 %v5200_v56, %v5120_v1  ;;  %v5207_v15 = vadd.f32 %v5203_v28, %v5121_v24  ;;  %v5232_v63 = vadd.f32 %v5228_v11, %v5132_v50  ;;  %v5231_v19 = vadd.f32 %v5225_v29, %v5131_v61  ;;  %v11185_v56 = vpop.permute.xlu2 %5409  ;;  %12765 = vst [vmem:[#allocation56_spill] sm:$0xff] %v11216_v37  ;;  %v11219_v1 = vld [vmem:[#allocation2 + $0x10] sm:$0xfc]  ;;  %v11225_v38 = vld [vmem:[#allocation2 + $0x30] sm:$0x3] }
 0x88f   : > { %v5253_v31 = vsel %vm649_vm10, %v11099_v47, %v5250_v12  ;;  %v5254_v44 = vsel %vm649_vm10, %v5250_v12, %v5252_v14  ;;  %v5696_v27 = vperm.slane %v6764_v41, 0  ;;  %v5697_v22 = vperm.slane %v6764_v41, 1  ;;  %12766 = vst [vmem:[#allocation38_spill] sm:$0xff] %v11219_v1 }
 0x890   : > { %v5257_v35 = vmul.f32 %v5253_v31, %v5238_v0  ;;  %v5268_v51 = vmul.f32 %v5264_v48, %v5253_v31  ;;  %v5279_v16 = vmul.f32 %v5275_v9, %v5253_v31  ;;  %v5258_v33 = vmul.f32 %v5254_v44, %v5239_v57  ;;  %12768 = vst [vmem:[#allocation42_spill] sm:$0xff] %v11225_v38 }
 0x891   : > { %v5269_v8 = vmul.f32 %v5265_v10, %v5254_v44  ;;  %v5280_v20 = vmul.f32 %v5276_v62, %v5254_v44  ;;  %v5290_v6 = vmul.f32 %v5286_v21, %v5253_v31  ;;  %v5291_v59 = vmul.f32 %v5287_v58, %v5254_v44  ;;  %v6736_v31 = vld [vmem:[%s11958_s3 + $0x17] ss:$8 sm:$0x3]  ;;  %v11257_v44 = vld [vmem:[%s11958_s3 + $0x52] ss:$8 sm:$0x3] }
 0x892   : > { %v11169_v60 = vadd.f32 %v5257_v35, %v5156_v43  ;;  %v11171_v3 = vadd.f32 %v5268_v51, %v5181_v52  ;;  %v11173_v2 = vadd.f32 %v5279_v16, %v5206_v30  ;;  %v11175_v40 = vadd.f32 %v5258_v33, %v5157_v55  ;;  %v11262_v35 = vld [vmem:[%s11958_s3 + $0x85] ss:$8 sm:$0x3]  ;;  %v11267_v51 = vld [vmem:[%s11958_s3 + $0xc0] ss:$8 sm:$0x3] }
 0x893   : > { %v11177_v53 = vadd.f32 %v5269_v8, %v5182_v34  ;;  %v11179_v47 = vadd.f32 %v5280_v20, %v5207_v15  ;;  %v11181_v49 = vadd.f32 %v5290_v6, %v5231_v19  ;;  %v11183_v25 = vadd.f32 %v5291_v59, %v5232_v63 }
 0x894   : > { %v11187_v28 = vpop.permute.xlu0 %5303  ;;  %v5721_v5 = vperm.slane %v6765_v23, 0  ;;  %v5722_v18 = vperm.slane %v6765_v23, 1  ;;  %v5700_v13 = vmul.f32 %v11216_v37, %v5696_v27  ;;  %v5701_v7 = vmul.f32 %v11219_v1, %v5697_v22 }
 0x895   : > { %12763 = vst [vmem:[#allocation36_spill] sm:$0xff] %v11181_v49  ;;  %v11189_v29 = vpop.permute.xlu1 %5305  ;;  %v5702_v4 = vmul.f32 %v11222_v36, %v5696_v27  ;;  %v5703_v24 = vmul.f32 %v11225_v38, %v5697_v22  ;;  %v5746_v61 = vperm.slane %v6766_v46, 0  ;;  %v5747_v52 = vperm.slane %v6766_v46, 1 }
 0x896   : > { %12764 = vst [vmem:[#allocation39_spill] sm:$0xff] %v11183_v25  ;;  %v11195_v11 = vpop.permute.xlu2 %5484  ;;  %v11231_v48 = vmul.f32 %v11216_v37, %v5721_v5  ;;  %v11234_v10 = vmul.f32 %v11219_v1, %v5722_v18  ;;  %v11237_v9 = vmul.f32 %v11222_v36, %v5721_v5  ;;  %v11240_v62 = vmul.f32 %v11225_v38, %v5722_v18  ;;  %v11323_v5 = vld [vmem:[%s11958_s3 + $0x54] ss:$8 sm:$0x3] }
 0x897   : > { %v5708_v58 = vrot.slane %v5700_v13, 2  ;;  %v5711_v43 = vrot.slane %v5701_v7, 2  ;;  %v5709_v34 = vrot.slane %v5702_v4, 2  ;;  %v5712_v12 = vrot.slane %v5703_v24, 2 }
 0x898   : > { %v5750_v30 = vmul.f32 %v11216_v37, %v5746_v61  ;;  %v5733_v14 = vrot.slane %v11231_v48, 2  ;;  %v5734_v15 = vrot.slane %v11237_v9, 2  ;;  %v5736_v63 = vrot.slane %v11234_v10, 2  ;;  %v11283_v13 = vld [vmem:[%s11958_s3 + $0x20] ss:$8 sm:$0x3] }
 0x899   : > { %v5737_v19 = vrot.slane %v11240_v62, 2  ;;  %v5751_v16 = vmul.f32 %v11219_v1, %v5747_v52  ;;  %v5752_v33 = vmul.f32 %v11222_v36, %v5746_v61  ;;  %v5753_v8 = vmul.f32 %v11225_v38, %v5747_v52  ;;  %v11288_v7 = vld [vmem:[%s11958_s3 + $0x53] ss:$8 sm:$0x3] }
 0x89a   : > { %v5758_v20 = vrot.slane %v5750_v30, 2  ;;  %v5297_v6 = vperm.slane %v6736_v31, 0  ;;  %v5298_v59 = vperm.slane %v6736_v31, 1  ;;  %v5318_v41 = vperm.slane %v11257_v44, 0 }
 0x89b   : > { %v5319_v23 = vperm.slane %v11257_v44, 1  ;;  %v5329_v27 = vperm.slane %v11262_v35, 0  ;;  %v5330_v22 = vperm.slane %v11262_v35, 1  ;;  %v11295_v24 = vld [vmem:[%s11958_s3 + $0xc7] ss:$8 sm:$0x3]  ;;  %v11315_v62 = vsel %vm2675_vm4, %v5708_v58, %v5709_v34 }
 0x89c   : > { %v11191_v45 = vpop.permute.xlu0 %5357  ;;  %v11300_v61 = vld [vmem:[%s11958_s3 + $0x86] ss:$8 sm:$0x3]  ;;  %v11305_v48 = vld [vmem:[%s11958_s3 + $0xc1] ss:$8 sm:$0x3]  ;;  %v11326_v36 = vsel %vm2675_vm4, %v5711_v43, %v5712_v12 }
 0x89d   : > { %v11193_v32 = vpop.permute.xlu1 %5359  ;;  %v11312_v9 = vld [vmem:[%s11958_s3 + $0x21] ss:$8 sm:$0x3]  ;;  %v5759_v52 = vrot.slane %v5752_v33, 2  ;;  %v5761_v30 = vrot.slane %v5751_v16, 2  ;;  %v5762_v31 = vrot.slane %v5753_v8, 2  ;;  %v11335_v8 = vsel %vm4746_vm7, %v11132_v54, %v11187_v28 }
 0x89e   : > { %v11201_v39 = vpop.permute.xlu2 %5538  ;;  %v5351_v44 = vperm.slane %v11283_v13, 0  ;;  %v5352_v35 = vperm.slane %v11283_v13, 1  ;;  %v5372_v18 = vperm.slane %v11288_v7, 0  ;;  %v5373_v58 = vperm.slane %v11288_v7, 1 }
 0x89f   : > { %v5383_v34 = vperm.slane %v11300_v61, 0  ;;  %v5384_v16 = vperm.slane %v11300_v61, 1  ;;  %v11342_v43 = vld [vmem:[%s11958_s3 + $0x87] ss:$8 sm:$0x3]  ;;  %v11348_v7 = vsel %vm4746_vm7, %v11187_v28, %v11189_v29  ;;  %v11369_v29 = vsel %vm2675_vm4, %v5733_v14, %v5734_v15 }
 0x8a0   : > { %v11356_v33 = vld [vmem:[%s11958_s3 + $0xc2] ss:$8 sm:$0x3]  ;;  %v11366_v28 = vld [vmem:[%s11958_s3 + $0x55] ss:$8 sm:$0x3]  ;;  %v11372_v13 = vsel %vm2675_vm4, %v5736_v63, %v5737_v19  ;;  %v11375_v61 = vsel %vm2675_vm4, %v5758_v20, %v5759_v52  ;;  %v11378_v54 = vsel %vm2675_vm4, %v5761_v30, %v5762_v31  ;;  %v5311_v38 = vmul.f32 %v11335_v8, %v5297_v6 }
 0x8a1   : > { %v11361_v12 = vld [vmem:[%s11958_s3 + $0x22] ss:$8 sm:$0x3]  ;;  %12769 = vst [vmem:[#allocation40_spill] sm:$0xff] %v11375_v61  ;;  %v5322_v1 = vmul.f32 %v5318_v41, %v11335_v8  ;;  %v5312_v14 = vmul.f32 %v11348_v7, %v5298_v59  ;;  %v5333_v15 = vmul.f32 %v5329_v27, %v11335_v8  ;;  %v11402_v52 = vsel %vm1041_vm13, %v11160_v17, %v11191_v45 }
 0x8a2   : > { %12770 = vst [vmem:[#allocation44_spill] sm:$0xff] %v11378_v54  ;;  %v11393_v20 = vld [vmem:[%s11958_s3 + $0x90] ss:$8 sm:$0x3]  ;;  %v5465_v59 = vperm.slane %v11361_v12, 0  ;;  %v5466_v27 = vperm.slane %v11361_v12, 1  ;;  %v5323_v31 = vmul.f32 %v5319_v23, %v11348_v7  ;;  %v5334_v19 = vmul.f32 %v5330_v22, %v11348_v7 }
 0x8a3   : > { %v11412_v63 = vsel %vm1041_vm13, %v11191_v45, %v11193_v32  ;;  %v5313_v17 = vadd.f32 %v5311_v38, %v11169_v60  ;;  %v5324_v25 = vadd.f32 %v5322_v1, %v11171_v3  ;;  %v6752_v23 = vld [vmem:[%s11958_s3 + $0x23] ss:$8 sm:$0x3]  ;;  %v5314_v22 = vadd.f32 %v5312_v14, %v11175_v40  ;;  %v11429_v60 = vld [vmem:[%s11958_s3 + $0x56] ss:$8 sm:$0x3] }
 0x8a4   : > { %v11197_v0 = vpop.permute.xlu0 %5411  ;;  %v5335_v30 = vadd.f32 %v5333_v15, %v11173_v2  ;;  %v5365_v45 = vmul.f32 %v11402_v52, %v5351_v44  ;;  %v5376_v32 = vmul.f32 %v5372_v18, %v11402_v52  ;;  %v11434_v3 = vld [vmem:[%s11958_s3 + $0x91] ss:$8 sm:$0x3]  ;;  %v5366_v1 = vmul.f32 %v11412_v63, %v5352_v35 }
 0x8a5   : > { %v11199_v57 = vpop.permute.xlu1 %5413  ;;  %v5377_v40 = vmul.f32 %v5373_v58, %v11412_v63  ;;  %v5387_v2 = vmul.f32 %v5383_v34, %v11402_v52  ;;  %v5388_v38 = vmul.f32 %v5384_v16, %v11412_v63  ;;  %v5325_v18 = vadd.f32 %v5323_v31, %v11177_v53  ;;  %v6756_v34 = vld [vmem:[%s11958_s3 + $0x24] ss:$8 sm:$0x3]  ;;  %v11464_v31 = vld [vmem:[%s11958_s3 + $0x57] ss:$8 sm:$0x3] }
 0x8a6   : > { %v11228_v50 = vpop.permute.xlu2 %5592  ;;  %v5336_v44 = vadd.f32 %v5334_v19, %v11179_v47  ;;  %v5534_v14 = vperm.slane %v6752_v23, 0  ;;  %v5535_v15 = vperm.slane %v6752_v23, 1  ;;  %v11445_v61 = vsel %vm1231_vm15, %v11185_v56, %v11197_v0 }
 0x8a7   : > { %v5367_v47 = vadd.f32 %v5365_v45, %v5313_v17  ;;  %v5378_v16 = vadd.f32 %v5376_v32, %v5324_v25  ;;  %v11458_v19 = vsel %vm1231_vm15, %v11197_v0, %v11199_v57  ;;  %v5368_v58 = vadd.f32 %v5366_v1, %v5314_v22  ;;  %v11473_v25 = vld [vmem:[%s11958_s3 + $0x92] ss:$8 sm:$0x3] }
 0x8a8   : > { %12771 = vst [vmem:[#allocation46_spill] sm:$0xff] %v11458_v19  ;;  %v5379_v12 = vadd.f32 %v5377_v40, %v5325_v18  ;;  %v5389_v35 = vadd.f32 %v5387_v2, %v5335_v30  ;;  %v11468_v49 = vadd.f32 %v5388_v38, %v5336_v44  ;;  %v12772_v0 = vperm.slane %v11312_v9, 0 }
 0x8a9   : > { %v12773_v17 = vperm.slane %v11323_v5, 0  ;;  %v5588_v30 = vperm.slane %v6756_v34, 0  ;;  %v12774_v1 = vperm.slane %v11312_v9, 1  ;;  %v5589_v38 = vperm.slane %v6756_v34, 1 }
 0x8aa   : > { %v5419_v57 = vmul.f32 %v11445_v61, %v12772_v0  ;;  %v12775_v44 = vperm.slane %v11342_v43, 0  ;;  %v5610_v9 = vperm.slane %v11464_v31, 1 }
 0x8ab   : > { %v5430_v45 = vmul.f32 %v12773_v17, %v11445_v61  ;;  %v5420_v40 = vmul.f32 %v11458_v19, %v12774_v1  ;;  %v12777_v1 = vperm.slane %v11342_v43, 1 }
 0x8ac   : > { %v11209_v42 = vpop.permute.xlu0 %5486  ;;  %v5421_v17 = vadd.f32 %v5419_v57, %v5367_v47 }
 0x8ad   : > { %v11211_v26 = vpop.permute.xlu1 %5488  ;;  %v11484_v22 = vsel %vm4427_vm2, %v11195_v11, %v11209_v42  ;;  %v5441_v11 = vmul.f32 %v12775_v44, %v11445_v61  ;;  %v11516_v44 = vmul.f32 %v12777_v1, %v11458_v19  ;;  %v5432_v18 = vadd.f32 %v5430_v45, %v5378_v16 }
 0x8ae   : > { %v11278_v46 = vpop.permute.xlu2 %5646  ;;  %v11494_v2 = vsel %vm4427_vm2, %v11209_v42, %v11211_v26  ;;  %v6760_v42 = vld [vmem:[%s11958_s3 + $0x25] ss:$8 sm:$0x3]  ;;  %v12776_v26 = vperm.slane %v11323_v5, 1 }
 0x8af   : > { %v5495_v54 = vmul.f32 %v11494_v2, %v5466_v27  ;;  %v5642_v1 = vperm.slane %v6760_v42, 0  ;;  %v5643_v16 = vperm.slane %v6760_v42, 1  ;;  %v11557_v42 = vadd.f32 %v5441_v11, %v5389_v35  ;;  %v6772_v11 = vld [vmem:[%s11958_s3 + $0x30] ss:$8 sm:$0x3] }
 0x8b0   : > { %v5431_v34 = vmul.f32 %v12776_v26, %v11458_v19  ;;  %v5422_v26 = vadd.f32 %v5420_v40, %v5368_v58  ;;  %v12779_v58 = vperm.slane %v11366_v28, 1 }
 0x8b2   : > { %v5506_v57 = vmul.f32 %v12779_v58, %v11494_v2  ;;  %v5433_v40 = vadd.f32 %v5431_v34, %v5379_v12 }
 0x8b4   : > { %v11242_v21 = vpop.permute.xlu0 %5540 }
 0x8b5   : > { %v11244_v55 = vpop.permute.xlu1 %5542  ;;  %v11503_v0 = vsel %vm3992_vm1, %v11201_v39, %v11242_v21  ;;  %v5494_v39 = vmul.f32 %v11484_v22, %v5465_v59 }
 0x8b6   : > { %v11397_v41 = vpop.permute.xlu2 %5807  ;;  %v11522_v56 = vsel %vm3992_vm1, %v11242_v21, %v11244_v55  ;;  %v5548_v43 = vmul.f32 %v11503_v0, %v5534_v14  ;;  %v12778_v55 = vperm.slane %v11366_v28, 0 }
 0x8b7   : > { %v5549_v27 = vmul.f32 %v11522_v56, %v5535_v15 }
 0x8b8   : > { %v5505_v47 = vmul.f32 %v12778_v55, %v11484_v22  ;;  %v5497_v55 = vadd.f32 %v5495_v54, %v5422_v26  ;;  %v12780_v54 = vperm.slane %v11429_v60, 1  ;;  %v5508_v26 = vadd.f32 %v5506_v57, %v5433_v40 }
 0x8ba   : > { %v5551_v12 = vadd.f32 %v5549_v27, %v5497_v55  ;;  %v5560_v35 = vmul.f32 %v12780_v54, %v11522_v56  ;;  %v6776_v27 = vld [vmem:[%s11958_s3 + $0x31] ss:$8 sm:$0x3]  ;;  %v5857_v55 = vperm.slane %v6772_v11, 0 }
 0x8bc   : > { %v11290_v4 = vpop.permute.xlu0 %5594 }
 0x8bd   : > { %v11307_v10 = vpop.permute.xlu1 %5596  ;;  %v11528_v5 = vsel %vm4536_vm3, %v11228_v50, %v11290_v4  ;;  %v6761_v50 = vld [vmem:[%s11958_s3 + $0x60] ss:$8 sm:$0x3] }
 0x8be   : > { %v11486_v32 = vpop.permute.xlu2 %5861  ;;  %v11534_v59 = vsel %vm4536_vm3, %v11290_v4, %v11307_v10  ;;  %v5496_v10 = vadd.f32 %v5494_v39, %v5421_v17  ;;  %v5602_v45 = vmul.f32 %v11528_v5, %v5588_v30  ;;  %v6768_v17 = vld [vmem:[%s11958_s3 + $0x27] ss:$8 sm:$0x3]  ;;  %v5663_v28 = vperm.slane %v6761_v50, 0 }
 0x8bf   : > { %v5664_v58 = vperm.slane %v6761_v50, 1  ;;  %v5799_v50 = vperm.slane %v6768_v17, 1  ;;  %v5614_v54 = vmul.f32 %v5610_v9, %v11534_v59 }
 0x8c0   : > { %v5550_v39 = vadd.f32 %v5548_v43, %v5496_v10 }
 0x8c2   : > { %v5604_v43 = vadd.f32 %v5602_v45, %v5550_v39 }
 0x8c5   : > { %v11384_v37 = vpop.permute.xlu0 %5648  ;;  %v11395_v6 = vpop.permute.xlu1 %5650 }
 0x8c6   : > { %v11546_v14 = vsel %vm4591_vm5, %v11278_v46, %v11384_v37  ;;  %v11555_v15 = vsel %vm4591_vm5, %v11384_v37, %v11395_v6  ;;  %v5603_v46 = vmul.f32 %v11534_v59, %v5589_v38  ;;  %v11567_v37 = vld [vmem:[%s11958_s3 + $0x62] ss:$8 sm:$0x3]  ;;  %v5507_v6 = vadd.f32 %v5505_v47, %v5432_v18  ;;  %v5916_v34 = vpop.permute.xlu2 %5915 }
 0x8c7   : > { %v5656_v30 = vmul.f32 %v11546_v14, %v5642_v1  ;;  %v5657_v38 = vmul.f32 %v11555_v15, %v5643_v16  ;;  %v5798_v1 = vperm.slane %v6768_v17, 0  ;;  %v5824_v19 = vperm.slane %v11567_v37, 0 }
 0x8c8   : > { %v5605_v10 = vadd.f32 %v5603_v46, %v5551_v12  ;;  %v5825_v18 = vperm.slane %v11567_v37, 1  ;;  %v12781_v16 = vperm.slane %v11429_v60, 0  ;;  %v5562_v17 = vadd.f32 %v5560_v35, %v5508_v26 }
 0x8c9   : > { %v5658_v45 = vadd.f32 %v5656_v30, %v5604_v43  ;;  %v5911_v43 = vperm.slane %v6776_v27, 0  ;;  %v5668_v9 = vmul.f32 %v5664_v58, %v11555_v15 }
 0x8ca   : > { %v5559_v57 = vmul.f32 %v12781_v16, %v11503_v0  ;;  %v5659_v39 = vadd.f32 %v5657_v38, %v5605_v10  ;;  %v5912_v38 = vperm.slane %v6776_v27, 1  ;;  %v5616_v27 = vadd.f32 %v5614_v54, %v5562_v17 }
 0x8cd   : > { %v11453_v53 = vpop.permute.xlu0 %5809  ;;  %v11466_v23 = vpop.permute.xlu1 %5811 }
 0x8ce   : > { %v11581_v47 = vsel %vm649_vm10, %v11397_v41, %v11453_v53  ;;  %v11592_v40 = vsel %vm649_vm10, %v11453_v53, %v11466_v23  ;;  %v5858_v41 = vperm.slane %v6772_v11, 1  ;;  %v12782_v53 = vperm.slane %v11464_v31, 0 }
 0x8cf   : > { %v5817_v60 = vmul.f32 %v11581_v47, %v5798_v1  ;;  %v5818_v35 = vmul.f32 %v11592_v40, %v5799_v50  ;;  %v5561_v31 = vadd.f32 %v5559_v57, %v5507_v6  ;;  %v5667_v1 = vmul.f32 %v5663_v28, %v11546_v14 }
 0x8d0   : > { %v5613_v23 = vmul.f32 %v12782_v53, %v11528_v5  ;;  %v5717_v50 = vadd.f32 %v11326_v36, %v5659_v39 }
 0x8d2   : > { %v5615_v6 = vadd.f32 %v5613_v23, %v5561_v31  ;;  %v5820_v57 = vadd.f32 %v5818_v35, %v5717_v50  ;;  %v5829_v35 = vmul.f32 %v5825_v18, %v11592_v40  ;;  %v6762_v18 = vld [vmem:[%s11958_s3 + $0x93] ss:$8 sm:$0x3] }
 0x8d4   : > { %v5669_v17 = vadd.f32 %v5667_v1, %v5615_v6  ;;  %v12783_v6 = vperm.slane %v11393_v20, 1 }
 0x8d5   : > { %v5864_v21 = vpop.permute.xlu0 %5863  ;;  %v5866_v4 = vpop.permute.xlu1 %5865 }
 0x8d6   : > { %v11596_v37 = vsel %vm4746_vm7, %v11486_v32, %v5864_v21  ;;  %v11601_v30 = vsel %vm4746_vm7, %v5864_v21, %v5866_v4  ;;  %v6780_v32 = vld [vmem:[%s11958_s3 + $0x32] ss:$8 sm:$0x3]  ;;  %v5716_v21 = vadd.f32 %v11315_v62, %v5658_v45  ;;  %v6777_v62 = vld [vmem:[%s11958_s3 + $0x64] ss:$8 sm:$0x3] }
 0x8d7   : > { %v5871_v4 = vmul.f32 %v11596_v37, %v5857_v55  ;;  %v5872_v10 = vmul.f32 %v11601_v30, %v5858_v41  ;;  %v5965_v45 = vperm.slane %v6780_v32, 0  ;;  %v5966_v36 = vperm.slane %v6780_v32, 1  ;;  %v5970_v55 = vpop.permute.xlu2 %5969 }
 0x8d8   : > { %v5819_v58 = vadd.f32 %v5817_v60, %v5716_v21  ;;  %v5933_v60 = vperm.slane %v6777_v62, 1  ;;  %v5932_v31 = vperm.slane %v6777_v62, 0 }
 0x8d9   : > { %v5874_v54 = vadd.f32 %v5872_v10, %v5820_v57  ;;  %v5621_v57 = vperm.slane %v11473_v25, 1 }
 0x8da   : > { %v5873_v53 = vadd.f32 %v5871_v4, %v5819_v58  ;;  %v5828_v4 = vmul.f32 %v5824_v19, %v11581_v47 }
 0x8dd   : > { %v5918_v46 = vpop.permute.xlu0 %5917  ;;  %v5920_v12 = vpop.permute.xlu1 %5919 }
 0x8de   : > { %v11608_v11 = vsel %vm1041_vm13, %v5916_v34, %v5918_v46  ;;  %v11617_v26 = vsel %vm1041_vm13, %v5918_v46, %v5920_v12  ;;  %v6773_v34 = vld [vmem:[%s11958_s3 + $0x63] ss:$8 sm:$0x3]  ;;  %v5670_v46 = vadd.f32 %v5668_v9, %v5616_v27 }
 0x8df   : > { %v5925_v16 = vmul.f32 %v11608_v11, %v5911_v43  ;;  %v5926_v28 = vmul.f32 %v11617_v26, %v5912_v38  ;;  %v5878_v39 = vperm.slane %v6773_v34, 0  ;;  %v5879_v12 = vperm.slane %v6773_v34, 1  ;;  %v6781_v43 = vld [vmem:[%s11958_s3 + $0x65] ss:$8 sm:$0x3] }
 0x8e0   : > { %v5742_v34 = vadd.f32 %v11372_v13, %v5670_v46  ;;  %v5987_v27 = vperm.slane %v6781_v43, 1  ;;  %v5986_v19 = vperm.slane %v6781_v43, 0  ;;  %v5517_v13 = vmul.f32 %v12783_v6, %v11494_v2 }
 0x8e1   : > { %v5927_v38 = vadd.f32 %v5925_v16, %v5873_v53  ;;  %v5928_v1 = vadd.f32 %v5926_v28, %v5874_v54  ;;  %v5883_v10 = vmul.f32 %v5879_v12, %v11601_v30  ;;  %v5741_v16 = vadd.f32 %v11369_v29, %v5669_v17 }
 0x8e2   : > { %v5831_v28 = vadd.f32 %v5829_v35, %v5742_v34  ;;  %v5444_v29 = vadd.f32 %v11516_v44, %v11468_v49  ;;  %v12784_v46 = vperm.slane %v11393_v20, 0  ;;  %v5936_v53 = vmul.f32 %v5932_v31, %v11608_v11 }
 0x8e3   : > { %v5830_v12 = vadd.f32 %v5828_v4, %v5741_v16  ;;  %v5675_v49 = vperm.slane %v6762_v18, 1  ;;  %v5674_v20 = vperm.slane %v6762_v18, 0  ;;  %v5625_v4 = vmul.f32 %v5621_v57, %v11534_v59  ;;  %v6774_v57 = vld [vmem:[%s11958_s3 + $0x96] ss:$8 sm:$0x3] }
 0x8e4   : > { %v5885_v44 = vadd.f32 %v5883_v10, %v5831_v28  ;;  %v12789_v16 = vperm.slane %v11267_v51, 1 }
 0x8e5   : > { %v5972_v41 = vpop.permute.xlu0 %5971  ;;  %v5974_v21 = vpop.permute.xlu1 %5973  ;;  %v5679_v6 = vmul.f32 %v5675_v49, %v11555_v15 }
 0x8e6   : > { %v11634_v23 = vsel %vm1231_vm15, %v5970_v55, %v5972_v41  ;;  %v11638_v32 = vsel %vm1231_vm15, %v5972_v41, %v5974_v21  ;;  %v11668_v55 = vld [vmem:[%s11958_s3 + $0xc3] ss:$8 sm:$0x3]  ;;  %v12785_v41 = vperm.slane %v11434_v3, 1 }
 0x8e7   : > { %v5979_v9 = vmul.f32 %v11634_v23, %v5965_v45  ;;  %v5980_v50 = vmul.f32 %v11638_v32, %v5966_v36  ;;  %v5882_v45 = vmul.f32 %v5878_v39, %v11596_v37  ;;  %v5937_v36 = vmul.f32 %v5933_v60, %v11617_v26 }
 0x8e8   : > { %v5516_v39 = vmul.f32 %v12784_v46, %v11484_v22  ;;  %v5571_v17 = vmul.f32 %v12785_v41, %v11522_v56  ;;  %v5991_v54 = vmul.f32 %v5987_v27, %v11638_v32  ;;  %v12786_v60 = vperm.slane %v11434_v3, 0  ;;  %v6770_v27 = vld [vmem:[%s11958_s3 + $0x95] ss:$8 sm:$0x3] }
 0x8e9   : > { %v11645_v58 = vadd.f32 %v5979_v9, %v5927_v38  ;;  %v11652_v62 = vadd.f32 %v5980_v50, %v5928_v1  ;;  %v5884_v43 = vadd.f32 %v5882_v45, %v5830_v12  ;;  %v5990_v35 = vmul.f32 %v5986_v19, %v11634_v23 }
 0x8ea   : > { %v5570_v21 = vmul.f32 %v12786_v60, %v11503_v0  ;;  %v5523_v38 = vperm.slane %v11668_v55, 0  ;;  %v5519_v9 = vadd.f32 %v5517_v13, %v5444_v29  ;;  %v5939_v31 = vadd.f32 %v5937_v36, %v5885_v44  ;;  %v6755_v36 = vld [vmem:[%s11958_s3 + $0xc4] ss:$8 sm:$0x3] }
 0x8eb   : > { %6035 = vrot.lane.b32.xlu1 %v11645_v58, %s12750_s30  ;;  %6026 = vrot.lane.b32.xlu2 %v11645_v58, %s12749_s20  ;;  %v12787_v1 = vperm.slane %v11267_v51, 0  ;;  %v5518_v34 = vadd.f32 %v5516_v39, %v11557_v42  ;;  %v12788_v3 = vperm.slane %v11473_v25, 0  ;;  %v5938_v18 = vadd.f32 %v5936_v53, %v5884_v43  ;;  %v12794_v60 = vld [vmem:[#allocation36_spill] sm:$0xff] }
 0x8ec   : > { %6028 = vrot.lane.b32.xlu0 %v11652_v62, %s12749_s20  ;;  %v5345_v45 = vmul.f32 %v12789_v16, %v11348_v7  ;;  %v5573_v19 = vadd.f32 %v5571_v17, %v5519_v9  ;;  %v11700_v13 = vadd.f32 %v5991_v54, %v5939_v31  ;;  %v5678_v25 = vmul.f32 %v5674_v20, %v11546_v14  ;;  %v12793_v17 = vld [vmem:[#allocation56_spill] sm:$0xff]  ;;  %v6778_v54 = vld [vmem:[%s11958_s3 + $0x97] ss:$8 sm:$0x3] }
 0x8ed   : > { %v5344_v50 = vmul.f32 %v12787_v1, %v11335_v8  ;;  %v5624_v10 = vmul.f32 %v12788_v3, %v11528_v5  ;;  %v5524_v8 = vperm.slane %v11668_v55, 1  ;;  %v5572_v42 = vadd.f32 %v5570_v21, %v5518_v34  ;;  %v12795_v20 = vld [vmem:[#allocation39_spill] sm:$0xff]  ;;  %v6782_v3 = vld [vmem:[%s11958_s3 + $0xa0] ss:$8 sm:$0x3] }
 0x8ee   : > { %v11707_v28 = vadd.f32 %v5990_v35, %v5938_v18  ;;  %v12790_v51 = vperm.slane %v11305_v48, 0  ;;  %v5627_v29 = vadd.f32 %v5625_v4, %v5573_v19  ;;  %v5772_v46 = vperm.slane %v11295_v24, 1 }
 0x8ef   : > { %v5836_v39 = vperm.slane %v6770_v27, 1  ;;  %v12791_v12 = vperm.slane %v11305_v48, 1  ;;  %v5626_v41 = vadd.f32 %v5624_v10, %v5572_v42  ;;  %v5835_v44 = vperm.slane %v6770_v27, 0  ;;  %v6759_v48 = vld [vmem:[%s11958_s3 + $0xc5] ss:$8 sm:$0x3] }
 0x8f0   : > { %v5398_v7 = vmul.f32 %v12790_v51, %v11402_v52  ;;  %v12792_v52 = vperm.slane %v11295_v24, 0  ;;  %v5346_v21 = vadd.f32 %v5344_v50, %v12794_v60  ;;  %v5347_v43 = vadd.f32 %v5345_v45, %v12795_v20  ;;  %v12797_v45 = vld [vmem:[#allocation46_spill] sm:$0xff] }
 0x8f1   : > { %v5399_v53 = vmul.f32 %v12791_v12, %v11412_v63  ;;  %v5681_v63 = vadd.f32 %v5679_v6, %v5627_v29  ;;  %v5890_v35 = vperm.slane %v6774_v57, 1  ;;  %v12796_v9 = vperm.slane %v11356_v33, 0 }
 0x8f2   : > { %v11726_v49 = vmul.f32 %v12793_v17, %v12792_v52  ;;  %v5577_v31 = vperm.slane %v6755_v36, 0  ;;  %v5680_v1 = vadd.f32 %v5678_v25, %v5626_v41  ;;  %v5889_v34 = vperm.slane %v6774_v57, 0  ;;  %v12799_v25 = vld [vmem:[#allocation44_spill] sm:$0xff] }
 0x8f3   : > { %6084 = vrot.lane.b32.xlu1 %v11700_v13, %s12749_s20  ;;  %6037 = vrot.lane.b32.xlu2 %v11652_v62, %s12750_s30  ;;  %v5452_v4 = vmul.f32 %v12796_v9, %v11445_v61  ;;  %v5400_v50 = vadd.f32 %v5398_v7, %v5346_v21  ;;  %v5578_v10 = vperm.slane %v6755_v36, 1  ;;  %v5840_v27 = vmul.f32 %v5836_v39, %v11592_v40  ;;  %v6763_v7 = vld [vmem:[%s11958_s3 + $0xc6] ss:$8 sm:$0x3] }
 0x8f4   : > { %6082 = vrot.lane.b32.xlu0 %v11707_v28, %s12749_s20  ;;  %v5944_v18 = vperm.slane %v6778_v54, 1  ;;  %v5401_v16 = vadd.f32 %v5399_v53, %v5347_v43  ;;  %v12798_v19 = vperm.slane %v11356_v33, 1  ;;  %v5839_v42 = vmul.f32 %v5835_v44, %v11581_v47  ;;  %v12800_v36 = vld [vmem:[#allocation40_spill] sm:$0xff] }
 0x8f5   : > { %v5943_v61 = vperm.slane %v6778_v54, 0  ;;  %v5631_v51 = vperm.slane %v6759_v48, 0  ;;  %v5767_v57 = vadd.f32 %v12799_v25, %v5681_v63  ;;  %v5894_v29 = vmul.f32 %v5890_v35, %v11601_v30 }
 0x8f6   : > { %v5453_v6 = vmul.f32 %v12798_v19, %v12797_v45  ;;  %v5998_v12 = vperm.slane %v6782_v3, 1  ;;  %v5454_v41 = vadd.f32 %v5452_v4, %v5400_v50  ;;  %v5766_v39 = vadd.f32 %v12800_v36, %v5680_v1  ;;  %v12804_v19 = vld [vmem:[#allocation41_spill] sm:$0xff] }
 0x8f7   : > { %v5893_v53 = vmul.f32 %v5889_v34, %v11596_v37  ;;  %v5997_v33 = vperm.slane %v6782_v3, 0  ;;  %v5528_v52 = vmul.f32 %v5524_v8, %v11494_v2  ;;  %v5632_v17 = vperm.slane %v6759_v48, 1 }
 0x8f8   : > { %v5842_v44 = vadd.f32 %v5840_v27, %v5767_v57  ;;  %v5948_v54 = vmul.f32 %v5944_v18, %v11617_v26  ;;  %v5455_v60 = vadd.f32 %v5453_v6, %v5401_v16  ;;  %v5527_v21 = vmul.f32 %v5523_v38, %v11484_v22  ;;  %v12801_v38 = vld [vmem:[#allocation38_spill] sm:$0xff] }
 0x8f9   : > { %v5841_v20 = vadd.f32 %v5839_v42, %v5766_v39  ;;  %v5947_v43 = vmul.f32 %v5943_v61, %v11608_v11  ;;  %v5582_v2 = vmul.f32 %v5578_v10, %v11522_v56  ;;  %v5686_v8 = vperm.slane %v6763_v7, 1  ;;  %v12802_v56 = vld [vmem:[#allocation42_spill] sm:$0xff] }
 0x8fa   : > { %v5896_v48 = vadd.f32 %v5894_v29, %v5842_v44  ;;  %v6002_v63 = vmul.f32 %v5998_v12, %v11638_v32  ;;  %v5581_v35 = vmul.f32 %v5577_v31, %v11503_v0  ;;  %v5685_v9 = vperm.slane %v6763_v7, 0  ;;  %v6771_v18 = vld [vmem:[%s11958_s3 + $0xd0] ss:$8 sm:$0x3] }
 0x8fb   : > { %6091 = vrot.lane.b32.xlu1 %v11707_v28, %s12750_s30  ;;  %6044 = vrot.lane.b32.xlu2 %v11645_v58, %s12386_s1  ;;  %v5895_v4 = vadd.f32 %v5893_v53, %v5841_v20  ;;  %v6001_v1 = vmul.f32 %v5997_v33, %v11634_v23  ;;  %v5530_v55 = vadd.f32 %v5528_v52, %v5455_v60  ;;  %v12803_v45 = vperm.slane %v11295_v24, 0  ;;  %v6783_v33 = vld [vmem:[%s11958_s3 + $0xd3] ss:$8 sm:$0x3] }
 0x8fc   : > { %6046 = vrot.lane.b32.xlu0 %v11652_v62, %s12386_s1  ;;  %v5636_v22 = vmul.f32 %v5632_v17, %v11534_v59  ;;  %v5776_v34 = vmul.f32 %v12801_v38, %v5772_v46  ;;  %v5950_v3 = vadd.f32 %v5948_v54, %v5896_v48  ;;  %v5529_v50 = vadd.f32 %v5527_v21, %v5454_v41 }
 0x8fd   : > { %v5635_v27 = vmul.f32 %v5631_v51, %v11528_v5  ;;  %v5778_v10 = vmul.f32 %v12802_v56, %v5772_v46  ;;  %v5949_v0 = vadd.f32 %v5947_v43, %v5895_v4  ;;  %v5584_v31 = vadd.f32 %v5582_v2, %v5530_v55  ;;  %v6775_v5 = vld [vmem:[%s11958_s3 + $0xd1] ss:$8 sm:$0x3] }
 0x8fe   : > { %v5690_v16 = vmul.f32 %v5686_v8, %v11555_v15  ;;  %v5777_v59 = vmul.f32 %v12804_v19, %v12803_v45  ;;  %v11783_v6 = vadd.f32 %v6002_v63, %v5950_v3  ;;  %v5583_v42 = vadd.f32 %v5581_v35, %v5529_v50  ;;  %v6057_v3 = vld [vmem:[%s11957_s2] ss:$4 sm:$0x3] }
 0x8ff   : > { %v5689_v61 = vmul.f32 %v5685_v9, %v11546_v14  ;;  %v11789_v46 = vadd.f32 %v6001_v1, %v5949_v0  ;;  %v5638_v51 = vadd.f32 %v5636_v22, %v5584_v31  ;;  %v5847_v25 = vperm.slane %v6771_v18, 1  ;;  %v6779_v14 = vld [vmem:[%s11958_s3 + $0xd2] ss:$8 sm:$0x3] }
 0x900   : > { %v5637_v24 = vadd.f32 %v5635_v27, %v5583_v42  ;;  %v5786_v15 = vrot.slane %v5776_v34, 2  ;;  %v5787_v57 = vrot.slane %v5778_v10, 2  ;;  %v5846_v29 = vperm.slane %v6771_v18, 0 }
 0x901   : > { %v5692_v12 = vadd.f32 %v5690_v16, %v5638_v51  ;;  %v5783_v41 = vrot.slane %v11726_v49, 2  ;;  %v5784_v7 = vrot.slane %v5777_v59, 2  ;;  %v5901_v36 = vperm.slane %v6775_v5, 1 }
 0x902   : > { %v5691_v39 = vadd.f32 %v5689_v61, %v5637_v24  ;;  %v5900_v53 = vperm.slane %v6775_v5, 0  ;;  %v5851_v52 = vmul.f32 %v5847_v25, %v11592_v40  ;;  %v5955_v17 = vperm.slane %v6779_v14, 1 }
 0x903   : > { %6140 = vrot.lane.b32.xlu1 %v11783_v6, %s12749_s20  ;;  %6093 = vrot.lane.b32.xlu2 %v11700_v13, %s12750_s30  ;;  %v5788_v44 = vsel %vm2675_vm4, %v5786_v15, %v5787_v57  ;;  %v5850_v54 = vmul.f32 %v5846_v29, %v11581_v47  ;;  %v5954_v60 = vperm.slane %v6779_v14, 0  ;;  %v5785_v21 = vsel %vm2675_vm4, %v5783_v41, %v5784_v7 }
 0x904   : > { %6138 = vrot.lane.b32.xlu0 %v11789_v46, %s12749_s20  ;;  %v5792_v20 = vadd.f32 %v5788_v44, %v5692_v12  ;;  %v5905_v49 = vmul.f32 %v5901_v36, %v11601_v30  ;;  %v6009_v43 = vperm.slane %v6783_v33, 1  ;;  %v5791_v2 = vadd.f32 %v5785_v21, %v5691_v39 }
 0x905   : > { %v5904_v8 = vmul.f32 %v5900_v53, %v11596_v37  ;;  %v6008_v48 = vperm.slane %v6783_v33, 0  ;;  %v5959_v35 = vmul.f32 %v5955_v17, %v11617_v26  ;;  %v5958_v40 = vmul.f32 %v5954_v60, %v11608_v11 }
 0x906   : > { %v5853_v63 = vadd.f32 %v5851_v52, %v5792_v20  ;;  %v5852_v47 = vadd.f32 %v5850_v54, %v5791_v2  ;;  %v6013_v9 = vmul.f32 %v6009_v43, %v11638_v32  ;;  %vm6058_vm4 = vcmp.gt.f32.partialorder %v6057_v3, 0.5 }
 0x907   : > { %v6012_v4 = vmul.f32 %v6008_v48, %v11634_v23  ;;  %v7074_v18 = vmov 0   ;;  %v6054_v51 = vstv %s6053_s0  ;;  %s470_s0 = sand.u32 1, %s7035_s26  }
 0x908   : > { %v5907_v30 = vadd.f32 %v5905_v49, %v5853_v63  ;;  %v5906_v37 = vadd.f32 %v5904_v8, %v5852_v47  ;;  %v6059_v0 = vsel %vm6058_vm4, 1, %v7074_v18  ;;  %v6110_v8 = vstv %s6784_s23  ;;  %s6561_s23 = sshll.u32 %s470_s0, 3  ;;  %s6446_s17 = scalar_lea.sflag [#allocation6], %s470_s0 }
 0x909   : > { %v6061_v45 = vperm.slane %v6059_v0, 1  ;;  %v6060_v61 = vperm.slane %v6059_v0, 0  ;;  %s472_s27 = scalar_lea.vmem [#allocation11], %s6561_s23 }
 0x90a   : > { %v5961_v1 = vadd.f32 %v5959_v35, %v5907_v30  ;;  %v5960_v26 = vadd.f32 %v5958_v40, %v5906_v37 }
 0x90b   : > { %6147 = vrot.lane.b32.xlu1 %v11789_v46, %s12750_s30  ;;  %6100 = vrot.lane.b32.xlu2 %v11707_v28, %s12386_s1  ;;  %vm6063_vm6 = vcmp.eq.s32.totalorder %v6061_v45, 1  ;;  %vm6062_vm10 = vcmp.eq.s32.totalorder %v6060_v61, 1 }
 0x90c   : > { %6102 = vrot.lane.b32.xlu0 %v11700_v13, %s12386_s1  ;;  %v11820_v55 = vadd.f32 %v6013_v9, %v5961_v1  ;;  %v11822_v22 = vadd.f32 %v6012_v4, %v5960_v26 }
 0x913   : > { %6196 = vrot.lane.b32.xlu1 %v11820_v55, %s12749_s20  ;;  %6149 = vrot.lane.b32.xlu2 %v11783_v6, %s12750_s30 }
 0x914   : > { %6194 = vrot.lane.b32.xlu0 %v11822_v22, %s12749_s20 }
 0x91b   : > { %6203 = vrot.lane.b32.xlu1 %v11822_v22, %s12750_s30  ;;  %6156 = vrot.lane.b32.xlu2 %v11789_v46, %s12386_s1 }
 0x91c   : > { %6158 = vrot.lane.b32.xlu0 %v11783_v6, %s12386_s1 }
 0x923   : > { %6214 = vrot.lane.b32.xlu1 %v11820_v55, %s12386_s1  ;;  %6205 = vrot.lane.b32.xlu2 %v11820_v55, %s12750_s30 }
 0x924   : > { %6212 = vrot.lane.b32.xlu0 %v11822_v22, %s12386_s1 }
 0x945   : > { %v6027_v11 = vpop.permute.xlu2 %6026 }
 0x94d   : > { %v6038_v23 = vpop.permute.xlu2 %6037 }
 0x955   : > { %v6045_v34 = vpop.permute.xlu2 %6044 }
 0x95d   : > { %v6036_v32 = vpop.permute.xlu1 %6035  ;;  %v6094_v16 = vpop.permute.xlu2 %6093 }
 0x95e   : > { %v6029_v38 = vpop.permute.xlu0 %6028  ;;  %v6039_v19 = vsel %vm750_vm11, %v6036_v32, %v6038_v23 }
 0x95f   : > { %v6030_v56 = vsel %vm543_vm8, %v6027_v11, %v6029_v38  ;;  %v6034_v10 = vadd.f32 %v6029_v38, %v11652_v62 }
 0x960   : > { %v6033_v31 = vadd.f32 %v6030_v56, %v11645_v58  ;;  %v6113_v58 = vld [vmem:[%s11957_s2] ss:$4 sm:$0x3] }
 0x961   : > { %v6043_v59 = vadd.f32 %v6038_v23, %v6034_v10  ;;  %vm6114_vm13 = vcmp.gt.f32.partialorder %v6113_v58, 0.5  ;;  %v6222_v58 = vstv %s11873_s15  ;;  %s6458_s15 = sshll.u32 %s472_s27, 4  ;;  %s6459_s15 = int_to_ptr.vmem [resolvable:$true] %s6458_s15 }
 0x962   : > { %v6042_v5 = vadd.f32 %v6039_v19, %v6033_v31  ;;  %v6115_v17 = vsel %vm6114_vm13, 1, %v7074_v18 }
 0x963   : > { %v6117_v60 = vperm.slane %v6115_v17, 1  ;;  %v6116_v49 = vperm.slane %v6115_v17, 0 }
 0x965   : > { %v6085_v50 = vpop.permute.xlu1 %6084  ;;  %v6101_v12 = vpop.permute.xlu2 %6100  ;;  %vm6119_vm15 = vcmp.eq.s32.totalorder %v6117_v60, 1  ;;  %vm6118_vm12 = vcmp.eq.s32.totalorder %v6116_v49, 1  ;;  %v6244_v49 = vld [vmem:[%s11961_s6 + $0x8] sm:$0xff] }
 0x966   : > { %v6083_v27 = vpop.permute.xlu0 %6082  ;;  %v6090_v52 = vadd.f32 %v6085_v50, %v11700_v13 }
 0x967   : > { %v6086_v33 = vsel %vm543_vm8, %v6083_v27, %v6085_v50 }
 0x968   : > { %v6089_v54 = vadd.f32 %v6086_v33, %v11707_v28  ;;  %v6099_v21 = vadd.f32 %v6094_v16, %v6090_v52  ;;  %v6169_v28 = vld [vmem:[%s11957_s2] ss:$4 sm:$0x3] }
 0x969   : > { %vm6170_vm14 = vcmp.gt.f32.partialorder %v6169_v28, 0.5 }
 0x96a   : > { %v6171_v38 = vsel %vm6170_vm14, 1, %v7074_v18 }
 0x96b   : > { %v6173_v27 = vperm.slane %v6171_v38, 1  ;;  %v6172_v0 = vperm.slane %v6171_v38, 0 }
 0x96d   : > { %v6092_v42 = vpop.permute.xlu1 %6091  ;;  %v6150_v2 = vpop.permute.xlu2 %6149  ;;  %vm6175_vm2 = vcmp.eq.s32.totalorder %v6173_v27, 1  ;;  %vm6174_vm3 = vcmp.eq.s32.totalorder %v6172_v0, 1  ;;  %v6890_v27 = vld [vmem:[%s11959_s4] ss:$0 sm:$0xff]  ;;  %v6891_v0 = vld [vmem:[%s11959_s4 + $0x1] ss:$0 sm:$0xff] }
 0x96e   : > { %v6047_v25 = vpop.permute.xlu0 %6046  ;;  %v6095_v44 = vsel %vm750_vm11, %v6092_v42, %v6094_v16  ;;  %v6166_v16 = vstv %s6785_s24 }
 0x96f   : > { %v6048_v24 = vsel %vm839_vm9, %v6045_v34, %v6047_v25  ;;  %v6052_v15 = vadd.f32 %v6047_v25, %v6043_v59  ;;  %v6098_v43 = vadd.f32 %v6095_v44, %v6089_v54  ;;  %v6225_v34 = vld [vmem:[%s11957_s2] ss:$4 sm:$0x3] }
 0x970   : > { %v6051_v62 = vadd.f32 %v6048_v24, %v6042_v5  ;;  %vm6226_vm0 = vcmp.gt.f32.partialorder %v6225_v34, 0.5 }
 0x971   : > { %v6056_v57 = vadd.f32 %v6054_v51, %v6052_v15 }
 0x972   : > { %v6055_v29 = vadd.f32 %v6054_v51, %v6051_v62 }
 0x973   : > { %v6065_v14 = vsel %vm6063_vm6, %v6056_v57, -3e+38 }
 0x974   : > { %v6064_v41 = vsel %vm6062_vm10, %v6055_v29, -3e+38  ;;  %v6066_v7 = vsel %vm839_vm9, %v6065_v14, -inf }
 0x975   : > { %v6141_v36 = vpop.permute.xlu1 %6140  ;;  %v6067_v39 = vmax.f32 %v6064_v41, %v6066_v7  ;;  %v6157_v11 = vpop.permute.xlu2 %6156 }
 0x976   : > { %v6139_v53 = vpop.permute.xlu0 %6138  ;;  %v6146_v32 = vadd.f32 %v6141_v36, %v11783_v6 }
 0x977   : > { %6068 = vmax.xlane.f32.xlu2 %v6067_v39  ;;  %v6142_v23 = vsel %vm543_vm8, %v6139_v53, %v6141_v36 }
 0x978   : > { %v6145_v50 = vadd.f32 %v6142_v23, %v11789_v46  ;;  %v6155_v56 = vadd.f32 %v6150_v2, %v6146_v32  ;;  %v6227_v46 = vsel %vm6226_vm0, 1, %v7074_v18 }
 0x979   : > { %v6229_v62 = vperm.slane %v6227_v46, 1  ;;  %v6228_v18 = vperm.slane %v6227_v46, 0 }
 0x97d   : > { %v6148_v20 = vpop.permute.xlu1 %6147  ;;  %v6206_v51 = vpop.permute.xlu2 %6205 }
 0x97e   : > { %v6103_v48 = vpop.permute.xlu0 %6102  ;;  %v6151_v3 = vsel %vm750_vm11, %v6148_v20, %v6150_v2  ;;  %v6245_v20 = vld [vmem:[%s11961_s6 + $0x10] sm:$0xff] }
 0x97f   : > { %v6104_v63 = vsel %vm839_vm9, %v6101_v12, %v6103_v48  ;;  %v6108_v35 = vadd.f32 %v6103_v48, %v6099_v21  ;;  %v6154_v31 = vadd.f32 %v6151_v3, %v6145_v50  ;;  %v6246_v21 = vld [vmem:[%s11961_s6 + $0x18] sm:$0xff]  ;;  %v6268_v2 = vand.u32 4294901760, %v6245_v20  ;;  %v6243_v48 = vld [vmem:[%s11961_s6] sm:$0xff] }
 0x980   : > { %v6107_v47 = vadd.f32 %v6104_v63, %v6098_v43  ;;  %v6266_v43 = vand.u32 4294901760, %v6246_v21  ;;  %v6272_v63 = vand.u32 4294901760, %v6243_v48 }
 0x981   : > { %v6112_v13 = vadd.f32 %v6110_v8, %v6108_v35 }
 0x982   : > { %v6111_v40 = vadd.f32 %v6110_v8, %v6107_v47  ;;  %v6270_v8 = vand.u32 4294901760, %v6244_v49  ;;  %v6296_v35 = vsub.f32 %v6246_v21, %v6266_v43  ;;  %v6302_v47 = vsub.f32 %v6245_v20, %v6268_v2  ;;  %6367 = vmatpush.msra.mxu3 %v6266_v43  ;;  %6267 = vmatpush.msra.mxu0 %v6266_v43  ;;  %v6441_v20 = vld [vmem:[%s11964_s9] sm:$0xff] }
 0x983   : > { %v6121_v30 = vsel %vm6119_vm15, %v6112_v13, -3e+38 }
 0x984   : > { %v6120_v9 = vsel %vm6118_vm12, %v6111_v40, -3e+38  ;;  %v6122_v37 = vsel %vm839_vm9, %v6121_v30, -inf  ;;  %v6308_v13 = vsub.f32 %v6244_v49, %v6270_v8  ;;  %v6314_v40 = vsub.f32 %v6243_v48, %v6272_v63  ;;  %6338 = vmatpush.msra.mxu2 %v6296_v35  ;;  %6369 = vmatpush.msra.mxu3 %v6268_v2 }
 0x985   : > { %v6197_v4 = vpop.permute.xlu1 %6196  ;;  %v6123_v1 = vmax.f32 %v6120_v9, %v6122_v37  ;;  %v6297_v30 = vand.u32 4294901760, %v6296_v35  ;;  %v6303_v28 = vand.u32 4294901760, %v6302_v47  ;;  %6269 = vmatpush.msra.mxu0 %v6268_v2 }
 0x986   : > { %v6195_v26 = vpop.permute.xlu0 %6194  ;;  %v6202_v59 = vadd.f32 %v6197_v4, %v11820_v55  ;;  %v6309_v9 = vand.u32 4294901760, %v6308_v13  ;;  %v6315_v37 = vand.u32 4294901760, %v6314_v40  ;;  %6341 = vmatpush.msra.mxu2 %v6302_v47  ;;  %6371 = vmatpush.msra.mxu3 %v6270_v8 }
 0x987   : > { %6124 = vmax.xlane.f32.xlu0 %v6123_v1  ;;  %v6198_v61 = vsel %vm543_vm8, %v6195_v26, %v6197_v4  ;;  %vm6231_vm8 = vcmp.eq.s32.totalorder %v6229_v62, 1  ;;  %v6298_v4 = vsub.f32 %v6296_v35, %v6297_v30  ;;  %v6304_v1 = vsub.f32 %v6302_v47, %v6303_v28  ;;  %6271 = vmatpush.msra.mxu0 %v6270_v8 }
 0x988   : > { %v6201_v57 = vadd.f32 %v6198_v61, %v11822_v22  ;;  %v6211_v29 = vadd.f32 %v6206_v51, %v6202_v59  ;;  %v6310_v26 = vsub.f32 %v6308_v13, %v6309_v9  ;;  %v6316_v32 = vsub.f32 %v6314_v40, %v6315_v37  ;;  %6344 = vmatpush.msra.mxu2 %v6308_v13  ;;  %v6893_v61 = vld [vmem:[%s11959_s4 + $0x3] ss:$0 sm:$0xff] }
 0x989   : > { %v6305_v23 = vand.u32 4294901760, %v6304_v1  ;;  %6373 = vmatpush.msra.mxu3 %v6272_v63  ;;  %6273 = vmatpush.msra.mxu0 %v6272_v63 }
 0x98a   : > { %v6311_v38 = vand.u32 4294901760, %v6310_v26  ;;  %6347 = vmatpush.msra.mxu2 %v6314_v40  ;;  %v6317_v3 = vand.u32 4294901760, %v6316_v32 }
 0x98b   : > { %6396 = vmatpush.msrb.mxu0 %v6297_v30 }
 0x98d   : > { %v6204_v10 = vpop.permute.xlu1 %6203  ;;  %6400 = vmatpush.msrb.mxu0 %v6303_v28 }
 0x98e   : > { %v6159_v6 = vpop.permute.xlu0 %6158  ;;  %v6207_v15 = vsel %vm750_vm11, %v6204_v10, %v6206_v51  ;;  %vm6230_vm11 = vcmp.eq.s32.totalorder %v6228_v18, 1 }
 0x98f   : > { %v6160_v45 = vsel %vm839_vm9, %v6157_v11, %v6159_v6  ;;  %v6164_v19 = vadd.f32 %v6159_v6, %v6155_v56  ;;  %v6210_v7 = vadd.f32 %v6207_v15, %v6201_v57  ;;  %v6299_v11 = vand.u32 4294901760, %v6298_v4  ;;  %6404 = vmatpush.msrb.mxu0 %v6309_v9 }
 0x990   : > { %v6163_v42 = vadd.f32 %v6160_v45, %v6154_v31  ;;  %v6892_v45 = vld [vmem:[%s11959_s4 + $0x2] ss:$0 sm:$0xff] }
 0x991   : > { %v6168_v5 = vadd.f32 %v6166_v16, %v6164_v19  ;;  %6300 = vmatpush.msra.mxu1 %v6299_v11  ;;  %6408 = vmatpush.msrb.mxu0 %v6315_v37 }
 0x992   : > { %v6167_v25 = vadd.f32 %v6166_v16, %v6163_v42  ;;  %v6889_v16 = vld [vmem:[%s11960_s5] ss:$0 sm:$0xff] }
 0x993   : > { %v6177_v24 = vsel %vm6175_vm2, %v6168_v5, -3e+38  ;;  %6306 = vmatpush.msra.mxu1 %v6305_v23 }
 0x994   : > { %v6176_v14 = vsel %vm6174_vm3, %v6167_v25, -3e+38  ;;  %v6178_v55 = vsel %vm839_vm9, %v6177_v24, -inf }
 0x995   : > { %v6215_v12 = vpop.permute.xlu1 %6214  ;;  %v6179_v41 = vmax.f32 %v6176_v14, %v6178_v55  ;;  %6312 = vmatpush.msra.mxu1 %v6311_v38 }
 0x996   : > { %v6213_v36 = vpop.permute.xlu0 %6212  ;;  %v6220_v39 = vadd.f32 %v6215_v12, %v6211_v29 }
 0x997   : > { %v6216_v53 = vsel %vm839_vm9, %v6213_v36, %v6215_v12  ;;  %6180 = vmax.xlane.f32.xlu1 %v6179_v41  ;;  %6318 = vmatpush.msra.mxu1 %v6317_v3  ;;  %v6894_v41 = vld [vmem:[%s11962_s7] ss:$0 sm:$0xff] }
 0x998   : > { %v6219_v33 = vadd.f32 %v6216_v53, %v6210_v7  ;;  %v6224_v52 = vadd.f32 %v6222_v58, %v6220_v39 }
 0x999   : > { %6427 = vmatpush.msrb.mxu1 %v6266_v43 }
 0x99a   : > { %v6223_v17 = vadd.f32 %v6222_v58, %v6219_v33  ;;  %v6233_v22 = vsel %vm6231_vm8, %v6224_v52, -3e+38 }
 0x99b   : > { %v6234_v44 = vsel %vm839_vm9, %v6233_v22, -inf  ;;  %6429 = vmatpush.msrb.mxu1 %v6268_v2 }
 0x99c   : > { %v6232_v54 = vsel %vm6230_vm11, %v6223_v17, -3e+38 }
 0x99d   : > { %v6235_v60 = vmax.f32 %v6232_v54, %v6234_v44  ;;  %6431 = vmatpush.msrb.mxu1 %v6270_v8 }
 0x99f   : > { %6236 = vmax.xlane.f32.xlu2 %v6235_v60  ;;  %6433 = vmatpush.msrb.mxu1 %v6272_v63  ;;  %v6439_v60 = vld [vmem:[%s11963_s8] sm:$0xff] }
 0x9ea   : > { %v6069_v34 = vpop.xlane.xlu2 %6068 }
 0x9eb   : > { %v6070_v56 = vmax.f32 %v6069_v34, 0.0 }
 0x9ed   : > { %v6073_v6 = vmul.f32 %v6890_v27, %v6070_v56 }
 0x9ef   : > { %v6074_v42 = vadd.f32 %v6889_v16, %v6073_v6 }
 0x9fa   : > { %v6125_v50 = vpop.xlane.xlu0 %6124 }
 0x9fb   : > { %v6126_v31 = vmax.f32 %v6125_v50, 0.0 }
 0x9fd   : > { %v6129_v59 = vmul.f32 %v6891_v0, %v6126_v31 }
 0x9ff   : > { %v6130_v51 = vadd.f32 %v6129_v59, %v6074_v42 }
 0xa0a   : > { %v6181_v10 = vpop.xlane.xlu1 %6180 }
 0xa0b   : > { %v6182_v19 = vmax.f32 %v6181_v10, 0.0 }
 0xa0d   : > { %v6185_v46 = vmul.f32 %v6892_v45, %v6182_v19 }
 0xa0f   : > { %v6186_v24 = vadd.f32 %v6185_v46, %v6130_v51 }
 0xa12   : > { %v6237_v5 = vpop.xlane.xlu2 %6236 }
 0xa13   : > { %v6238_v25 = vmax.f32 %v6237_v5, 0.0 }
 0xa15   : > { %v6241_v15 = vmul.f32 %v6893_v61, %v6238_v25 }
 0xa17   : > { %v6242_v62 = vadd.f32 %v6241_v15, %v6186_v24 }
 0xa19   : > { %v6252_v57 = vsel %vm3992_vm1, %v6242_v62, 0 }
 0xa1a   : > { %v6274_v29 = vand.u32 4294901760, %v6252_v57 }
 0xa1c   : > { %6320 = vmatmul.f32.vlgmr.msra.gmra.mxu1 %v6274_v29  ;;  %v6275_v14 = vsub.f32 %v6252_v57, %v6274_v29 }
 0xa1e   : > { %6350 = vmatmul.f32.vlgmr.msra.gmra.mxu2 %v6275_v14  ;;  %v6276_v55 = vand.u32 4294901760, %v6275_v14 }
 0xa20   : > { %6377 = vmatmul.f32.vlgmr.msra.gmra.mxu3 %v6276_v55  ;;  %v6277_v58 = vsub.f32 %v6275_v14, %v6276_v55 }
 0xa22   : > { %v6278_v12 = vand.u32 4294901760, %v6277_v58 }
 0xa24   : > { %6279 = vmatmul.f32.vlgmr.msra.gmra.mxu0 %v6278_v12  ;;  %6435 = vmatmul.f32.vlgmr.msrb.gmra.mxu1 %v6274_v29 }
 0xa2c   : > { %6410 = vmatmul.f32.vlgmr.msrb.gmra.mxu0 %v6274_v29 }
 0xa99   : > { %v6321_v18 = vpop.f32.mrf.mxu1 }
 0xaa1   : > { %v6280_v7 = vpop.f32.mrf.mxu0  ;;  %v6351_v53 = vpop.f32.mrf.mxu2 }
 0xaa2   : > { %v6281_v36 = vadd.f32 %v6894_v41, %v6280_v7  ;;  %v6436_v54 = vpop.f32.mrf.mxu1 }
 0xaa3   : > { %v6378_v52 = vpop.f32.mrf.mxu3 }
 0xaa4   : > { %v6322_v39 = vadd.f32 %v6321_v18, %v6281_v36 }
 0xaa6   : > { %v6352_v33 = vadd.f32 %v6351_v53, %v6322_v39 }
 0xaa8   : > { %v6379_v17 = vadd.f32 %v6378_v52, %v6352_v33 }
 0xaa9   : > { %v6411_v22 = vpop.f32.mrf.mxu0 }
 0xaaa   : > { %v6412_v44 = vadd.f32 %v6411_v22, %v6379_v17 }
 0xaac   : > { %v6437_v21 = vadd.f32 %v6436_v54, %v6412_v44 }
 0xaae   : > { %v6440_v49 = vmul.f32 %v6439_v60, %v6437_v21 }
 0xab0   : > { %v6442_v43 = vadd.f32 %v6441_v20, %v6440_v49 }
 0xab2   : > { %6895 = vtanh.f32 %v6442_v43 }
 0xab8   : > { %v6896_v2 = vpop.eup %6895 }
 0xab9   : > { %6444 = vst.msk [vmem:[%s472_s27] sm:$0xff] %vm3992_vm1, %v6896_v2 }
 0xaba   : > { %7000 = shalt.err (!%p6997_p8)
}
 0xabb   : > { %6804 = dma.vmem_to_hbm [thread:$0]  (%p7183_p5), %s6459_s15, 128, %s6461_s21, %s6446_s17  }
 0xabc PF: > { %p6826_p9 = scmp.ge.s32.totalorder %s7043_s28, 2  ;;  %s6472_s0 = sand.u32 1, %s7031_s25  }
 0xabd   : > { %s6473_s23 = scalar_lea.sflag [#allocation6], %s6472_s0 }
 0xabe   : > { %p6817_p10 = pnand %p6826_p9, %p7187_p6 }
 0xac0   : > { %p6818_p11 = pneg %p6817_p10 }
 0xac2   : > { %7026 = dma.done.wait (%p6818_p11), %s6473_s23, 128  }
 0xac3   : > { %7028 = vsyncadd (%p6818_p11), %s6473_s23, 4294967168  ;;  %s12805_s28 = sld [smem:[#allocation16_spill]]  ;;  %s12808_s25 = smov %s7035_s26 }
 0xac4   : > { %s12806_s16 = sld [smem:[#allocation15_spill]] }
 0xac5   : > { %s12807_s27 = sld [smem:[#allocation17_spill]] }
 0xac9   : > { %p25_p12 = scmp.ge.s32.totalorder %s12805_s28, 4  }
 0xaca   : > { %s12809_s26 = smov %s12806_s16 }
 0xacb   :  { %27 = sbr.rel (!%p25_p12) target bundleno = 11 (0xb), region = 238 }
 0xad0   :  { %6479 = vsyncpa [#allocation6], 1 }
 0xad1   :  { %6481 = vsyncpa [#allocation6 + $0x1], 1 }
 0xad2   :  { %6482 = vsyncpa [#allocation7], 1 }
 0xad3   :  { %6484 = vsyncpa [#allocation7 + $0x1], 1 }
 0xad4   :  { %6485 = vsyncpa [#allocation9], 1 }

</bundles_post_ra>
